<compile_context>
chip_gen: v5e
topology: v5e:2x2
jax: 0.10.0
libtpu: 0.0.40
codegen_flags: <defaults>
</compile_context>

<pallas_src>
import functools

import jax
import jax.numpy as jnp
from jax.experimental import pallas as pl
from jax.experimental.pallas import tpu as pltpu

IN_DIM = 32 * 32 * 3   # 3072
HID = 512
OUT_DIM = 10
OUT_PAD = 128          # lane-dense padded logits width (sliced back to 10 outside)


def _round_up(n, m):
    return ((n + m - 1) // m) * m


def _pick_tb(b8, batch_tile):
    """Pick a batch tile (multiple of 8) for a padded batch of b8 rows.

    Goals:
      * tb <= batch_tile
      * when b8 > 128, keep at least 2 grid steps so a 2-TensorCore chip (v7x)
        can shard the batch across cores via dimension_semantics=("parallel",)
      * minimize tail padding (avoid DMA/MXU work on a mostly-garbage extra tile)
      * keep tb >= 64 where possible so fc1/fc2 stay MXU-shaped
    """
    cap = min(batch_tile, b8)
    if b8 > 128:
        cap = min(cap, max(128, _round_up(b8 // 2, 8)))
    if cap <= 64:
        return cap
    best_tb = cap
    best_waste = _round_up(b8, cap) - b8
    tb = cap - 8
    while tb >= 64 and best_waste > 0:
        waste = _round_up(b8, tb) - b8
        if waste < best_waste:
            best_tb, best_waste = tb, waste
        tb -= 8
    return best_tb


def _mlp_kernel(x_ref, w1_ref, b1_ref, w2_ref, b2_ref, w3_ref, b3_ref,
                o_ref, h1_ref, h2_ref):
    """Fused 3-layer MLP forward on one batch tile.

    x_ref : [TB, 3072] f32 activation tile (cast to bf16 in-kernel)
    w*_ref: [in, out]  bf16 weights (pre-transposed, single-buffered resident blocks)
    b*_ref: [1, out]   f32 biases (broadcast over batch)
    o_ref : [TB, 128]  f32 padded logits tile (cols 10..127 are zero-weight lanes)
    h1_ref, h2_ref: [TB, 512] bf16 VMEM scratch for hidden activations
    """
    # fc1 + ReLU  (bf16 x bf16 -> f32 accumulate on MXU); x cast fused here.
    x_bf16 = x_ref[...].astype(jnp.bfloat16)
    h1 = jnp.dot(x_bf16, w1_ref[...], preferred_element_type=jnp.float32)
    h1 = jnp.maximum(h1 + b1_ref[...], 0.0)
    h1_ref[...] = h1.astype(h1_ref.dtype)
    # dropout(p=0.5) -> identity in eval mode

    # fc2 + ReLU
    h2 = jnp.dot(h1_ref[...], w2_ref[...], preferred_element_type=jnp.float32)
    h2 = jnp.maximum(h2 + b2_ref[...], 0.0)
    h2_ref[...] = h2.astype(h2_ref.dtype)
    # dropout(p=0.5) -> identity in eval mode

    # fc3 (logits, no activation; output columns zero-padded to 128 lanes)
    out = jnp.dot(h2_ref[...], w3_ref[...], preferred_element_type=jnp.float32)
    o_ref[...] = (out + b3_ref[...]).astype(o_ref.dtype)


def prepare_params(params):
    """One-time parameter prep (hoisted out of the per-call forward):
    bf16 weight cast + fc3 weight/bias padding to a lane-dense 128-wide block."""
    w1, b1, w2, b2, w3, b3 = params
    w1 = jnp.asarray(w1, jnp.bfloat16)
    w2 = jnp.asarray(w2, jnp.bfloat16)
    w3p = jnp.pad(jnp.asarray(w3, jnp.bfloat16), ((0, 0), (0, OUT_PAD - OUT_DIM)))
    b1 = jnp.asarray(b1, jnp.float32).reshape(1, HID)
    b2 = jnp.asarray(b2, jnp.float32).reshape(1, HID)
    b3p = jnp.pad(jnp.asarray(b3, jnp.float32).reshape(1, OUT_DIM),
                  ((0, 0), (0, OUT_PAD - OUT_DIM)))
    return (w1, b1, w2, b2, w3p, b3p)


@functools.partial(jax.jit, static_argnames=("batch_tile",))
def simple_dense_nn_forward(x_nchw, prepared, batch_tile=256):
    """x_nchw: [B, 3, 32, 32] float32 -> logits [B, 10] float32.

    `prepared` comes from prepare_params() (bf16 weights, padded fc3). The kernel
    reads x in f32 and does the bf16 cast internally, so there is no extra
    activation pre-pass over HBM.
    """
    w1, b1, w2, b2, w3p, b3p = prepared
    B = x_nchw.shape[0]

    # Flatten exactly like torch's x.view(-1, 32*32*3) (row-major over C,H,W).
    x = x_nchw.reshape(B, IN_DIM)

    b8 = _round_up(B, 8)
    tb = _pick_tb(b8, batch_tile)
    bp = _round_up(b8, tb)
    if bp != B:
        x = jnp.pad(x, ((0, bp - B), (0, 0)))   # at most tb-8 junk rows by construction

    grid = (bp // tb,)
    const = lambda i: (0, 0)
    single = pl.Buffered(1)   # constant-index blocks: no double-buffer (VMEM headroom)

    logits_p = pl.pallas_call(
        _mlp_kernel,
        out_shape=jax.ShapeDtypeStruct((bp, OUT_PAD), jnp.float32),
        grid_spec=pltpu.PrefetchScalarGridSpec(
            num_scalar_prefetch=0,
            grid=grid,
            in_specs=[
                pl.BlockSpec((tb, IN_DIM), lambda i: (i, 0)),               # x tile (f32)
                pl.BlockSpec((IN_DIM, HID), const, pipeline_mode=single),   # W1^T
                pl.BlockSpec((1, HID), const, pipeline_mode=single),        # b1
                pl.BlockSpec((HID, HID), const, pipeline_mode=single),      # W2^T
                pl.BlockSpec((1, HID), const, pipeline_mode=single),        # b2
                pl.BlockSpec((HID, OUT_PAD), const, pipeline_mode=single),  # W3^T (padded)
                pl.BlockSpec((1, OUT_PAD), const, pipeline_mode=single),    # b3   (padded)
            ],
            out_specs=pl.BlockSpec((tb, OUT_PAD), lambda i: (i, 0)),
            scratch_shapes=[
                pltpu.VMEM((tb, HID), jnp.bfloat16),  # h1
                pltpu.VMEM((tb, HID), jnp.bfloat16),  # h2
            ],
        ),
        compiler_params=pltpu.CompilerParams(
            dimension_semantics=("parallel",),
            vmem_limit_bytes=48 << 20,   # ~11 MiB actual footprint; safely under v7x's 64 MiB
        ),
    )(x, w1, b1, w2, b2, w3p, b3p)

    return logits_p[:B, :OUT_DIM]


def init_params(key):
    """Deterministic init matching nn.Linear default (U(-1/sqrt(fan_in), +1/sqrt(fan_in))).

    Weights are stored pre-transposed as [in_features, out_features], f32.
    """
    ks = jax.random.split(key, 6)

    def linear(kw, kb, fan_in, fan_out):
        bound = 1.0 / jnp.sqrt(jnp.float32(fan_in))
        w = jax.random.uniform(kw, (fan_in, fan_out), jnp.float32, -bound, bound)
        b = jax.random.uniform(kb, (1, fan_out), jnp.float32, -bound, bound)
        return w, b

    w1, b1 = linear(ks[0], ks[1], IN_DIM, HID)
    w2, b2 = linear(ks[2], ks[3], HID, HID)
    w3, b3 = linear(ks[4], ks[5], HID, OUT_DIM)
    return (w1, b1, w2, b2, w3, b3)


def _reference_forward(x_nchw, params):
    """Reference with the same bf16 rounding of activations/weights, f32 math."""
    w1, b1, w2, b2, w3, b3 = params
    f32 = jnp.float32
    x = x_nchw.reshape(x_nchw.shape[0], IN_DIM).astype(jnp.bfloat16).astype(f32)
    w1 = w1.astype(jnp.bfloat16).astype(f32)
    w2 = w2.astype(jnp.bfloat16).astype(f32)
    w3 = w3.astype(jnp.bfloat16).astype(f32)
    h1 = jnp.maximum(x @ w1 + b1, 0.0).astype(jnp.bfloat16).astype(f32)
    h2 = jnp.maximum(h1 @ w2 + b2, 0.0).astype(jnp.bfloat16).astype(f32)
    return h2 @ w3 + b3


if __name__ == "__main__":
    key = jax.random.PRNGKey(0)
    k_x, k_x2, k_x3, k_p = jax.random.split(key, 4)
    params = init_params(k_p)
    prepared = prepare_params(params)   # one-time bf16 cast + fc3 pad (hoisted)

    # Small CIFAR-10-shaped batch: [B=2, C=3, H=32, W=32] (NCHW, as in PyTorch).
    x_small = jax.random.normal(k_x, (2, 3, 32, 32), dtype=jnp.float32)
    logits_small = jax.block_until_ready(simple_dense_nn_forward(x_small, prepared))
    ref_small = _reference_forward(x_small, params)
    assert logits_small.shape == (2, 10), logits_small.shape
    assert jnp.allclose(logits_small, ref_small, atol=1e-2, rtol=1e-2), "mismatch (B=2)"

    # Larger batch: tb=256, grid=(2,) -> multi-step parallel grid (2 TCs on v7x).
    x_big = jax.random.normal(k_x2, (512, 3, 32, 32), dtype=jnp.float32)
    logits_big = jax.block_until_ready(simple_dense_nn_forward(x_big, prepared))
    ref_big = _reference_forward(x_big, params)
    assert logits_big.shape == (512, 10), logits_big.shape
    assert jnp.allclose(logits_big, ref_big, atol=1e-2, rtol=1e-2), "mismatch (B=512)"

    # Ragged batch: exercises the padding-minimizing tile selection (tb=72, grid=(2,)).
    x_rag = jax.random.normal(k_x3, (130, 3, 32, 32), dtype=jnp.float32)
    logits_rag = jax.block_until_ready(simple_dense_nn_forward(x_rag, prepared))
    ref_rag = _reference_forward(x_rag, params)
    assert logits_rag.shape == (130, 10), logits_rag.shape
    assert jnp.allclose(logits_rag, ref_rag, atol=1e-2, rtol=1e-2), "mismatch (B=130)"

    print("KERNEL_OK")
</pallas_src>

<mosaic_0001>
module attributes {stable_mosaic.version = 11 : i64} {
  func.func @_mlp_kernel(%arg0: i32, %arg1: memref<8x3072xf32, #tpu.memory_space<vmem>>, %arg2: memref<3072x512xbf16, #tpu.memory_space<vmem>>, %arg3: memref<1x512xf32, #tpu.memory_space<vmem>>, %arg4: memref<512x512xbf16, #tpu.memory_space<vmem>>, %arg5: memref<1x512xf32, #tpu.memory_space<vmem>>, %arg6: memref<512x128xbf16, #tpu.memory_space<vmem>>, %arg7: memref<1x128xf32, #tpu.memory_space<vmem>>, %arg8: memref<8x128xf32, #tpu.memory_space<vmem>>, %arg9: memref<8x512xbf16, #tpu.memory_space<vmem>>, %arg10: memref<8x512xbf16, #tpu.memory_space<vmem>>) attributes {dimension_semantics = [#tpu.dimension_semantics<parallel>], iteration_bounds = array<i64: 1>, scalar_prefetch = 0 : i64, scratch_operands = 2 : i64, tpu.core_type = #tpu.core_type<tc>, window_params = [{transform_indices = @transform_0, window_bounds = array<i64: 8, 3072>}, {pipeline_mode = #tpu.pipeline_mode<synchronous>, transform_indices = @transform_1, window_bounds = array<i64: 3072, 512>}, {pipeline_mode = #tpu.pipeline_mode<synchronous>, transform_indices = @transform_2, window_bounds = array<i64: 1, 512>}, {pipeline_mode = #tpu.pipeline_mode<synchronous>, transform_indices = @transform_3, window_bounds = array<i64: 512, 512>}, {pipeline_mode = #tpu.pipeline_mode<synchronous>, transform_indices = @transform_4, window_bounds = array<i64: 1, 512>}, {pipeline_mode = #tpu.pipeline_mode<synchronous>, transform_indices = @transform_5, window_bounds = array<i64: 512, 128>}, {pipeline_mode = #tpu.pipeline_mode<synchronous>, transform_indices = @transform_6, window_bounds = array<i64: 1, 128>}, {transform_indices = @transform_7, window_bounds = array<i64: 8, 128>}]} {
    %c0 = arith.constant 0 : index
    %c0_0 = arith.constant 0 : index
    %0 = vector.load %arg1[%c0, %c0_0] : memref<8x3072xf32, #tpu.memory_space<vmem>>, vector<8x3072xf32>
    %1 = arith.truncf %0 : vector<8x3072xf32> to vector<8x3072xbf16>
    %c0_1 = arith.constant 0 : index
    %c0_2 = arith.constant 0 : index
    %2 = vector.load %arg2[%c0_1, %c0_2] : memref<3072x512xbf16, #tpu.memory_space<vmem>>, vector<3072x512xbf16>
    %cst = arith.constant dense<0.000000e+00> : vector<8x512xf32>
    %3 = tpu.matmul %1, %2, %cst {dimension_numbers = #tpu.dot_dimension_numbers<[1], [0], [0], [1], [0, 0, 1, 1], [], []>} : vector<8x3072xbf16>, vector<3072x512xbf16>, vector<8x512xf32> -> vector<8x512xf32>
    %c0_3 = arith.constant 0 : index
    %c0_4 = arith.constant 0 : index
    %4 = vector.load %arg3[%c0_3, %c0_4] : memref<1x512xf32, #tpu.memory_space<vmem>>, vector<1x512xf32>
    %5 = vector.broadcast %4 : vector<1x512xf32> to vector<8x512xf32>
    %6 = arith.addf %3, %5 : vector<8x512xf32>
    %cst_5 = arith.constant 0.000000e+00 : f32
    %7 = vector.broadcast %cst_5 : f32 to vector<8x512xf32>
    %8 = arith.maximumf %6, %7 : vector<8x512xf32>
    %9 = arith.truncf %8 : vector<8x512xf32> to vector<8x512xbf16>
    %c0_6 = arith.constant 0 : index
    %c0_7 = arith.constant 0 : index
    %10 = vector.load %arg9[%c0_6, %c0_7] : memref<8x512xbf16, #tpu.memory_space<vmem>>, vector<8x512xbf16>
    tpu.vector_store %arg9[%c0_6, %c0_7], %9 {strides = array<i32>} : memref<8x512xbf16, #tpu.memory_space<vmem>>, vector<8x512xbf16>,
    %c0_8 = arith.constant 0 : index
    %c0_9 = arith.constant 0 : index
    %11 = vector.load %arg9[%c0_8, %c0_9] : memref<8x512xbf16, #tpu.memory_space<vmem>>, vector<8x512xbf16>
    %c0_10 = arith.constant 0 : index
    %c0_11 = arith.constant 0 : index
    %12 = vector.load %arg4[%c0_10, %c0_11] : memref<512x512xbf16, #tpu.memory_space<vmem>>, vector<512x512xbf16>
    %cst_12 = arith.constant dense<0.000000e+00> : vector<8x512xf32>
    %13 = tpu.matmul %11, %12, %cst_12 {dimension_numbers = #tpu.dot_dimension_numbers<[1], [0], [0], [1], [0, 0, 1, 1], [], []>} : vector<8x512xbf16>, vector<512x512xbf16>, vector<8x512xf32> -> vector<8x512xf32>
    %c0_13 = arith.constant 0 : index
    %c0_14 = arith.constant 0 : index
    %14 = vector.load %arg5[%c0_13, %c0_14] : memref<1x512xf32, #tpu.memory_space<vmem>>, vector<1x512xf32>
    %15 = vector.broadcast %14 : vector<1x512xf32> to vector<8x512xf32>
    %16 = arith.addf %13, %15 : vector<8x512xf32>
    %cst_15 = arith.constant 0.000000e+00 : f32
    %17 = vector.broadcast %cst_15 : f32 to vector<8x512xf32>
    %18 = arith.maximumf %16, %17 : vector<8x512xf32>
    %19 = arith.truncf %18 : vector<8x512xf32> to vector<8x512xbf16>
    %c0_16 = arith.constant 0 : index
    %c0_17 = arith.constant 0 : index
    %20 = vector.load %arg10[%c0_16, %c0_17] : memref<8x512xbf16, #tpu.memory_space<vmem>>, vector<8x512xbf16>
    tpu.vector_store %arg10[%c0_16, %c0_17], %19 {strides = array<i32>} : memref<8x512xbf16, #tpu.memory_space<vmem>>, vector<8x512xbf16>,
    %c0_18 = arith.constant 0 : index
    %c0_19 = arith.constant 0 : index
    %21 = vector.load %arg10[%c0_18, %c0_19] : memref<8x512xbf16, #tpu.memory_space<vmem>>, vector<8x512xbf16>
    %c0_20 = arith.constant 0 : index
    %c0_21 = arith.constant 0 : index
    %22 = vector.load %arg6[%c0_20, %c0_21] : memref<512x128xbf16, #tpu.memory_space<vmem>>, vector<512x128xbf16>
    %cst_22 = arith.constant dense<0.000000e+00> : vector<8x128xf32>
    %23 = tpu.matmul %21, %22, %cst_22 {dimension_numbers = #tpu.dot_dimension_numbers<[1], [0], [0], [1], [0, 0, 1, 1], [], []>} : vector<8x512xbf16>, vector<512x128xbf16>, vector<8x128xf32> -> vector<8x128xf32>
    %c0_23 = arith.constant 0 : index
    %c0_24 = arith.constant 0 : index
    %24 = vector.load %arg7[%c0_23, %c0_24] : memref<1x128xf32, #tpu.memory_space<vmem>>, vector<1x128xf32>
    %25 = vector.broadcast %24 : vector<1x128xf32> to vector<8x128xf32>
    %26 = arith.addf %23, %25 : vector<8x128xf32>
    %c0_25 = arith.constant 0 : index
    %c0_26 = arith.constant 0 : index
    %27 = vector.load %arg8[%c0_25, %c0_26] : memref<8x128xf32, #tpu.memory_space<vmem>>, vector<8x128xf32>
    tpu.vector_store %arg8[%c0_25, %c0_26], %26 {strides = array<i32>} : memref<8x128xf32, #tpu.memory_space<vmem>>, vector<8x128xf32>,
    return
  }
  func.func @transform_0(%arg0: i32) -> (i32, i32) {
    %c0_i32 = arith.constant 0 : i32
    %c0_i32_0 = arith.constant 0 : i32
    return %arg0, %c0_i32 : i32, i32
  }
  func.func @transform_1(%arg0: i32) -> (i32, i32) {
    %c0_i32 = arith.constant 0 : i32
    %c0_i32_0 = arith.constant 0 : i32
    %c0_i32_1 = arith.constant 0 : i32
    return %c0_i32, %c0_i32_0 : i32, i32
  }
  func.func @transform_2(%arg0: i32) -> (i32, i32) {
    %c0_i32 = arith.constant 0 : i32
    %c0_i32_0 = arith.constant 0 : i32
    %c0_i32_1 = arith.constant 0 : i32
    return %c0_i32, %c0_i32_0 : i32, i32
  }
  func.func @transform_3(%arg0: i32) -> (i32, i32) {
    %c0_i32 = arith.constant 0 : i32
    %c0_i32_0 = arith.constant 0 : i32
    %c0_i32_1 = arith.constant 0 : i32
    return %c0_i32, %c0_i32_0 : i32, i32
  }
  func.func @transform_4(%arg0: i32) -> (i32, i32) {
    %c0_i32 = arith.constant 0 : i32
    %c0_i32_0 = arith.constant 0 : i32
    %c0_i32_1 = arith.constant 0 : i32
    return %c0_i32, %c0_i32_0 : i32, i32
  }
  func.func @transform_5(%arg0: i32) -> (i32, i32) {
    %c0_i32 = arith.constant 0 : i32
    %c0_i32_0 = arith.constant 0 : i32
    %c0_i32_1 = arith.constant 0 : i32
    return %c0_i32, %c0_i32_0 : i32, i32
  }
  func.func @transform_6(%arg0: i32) -> (i32, i32) {
    %c0_i32 = arith.constant 0 : i32
    %c0_i32_0 = arith.constant 0 : i32
    %c0_i32_1 = arith.constant 0 : i32
    return %c0_i32, %c0_i32_0 : i32, i32
  }
  func.func @transform_7(%arg0: i32) -> (i32, i32) {
    %c0_i32 = arith.constant 0 : i32
    %c0_i32_0 = arith.constant 0 : i32
    return %arg0, %c0_i32 : i32, i32
  }
}

</mosaic_0001>

<bundles_post_ra>
// kernel: simple_dense_nn_forward.1
= control target key start
LH: loop header
LB: loop body
LE: loop exit
PB: predicated region body
PF: predicated region fallthrough
CT: control target
= control target key end

     0   :  { %12 = vsyncpa [#allocation5], 0  ;;  %s12597_s0 = inlined_call_operand.vmem [shape: f32[8,3072], index: 0, kind: input, shape index: {}]   ;;  %s12598_s1 = inlined_call_operand.hbm [shape: bf16[3072,512], index: 1, kind: input, shape index: {}]   ;;  %s12599_s2 = inlined_call_operand.hbm [shape: f32[1,512], index: 2, kind: input, shape index: {}]   ;;  %s12600_s3 = inlined_call_operand.hbm [shape: bf16[512,512], index: 3, kind: input, shape index: {}]   ;;  %s12601_s4 = inlined_call_operand.hbm [shape: f32[1,512], index: 4, kind: input, shape index: {}]   ;;  %s12602_s5 = inlined_call_operand.hbm [shape: bf16[512,128], index: 5, kind: input, shape index: {}]   ;;  %s12603_s6 = inlined_call_operand.hbm [shape: f32[1,128], index: 6, kind: input, shape index: {}]   ;;  %s12604_s7 = inlined_call_operand.vmem [shape: f32[8,128], index: 7, kind: output, shape index: {}]  }
   0x1   :  { %13 = vsyncpa [#allocation7], 0 }
   0x2   :  { %14 = vsyncpa [#allocation10], 0  ;;  %s36_s26 = sshll.u32 %s12599_s2, 4  ;;  %s37_s26 = int_to_ptr.hbm [resolvable:$true] %s36_s26 }
   0x3   :  { %15 = vsyncpa [#allocation13], 0  ;;  %s12189_s27 = smov [#allocation6]   ;;  %s60_s8 = sshll.u32 %s12601_s4, 4  ;;  %s61_s8 = int_to_ptr.hbm [resolvable:$true] %s60_s8 }
   0x4   :  { %s38_s28 = sshll.u32 %s12189_s27, 4  ;;  %s12190_s9 = smov [#allocation9]   ;;  %s39_s28 = int_to_ptr.vmem [resolvable:$true] %s38_s28 }
   0x5   :  { %41 = dma.hbm_to_vmem [thread:$0]  %s37_s26, 64, %s39_s28, [#allocation7]  }
   0x6   :  { %s62_s10 = sshll.u32 %s12190_s9, 4  ;;  %s22_s13 = sshll.u32 %s12598_s1, 4  ;;  %s63_s10 = int_to_ptr.vmem [resolvable:$true] %s62_s10  ;;  %s23_s13 = int_to_ptr.hbm [resolvable:$true] %s22_s13 }
   0x7   :  { %65 = dma.hbm_to_vmem [thread:$0]  %s61_s8, 64, %s63_s10, [#allocation10]  }
   0x8   :  { %s12191_s2 = smov [#allocation4]   ;;  %s46_s17 = sshll.u32 %s12600_s3, 4  ;;  %s47_s17 = int_to_ptr.hbm [resolvable:$true] %s46_s17 }
   0x9   :  { %s24_s14 = sshll.u32 %s12191_s2, 4  ;;  %s12192_s18 = smov 256   ;;  %s25_s14 = int_to_ptr.vmem [resolvable:$true] %s24_s14 }
   0xa   :  { %s12193_s4 = smov 16   ;;  %s12194_s19 = smov [#allocation8]  }
   0xb   :  { %30 = dma.hbm_to_vmem [thread:$0]  %s23_s13, 98304, %s25_s14, [#allocation5], %s12192_s18, %s12192_s18, %s12193_s4  }
   0xc   :  { %s48_s20 = sshll.u32 %s12194_s19, 4  ;;  %s70_s1 = sshll.u32 %s12602_s5, 4  ;;  %s49_s20 = int_to_ptr.vmem [resolvable:$true] %s48_s20  ;;  %s71_s1 = int_to_ptr.hbm [resolvable:$true] %s70_s1 }
   0xd   :  { %54 = dma.hbm_to_vmem [thread:$0]  %s47_s17, 16384, %s49_s20, [#allocation7], %s12192_s18, %s12192_s18, %s12193_s4  }
   0xe   :  { %s12195_s23 = smov [#allocation11]   ;;  %s84_s3 = sshll.u32 %s12603_s6, 4  ;;  %s85_s3 = int_to_ptr.hbm [resolvable:$true] %s84_s3 }
   0xf   :  { %s72_s24 = sshll.u32 %s12195_s23, 4  ;;  %s12196_s27 = smov 64   ;;  %s73_s24 = int_to_ptr.vmem [resolvable:$true] %s72_s24 }
  0x10   :  { %s12197_s28 = smov 4   ;;  %s12198_s29 = smov [#allocation12]  }
  0x11   :  { %78 = dma.hbm_to_vmem [thread:$0]  %s71_s1, 4096, %s73_s24, [#allocation10], %s12196_s27, %s12196_s27, %s12197_s28  }
  0x12   :  { %s86_s30 = sshll.u32 %s12198_s29, 4  ;;  %s87_s30 = int_to_ptr.vmem [resolvable:$true] %s86_s30 }
  0x13   :  { %89 = dma.hbm_to_vmem [thread:$0]  %s85_s3, 16, %s87_s30, [#allocation13]  }
  0x14   :  { %12181 = dma.done.wait [#allocation5], 98304  }
  0x15   :  { %12182 = vsyncadd [#allocation5], 4294868992 }
  0x16   :  { %12183 = dma.done.wait [#allocation7], 16448  }
  0x17   :  { %12184 = vsyncadd [#allocation7], 4294950848 }
  0x18   :  { %12185 = dma.done.wait [#allocation10], 4160  }
  0x19   :  { %12186 = vsyncadd [#allocation10], 4294963136 }
  0x1a   :  { %12187 = dma.done.wait [#allocation13], 16  }
  0x1b   :  { %12188 = vsyncadd [#allocation13], 4294967280  ;;  %v7497_v0 = vld [vmem:[#allocation4 + $0xe0] sm:$0xf]  ;;  %v11125_v1 = vld [vmem:[#allocation4 + $0xec] sm:$0xf0] }
  0x1c   :  { %v7625_v2 = vld [vmem:[#allocation4 + $0x1e0] sm:$0xf]  ;;  %v7498_v3 = vor.u32 %v11125_v1, %v7497_v0  ;;  %v11157_v4 = vld [vmem:[#allocation4 + $0x1ec] sm:$0xf0] }
  0x1d   :  { %v7753_v5 = vld [vmem:[#allocation4 + $0x2e0] sm:$0xf]  ;;  %v11189_v6 = vld [vmem:[#allocation4 + $0x2ec] sm:$0xf0]  ;;  %v7626_v7 = vor.u32 %v11157_v4, %v7625_v2 }
  0x1e   :  { %v7754_v8 = vor.u32 %v11189_v6, %v7753_v5  ;;  %v7881_v9 = vld [vmem:[#allocation4 + $0x3e0] sm:$0xf]  ;;  %v11221_v10 = vld [vmem:[#allocation4 + $0x3ec] sm:$0xf0]  ;;  %4780 = vmatpush.bf16.msra.mxu0 %v7498_v3 }
  0x1f   :  { %v7481_v11 = vld [vmem:[#allocation4 + $0xc0] sm:$0xf]  ;;  %v7882_v12 = vor.u32 %v11221_v10, %v7881_v9  ;;  %v11121_v13 = vld [vmem:[#allocation4 + $0xcc] sm:$0xf0]  ;;  %4793 = vmatpush.bf16.msra.mxu1 %v7626_v7 }
  0x20   :  { %v7609_v14 = vld [vmem:[#allocation4 + $0x1c0] sm:$0xf]  ;;  %v11153_v15 = vld [vmem:[#allocation4 + $0x1cc] sm:$0xf0]  ;;  %4806 = vmatpush.bf16.msra.mxu2 %v7754_v8  ;;  %v7482_v16 = vor.u32 %v11121_v13, %v7481_v11 }
  0x21   :  { %v7610_v17 = vor.u32 %v11153_v15, %v7609_v14  ;;  %v7737_v18 = vld [vmem:[#allocation4 + $0x2c0] sm:$0xf]  ;;  %v11185_v19 = vld [vmem:[#allocation4 + $0x2cc] sm:$0xf0]  ;;  %4819 = vmatpush.bf16.msra.mxu3 %v7882_v12 }
  0x22   :  { %v7865_v20 = vld [vmem:[#allocation4 + $0x3c0] sm:$0xf]  ;;  %v7738_v21 = vor.u32 %v11185_v19, %v7737_v18  ;;  %v11217_v22 = vld [vmem:[#allocation4 + $0x3cc] sm:$0xf0]  ;;  %4781 = vmatpush.bf16.msra.mxu0 %v7482_v16 }
  0x23   :  { %v7465_v23 = vld [vmem:[#allocation4 + $0xa0] sm:$0xf]  ;;  %v11117_v24 = vld [vmem:[#allocation4 + $0xac] sm:$0xf0]  ;;  %v7866_v25 = vor.u32 %v11217_v22, %v7865_v20  ;;  %4794 = vmatpush.bf16.msra.mxu1 %v7610_v17 }
  0x24   :  { %v7593_v26 = vld [vmem:[#allocation4 + $0x1a0] sm:$0xf]  ;;  %v11149_v27 = vld [vmem:[#allocation4 + $0x1ac] sm:$0xf0]  ;;  %v7466_v29 = vor.u32 %v11117_v24, %v7465_v23  ;;  %4807 = vmatpush.bf16.msra.mxu2 %v7738_v21 }
  0x25   :  { %v7721_v28 = vld [vmem:[#allocation4 + $0x2a0] sm:$0xf]  ;;  %v11181_v30 = vld [vmem:[#allocation4 + $0x2ac] sm:$0xf0]  ;;  %v7594_v33 = vor.u32 %v11149_v27, %v7593_v26  ;;  %4820 = vmatpush.bf16.msra.mxu3 %v7866_v25 }
  0x26   :  { %v7849_v31 = vld [vmem:[#allocation4 + $0x3a0] sm:$0xf]  ;;  %v11213_v32 = vld [vmem:[#allocation4 + $0x3ac] sm:$0xf0]  ;;  %v7722_v34 = vor.u32 %v11181_v30, %v7721_v28  ;;  %4782 = vmatpush.bf16.msra.mxu0 %v7466_v29 }
  0x27   :  { %v7449_v35 = vld [vmem:[#allocation4 + $0x80] sm:$0xf]  ;;  %v11113_v36 = vld [vmem:[#allocation4 + $0x8c] sm:$0xf0]  ;;  %v7850_v38 = vor.u32 %v11213_v32, %v7849_v31  ;;  %4795 = vmatpush.bf16.msra.mxu1 %v7594_v33 }
  0x28   :  { %v7577_v37 = vld [vmem:[#allocation4 + $0x180] sm:$0xf]  ;;  %v11145_v39 = vld [vmem:[#allocation4 + $0x18c] sm:$0xf0]  ;;  %v7450_v44 = vor.u32 %v11113_v36, %v7449_v35  ;;  %4808 = vmatpush.bf16.msra.mxu2 %v7722_v34 }
  0x29   :  { %v7705_v40 = vld [vmem:[#allocation4 + $0x280] sm:$0xf]  ;;  %v11177_v41 = vld [vmem:[#allocation4 + $0x28c] sm:$0xf0]  ;;  %v7578_v45 = vor.u32 %v11145_v39, %v7577_v37  ;;  %4821 = vmatpush.bf16.msra.mxu3 %v7850_v38 }
  0x2a   :  { %v7833_v42 = vld [vmem:[#allocation4 + $0x380] sm:$0xf]  ;;  %v11209_v43 = vld [vmem:[#allocation4 + $0x38c] sm:$0xf0]  ;;  %v7706_v46 = vor.u32 %v11177_v41, %v7705_v40  ;;  %4783 = vmatpush.bf16.msra.mxu0 %v7450_v44 }
  0x2b   :  { %v7433_v47 = vld [vmem:[#allocation4 + $0x60] sm:$0xf]  ;;  %v11109_v48 = vld [vmem:[#allocation4 + $0x6c] sm:$0xf0]  ;;  %v7834_v50 = vor.u32 %v11209_v43, %v7833_v42  ;;  %4796 = vmatpush.bf16.msra.mxu1 %v7578_v45 }
  0x2c   :  { %v7561_v49 = vld [vmem:[#allocation4 + $0x160] sm:$0xf]  ;;  %v11141_v51 = vld [vmem:[#allocation4 + $0x16c] sm:$0xf0]  ;;  %v7434_v56 = vor.u32 %v11109_v48, %v7433_v47  ;;  %4809 = vmatpush.bf16.msra.mxu2 %v7706_v46 }
  0x2d   :  { %v7689_v52 = vld [vmem:[#allocation4 + $0x260] sm:$0xf]  ;;  %v11173_v53 = vld [vmem:[#allocation4 + $0x26c] sm:$0xf0]  ;;  %v7562_v57 = vor.u32 %v11141_v51, %v7561_v49  ;;  %4822 = vmatpush.bf16.msra.mxu3 %v7834_v50 }
  0x2e   :  { %v7817_v54 = vld [vmem:[#allocation4 + $0x360] sm:$0xf]  ;;  %v11205_v55 = vld [vmem:[#allocation4 + $0x36c] sm:$0xf0]  ;;  %v7690_v58 = vor.u32 %v11173_v53, %v7689_v52  ;;  %4784 = vmatpush.bf16.msra.mxu0 %v7434_v56 }
  0x2f   :  { %v7417_v59 = vld [vmem:[#allocation4 + $0x40] sm:$0xf]  ;;  %v11105_v60 = vld [vmem:[#allocation4 + $0x4c] sm:$0xf0]  ;;  %v7818_v62 = vor.u32 %v11205_v55, %v7817_v54  ;;  %4797 = vmatpush.bf16.msra.mxu1 %v7562_v57 }
  0x30   :  { %v7545_v61 = vld [vmem:[#allocation4 + $0x140] sm:$0xf]  ;;  %v11137_v63 = vld [vmem:[#allocation4 + $0x14c] sm:$0xf0]  ;;  %v7418_v4 = vor.u32 %v11105_v60, %v7417_v59  ;;  %4810 = vmatpush.bf16.msra.mxu2 %v7690_v58 }
  0x31   :  { %v7673_v0 = vld [vmem:[#allocation4 + $0x240] sm:$0xf]  ;;  %v11169_v1 = vld [vmem:[#allocation4 + $0x24c] sm:$0xf0]  ;;  %v7546_v5 = vor.u32 %v11137_v63, %v7545_v61  ;;  %4823 = vmatpush.bf16.msra.mxu3 %v7818_v62 }
  0x32   :  { %v7801_v2 = vld [vmem:[#allocation4 + $0x340] sm:$0xf]  ;;  %v11201_v3 = vld [vmem:[#allocation4 + $0x34c] sm:$0xf0]  ;;  %v7674_v6 = vor.u32 %v11169_v1, %v7673_v0  ;;  %4785 = vmatpush.bf16.msra.mxu0 %v7418_v4 }
  0x33   :  { %v7401_v7 = vld [vmem:[#allocation4 + $0x20] sm:$0xf]  ;;  %v11101_v8 = vld [vmem:[#allocation4 + $0x2c] sm:$0xf0]  ;;  %v7802_v10 = vor.u32 %v11201_v3, %v7801_v2  ;;  %4798 = vmatpush.bf16.msra.mxu1 %v7546_v5 }
  0x34   :  { %v7529_v9 = vld [vmem:[#allocation4 + $0x120] sm:$0xf]  ;;  %v11133_v11 = vld [vmem:[#allocation4 + $0x12c] sm:$0xf0]  ;;  %v7402_v16 = vor.u32 %v11101_v8, %v7401_v7  ;;  %4811 = vmatpush.bf16.msra.mxu2 %v7674_v6 }
  0x35   :  { %v7657_v12 = vld [vmem:[#allocation4 + $0x220] sm:$0xf]  ;;  %v11165_v13 = vld [vmem:[#allocation4 + $0x22c] sm:$0xf0]  ;;  %v7530_v19 = vor.u32 %v11133_v11, %v7529_v9  ;;  %4824 = vmatpush.bf16.msra.mxu3 %v7802_v10  ;;  %v117_v10 = vld [vmem:[%s12597_s0 + $0x18] sm:$0xff] }
  0x36   :  { %v7785_v14 = vld [vmem:[#allocation4 + $0x320] sm:$0xf]  ;;  %v11197_v15 = vld [vmem:[#allocation4 + $0x32c] sm:$0xf0]  ;;  %v7658_v20 = vor.u32 %v11165_v13, %v7657_v12  ;;  %4786 = vmatpush.bf16.msra.mxu0 %v7402_v16 }
  0x37   :  { %v7385_v17 = vld [vmem:[#allocation4] sm:$0xf]  ;;  %v11097_v18 = vld [vmem:[#allocation4 + $0xc] sm:$0xf0]  ;;  %v7786_v24 = vor.u32 %v11197_v15, %v7785_v14  ;;  %4799 = vmatpush.bf16.msra.mxu1 %v7530_v19  ;;  %v12270_v15 = vpack.c.bf16 %v117_v10, %v117_v10  ;;  %v115_v19 = vld [vmem:[%s12597_s0 + $0x8] sm:$0xff] }
  0x38   :  { %v7513_v21 = vld [vmem:[#allocation4 + $0x100] sm:$0xf]  ;;  %v11129_v22 = vld [vmem:[#allocation4 + $0x10c] sm:$0xf0]  ;;  %v7386_v31 = vor.u32 %v11097_v18, %v7385_v17  ;;  %4812 = vmatpush.bf16.msra.mxu2 %v7658_v20 }
  0x39   :  { %v7641_v23 = vld [vmem:[#allocation4 + $0x200] sm:$0xf]  ;;  %v11161_v25 = vld [vmem:[#allocation4 + $0x20c] sm:$0xf0]  ;;  %v7514_v35 = vor.u32 %v11129_v22, %v7513_v21  ;;  %4825 = vmatpush.bf16.msra.mxu3 %v7786_v24 }
  0x3a   :  { %v7769_v26 = vld [vmem:[#allocation4 + $0x300] sm:$0xf]  ;;  %v11193_v27 = vld [vmem:[#allocation4 + $0x30c] sm:$0xf0]  ;;  %v7642_v36 = vor.u32 %v11161_v25, %v7641_v23  ;;  %4787 = vmatpush.bf16.msra.mxu0 %v7386_v31  ;;  %v12278_v25 = vpack.c.bf16 %v115_v19, %v115_v19 }
  0x3b   :  { %v8009_v28 = vld [vmem:[#allocation4 + $0x4e0] sm:$0xf]  ;;  %v11253_v29 = vld [vmem:[#allocation4 + $0x4ec] sm:$0xf0]  ;;  %v7770_v39 = vor.u32 %v11193_v27, %v7769_v26  ;;  %4800 = vmatpush.bf16.msra.mxu1 %v7514_v35 }
  0x3c   :  { %v8137_v30 = vld [vmem:[#allocation4 + $0x5e0] sm:$0xf]  ;;  %v11285_v32 = vld [vmem:[#allocation4 + $0x5ec] sm:$0xf0]  ;;  %v8010_v40 = vor.u32 %v11253_v29, %v8009_v28  ;;  %4813 = vmatpush.bf16.msra.mxu2 %v7642_v36 }
  0x3d   :  { %v8265_v33 = vld [vmem:[#allocation4 + $0x6e0] sm:$0xf]  ;;  %v11317_v34 = vld [vmem:[#allocation4 + $0x6ec] sm:$0xf0]  ;;  %v8138_v41 = vor.u32 %v11285_v32, %v8137_v30  ;;  %4826 = vmatpush.bf16.msra.mxu3 %v7770_v39 }
  0x3e   :  { %v8393_v37 = vld [vmem:[#allocation4 + $0x7e0] sm:$0xf]  ;;  %v11349_v38 = vld [vmem:[#allocation4 + $0x7ec] sm:$0xf0]  ;;  %v8266_v42 = vor.u32 %v11317_v34, %v8265_v33  ;;  %4832 = vmatpush.bf16.msrb.mxu0 %v8010_v40  ;;  %4801 = vmatmul.bf16.vlgmr.msra.gmra.mxu1 %v12278_v25 }
  0x3f   :  { %v7993_v43 = vld [vmem:[#allocation4 + $0x4c0] sm:$0xf]  ;;  %v11249_v44 = vld [vmem:[#allocation4 + $0x4cc] sm:$0xf0]  ;;  %v8394_v46 = vor.u32 %v11349_v38, %v8393_v37  ;;  %4845 = vmatpush.bf16.msrb.mxu1 %v8138_v41 }
  0x40   :  { %v8121_v45 = vld [vmem:[#allocation4 + $0x5c0] sm:$0xf]  ;;  %v11281_v47 = vld [vmem:[#allocation4 + $0x5cc] sm:$0xf0]  ;;  %v7994_v52 = vor.u32 %v11249_v44, %v7993_v43  ;;  %4858 = vmatpush.bf16.msrb.mxu2 %v8266_v42  ;;  %4827 = vmatmul.bf16.vlgmr.msra.gmra.mxu3 %v12270_v15 }
  0x41   :  { %v8249_v48 = vld [vmem:[#allocation4 + $0x6c0] sm:$0xf]  ;;  %v11313_v49 = vld [vmem:[#allocation4 + $0x6cc] sm:$0xf0]  ;;  %v8122_v54 = vor.u32 %v11281_v47, %v8121_v45  ;;  %4871 = vmatpush.bf16.msrb.mxu3 %v8394_v46 }
  0x42   :  { %v8377_v50 = vld [vmem:[#allocation4 + $0x7c0] sm:$0xf]  ;;  %v11345_v51 = vld [vmem:[#allocation4 + $0x7cc] sm:$0xf0]  ;;  %v8250_v55 = vor.u32 %v11313_v49, %v8249_v48  ;;  %4833 = vmatpush.bf16.msrb.mxu0 %v7994_v52 }
  0x43   :  { %v7977_v53 = vld [vmem:[#allocation4 + $0x4a0] sm:$0xf]  ;;  %v11245_v56 = vld [vmem:[#allocation4 + $0x4ac] sm:$0xf0]  ;;  %v8378_v59 = vor.u32 %v11345_v51, %v8377_v50  ;;  %4846 = vmatpush.bf16.msrb.mxu1 %v8122_v54 }
  0x44   :  { %v8105_v57 = vld [vmem:[#allocation4 + $0x5a0] sm:$0xf]  ;;  %v11277_v58 = vld [vmem:[#allocation4 + $0x5ac] sm:$0xf0]  ;;  %v7978_v0 = vor.u32 %v11245_v56, %v7977_v53  ;;  %4859 = vmatpush.bf16.msrb.mxu2 %v8250_v55 }
  0x45   :  { %v8233_v60 = vld [vmem:[#allocation4 + $0x6a0] sm:$0xf]  ;;  %v11309_v61 = vld [vmem:[#allocation4 + $0x6ac] sm:$0xf0]  ;;  %v8106_v1 = vor.u32 %v11277_v58, %v8105_v57  ;;  %4872 = vmatpush.bf16.msrb.mxu3 %v8378_v59 }
  0x46   :  { %v8361_v62 = vld [vmem:[#allocation4 + $0x7a0] sm:$0xf]  ;;  %v11341_v63 = vld [vmem:[#allocation4 + $0x7ac] sm:$0xf0]  ;;  %v8234_v5 = vor.u32 %v11309_v61, %v8233_v60  ;;  %4834 = vmatpush.bf16.msrb.mxu0 %v7978_v0 }
  0x47   :  { %v7961_v2 = vld [vmem:[#allocation4 + $0x480] sm:$0xf]  ;;  %v116_v3 = vld [vmem:[%s12597_s0 + $0x10] sm:$0xff]  ;;  %v8362_v11 = vor.u32 %v11341_v63, %v8361_v62  ;;  %4847 = vmatpush.bf16.msrb.mxu1 %v8106_v1 }
  0x48   :  { %v114_v4 = vld [vmem:[%s12597_s0] sm:$0xff]  ;;  %v11241_v6 = vld [vmem:[#allocation4 + $0x48c] sm:$0xf0]  ;;  %v12263_v8 = vpack.c.bf16 %v116_v3, %v116_v3  ;;  %4860 = vmatpush.bf16.msrb.mxu2 %v8234_v5 }
  0x49   :  { %v8089_v7 = vld [vmem:[#allocation4 + $0x580] sm:$0xf]  ;;  %v12265_v9 = vpack.c.bf16 %v114_v4, %v114_v4  ;;  %v11273_v12 = vld [vmem:[#allocation4 + $0x58c] sm:$0xf0]  ;;  %v7962_v18 = vor.u32 %v11241_v6, %v7961_v2  ;;  %4873 = vmatpush.bf16.msrb.mxu3 %v8362_v11 }
  0x4a   :  { %v8217_v13 = vld [vmem:[#allocation4 + $0x680] sm:$0xf]  ;;  %v11305_v14 = vld [vmem:[#allocation4 + $0x68c] sm:$0xf0]  ;;  %4814 = vmatmul.bf16.vlgmr.msra.gmra.mxu2 %v12263_v8  ;;  %v8090_v20 = vor.u32 %v11273_v12, %v8089_v7 }
  0x4b   :  { %v8345_v16 = vld [vmem:[#allocation4 + $0x780] sm:$0xf]  ;;  %v11337_v17 = vld [vmem:[#allocation4 + $0x78c] sm:$0xf0]  ;;  %4788 = vmatmul.bf16.vlgmr.msra.gmra.mxu0 %v12265_v9  ;;  %v8218_v21 = vor.u32 %v11305_v14, %v8217_v13 }
  0x4c   :  { %v7945_v22 = vld [vmem:[#allocation4 + $0x460] sm:$0xf]  ;;  %v11237_v23 = vld [vmem:[#allocation4 + $0x46c] sm:$0xf0]  ;;  %v8346_v26 = vor.u32 %v11337_v17, %v8345_v16  ;;  %4835 = vmatpush.bf16.msrb.mxu0 %v7962_v18  ;;  %4848 = vmatpush.bf16.msrb.mxu1 %v8090_v20 }
  0x4d   :  { %v8073_v24 = vld [vmem:[#allocation4 + $0x560] sm:$0xf]  ;;  %v11269_v27 = vld [vmem:[#allocation4 + $0x56c] sm:$0xf0]  ;;  %v7946_v32 = vor.u32 %v11237_v23, %v7945_v22  ;;  %4861 = vmatpush.bf16.msrb.mxu2 %v8218_v21  ;;  %v121_v23 = vld [vmem:[%s12597_s0 + $0x38] sm:$0xff] }
  0x4e   :  { %v8201_v28 = vld [vmem:[#allocation4 + $0x660] sm:$0xf]  ;;  %v11301_v29 = vld [vmem:[#allocation4 + $0x66c] sm:$0xf0]  ;;  %v8074_v33 = vor.u32 %v11269_v27, %v8073_v24  ;;  %4874 = vmatpush.bf16.msrb.mxu3 %v8346_v26 }
  0x4f   :  { %v8329_v30 = vld [vmem:[#allocation4 + $0x760] sm:$0xf]  ;;  %v11333_v31 = vld [vmem:[#allocation4 + $0x76c] sm:$0xf0]  ;;  %v8202_v34 = vor.u32 %v11301_v29, %v8201_v28  ;;  %v119_v29 = vld [vmem:[%s12597_s0 + $0x28] sm:$0xff] }
  0x50   :  { %v7929_v35 = vld [vmem:[#allocation4 + $0x440] sm:$0xf]  ;;  %v11233_v36 = vld [vmem:[#allocation4 + $0x44c] sm:$0xf0]  ;;  %v8330_v38 = vor.u32 %v11333_v31, %v8329_v30  ;;  %4836 = vmatpush.bf16.msrb.mxu0 %v7946_v32  ;;  %4849 = vmatpush.bf16.msrb.mxu1 %v8074_v33 }
  0x51   :  { %v8057_v37 = vld [vmem:[#allocation4 + $0x540] sm:$0xf]  ;;  %v11265_v39 = vld [vmem:[#allocation4 + $0x54c] sm:$0xf0]  ;;  %v7930_v44 = vor.u32 %v11233_v36, %v7929_v35  ;;  %4862 = vmatpush.bf16.msrb.mxu2 %v8202_v34 }
  0x52   :  { %v8185_v40 = vld [vmem:[#allocation4 + $0x640] sm:$0xf]  ;;  %v11297_v41 = vld [vmem:[#allocation4 + $0x64c] sm:$0xf0]  ;;  %v8058_v45 = vor.u32 %v11265_v39, %v8057_v37  ;;  %4875 = vmatpush.bf16.msrb.mxu3 %v8330_v38  ;;  %v12297_v38 = vpack.c.bf16 %v121_v23, %v121_v23 }
  0x53   :  { %v8313_v42 = vld [vmem:[#allocation4 + $0x740] sm:$0xf]  ;;  %v11329_v43 = vld [vmem:[#allocation4 + $0x74c] sm:$0xf0]  ;;  %v8186_v46 = vor.u32 %v11297_v41, %v8185_v40  ;;  %v12299_v40 = vpack.c.bf16 %v119_v29, %v119_v29 }
  0x54   :  { %v7913_v47 = vld [vmem:[#allocation4 + $0x420] sm:$0xf]  ;;  %v11229_v48 = vld [vmem:[#allocation4 + $0x42c] sm:$0xf0]  ;;  %v8314_v50 = vor.u32 %v11329_v43, %v8313_v42  ;;  %4837 = vmatpush.bf16.msrb.mxu0 %v7930_v44  ;;  %4850 = vmatpush.bf16.msrb.mxu1 %v8058_v45 }
  0x55   :  { %v8041_v49 = vld [vmem:[#allocation4 + $0x520] sm:$0xf]  ;;  %v11261_v51 = vld [vmem:[#allocation4 + $0x52c] sm:$0xf0]  ;;  %v7914_v56 = vor.u32 %v11229_v48, %v7913_v47  ;;  %4863 = vmatpush.bf16.msrb.mxu2 %v8186_v46 }
  0x56   :  { %v8169_v52 = vld [vmem:[#allocation4 + $0x620] sm:$0xf]  ;;  %v11293_v53 = vld [vmem:[#allocation4 + $0x62c] sm:$0xf0]  ;;  %v8042_v59 = vor.u32 %v11261_v51, %v8041_v49  ;;  %4876 = vmatpush.bf16.msrb.mxu3 %v8314_v50 }
  0x57   :  { %v8297_v54 = vld [vmem:[#allocation4 + $0x720] sm:$0xf]  ;;  %v11325_v55 = vld [vmem:[#allocation4 + $0x72c] sm:$0xf0]  ;;  %v8170_v60 = vor.u32 %v11293_v53, %v8169_v52 }
  0x58   :  { %v7897_v57 = vld [vmem:[#allocation4 + $0x400] sm:$0xf]  ;;  %v11225_v58 = vld [vmem:[#allocation4 + $0x40c] sm:$0xf0]  ;;  %v8298_v0 = vor.u32 %v11325_v55, %v8297_v54  ;;  %4838 = vmatpush.bf16.msrb.mxu0 %v7914_v56  ;;  %4851 = vmatpush.bf16.msrb.mxu1 %v8042_v59 }
  0x59   :  { %v8025_v61 = vld [vmem:[#allocation4 + $0x500] sm:$0xf]  ;;  %v11257_v62 = vld [vmem:[#allocation4 + $0x50c] sm:$0xf0]  ;;  %v7898_v7 = vor.u32 %v11225_v58, %v7897_v57  ;;  %4864 = vmatpush.bf16.msrb.mxu2 %v8170_v60 }
  0x5a   :  { %v8153_v63 = vld [vmem:[#allocation4 + $0x600] sm:$0xf]  ;;  %v11289_v1 = vld [vmem:[#allocation4 + $0x60c] sm:$0xf0]  ;;  %v8026_v13 = vor.u32 %v11257_v62, %v8025_v61  ;;  %4877 = vmatpush.bf16.msrb.mxu3 %v8298_v0 }
  0x5b   :  { %v8281_v2 = vld [vmem:[#allocation4 + $0x700] sm:$0xf]  ;;  %v11321_v3 = vld [vmem:[#allocation4 + $0x70c] sm:$0xf0]  ;;  %v8154_v14 = vor.u32 %v11289_v1, %v8153_v63 }
  0x5c   :  { %v8521_v4 = vld [vmem:[#allocation4 + $0x8e0] sm:$0xf]  ;;  %v11381_v5 = vld [vmem:[#allocation4 + $0x8ec] sm:$0xf0]  ;;  %v8282_v19 = vor.u32 %v11321_v3, %v8281_v2  ;;  %4839 = vmatpush.bf16.msrb.mxu0 %v7898_v7  ;;  %4852 = vmatpush.bf16.msrb.mxu1 %v8026_v13 }
  0x5d   :  { %v8649_v6 = vld [vmem:[#allocation4 + $0x9e0] sm:$0xf]  ;;  %v11413_v10 = vld [vmem:[#allocation4 + $0x9ec] sm:$0xf0]  ;;  %v8522_v20 = vor.u32 %v11381_v5, %v8521_v4  ;;  %4865 = vmatpush.bf16.msrb.mxu2 %v8154_v14 }
  0x5e   :  { %v8777_v11 = vld [vmem:[#allocation4 + $0xae0] sm:$0xf]  ;;  %v11445_v12 = vld [vmem:[#allocation4 + $0xaec] sm:$0xf0]  ;;  %v8650_v24 = vor.u32 %v11413_v10, %v8649_v6  ;;  %4878 = vmatpush.bf16.msrb.mxu3 %v8282_v19 }
  0x5f   :  { %v8905_v16 = vld [vmem:[#allocation4 + $0xbe0] sm:$0xf]  ;;  %v11477_v17 = vld [vmem:[#allocation4 + $0xbec] sm:$0xf0]  ;;  %v8778_v26 = vor.u32 %v11445_v12, %v8777_v11  ;;  %4853 = vmatmul.bf16.vlgmr.msrb.gmra.mxu1 %v12299_v40 }
  0x60   :  { %v120_v18 = vld [vmem:[%s12597_s0 + $0x30] sm:$0xff]  ;;  %v8505_v21 = vld [vmem:[#allocation4 + $0x8c0] sm:$0xf]  ;;  %v8906_v30 = vor.u32 %v11477_v17, %v8905_v16  ;;  %4884 = vmatpush.bf16.msra.mxu0 %v8522_v20  ;;  %4897 = vmatpush.bf16.msra.mxu1 %v8650_v24 }
  0x61   :  { %v118_v22 = vld [vmem:[%s12597_s0 + $0x20] sm:$0xff]  ;;  %v11377_v27 = vld [vmem:[#allocation4 + $0x8cc] sm:$0xf0]  ;;  %v12293_v34 = vpack.c.bf16 %v120_v18, %v120_v18  ;;  %4910 = vmatpush.bf16.msra.mxu2 %v8778_v26  ;;  %4879 = vmatmul.bf16.vlgmr.msrb.gmra.mxu3 %v12297_v38 }
  0x62   :  { %v8633_v28 = vld [vmem:[#allocation4 + $0x9c0] sm:$0xf]  ;;  %v11409_v31 = vld [vmem:[#allocation4 + $0x9cc] sm:$0xf0]  ;;  %v12295_v37 = vpack.c.bf16 %v118_v22, %v118_v22  ;;  %v8506_v39 = vor.u32 %v11377_v27, %v8505_v21  ;;  %4923 = vmatpush.bf16.msra.mxu3 %v8906_v30 }
  0x63   :  { %v8761_v32 = vld [vmem:[#allocation4 + $0xac0] sm:$0xf]  ;;  %v11441_v33 = vld [vmem:[#allocation4 + $0xacc] sm:$0xf0]  ;;  %v8634_v41 = vor.u32 %v11409_v31, %v8633_v28  ;;  %4866 = vmatmul.bf16.vlgmr.msrb.gmra.mxu2 %v12293_v34 }
  0x64   :  { %v8889_v35 = vld [vmem:[#allocation4 + $0xbc0] sm:$0xf]  ;;  %v11473_v36 = vld [vmem:[#allocation4 + $0xbcc] sm:$0xf0]  ;;  %v8762_v42 = vor.u32 %v11441_v33, %v8761_v32  ;;  %4840 = vmatmul.bf16.vlgmr.msrb.gmra.mxu0 %v12295_v37 }
  0x65   :  { %v8489_v43 = vld [vmem:[#allocation4 + $0x8a0] sm:$0xf]  ;;  %v11373_v44 = vld [vmem:[#allocation4 + $0x8ac] sm:$0xf0]  ;;  %v8890_v46 = vor.u32 %v11473_v36, %v8889_v35  ;;  %4885 = vmatpush.bf16.msra.mxu0 %v8506_v39  ;;  %4898 = vmatpush.bf16.msra.mxu1 %v8634_v41 }
  0x66   :  { %v8617_v45 = vld [vmem:[#allocation4 + $0x9a0] sm:$0xf]  ;;  %v11405_v47 = vld [vmem:[#allocation4 + $0x9ac] sm:$0xf0]  ;;  %v8490_v52 = vor.u32 %v11373_v44, %v8489_v43  ;;  %4911 = vmatpush.bf16.msra.mxu2 %v8762_v42 }
  0x67   :  { %v8745_v48 = vld [vmem:[#allocation4 + $0xaa0] sm:$0xf]  ;;  %v11437_v49 = vld [vmem:[#allocation4 + $0xaac] sm:$0xf0]  ;;  %v8618_v53 = vor.u32 %v11405_v47, %v8617_v45  ;;  %4924 = vmatpush.bf16.msra.mxu3 %v8890_v46 }
  0x68   :  { %v8873_v50 = vld [vmem:[#allocation4 + $0xba0] sm:$0xf]  ;;  %v11469_v51 = vld [vmem:[#allocation4 + $0xbac] sm:$0xf0]  ;;  %v8746_v54 = vor.u32 %v11437_v49, %v8745_v48 }
  0x69   :  { %v8473_v55 = vld [vmem:[#allocation4 + $0x880] sm:$0xf]  ;;  %v11369_v56 = vld [vmem:[#allocation4 + $0x88c] sm:$0xf0]  ;;  %v8874_v58 = vor.u32 %v11469_v51, %v8873_v50  ;;  %4886 = vmatpush.bf16.msra.mxu0 %v8490_v52  ;;  %4899 = vmatpush.bf16.msra.mxu1 %v8618_v53 }
  0x6a   :  { %v8601_v57 = vld [vmem:[#allocation4 + $0x980] sm:$0xf]  ;;  %v11401_v59 = vld [vmem:[#allocation4 + $0x98c] sm:$0xf0]  ;;  %v8474_v0 = vor.u32 %v11369_v56, %v8473_v55  ;;  %4912 = vmatpush.bf16.msra.mxu2 %v8746_v54 }
  0x6b   :  { %v8729_v60 = vld [vmem:[#allocation4 + $0xa80] sm:$0xf]  ;;  %v11433_v61 = vld [vmem:[#allocation4 + $0xa8c] sm:$0xf0]  ;;  %v8602_v1 = vor.u32 %v11401_v59, %v8601_v57  ;;  %4925 = vmatpush.bf16.msra.mxu3 %v8874_v58 }
  0x6c   :  { %v8857_v62 = vld [vmem:[#allocation4 + $0xb80] sm:$0xf]  ;;  %v11465_v63 = vld [vmem:[#allocation4 + $0xb8c] sm:$0xf0]  ;;  %v8730_v2 = vor.u32 %v11433_v61, %v8729_v60 }
  0x6d   :  { %v8457_v3 = vld [vmem:[#allocation4 + $0x860] sm:$0xf]  ;;  %v11365_v4 = vld [vmem:[#allocation4 + $0x86c] sm:$0xf0]  ;;  %v8858_v6 = vor.u32 %v11465_v63, %v8857_v62  ;;  %4887 = vmatpush.bf16.msra.mxu0 %v8474_v0  ;;  %4900 = vmatpush.bf16.msra.mxu1 %v8602_v1 }
  0x6e   :  { %v8585_v5 = vld [vmem:[#allocation4 + $0x960] sm:$0xf]  ;;  %v11397_v7 = vld [vmem:[#allocation4 + $0x96c] sm:$0xf0]  ;;  %v8458_v14 = vor.u32 %v11365_v4, %v8457_v3  ;;  %4913 = vmatpush.bf16.msra.mxu2 %v8730_v2 }
  0x6f   :  { %v8713_v10 = vld [vmem:[#allocation4 + $0xa60] sm:$0xf]  ;;  %v11429_v11 = vld [vmem:[#allocation4 + $0xa6c] sm:$0xf0]  ;;  %v8586_v16 = vor.u32 %v11397_v7, %v8585_v5  ;;  %4926 = vmatpush.bf16.msra.mxu3 %v8858_v6  ;;  %v123_v7 = vld [vmem:[%s12597_s0 + $0x48] sm:$0xff] }
  0x70   :  { %v8841_v12 = vld [vmem:[#allocation4 + $0xb60] sm:$0xf]  ;;  %v11461_v13 = vld [vmem:[#allocation4 + $0xb6c] sm:$0xf0]  ;;  %v8714_v17 = vor.u32 %v11429_v11, %v8713_v10  ;;  %v125_v10 = vld [vmem:[%s12597_s0 + $0x58] sm:$0xff] }
  0x71   :  { %v8441_v18 = vld [vmem:[#allocation4 + $0x840] sm:$0xf]  ;;  %v11361_v19 = vld [vmem:[#allocation4 + $0x84c] sm:$0xf0]  ;;  %v8842_v21 = vor.u32 %v11461_v13, %v8841_v12  ;;  %4888 = vmatpush.bf16.msra.mxu0 %v8458_v14  ;;  %4901 = vmatpush.bf16.msra.mxu1 %v8586_v16 }
  0x72   :  { %v8569_v20 = vld [vmem:[#allocation4 + $0x940] sm:$0xf]  ;;  %v11393_v22 = vld [vmem:[#allocation4 + $0x94c] sm:$0xf0]  ;;  %v8442_v28 = vor.u32 %v11361_v19, %v8441_v18  ;;  %4914 = vmatpush.bf16.msra.mxu2 %v8714_v17 }
  0x73   :  { %v8697_v23 = vld [vmem:[#allocation4 + $0xa40] sm:$0xf]  ;;  %v11425_v24 = vld [vmem:[#allocation4 + $0xa4c] sm:$0xf0]  ;;  %v8570_v29 = vor.u32 %v11393_v22, %v8569_v20  ;;  %4927 = vmatpush.bf16.msra.mxu3 %v8842_v21 }
  0x74   :  { %v8825_v26 = vld [vmem:[#allocation4 + $0xb40] sm:$0xf]  ;;  %v11457_v27 = vld [vmem:[#allocation4 + $0xb4c] sm:$0xf0]  ;;  %v8698_v30 = vor.u32 %v11425_v24, %v8697_v23  ;;  %v12321_v23 = vpack.c.bf16 %v123_v7, %v123_v7 }
  0x75   :  { %v8425_v31 = vld [vmem:[#allocation4 + $0x820] sm:$0xf]  ;;  %v11357_v32 = vld [vmem:[#allocation4 + $0x82c] sm:$0xf0]  ;;  %v8826_v35 = vor.u32 %v11457_v27, %v8825_v26  ;;  %4889 = vmatpush.bf16.msra.mxu0 %v8442_v28  ;;  %4902 = vmatpush.bf16.msra.mxu1 %v8570_v29  ;;  %v12323_v27 = vpack.c.bf16 %v125_v10, %v125_v10 }
  0x76   :  { %v8553_v33 = vld [vmem:[#allocation4 + $0x920] sm:$0xf]  ;;  %v11389_v36 = vld [vmem:[#allocation4 + $0x92c] sm:$0xf0]  ;;  %v8426_v44 = vor.u32 %v11357_v32, %v8425_v31  ;;  %4915 = vmatpush.bf16.msra.mxu2 %v8698_v30 }
  0x77   :  { %v8681_v39 = vld [vmem:[#allocation4 + $0xa20] sm:$0xf]  ;;  %v11421_v41 = vld [vmem:[#allocation4 + $0xa2c] sm:$0xf0]  ;;  %v8554_v48 = vor.u32 %v11389_v36, %v8553_v33  ;;  %4928 = vmatpush.bf16.msra.mxu3 %v8826_v35 }
  0x78   :  { %v8809_v42 = vld [vmem:[#allocation4 + $0xb20] sm:$0xf]  ;;  %v11453_v43 = vld [vmem:[#allocation4 + $0xb2c] sm:$0xf0]  ;;  %v8682_v49 = vor.u32 %v11421_v41, %v8681_v39 }
  0x79   :  { %v8409_v45 = vld [vmem:[#allocation4 + $0x800] sm:$0xf]  ;;  %v11353_v46 = vld [vmem:[#allocation4 + $0x80c] sm:$0xf0]  ;;  %v8810_v53 = vor.u32 %v11453_v43, %v8809_v42  ;;  %4890 = vmatpush.bf16.msra.mxu0 %v8426_v44  ;;  %4903 = vmatpush.bf16.msra.mxu1 %v8554_v48 }
  0x7a   :  { %v8537_v47 = vld [vmem:[#allocation4 + $0x900] sm:$0xf]  ;;  %v11385_v50 = vld [vmem:[#allocation4 + $0x90c] sm:$0xf0]  ;;  %v8410_v59 = vor.u32 %v11353_v46, %v8409_v45  ;;  %4916 = vmatpush.bf16.msra.mxu2 %v8682_v49 }
  0x7b   :  { %v8665_v51 = vld [vmem:[#allocation4 + $0xa00] sm:$0xf]  ;;  %v11417_v52 = vld [vmem:[#allocation4 + $0xa0c] sm:$0xf0]  ;;  %v8538_v63 = vor.u32 %v11385_v50, %v8537_v47  ;;  %4929 = vmatpush.bf16.msra.mxu3 %v8810_v53 }
  0x7c   :  { %v8793_v54 = vld [vmem:[#allocation4 + $0xb00] sm:$0xf]  ;;  %v11449_v55 = vld [vmem:[#allocation4 + $0xb0c] sm:$0xf0]  ;;  %v8666_v0 = vor.u32 %v11417_v52, %v8665_v51 }
  0x7d   :  { %v9033_v56 = vld [vmem:[#allocation4 + $0xce0] sm:$0xf]  ;;  %v11509_v57 = vld [vmem:[#allocation4 + $0xcec] sm:$0xf0]  ;;  %v8794_v4 = vor.u32 %v11449_v55, %v8793_v54  ;;  %4891 = vmatpush.bf16.msra.mxu0 %v8410_v59  ;;  %4904 = vmatpush.bf16.msra.mxu1 %v8538_v63 }
  0x7e   :  { %v9161_v58 = vld [vmem:[#allocation4 + $0xde0] sm:$0xf]  ;;  %v11541_v60 = vld [vmem:[#allocation4 + $0xdec] sm:$0xf0]  ;;  %v9034_v5 = vor.u32 %v11509_v57, %v9033_v56  ;;  %4917 = vmatpush.bf16.msra.mxu2 %v8666_v0 }
  0x7f   :  { %v9289_v61 = vld [vmem:[#allocation4 + $0xee0] sm:$0xf]  ;;  %v11573_v62 = vld [vmem:[#allocation4 + $0xeec] sm:$0xf0]  ;;  %v9162_v11 = vor.u32 %v11541_v60, %v9161_v58  ;;  %4930 = vmatpush.bf16.msra.mxu3 %v8794_v4 }
  0x80   :  { %v9417_v1 = vld [vmem:[#allocation4 + $0xfe0] sm:$0xf]  ;;  %v11605_v2 = vld [vmem:[#allocation4 + $0xfec] sm:$0xf0]  ;;  %v9290_v12 = vor.u32 %v11573_v62, %v9289_v61  ;;  %4905 = vmatmul.bf16.vlgmr.msra.gmra.mxu1 %v12321_v23 }
  0x81   :  { %v122_v3 = vld [vmem:[%s12597_s0 + $0x40] sm:$0xff]  ;;  %v124_v6 = vld [vmem:[%s12597_s0 + $0x50] sm:$0xff]  ;;  %v9418_v17 = vor.u32 %v11605_v2, %v9417_v1  ;;  %4936 = vmatpush.bf16.msrb.mxu0 %v9034_v5  ;;  %4949 = vmatpush.bf16.msrb.mxu1 %v9162_v11 }
  0x82   :  { %v9017_v13 = vld [vmem:[#allocation4 + $0xcc0] sm:$0xf]  ;;  %v11505_v14 = vld [vmem:[#allocation4 + $0xccc] sm:$0xf0]  ;;  %v12317_v18 = vpack.c.bf16 %v122_v3, %v122_v3  ;;  %v12319_v22 = vpack.c.bf16 %v124_v6, %v124_v6  ;;  %4962 = vmatpush.bf16.msrb.mxu2 %v9290_v12  ;;  %4931 = vmatmul.bf16.vlgmr.msra.gmra.mxu3 %v12323_v27 }
  0x83   :  { %v9145_v16 = vld [vmem:[#allocation4 + $0xdc0] sm:$0xf]  ;;  %v11537_v19 = vld [vmem:[#allocation4 + $0xdcc] sm:$0xf0]  ;;  %v9018_v28 = vor.u32 %v11505_v14, %v9017_v13  ;;  %4975 = vmatpush.bf16.msrb.mxu3 %v9418_v17 }
  0x84   :  { %v9273_v20 = vld [vmem:[#allocation4 + $0xec0] sm:$0xf]  ;;  %v11569_v21 = vld [vmem:[#allocation4 + $0xecc] sm:$0xf0]  ;;  %v9146_v29 = vor.u32 %v11537_v19, %v9145_v16  ;;  %4892 = vmatmul.bf16.vlgmr.msra.gmra.mxu0 %v12317_v18  ;;  %4918 = vmatmul.bf16.vlgmr.msra.gmra.mxu2 %v12319_v22 }
  0x85   :  { %v9401_v24 = vld [vmem:[#allocation4 + $0xfc0] sm:$0xf]  ;;  %v11601_v26 = vld [vmem:[#allocation4 + $0xfcc] sm:$0xf0]  ;;  %v9274_v30 = vor.u32 %v11569_v21, %v9273_v20  ;;  %4937 = vmatpush.bf16.msrb.mxu0 %v9018_v28 }
  0x86   :  { %v9001_v31 = vld [vmem:[#allocation4 + $0xca0] sm:$0xf]  ;;  %v11501_v32 = vld [vmem:[#allocation4 + $0xcac] sm:$0xf0]  ;;  %v9402_v35 = vor.u32 %v11601_v26, %v9401_v24  ;;  %4950 = vmatpush.bf16.msrb.mxu1 %v9146_v29 }
  0x87   :  { %v9129_v33 = vld [vmem:[#allocation4 + $0xda0] sm:$0xf]  ;;  %v11533_v36 = vld [vmem:[#allocation4 + $0xdac] sm:$0xf0]  ;;  %v9002_v44 = vor.u32 %v11501_v32, %v9001_v31  ;;  %4963 = vmatpush.bf16.msrb.mxu2 %v9274_v30 }
  0x88   :  { %v9257_v39 = vld [vmem:[#allocation4 + $0xea0] sm:$0xf]  ;;  %v11565_v41 = vld [vmem:[#allocation4 + $0xeac] sm:$0xf0]  ;;  %v9130_v45 = vor.u32 %v11533_v36, %v9129_v33  ;;  %4976 = vmatpush.bf16.msrb.mxu3 %v9402_v35 }
  0x89   :  { %v9385_v42 = vld [vmem:[#allocation4 + $0xfa0] sm:$0xf]  ;;  %v11597_v43 = vld [vmem:[#allocation4 + $0xfac] sm:$0xf0]  ;;  %v9258_v46 = vor.u32 %v11565_v41, %v9257_v39  ;;  %4938 = vmatpush.bf16.msrb.mxu0 %v9002_v44 }
  0x8a   :  { %v8985_v47 = vld [vmem:[#allocation4 + $0xc80] sm:$0xf]  ;;  %v11497_v48 = vld [vmem:[#allocation4 + $0xc8c] sm:$0xf0]  ;;  %v9386_v50 = vor.u32 %v11597_v43, %v9385_v42  ;;  %4951 = vmatpush.bf16.msrb.mxu1 %v9130_v45 }
  0x8b   :  { %v9113_v49 = vld [vmem:[#allocation4 + $0xd80] sm:$0xf]  ;;  %v11529_v51 = vld [vmem:[#allocation4 + $0xd8c] sm:$0xf0]  ;;  %v8986_v56 = vor.u32 %v11497_v48, %v8985_v47  ;;  %4964 = vmatpush.bf16.msrb.mxu2 %v9258_v46 }
  0x8c   :  { %v9241_v52 = vld [vmem:[#allocation4 + $0xe80] sm:$0xf]  ;;  %v11561_v53 = vld [vmem:[#allocation4 + $0xe8c] sm:$0xf0]  ;;  %v9114_v57 = vor.u32 %v11529_v51, %v9113_v49  ;;  %4977 = vmatpush.bf16.msrb.mxu3 %v9386_v50 }
  0x8d   :  { %v9369_v54 = vld [vmem:[#allocation4 + $0xf80] sm:$0xf]  ;;  %v11593_v55 = vld [vmem:[#allocation4 + $0xf8c] sm:$0xf0]  ;;  %v9242_v58 = vor.u32 %v11561_v53, %v9241_v52  ;;  %4939 = vmatpush.bf16.msrb.mxu0 %v8986_v56 }
  0x8e   :  { %v8969_v59 = vld [vmem:[#allocation4 + $0xc60] sm:$0xf]  ;;  %v11493_v60 = vld [vmem:[#allocation4 + $0xc6c] sm:$0xf0]  ;;  %v9370_v62 = vor.u32 %v11593_v55, %v9369_v54  ;;  %4952 = vmatpush.bf16.msrb.mxu1 %v9114_v57 }
  0x8f   :  { %v9097_v61 = vld [vmem:[#allocation4 + $0xd60] sm:$0xf]  ;;  %v11525_v63 = vld [vmem:[#allocation4 + $0xd6c] sm:$0xf0]  ;;  %v8970_v4 = vor.u32 %v11493_v60, %v8969_v59  ;;  %4965 = vmatpush.bf16.msrb.mxu2 %v9242_v58 }
  0x90   :  { %v9225_v0 = vld [vmem:[#allocation4 + $0xe60] sm:$0xf]  ;;  %v11557_v1 = vld [vmem:[#allocation4 + $0xe6c] sm:$0xf0]  ;;  %v9098_v5 = vor.u32 %v11525_v63, %v9097_v61  ;;  %4978 = vmatpush.bf16.msrb.mxu3 %v9370_v62 }
  0x91   :  { %v9353_v2 = vld [vmem:[#allocation4 + $0xf60] sm:$0xf]  ;;  %v11589_v3 = vld [vmem:[#allocation4 + $0xf6c] sm:$0xf0]  ;;  %v9226_v6 = vor.u32 %v11557_v1, %v9225_v0  ;;  %4940 = vmatpush.bf16.msrb.mxu0 %v8970_v4  ;;  %v129_v4 = vld [vmem:[%s12597_s0 + $0x78] sm:$0xff] }
  0x92   :  { %v8953_v7 = vld [vmem:[#allocation4 + $0xc40] sm:$0xf]  ;;  %v11489_v10 = vld [vmem:[#allocation4 + $0xc4c] sm:$0xf0]  ;;  %v9354_v12 = vor.u32 %v11589_v3, %v9353_v2  ;;  %4953 = vmatpush.bf16.msrb.mxu1 %v9098_v5  ;;  %v127_v3 = vld [vmem:[%s12597_s0 + $0x68] sm:$0xff] }
  0x93   :  { %v9081_v11 = vld [vmem:[#allocation4 + $0xd40] sm:$0xf]  ;;  %v11521_v13 = vld [vmem:[#allocation4 + $0xd4c] sm:$0xf0]  ;;  %v8954_v20 = vor.u32 %v11489_v10, %v8953_v7  ;;  %4966 = vmatpush.bf16.msrb.mxu2 %v9226_v6 }
  0x94   :  { %v9209_v14 = vld [vmem:[#allocation4 + $0xe40] sm:$0xf]  ;;  %v11553_v16 = vld [vmem:[#allocation4 + $0xe4c] sm:$0xf0]  ;;  %v9082_v21 = vor.u32 %v11521_v13, %v9081_v11  ;;  %4979 = vmatpush.bf16.msrb.mxu3 %v9354_v12 }
  0x95   :  { %v9337_v17 = vld [vmem:[#allocation4 + $0xf40] sm:$0xf]  ;;  %v11585_v19 = vld [vmem:[#allocation4 + $0xf4c] sm:$0xf0]  ;;  %v9210_v24 = vor.u32 %v11553_v16, %v9209_v14  ;;  %4941 = vmatpush.bf16.msrb.mxu0 %v8954_v20  ;;  %v12345_v20 = vpack.c.bf16 %v127_v3, %v127_v3 }
  0x96   :  { %v8937_v26 = vld [vmem:[#allocation4 + $0xc20] sm:$0xf]  ;;  %v11485_v28 = vld [vmem:[#allocation4 + $0xc2c] sm:$0xf0]  ;;  %v9338_v30 = vor.u32 %v11585_v19, %v9337_v17  ;;  %4954 = vmatpush.bf16.msrb.mxu1 %v9082_v21 }
  0x97   :  { %v9065_v29 = vld [vmem:[#allocation4 + $0xd20] sm:$0xf]  ;;  %v11517_v31 = vld [vmem:[#allocation4 + $0xd2c] sm:$0xf0]  ;;  %v8938_v39 = vor.u32 %v11485_v28, %v8937_v26  ;;  %4967 = vmatpush.bf16.msrb.mxu2 %v9210_v24  ;;  %v12347_v26 = vpack.c.bf16 %v129_v4, %v129_v4 }
  0x98   :  { %v9193_v32 = vld [vmem:[#allocation4 + $0xe20] sm:$0xf]  ;;  %v11549_v33 = vld [vmem:[#allocation4 + $0xe2c] sm:$0xf0]  ;;  %v9066_v43 = vor.u32 %v11517_v31, %v9065_v29  ;;  %4980 = vmatpush.bf16.msrb.mxu3 %v9338_v30 }
  0x99   :  { %v9321_v35 = vld [vmem:[#allocation4 + $0xf20] sm:$0xf]  ;;  %v11581_v36 = vld [vmem:[#allocation4 + $0xf2c] sm:$0xf0]  ;;  %v9194_v44 = vor.u32 %v11549_v33, %v9193_v32  ;;  %4942 = vmatpush.bf16.msrb.mxu0 %v8938_v39 }
  0x9a   :  { %v8921_v41 = vld [vmem:[#allocation4 + $0xc00] sm:$0xf]  ;;  %v11481_v42 = vld [vmem:[#allocation4 + $0xc0c] sm:$0xf0]  ;;  %v9322_v48 = vor.u32 %v11581_v36, %v9321_v35  ;;  %4955 = vmatpush.bf16.msrb.mxu1 %v9066_v43 }
  0x9b   :  { %v9049_v45 = vld [vmem:[#allocation4 + $0xd00] sm:$0xf]  ;;  %v11513_v46 = vld [vmem:[#allocation4 + $0xd0c] sm:$0xf0]  ;;  %v8922_v55 = vor.u32 %v11481_v42, %v8921_v41  ;;  %4968 = vmatpush.bf16.msrb.mxu2 %v9194_v44 }
  0x9c   :  { %v9177_v47 = vld [vmem:[#allocation4 + $0xe00] sm:$0xf]  ;;  %v11545_v49 = vld [vmem:[#allocation4 + $0xe0c] sm:$0xf0]  ;;  %v9050_v59 = vor.u32 %v11513_v46, %v9049_v45  ;;  %4981 = vmatpush.bf16.msrb.mxu3 %v9322_v48 }
  0x9d   :  { %v9305_v50 = vld [vmem:[#allocation4 + $0xf00] sm:$0xf]  ;;  %v11577_v51 = vld [vmem:[#allocation4 + $0xf0c] sm:$0xf0]  ;;  %v9178_v60 = vor.u32 %v11545_v49, %v9177_v47  ;;  %4943 = vmatpush.bf16.msrb.mxu0 %v8922_v55 }
  0x9e   :  { %v9545_v52 = vld [vmem:[#allocation4 + $0x10e0] sm:$0xf]  ;;  %v11637_v53 = vld [vmem:[#allocation4 + $0x10ec] sm:$0xf0]  ;;  %v9306_v0 = vor.u32 %v11577_v51, %v9305_v50  ;;  %4956 = vmatpush.bf16.msrb.mxu1 %v9050_v59 }
  0x9f   :  { %v9673_v54 = vld [vmem:[#allocation4 + $0x11e0] sm:$0xf]  ;;  %v11669_v56 = vld [vmem:[#allocation4 + $0x11ec] sm:$0xf0]  ;;  %v9546_v1 = vor.u32 %v11637_v53, %v9545_v52  ;;  %4969 = vmatpush.bf16.msrb.mxu2 %v9178_v60 }
  0xa0   :  { %v9801_v57 = vld [vmem:[#allocation4 + $0x12e0] sm:$0xf]  ;;  %v11701_v58 = vld [vmem:[#allocation4 + $0x12ec] sm:$0xf0]  ;;  %v9674_v5 = vor.u32 %v11669_v56, %v9673_v54  ;;  %4982 = vmatpush.bf16.msrb.mxu3 %v9306_v0 }
  0xa1   :  { %v9929_v61 = vld [vmem:[#allocation4 + $0x13e0] sm:$0xf]  ;;  %v11733_v62 = vld [vmem:[#allocation4 + $0x13ec] sm:$0xf0]  ;;  %v9802_v6 = vor.u32 %v11701_v58, %v9801_v57  ;;  %4988 = vmatpush.bf16.msra.mxu0 %v9546_v1  ;;  %4957 = vmatmul.bf16.vlgmr.msrb.gmra.mxu1 %v12345_v20 }
  0xa2   :  { %v126_v63 = vld [vmem:[%s12597_s0 + $0x60] sm:$0xff]  ;;  %v128_v2 = vld [vmem:[%s12597_s0 + $0x70] sm:$0xff]  ;;  %v9930_v12 = vor.u32 %v11733_v62, %v9929_v61  ;;  %5001 = vmatpush.bf16.msra.mxu1 %v9674_v5 }
  0xa3   :  { %v9529_v7 = vld [vmem:[#allocation4 + $0x10c0] sm:$0xf]  ;;  %v11633_v10 = vld [vmem:[#allocation4 + $0x10cc] sm:$0xf0]  ;;  %v12341_v13 = vpack.c.bf16 %v126_v63, %v126_v63  ;;  %v12343_v19 = vpack.c.bf16 %v128_v2, %v128_v2  ;;  %5014 = vmatpush.bf16.msra.mxu2 %v9802_v6  ;;  %4983 = vmatmul.bf16.vlgmr.msrb.gmra.mxu3 %v12347_v26 }
  0xa4   :  { %v9657_v11 = vld [vmem:[#allocation4 + $0x11c0] sm:$0xf]  ;;  %v11665_v14 = vld [vmem:[#allocation4 + $0x11cc] sm:$0xf0]  ;;  %v9530_v28 = vor.u32 %v11633_v10, %v9529_v7  ;;  %5027 = vmatpush.bf16.msra.mxu3 %v9930_v12 }
  0xa5   :  { %v9785_v16 = vld [vmem:[#allocation4 + $0x12c0] sm:$0xf]  ;;  %v11697_v17 = vld [vmem:[#allocation4 + $0x12cc] sm:$0xf0]  ;;  %v9658_v29 = vor.u32 %v11665_v14, %v9657_v11  ;;  %4944 = vmatmul.bf16.vlgmr.msrb.gmra.mxu0 %v12341_v13  ;;  %4970 = vmatmul.bf16.vlgmr.msrb.gmra.mxu2 %v12343_v19 }
  0xa6   :  { %v9913_v21 = vld [vmem:[#allocation4 + $0x13c0] sm:$0xf]  ;;  %v11729_v24 = vld [vmem:[#allocation4 + $0x13cc] sm:$0xf0]  ;;  %v9786_v30 = vor.u32 %v11697_v17, %v9785_v16  ;;  %4989 = vmatpush.bf16.msra.mxu0 %v9530_v28 }
  0xa7   :  { %v9513_v31 = vld [vmem:[#allocation4 + $0x10a0] sm:$0xf]  ;;  %v11629_v32 = vld [vmem:[#allocation4 + $0x10ac] sm:$0xf0]  ;;  %v9914_v35 = vor.u32 %v11729_v24, %v9913_v21  ;;  %5002 = vmatpush.bf16.msra.mxu1 %v9658_v29 }
  0xa8   :  { %v9641_v33 = vld [vmem:[#allocation4 + $0x11a0] sm:$0xf]  ;;  %v11661_v36 = vld [vmem:[#allocation4 + $0x11ac] sm:$0xf0]  ;;  %v9514_v44 = vor.u32 %v11629_v32, %v9513_v31  ;;  %5015 = vmatpush.bf16.msra.mxu2 %v9786_v30 }
  0xa9   :  { %v9769_v39 = vld [vmem:[#allocation4 + $0x12a0] sm:$0xf]  ;;  %v11693_v41 = vld [vmem:[#allocation4 + $0x12ac] sm:$0xf0]  ;;  %v9642_v45 = vor.u32 %v11661_v36, %v9641_v33  ;;  %5028 = vmatpush.bf16.msra.mxu3 %v9914_v35 }
  0xaa   :  { %v9897_v42 = vld [vmem:[#allocation4 + $0x13a0] sm:$0xf]  ;;  %v11725_v43 = vld [vmem:[#allocation4 + $0x13ac] sm:$0xf0]  ;;  %v9770_v46 = vor.u32 %v11693_v41, %v9769_v39  ;;  %4990 = vmatpush.bf16.msra.mxu0 %v9514_v44 }
  0xab   :  { %v9497_v47 = vld [vmem:[#allocation4 + $0x1080] sm:$0xf]  ;;  %v11625_v48 = vld [vmem:[#allocation4 + $0x108c] sm:$0xf0]  ;;  %v9898_v50 = vor.u32 %v11725_v43, %v9897_v42  ;;  %5003 = vmatpush.bf16.msra.mxu1 %v9642_v45 }
  0xac   :  { %v9625_v49 = vld [vmem:[#allocation4 + $0x1180] sm:$0xf]  ;;  %v11657_v51 = vld [vmem:[#allocation4 + $0x118c] sm:$0xf0]  ;;  %v9498_v56 = vor.u32 %v11625_v48, %v9497_v47  ;;  %5016 = vmatpush.bf16.msra.mxu2 %v9770_v46 }
  0xad   :  { %v9753_v52 = vld [vmem:[#allocation4 + $0x1280] sm:$0xf]  ;;  %v11689_v53 = vld [vmem:[#allocation4 + $0x128c] sm:$0xf0]  ;;  %v9626_v57 = vor.u32 %v11657_v51, %v9625_v49  ;;  %5029 = vmatpush.bf16.msra.mxu3 %v9898_v50 }
  0xae   :  { %v9881_v54 = vld [vmem:[#allocation4 + $0x1380] sm:$0xf]  ;;  %v11721_v55 = vld [vmem:[#allocation4 + $0x138c] sm:$0xf0]  ;;  %v9754_v58 = vor.u32 %v11689_v53, %v9753_v52  ;;  %4991 = vmatpush.bf16.msra.mxu0 %v9498_v56 }
  0xaf   :  { %v9481_v59 = vld [vmem:[#allocation4 + $0x1060] sm:$0xf]  ;;  %v11621_v60 = vld [vmem:[#allocation4 + $0x106c] sm:$0xf0]  ;;  %v9882_v62 = vor.u32 %v11721_v55, %v9881_v54  ;;  %5004 = vmatpush.bf16.msra.mxu1 %v9626_v57 }
  0xb0   :  { %v9609_v61 = vld [vmem:[#allocation4 + $0x1160] sm:$0xf]  ;;  %v11653_v63 = vld [vmem:[#allocation4 + $0x116c] sm:$0xf0]  ;;  %v9482_v4 = vor.u32 %v11621_v60, %v9481_v59  ;;  %5017 = vmatpush.bf16.msra.mxu2 %v9754_v58 }
  0xb1   :  { %v9737_v0 = vld [vmem:[#allocation4 + $0x1260] sm:$0xf]  ;;  %v11685_v1 = vld [vmem:[#allocation4 + $0x126c] sm:$0xf0]  ;;  %v9610_v5 = vor.u32 %v11653_v63, %v9609_v61  ;;  %5030 = vmatpush.bf16.msra.mxu3 %v9882_v62 }
  0xb2   :  { %v9865_v2 = vld [vmem:[#allocation4 + $0x1360] sm:$0xf]  ;;  %v11717_v3 = vld [vmem:[#allocation4 + $0x136c] sm:$0xf0]  ;;  %v9738_v6 = vor.u32 %v11685_v1, %v9737_v0  ;;  %4992 = vmatpush.bf16.msra.mxu0 %v9482_v4 }
  0xb3   :  { %v9465_v7 = vld [vmem:[#allocation4 + $0x1040] sm:$0xf]  ;;  %v11617_v10 = vld [vmem:[#allocation4 + $0x104c] sm:$0xf0]  ;;  %v9866_v12 = vor.u32 %v11717_v3, %v9865_v2  ;;  %5005 = vmatpush.bf16.msra.mxu1 %v9610_v5 }
  0xb4   :  { %v9593_v11 = vld [vmem:[#allocation4 + $0x1140] sm:$0xf]  ;;  %v11649_v14 = vld [vmem:[#allocation4 + $0x114c] sm:$0xf0]  ;;  %v9466_v28 = vor.u32 %v11617_v10, %v9465_v7  ;;  %5018 = vmatpush.bf16.msra.mxu2 %v9738_v6  ;;  %v131_v7 = vld [vmem:[%s12597_s0 + $0x88] sm:$0xff] }
  0xb5   :  { %v9721_v16 = vld [vmem:[#allocation4 + $0x1240] sm:$0xf]  ;;  %v11681_v17 = vld [vmem:[#allocation4 + $0x124c] sm:$0xf0]  ;;  %v9594_v29 = vor.u32 %v11649_v14, %v9593_v11  ;;  %5031 = vmatpush.bf16.msra.mxu3 %v9866_v12  ;;  %v133_v10 = vld [vmem:[%s12597_s0 + $0x98] sm:$0xff] }
  0xb6   :  { %v9849_v21 = vld [vmem:[#allocation4 + $0x1340] sm:$0xf]  ;;  %v11713_v24 = vld [vmem:[#allocation4 + $0x134c] sm:$0xf0]  ;;  %v9722_v30 = vor.u32 %v11681_v17, %v9721_v16  ;;  %4993 = vmatpush.bf16.msra.mxu0 %v9466_v28 }
  0xb7   :  { %v9449_v31 = vld [vmem:[#allocation4 + $0x1020] sm:$0xf]  ;;  %v11613_v32 = vld [vmem:[#allocation4 + $0x102c] sm:$0xf0]  ;;  %v9850_v35 = vor.u32 %v11713_v24, %v9849_v21  ;;  %5006 = vmatpush.bf16.msra.mxu1 %v9594_v29 }
  0xb8   :  { %v9577_v33 = vld [vmem:[#allocation4 + $0x1120] sm:$0xf]  ;;  %v11645_v36 = vld [vmem:[#allocation4 + $0x112c] sm:$0xf0]  ;;  %v9450_v44 = vor.u32 %v11613_v32, %v9449_v31  ;;  %5019 = vmatpush.bf16.msra.mxu2 %v9722_v30  ;;  %v12369_v32 = vpack.c.bf16 %v131_v7, %v131_v7 }
  0xb9   :  { %v9705_v39 = vld [vmem:[#allocation4 + $0x1220] sm:$0xf]  ;;  %v11677_v41 = vld [vmem:[#allocation4 + $0x122c] sm:$0xf0]  ;;  %v9578_v47 = vor.u32 %v11645_v36, %v9577_v33  ;;  %5032 = vmatpush.bf16.msra.mxu3 %v9850_v35  ;;  %v12371_v36 = vpack.c.bf16 %v133_v10, %v133_v10 }
  0xba   :  { %v9833_v42 = vld [vmem:[#allocation4 + $0x1320] sm:$0xf]  ;;  %v11709_v43 = vld [vmem:[#allocation4 + $0x132c] sm:$0xf0]  ;;  %v9706_v48 = vor.u32 %v11677_v41, %v9705_v39  ;;  %4994 = vmatpush.bf16.msra.mxu0 %v9450_v44 }
  0xbb   :  { %v9433_v45 = vld [vmem:[#allocation4 + $0x1000] sm:$0xf]  ;;  %v11609_v46 = vld [vmem:[#allocation4 + $0x100c] sm:$0xf0]  ;;  %v9834_v52 = vor.u32 %v11709_v43, %v9833_v42  ;;  %5007 = vmatpush.bf16.msra.mxu1 %v9578_v47 }
  0xbc   :  { %v9561_v49 = vld [vmem:[#allocation4 + $0x1100] sm:$0xf]  ;;  %v11641_v50 = vld [vmem:[#allocation4 + $0x110c] sm:$0xf0]  ;;  %v9434_v59 = vor.u32 %v11609_v46, %v9433_v45  ;;  %5020 = vmatpush.bf16.msra.mxu2 %v9706_v48 }
  0xbd   :  { %v9689_v51 = vld [vmem:[#allocation4 + $0x1200] sm:$0xf]  ;;  %v11673_v53 = vld [vmem:[#allocation4 + $0x120c] sm:$0xf0]  ;;  %v9562_v63 = vor.u32 %v11641_v50, %v9561_v49  ;;  %5033 = vmatpush.bf16.msra.mxu3 %v9834_v52 }
  0xbe   :  { %v9817_v54 = vld [vmem:[#allocation4 + $0x1300] sm:$0xf]  ;;  %v11705_v55 = vld [vmem:[#allocation4 + $0x130c] sm:$0xf0]  ;;  %v9690_v0 = vor.u32 %v11673_v53, %v9689_v51  ;;  %4995 = vmatpush.bf16.msra.mxu0 %v9434_v59 }
  0xbf   :  { %v10057_v56 = vld [vmem:[#allocation4 + $0x14e0] sm:$0xf]  ;;  %v11765_v57 = vld [vmem:[#allocation4 + $0x14ec] sm:$0xf0]  ;;  %v9818_v4 = vor.u32 %v11705_v55, %v9817_v54  ;;  %5008 = vmatpush.bf16.msra.mxu1 %v9562_v63 }
  0xc0   :  { %v10185_v58 = vld [vmem:[#allocation4 + $0x15e0] sm:$0xf]  ;;  %v11797_v60 = vld [vmem:[#allocation4 + $0x15ec] sm:$0xf0]  ;;  %v10058_v5 = vor.u32 %v11765_v57, %v10057_v56  ;;  %5021 = vmatpush.bf16.msra.mxu2 %v9690_v0 }
  0xc1   :  { %v10313_v61 = vld [vmem:[#allocation4 + $0x16e0] sm:$0xf]  ;;  %v11829_v62 = vld [vmem:[#allocation4 + $0x16ec] sm:$0xf0]  ;;  %v10186_v11 = vor.u32 %v11797_v60, %v10185_v58  ;;  %5034 = vmatpush.bf16.msra.mxu3 %v9818_v4 }
  0xc2   :  { %v10441_v1 = vld [vmem:[#allocation4 + $0x17e0] sm:$0xf]  ;;  %v11861_v2 = vld [vmem:[#allocation4 + $0x17ec] sm:$0xf0]  ;;  %v10314_v12 = vor.u32 %v11829_v62, %v10313_v61  ;;  %5040 = vmatpush.bf16.msrb.mxu0 %v10058_v5  ;;  %5009 = vmatmul.bf16.vlgmr.msra.gmra.mxu1 %v12369_v32 }
  0xc3   :  { %v130_v3 = vld [vmem:[%s12597_s0 + $0x80] sm:$0xff]  ;;  %v132_v6 = vld [vmem:[%s12597_s0 + $0x90] sm:$0xff]  ;;  %v10442_v21 = vor.u32 %v11861_v2, %v10441_v1  ;;  %5053 = vmatpush.bf16.msrb.mxu1 %v10186_v11 }
  0xc4   :  { %v10041_v14 = vld [vmem:[#allocation4 + $0x14c0] sm:$0xf]  ;;  %v11761_v16 = vld [vmem:[#allocation4 + $0x14cc] sm:$0xf0]  ;;  %v12365_v24 = vpack.c.bf16 %v130_v3, %v130_v3  ;;  %v12367_v31 = vpack.c.bf16 %v132_v6, %v132_v6  ;;  %5066 = vmatpush.bf16.msrb.mxu2 %v10314_v12  ;;  %5035 = vmatmul.bf16.vlgmr.msra.gmra.mxu3 %v12371_v36 }
  0xc5   :  { %v10169_v17 = vld [vmem:[#allocation4 + $0x15c0] sm:$0xf]  ;;  %v11793_v28 = vld [vmem:[#allocation4 + $0x15cc] sm:$0xf0]  ;;  %v10042_v39 = vor.u32 %v11761_v16, %v10041_v14  ;;  %5079 = vmatpush.bf16.msrb.mxu3 %v10442_v21 }
  0xc6   :  { %v10297_v29 = vld [vmem:[#allocation4 + $0x16c0] sm:$0xf]  ;;  %v11825_v30 = vld [vmem:[#allocation4 + $0x16cc] sm:$0xf0]  ;;  %v10170_v41 = vor.u32 %v11793_v28, %v10169_v17  ;;  %4996 = vmatmul.bf16.vlgmr.msra.gmra.mxu0 %v12365_v24  ;;  %5022 = vmatmul.bf16.vlgmr.msra.gmra.mxu2 %v12367_v31 }
  0xc7   :  { %v10425_v33 = vld [vmem:[#allocation4 + $0x17c0] sm:$0xf]  ;;  %v11857_v35 = vld [vmem:[#allocation4 + $0x17cc] sm:$0xf0]  ;;  %v10298_v42 = vor.u32 %v11825_v30, %v10297_v29  ;;  %5041 = vmatpush.bf16.msrb.mxu0 %v10042_v39 }
  0xc8   :  { %v10025_v43 = vld [vmem:[#allocation4 + $0x14a0] sm:$0xf]  ;;  %v11757_v44 = vld [vmem:[#allocation4 + $0x14ac] sm:$0xf0]  ;;  %v10426_v46 = vor.u32 %v11857_v35, %v10425_v33  ;;  %5054 = vmatpush.bf16.msrb.mxu1 %v10170_v41  ;;  %v4789_v28 = vpop.f32.mrf.mxu0 }
  0xc9   :  { %v10153_v45 = vld [vmem:[#allocation4 + $0x15a0] sm:$0xf]  ;;  %v11789_v47 = vld [vmem:[#allocation4 + $0x15ac] sm:$0xf0]  ;;  %v10026_v52 = vor.u32 %v11757_v44, %v10025_v43  ;;  %5067 = vmatpush.bf16.msrb.mxu2 %v10298_v42 }
  0xca   :  { %v10281_v48 = vld [vmem:[#allocation4 + $0x16a0] sm:$0xf]  ;;  %v11821_v49 = vld [vmem:[#allocation4 + $0x16ac] sm:$0xf0]  ;;  %v10154_v54 = vor.u32 %v11789_v47, %v10153_v45  ;;  %5080 = vmatpush.bf16.msrb.mxu3 %v10426_v46 }
  0xcb   :  { %v10409_v50 = vld [vmem:[#allocation4 + $0x17a0] sm:$0xf]  ;;  %v11853_v51 = vld [vmem:[#allocation4 + $0x17ac] sm:$0xf0]  ;;  %v10282_v55 = vor.u32 %v11821_v49, %v10281_v48  ;;  %5042 = vmatpush.bf16.msrb.mxu0 %v10026_v52  ;;  %v4802_v49 = vpop.f32.mrf.mxu1 }
  0xcc   :  { %v10009_v53 = vld [vmem:[#allocation4 + $0x1480] sm:$0xf]  ;;  %v11753_v56 = vld [vmem:[#allocation4 + $0x148c] sm:$0xf0]  ;;  %v10410_v59 = vor.u32 %v11853_v51, %v10409_v50  ;;  %5055 = vmatpush.bf16.msrb.mxu1 %v10154_v54 }
  0xcd   :  { %v10137_v57 = vld [vmem:[#allocation4 + $0x1580] sm:$0xf]  ;;  %v11785_v58 = vld [vmem:[#allocation4 + $0x158c] sm:$0xf0]  ;;  %v10010_v1 = vor.u32 %v11753_v56, %v10009_v53  ;;  %5068 = vmatpush.bf16.msrb.mxu2 %v10282_v55 }
  0xce   :  { %v10265_v60 = vld [vmem:[#allocation4 + $0x1680] sm:$0xf]  ;;  %v11817_v61 = vld [vmem:[#allocation4 + $0x168c] sm:$0xf0]  ;;  %v10138_v3 = vor.u32 %v11785_v58, %v10137_v57  ;;  %5081 = vmatpush.bf16.msrb.mxu3 %v10410_v59 }
  0xcf   :  { %v930_v62 = vld [vmem:[#allocation6] sm:$0xf]  ;;  %v11849_v0 = vld [vmem:[#allocation4 + $0x178c] sm:$0xf0]  ;;  %v10266_v4 = vor.u32 %v11817_v61, %v10265_v60  ;;  %5043 = vmatpush.bf16.msrb.mxu0 %v10010_v1  ;;  %v4815_v60 = vpop.f32.mrf.mxu2 }
  0xd0   :  { %v10393_v63 = vld [vmem:[#allocation4 + $0x1780] sm:$0xf]  ;;  %v11749_v5 = vld [vmem:[#allocation4 + $0x146c] sm:$0xf0]  ;;  %v932_v7 = vperm.slane %v930_v62, 0  ;;  %5056 = vmatpush.bf16.msrb.mxu1 %v10138_v3 }
  0xd1   :  { %v9993_v2 = vld [vmem:[#allocation4 + $0x1460] sm:$0xf]  ;;  %v10394_v10 = vor.u32 %v11849_v0, %v10393_v63  ;;  %v11781_v11 = vld [vmem:[#allocation4 + $0x156c] sm:$0xf0]  ;;  %5069 = vmatpush.bf16.msrb.mxu2 %v10266_v4  ;;  %v4828_v0 = vpop.f32.mrf.mxu3  ;;  %v4791_v4 = vpop.f32.mrf.mxu0 }
  0xd2   :  { %v10121_v6 = vld [vmem:[#allocation4 + $0x1560] sm:$0xf]  ;;  %v11813_v14 = vld [vmem:[#allocation4 + $0x166c] sm:$0xf0]  ;;  %v9994_v21 = vor.u32 %v11749_v5, %v9993_v2  ;;  %v4790_v41 = vadd.f32 %v4789_v28, %v932_v7  ;;  %v11123_v28 = vld [vmem:[#allocation4 + $0xe4] sm:$0xf] }
  0xd3   :  { %v10249_v12 = vld [vmem:[#allocation4 + $0x1660] sm:$0xf]  ;;  %v11845_v17 = vld [vmem:[#allocation4 + $0x176c] sm:$0xf0]  ;;  %v10122_v29 = vor.u32 %v11781_v11, %v10121_v6  ;;  %5082 = vmatpush.bf16.msrb.mxu3 %v10394_v10  ;;  %v7867_v4 = vld [vmem:[#allocation4 + $0x3d0] sm:$0xf0] }
  0xd4   :  { %v10377_v16 = vld [vmem:[#allocation4 + $0x1760] sm:$0xf]  ;;  %v10250_v30 = vor.u32 %v11813_v14, %v10249_v12  ;;  %v11745_v35 = vld [vmem:[#allocation4 + $0x144c] sm:$0xf0]  ;;  %5044 = vmatpush.bf16.msrb.mxu0 %v9994_v21  ;;  %v4803_v55 = vadd.f32 %v4802_v49, %v4790_v41  ;;  %v7755_v41 = vld [vmem:[#allocation4 + $0x2f0] sm:$0xf0] }
  0xd5   :  { %v9977_v33 = vld [vmem:[#allocation4 + $0x1440] sm:$0xf]  ;;  %v10378_v42 = vor.u32 %v11845_v17, %v10377_v16  ;;  %v11777_v43 = vld [vmem:[#allocation4 + $0x154c] sm:$0xf0]  ;;  %5057 = vmatpush.bf16.msrb.mxu1 %v10122_v29  ;;  %v7499_v29 = vld [vmem:[#allocation4 + $0xf0] sm:$0xf0] }
  0xd6   :  { %v10105_v39 = vld [vmem:[#allocation4 + $0x1540] sm:$0xf]  ;;  %v11809_v45 = vld [vmem:[#allocation4 + $0x164c] sm:$0xf0]  ;;  %v9978_v48 = vor.u32 %v11745_v35, %v9977_v33  ;;  %5070 = vmatpush.bf16.msrb.mxu2 %v10250_v30  ;;  %v4816_v63 = vadd.f32 %v4815_v60, %v4803_v55  ;;  %v11155_v30 = vld [vmem:[#allocation4 + $0x1e4] sm:$0xf]  ;;  %v7502_v49 = vor.u32 %v11123_v28, %v7499_v29 }
  0xd7   :  { %v10233_v44 = vld [vmem:[#allocation4 + $0x1640] sm:$0xf]  ;;  %v11841_v47 = vld [vmem:[#allocation4 + $0x174c] sm:$0xf0]  ;;  %v10106_v50 = vor.u32 %v11777_v43, %v10105_v39  ;;  %5083 = vmatpush.bf16.msrb.mxu3 %v10378_v42  ;;  %v7627_v35 = vld [vmem:[#allocation4 + $0x1f0] sm:$0xf0]  ;;  %v4804_v42 = vpop.f32.mrf.mxu1 }
  0xd8   :  { %v10361_v46 = vld [vmem:[#allocation4 + $0x1740] sm:$0xf]  ;;  %v10234_v51 = vor.u32 %v11809_v45, %v10233_v44  ;;  %v11741_v53 = vld [vmem:[#allocation4 + $0x142c] sm:$0xf0]  ;;  %5045 = vmatpush.bf16.msrb.mxu0 %v9978_v48  ;;  %v12377_v12 = vadd.f32 %v4828_v0, %v4816_v63  ;;  %v11187_v39 = vld [vmem:[#allocation4 + $0x2e4] sm:$0xf] }
  0xd9   :  { %v9961_v52 = vld [vmem:[#allocation4 + $0x1420] sm:$0xf]  ;;  %v10362_v56 = vor.u32 %v11841_v47, %v10361_v46  ;;  %v11773_v57 = vld [vmem:[#allocation4 + $0x152c] sm:$0xf0]  ;;  %5058 = vmatpush.bf16.msrb.mxu1 %v10106_v50  ;;  %v11219_v45 = vld [vmem:[#allocation4 + $0x3e4] sm:$0xf]  ;;  %v7758_v55 = vor.u32 %v11187_v39, %v7755_v41 }
  0xda   :  { %v10089_v54 = vld [vmem:[#allocation4 + $0x1520] sm:$0xf]  ;;  %v11805_v59 = vld [vmem:[#allocation4 + $0x162c] sm:$0xf0]  ;;  %v9962_v1 = vor.u32 %v11741_v53, %v9961_v52  ;;  %5071 = vmatpush.bf16.msrb.mxu2 %v10234_v51  ;;  %v7883_v46 = vld [vmem:[#allocation4 + $0x3f0] sm:$0xf0]  ;;  %v4817_v53 = vpop.f32.mrf.mxu2 }
  0xdb   :  { %v10217_v58 = vld [vmem:[#allocation4 + $0x1620] sm:$0xf]  ;;  %v11837_v62 = vld [vmem:[#allocation4 + $0x172c] sm:$0xf0]  ;;  %v10090_v5 = vor.u32 %v11773_v57, %v10089_v54  ;;  %5084 = vmatpush.bf16.msrb.mxu3 %v10362_v56  ;;  %v135_v51 = vld [vmem:[%s12597_s0 + $0xa8] sm:$0xff]  ;;  %v7630_v54 = vor.u32 %v11155_v30, %v7627_v35  ;;  %v7886_v60 = vor.u32 %v11219_v45, %v7883_v46 }
  0xdc   :  { %v10345_v61 = vld [vmem:[#allocation4 + $0x1720] sm:$0xf]  ;;  %v11737_v3 = vld [vmem:[#allocation4 + $0x140c] sm:$0xf0]  ;;  %v10218_v6 = vor.u32 %v11805_v59, %v10217_v58  ;;  %5046 = vmatpush.bf16.msrb.mxu0 %v9962_v1  ;;  %v137_v52 = vld [vmem:[%s12597_s0 + $0xb8] sm:$0xff]  ;;  %v4830_v59 = vpop.f32.mrf.mxu3 }
  0xdd   :  { %v9945_v2 = vld [vmem:[#allocation4 + $0x1400] sm:$0xf]  ;;  %v11769_v10 = vld [vmem:[#allocation4 + $0x150c] sm:$0xf0]  ;;  %v10346_v14 = vor.u32 %v11837_v62, %v10345_v61  ;;  %5059 = vmatpush.bf16.msrb.mxu1 %v10090_v5  ;;  %v11119_v56 = vld [vmem:[#allocation4 + $0xc4] sm:$0xf]  ;;  %v12397_v5 = vpack.c.bf16 %v137_v52, %v137_v52 }
  0xde   :  { %v10073_v7 = vld [vmem:[#allocation4 + $0x1500] sm:$0xf]  ;;  %v11801_v16 = vld [vmem:[#allocation4 + $0x160c] sm:$0xf0]  ;;  %v9946_v33 = vor.u32 %v11737_v3, %v9945_v2  ;;  %5072 = vmatpush.bf16.msrb.mxu2 %v10218_v6  ;;  %v7483_v57 = vld [vmem:[#allocation4 + $0xd0] sm:$0xf0]  ;;  %v12395_v2 = vpack.c.bf16 %v135_v51, %v135_v51 }
  0xdf   :  { %v10201_v11 = vld [vmem:[#allocation4 + $0x1600] sm:$0xf]  ;;  %v11833_v21 = vld [vmem:[#allocation4 + $0x170c] sm:$0xf0]  ;;  %v10074_v43 = vor.u32 %v11769_v10, %v10073_v7  ;;  %5085 = vmatpush.bf16.msrb.mxu3 %v10346_v14  ;;  %v11151_v58 = vld [vmem:[#allocation4 + $0x1c4] sm:$0xf]  ;;  %v7486_v6 = vor.u32 %v11119_v56, %v7483_v57  ;;  %v4854_v59 = vpop.f32.mrf.mxu1 }
  0xe0   :  { %v10329_v17 = vld [vmem:[#allocation4 + $0x1700] sm:$0xf]  ;;  %v10202_v44 = vor.u32 %v11801_v16, %v10201_v11  ;;  %v136_v50 = vld [vmem:[%s12597_s0 + $0xb0] sm:$0xff]  ;;  %5047 = vmatpush.bf16.msrb.mxu0 %v9946_v33  ;;  %v11183_v63 = vld [vmem:[#allocation4 + $0x2c4] sm:$0xf] }
  0xe1   :  { %v134_v47 = vld [vmem:[%s12597_s0 + $0xa0] sm:$0xff]  ;;  %v10330_v48 = vor.u32 %v11833_v21, %v10329_v17  ;;  %v7611_v62 = vld [vmem:[#allocation4 + $0x1d0] sm:$0xf0]  ;;  %5060 = vmatpush.bf16.msrb.mxu1 %v10074_v43  ;;  %v12393_v1 = vpack.c.bf16 %v136_v50, %v136_v50  ;;  %v4841_v52 = vpop.f32.mrf.mxu0 }
  0xe2   :  { %v12391_v61 = vpack.c.bf16 %v134_v47, %v134_v47  ;;  %v7739_v0 = vld [vmem:[#allocation4 + $0x2d0] sm:$0xf0]  ;;  %5073 = vmatpush.bf16.msrb.mxu2 %v10202_v44  ;;  %v11215_v3 = vld [vmem:[#allocation4 + $0x3c4] sm:$0xf]  ;;  %v7614_v7 = vor.u32 %v11151_v58, %v7611_v62  ;;  %v4842_v58 = vadd.f32 %v4841_v52, %v12377_v12 }
  0xe3   :  { %5086 = vmatpush.bf16.msrb.mxu3 %v10330_v48  ;;  %v7742_v10 = vor.u32 %v11183_v63, %v7739_v0  ;;  %v11115_v11 = vld [vmem:[#allocation4 + $0xa4] sm:$0xf]  ;;  %v7467_v14 = vld [vmem:[#allocation4 + $0xb0] sm:$0xf0]  ;;  %v7870_v17 = vor.u32 %v11215_v3, %v7867_v4 }
  0xe4   :  { %5092 = vmatpush.bf16.msra.mxu0 %v7502_v49  ;;  %v11147_v16 = vld [vmem:[#allocation4 + $0x1a4] sm:$0xf]  ;;  %v7595_v21 = vld [vmem:[#allocation4 + $0x1b0] sm:$0xf0]  ;;  %5061 = vmatmul.bf16.vlgmr.msrb.gmra.mxu1 %v12395_v2  ;;  %v7470_v35 = vor.u32 %v11115_v11, %v7467_v14 }
  0xe5   :  { %5105 = vmatpush.bf16.msra.mxu1 %v7630_v54  ;;  %5048 = vmatmul.bf16.vlgmr.msrb.gmra.mxu0 %v12391_v61  ;;  %v11179_v28 = vld [vmem:[#allocation4 + $0x2a4] sm:$0xf]  ;;  %v7723_v29 = vld [vmem:[#allocation4 + $0x2b0] sm:$0xf0]  ;;  %v7598_v39 = vor.u32 %v11147_v16, %v7595_v21 }
  0xe6   :  { %5118 = vmatpush.bf16.msra.mxu2 %v7758_v55  ;;  %v11211_v30 = vld [vmem:[#allocation4 + $0x3a4] sm:$0xf]  ;;  %v7851_v33 = vld [vmem:[#allocation4 + $0x3b0] sm:$0xf0]  ;;  %5087 = vmatmul.bf16.vlgmr.msrb.gmra.mxu3 %v12397_v5  ;;  %v7726_v41 = vor.u32 %v11179_v28, %v7723_v29  ;;  %v4867_v21 = vpop.f32.mrf.mxu2 }
  0xe7   :  { %5131 = vmatpush.bf16.msra.mxu3 %v7886_v60  ;;  %5074 = vmatmul.bf16.vlgmr.msrb.gmra.mxu2 %v12393_v1  ;;  %v11111_v42 = vld [vmem:[#allocation4 + $0x84] sm:$0xf]  ;;  %v7451_v43 = vld [vmem:[#allocation4 + $0x90] sm:$0xf0]  ;;  %v7854_v45 = vor.u32 %v11211_v30, %v7851_v33 }
  0xe8   :  { %5093 = vmatpush.bf16.msra.mxu0 %v7486_v6  ;;  %v11143_v44 = vld [vmem:[#allocation4 + $0x184] sm:$0xf]  ;;  %v7579_v46 = vld [vmem:[#allocation4 + $0x190] sm:$0xf0]  ;;  %v7454_v51 = vor.u32 %v11111_v42, %v7451_v43  ;;  %v4855_v6 = vadd.f32 %v4854_v59, %v4842_v58 }
  0xe9   :  { %5106 = vmatpush.bf16.msra.mxu1 %v7614_v7  ;;  %v11175_v47 = vld [vmem:[#allocation4 + $0x284] sm:$0xf]  ;;  %v7707_v48 = vld [vmem:[#allocation4 + $0x290] sm:$0xf0]  ;;  %v7582_v53 = vor.u32 %v11143_v44, %v7579_v46  ;;  %v4843_v44 = vpop.f32.mrf.mxu0 }
  0xea   :  { %5119 = vmatpush.bf16.msra.mxu2 %v7742_v10  ;;  %v11207_v49 = vld [vmem:[#allocation4 + $0x384] sm:$0xf]  ;;  %v7835_v50 = vld [vmem:[#allocation4 + $0x390] sm:$0xf0]  ;;  %v7710_v54 = vor.u32 %v11175_v47, %v7707_v48  ;;  %v4868_v33 = vadd.f32 %v4867_v21, %v4855_v6 }
  0xeb   :  { %5132 = vmatpush.bf16.msra.mxu3 %v7870_v17  ;;  %v11107_v55 = vld [vmem:[#allocation4 + $0x64] sm:$0xf]  ;;  %v7435_v56 = vld [vmem:[#allocation4 + $0x70] sm:$0xf0]  ;;  %v7838_v60 = vor.u32 %v11207_v49, %v7835_v50  ;;  %v4856_v50 = vpop.f32.mrf.mxu1 }
  0xec   :  { %5094 = vmatpush.bf16.msra.mxu0 %v7470_v35  ;;  %v11139_v57 = vld [vmem:[#allocation4 + $0x164] sm:$0xf]  ;;  %v7563_v62 = vld [vmem:[#allocation4 + $0x170] sm:$0xf0]  ;;  %v7438_v7 = vor.u32 %v11107_v55, %v7435_v56  ;;  %v4880_v35 = vpop.f32.mrf.mxu3 }
  0xed   :  { %5107 = vmatpush.bf16.msra.mxu1 %v7598_v39  ;;  %v11171_v63 = vld [vmem:[#allocation4 + $0x264] sm:$0xf]  ;;  %v7691_v0 = vld [vmem:[#allocation4 + $0x270] sm:$0xf0]  ;;  %v7566_v10 = vor.u32 %v11139_v57, %v7563_v62  ;;  %v12404_v43 = vadd.f32 %v4880_v35, %v4868_v33 }
  0xee   :  { %5120 = vmatpush.bf16.msra.mxu2 %v7726_v41  ;;  %v11203_v3 = vld [vmem:[#allocation4 + $0x364] sm:$0xf]  ;;  %v7819_v4 = vld [vmem:[#allocation4 + $0x370] sm:$0xf0]  ;;  %v7694_v11 = vor.u32 %v11171_v63, %v7691_v0 }
  0xef   :  { %5133 = vmatpush.bf16.msra.mxu3 %v7854_v45  ;;  %v11103_v14 = vld [vmem:[#allocation4 + $0x44] sm:$0xf]  ;;  %v7419_v16 = vld [vmem:[#allocation4 + $0x50] sm:$0xf0]  ;;  %v7822_v12 = vor.u32 %v11203_v3, %v7819_v4  ;;  %v4869_v4 = vpop.f32.mrf.mxu2 }
  0xf0   :  { %5095 = vmatpush.bf16.msra.mxu0 %v7454_v51  ;;  %v11135_v17 = vld [vmem:[#allocation4 + $0x144] sm:$0xf]  ;;  %v7547_v28 = vld [vmem:[#allocation4 + $0x150] sm:$0xf0]  ;;  %v7422_v42 = vor.u32 %v11103_v14, %v7419_v16 }
  0xf1   :  { %5108 = vmatpush.bf16.msra.mxu1 %v7582_v53  ;;  %v11167_v29 = vld [vmem:[#allocation4 + $0x244] sm:$0xf]  ;;  %v7675_v30 = vld [vmem:[#allocation4 + $0x250] sm:$0xf0]  ;;  %v7550_v45 = vor.u32 %v11135_v17, %v7547_v28 }
  0xf2   :  { %5121 = vmatpush.bf16.msra.mxu2 %v7710_v54  ;;  %v11199_v39 = vld [vmem:[#allocation4 + $0x344] sm:$0xf]  ;;  %v7803_v41 = vld [vmem:[#allocation4 + $0x350] sm:$0xf0]  ;;  %v7678_v46 = vor.u32 %v11167_v29, %v7675_v30 }
  0xf3   :  { %5134 = vmatpush.bf16.msra.mxu3 %v7838_v60  ;;  %v11099_v47 = vld [vmem:[#allocation4 + $0x24] sm:$0xf]  ;;  %v7403_v48 = vld [vmem:[#allocation4 + $0x30] sm:$0xf0]  ;;  %v7806_v51 = vor.u32 %v11199_v39, %v7803_v41 }
  0xf4   :  { %5096 = vmatpush.bf16.msra.mxu0 %v7438_v7  ;;  %v11131_v49 = vld [vmem:[#allocation4 + $0x124] sm:$0xf]  ;;  %v7531_v52 = vld [vmem:[#allocation4 + $0x130] sm:$0xf0]  ;;  %v7406_v57 = vor.u32 %v11099_v47, %v7403_v48  ;;  %v4882_v14 = vpop.f32.mrf.mxu3 }
  0xf5   :  { %5109 = vmatpush.bf16.msra.mxu1 %v7566_v10  ;;  %v11163_v53 = vld [vmem:[#allocation4 + $0x224] sm:$0xf]  ;;  %v7659_v54 = vld [vmem:[#allocation4 + $0x230] sm:$0xf0]  ;;  %v7534_v60 = vor.u32 %v11131_v49, %v7531_v52 }
  0xf6   :  { %5122 = vmatpush.bf16.msra.mxu2 %v7694_v11  ;;  %v11195_v55 = vld [vmem:[#allocation4 + $0x324] sm:$0xf]  ;;  %v7787_v56 = vld [vmem:[#allocation4 + $0x330] sm:$0xf0]  ;;  %v7662_v62 = vor.u32 %v11163_v53, %v7659_v54 }
  0xf7   :  { %5135 = vmatpush.bf16.msra.mxu3 %v7822_v12  ;;  %v11095_v58 = vld [vmem:[#allocation4 + $0x4] sm:$0xf]  ;;  %v7387_v59 = vld [vmem:[#allocation4 + $0x10] sm:$0xf0]  ;;  %v7790_v6 = vor.u32 %v11195_v55, %v7787_v56 }
  0xf8   :  { %5097 = vmatpush.bf16.msra.mxu0 %v7422_v42  ;;  %v11127_v63 = vld [vmem:[#allocation4 + $0x104] sm:$0xf]  ;;  %v7515_v0 = vld [vmem:[#allocation4 + $0x110] sm:$0xf0]  ;;  %v7390_v12 = vor.u32 %v11095_v58, %v7387_v59 }
  0xf9   :  { %5110 = vmatpush.bf16.msra.mxu1 %v7550_v45  ;;  %v11159_v3 = vld [vmem:[#allocation4 + $0x204] sm:$0xf]  ;;  %v7643_v7 = vld [vmem:[#allocation4 + $0x210] sm:$0xf0]  ;;  %v7518_v33 = vor.u32 %v11127_v63, %v7515_v0 }
  0xfa   :  { %5123 = vmatpush.bf16.msra.mxu2 %v7678_v46  ;;  %v11191_v10 = vld [vmem:[#allocation4 + $0x304] sm:$0xf]  ;;  %v7771_v11 = vld [vmem:[#allocation4 + $0x310] sm:$0xf0]  ;;  %v7646_v35 = vor.u32 %v11159_v3, %v7643_v7 }
  0xfb   :  { %5136 = vmatpush.bf16.msra.mxu3 %v7806_v51  ;;  %v11251_v16 = vld [vmem:[#allocation4 + $0x4e4] sm:$0xf]  ;;  %v8011_v17 = vld [vmem:[#allocation4 + $0x4f0] sm:$0xf0]  ;;  %v7774_v42 = vor.u32 %v11191_v10, %v7771_v11 }
  0xfc   :  { %v11283_v21 = vld [vmem:[#allocation4 + $0x5e4] sm:$0xf]  ;;  %5098 = vmatpush.bf16.msra.mxu0 %v7406_v57  ;;  %v8139_v28 = vld [vmem:[#allocation4 + $0x5f0] sm:$0xf0]  ;;  %v8014_v44 = vor.u32 %v11251_v16, %v8011_v17 }
  0xfd   :  { %v11315_v29 = vld [vmem:[#allocation4 + $0x6e4] sm:$0xf]  ;;  %v8267_v30 = vld [vmem:[#allocation4 + $0x6f0] sm:$0xf0]  ;;  %5111 = vmatpush.bf16.msra.mxu1 %v7534_v60  ;;  %v8142_v45 = vor.u32 %v11283_v21, %v8139_v28 }
  0xfe   :  { %5124 = vmatpush.bf16.msra.mxu2 %v7662_v62  ;;  %v11347_v39 = vld [vmem:[#allocation4 + $0x7e4] sm:$0xf]  ;;  %v8395_v41 = vld [vmem:[#allocation4 + $0x7f0] sm:$0xf0]  ;;  %v8270_v46 = vor.u32 %v11315_v29, %v8267_v30 }
  0xff   :  { %5137 = vmatpush.bf16.msra.mxu3 %v7790_v6  ;;  %v11247_v47 = vld [vmem:[#allocation4 + $0x4c4] sm:$0xf]  ;;  %v7995_v48 = vld [vmem:[#allocation4 + $0x4d0] sm:$0xf0]  ;;  %v8398_v50 = vor.u32 %v11347_v39, %v8395_v41 }
 0x100   :  { %v11279_v49 = vld [vmem:[#allocation4 + $0x5c4] sm:$0xf]  ;;  %5099 = vmatpush.bf16.msra.mxu0 %v7390_v12  ;;  %v8123_v51 = vld [vmem:[#allocation4 + $0x5d0] sm:$0xf0]  ;;  %v7998_v56 = vor.u32 %v11247_v47, %v7995_v48 }
 0x101   :  { %v11311_v52 = vld [vmem:[#allocation4 + $0x6c4] sm:$0xf]  ;;  %v8251_v53 = vld [vmem:[#allocation4 + $0x6d0] sm:$0xf0]  ;;  %5112 = vmatpush.bf16.msra.mxu1 %v7518_v33  ;;  %v8126_v57 = vor.u32 %v11279_v49, %v8123_v51  ;;  %v4893_v33 = vpop.f32.mrf.mxu0 }
 0x102   :  { %5125 = vmatpush.bf16.msra.mxu2 %v7646_v35  ;;  %v11343_v54 = vld [vmem:[#allocation4 + $0x7c4] sm:$0xf]  ;;  %v8379_v55 = vld [vmem:[#allocation4 + $0x7d0] sm:$0xf0]  ;;  %v8254_v58 = vor.u32 %v11311_v52, %v8251_v53  ;;  %v4894_v41 = vadd.f32 %v4893_v33, %v12404_v43 }
 0x103   :  { %5138 = vmatpush.bf16.msra.mxu3 %v7774_v42  ;;  %v11243_v59 = vld [vmem:[#allocation4 + $0x4a4] sm:$0xf]  ;;  %v7979_v60 = vld [vmem:[#allocation4 + $0x4b0] sm:$0xf0]  ;;  %v8382_v63 = vor.u32 %v11343_v54, %v8379_v55  ;;  %5100 = vmatmul.bf16.vlgmr.msra.gmra.mxu0 %v12265_v9 }
 0x104   :  { %5144 = vmatpush.bf16.msrb.mxu0 %v8014_v44  ;;  %v11275_v62 = vld [vmem:[#allocation4 + $0x5a4] sm:$0xf]  ;;  %v8107_v0 = vld [vmem:[#allocation4 + $0x5b0] sm:$0xf0]  ;;  %v7982_v10 = vor.u32 %v11243_v59, %v7979_v60  ;;  %5113 = vmatmul.bf16.vlgmr.msra.gmra.mxu1 %v12278_v25  ;;  %v4906_v44 = vpop.f32.mrf.mxu1 }
 0x105   :  { %5157 = vmatpush.bf16.msrb.mxu1 %v8142_v45  ;;  %v11307_v3 = vld [vmem:[#allocation4 + $0x6a4] sm:$0xf]  ;;  %v8235_v4 = vld [vmem:[#allocation4 + $0x6b0] sm:$0xf0]  ;;  %5126 = vmatmul.bf16.vlgmr.msra.gmra.mxu2 %v12263_v8  ;;  %v8110_v11 = vor.u32 %v11275_v62, %v8107_v0  ;;  %v4907_v51 = vadd.f32 %v4906_v44, %v4894_v41 }
 0x106   :  { %5170 = vmatpush.bf16.msrb.mxu2 %v8270_v46  ;;  %v11339_v6 = vld [vmem:[#allocation4 + $0x7a4] sm:$0xf]  ;;  %v8363_v7 = vld [vmem:[#allocation4 + $0x7b0] sm:$0xf0]  ;;  %5139 = vmatmul.bf16.vlgmr.msra.gmra.mxu3 %v12270_v15  ;;  %v8238_v14 = vor.u32 %v11307_v3, %v8235_v4 }
 0x107   :  { %5183 = vmatpush.bf16.msrb.mxu3 %v8398_v50  ;;  %v11239_v16 = vld [vmem:[#allocation4 + $0x484] sm:$0xf]  ;;  %v7963_v17 = vld [vmem:[#allocation4 + $0x490] sm:$0xf0]  ;;  %v8366_v12 = vor.u32 %v11339_v6, %v8363_v7  ;;  %v4919_v0 = vpop.f32.mrf.mxu2 }
 0x108   :  { %5145 = vmatpush.bf16.msrb.mxu0 %v7998_v56  ;;  %v11271_v21 = vld [vmem:[#allocation4 + $0x584] sm:$0xf]  ;;  %v8091_v28 = vld [vmem:[#allocation4 + $0x590] sm:$0xf0]  ;;  %v7966_v42 = vor.u32 %v11239_v16, %v7963_v17  ;;  %v4920_v7 = vadd.f32 %v4919_v0, %v4907_v51 }
 0x109   :  { %5158 = vmatpush.bf16.msrb.mxu1 %v8126_v57  ;;  %v11303_v29 = vld [vmem:[#allocation4 + $0x684] sm:$0xf]  ;;  %v8219_v30 = vld [vmem:[#allocation4 + $0x690] sm:$0xf0]  ;;  %v8094_v45 = vor.u32 %v11271_v21, %v8091_v28  ;;  %v4895_v16 = vpop.f32.mrf.mxu0 }
 0x10a   :  { %5171 = vmatpush.bf16.msrb.mxu2 %v8254_v58  ;;  %v11335_v35 = vld [vmem:[#allocation4 + $0x784] sm:$0xf]  ;;  %v8347_v39 = vld [vmem:[#allocation4 + $0x790] sm:$0xf0]  ;;  %v8222_v46 = vor.u32 %v11303_v29, %v8219_v30 }
 0x10b   :  { %5184 = vmatpush.bf16.msrb.mxu3 %v8382_v63  ;;  %v11235_v47 = vld [vmem:[#allocation4 + $0x464] sm:$0xf]  ;;  %v7947_v48 = vld [vmem:[#allocation4 + $0x470] sm:$0xf0]  ;;  %v8350_v50 = vor.u32 %v11335_v35, %v8347_v39 }
 0x10c   :  { %5146 = vmatpush.bf16.msrb.mxu0 %v7982_v10  ;;  %v11267_v49 = vld [vmem:[#allocation4 + $0x564] sm:$0xf]  ;;  %v8075_v52 = vld [vmem:[#allocation4 + $0x570] sm:$0xf0]  ;;  %v7950_v57 = vor.u32 %v11235_v47, %v7947_v48  ;;  %v4932_v10 = vpop.f32.mrf.mxu3  ;;  %v4908_v21 = vpop.f32.mrf.mxu1 }
 0x10d   :  { %5159 = vmatpush.bf16.msrb.mxu1 %v8110_v11  ;;  %v11299_v53 = vld [vmem:[#allocation4 + $0x664] sm:$0xf]  ;;  %v8203_v54 = vld [vmem:[#allocation4 + $0x670] sm:$0xf0]  ;;  %v8078_v43 = vor.u32 %v11267_v49, %v8075_v52 }
 0x10e   :  { %5172 = vmatpush.bf16.msrb.mxu2 %v8238_v14  ;;  %v11331_v55 = vld [vmem:[#allocation4 + $0x764] sm:$0xf]  ;;  %v8331_v56 = vld [vmem:[#allocation4 + $0x770] sm:$0xf0]  ;;  %v8206_v58 = vor.u32 %v11299_v53, %v8203_v54 }
 0x10f   :  { %5185 = vmatpush.bf16.msrb.mxu3 %v8366_v12  ;;  %v11231_v59 = vld [vmem:[#allocation4 + $0x444] sm:$0xf]  ;;  %v7931_v60 = vld [vmem:[#allocation4 + $0x450] sm:$0xf0]  ;;  %v8334_v63 = vor.u32 %v11331_v55, %v8331_v56  ;;  %v12411_v12 = vadd.f32 %v4932_v10, %v4920_v7 }
 0x110   :  { %5147 = vmatpush.bf16.msrb.mxu0 %v7966_v42  ;;  %v11263_v62 = vld [vmem:[#allocation4 + $0x544] sm:$0xf]  ;;  %v8059_v3 = vld [vmem:[#allocation4 + $0x550] sm:$0xf0]  ;;  %v7934_v17 = vor.u32 %v11231_v59, %v7931_v60 }
 0x111   :  { %5160 = vmatpush.bf16.msrb.mxu1 %v8094_v45  ;;  %v11295_v4 = vld [vmem:[#allocation4 + $0x644] sm:$0xf]  ;;  %v8187_v6 = vld [vmem:[#allocation4 + $0x650] sm:$0xf0]  ;;  %v8062_v28 = vor.u32 %v11263_v62, %v8059_v3 }
 0x112   :  { %5173 = vmatpush.bf16.msrb.mxu2 %v8222_v46  ;;  %v11327_v11 = vld [vmem:[#allocation4 + $0x744] sm:$0xf]  ;;  %v8315_v14 = vld [vmem:[#allocation4 + $0x750] sm:$0xf0]  ;;  %v8190_v29 = vor.u32 %v11295_v4, %v8187_v6 }
 0x113   :  { %5186 = vmatpush.bf16.msrb.mxu3 %v8350_v50  ;;  %v11227_v30 = vld [vmem:[#allocation4 + $0x424] sm:$0xf]  ;;  %v7915_v33 = vld [vmem:[#allocation4 + $0x430] sm:$0xf0]  ;;  %v8318_v39 = vor.u32 %v11327_v11, %v8315_v14 }
 0x114   :  { %5148 = vmatpush.bf16.msrb.mxu0 %v7950_v57  ;;  %v11259_v35 = vld [vmem:[#allocation4 + $0x524] sm:$0xf]  ;;  %v8043_v41 = vld [vmem:[#allocation4 + $0x530] sm:$0xf0]  ;;  %v7918_v47 = vor.u32 %v11227_v30, %v7915_v33 }
 0x115   :  { %5161 = vmatpush.bf16.msrb.mxu1 %v8078_v43  ;;  %v11291_v42 = vld [vmem:[#allocation4 + $0x624] sm:$0xf]  ;;  %v8171_v44 = vld [vmem:[#allocation4 + $0x630] sm:$0xf0]  ;;  %v8046_v50 = vor.u32 %v11259_v35, %v8043_v41 }
 0x116   :  { %5174 = vmatpush.bf16.msrb.mxu2 %v8206_v58  ;;  %v11323_v45 = vld [vmem:[#allocation4 + $0x724] sm:$0xf]  ;;  %v8299_v46 = vld [vmem:[#allocation4 + $0x730] sm:$0xf0]  ;;  %v8174_v51 = vor.u32 %v11291_v42, %v8171_v44  ;;  %v4921_v58 = vpop.f32.mrf.mxu2 }
 0x117   :  { %5187 = vmatpush.bf16.msrb.mxu3 %v8334_v63  ;;  %v11223_v48 = vld [vmem:[#allocation4 + $0x404] sm:$0xf]  ;;  %v7899_v49 = vld [vmem:[#allocation4 + $0x410] sm:$0xf0]  ;;  %v8302_v55 = vor.u32 %v11323_v45, %v8299_v46  ;;  %v4934_v63 = vpop.f32.mrf.mxu3 }
 0x118   :  { %5149 = vmatpush.bf16.msrb.mxu0 %v7934_v17  ;;  %v11255_v52 = vld [vmem:[#allocation4 + $0x504] sm:$0xf]  ;;  %v8027_v53 = vld [vmem:[#allocation4 + $0x510] sm:$0xf0]  ;;  %v7902_v0 = vor.u32 %v11223_v48, %v7899_v49 }
 0x119   :  { %5162 = vmatpush.bf16.msrb.mxu1 %v8062_v28  ;;  %v11287_v54 = vld [vmem:[#allocation4 + $0x604] sm:$0xf]  ;;  %v8155_v56 = vld [vmem:[#allocation4 + $0x610] sm:$0xf0]  ;;  %v8030_v7 = vor.u32 %v11255_v52, %v8027_v53 }
 0x11a   :  { %5175 = vmatpush.bf16.msrb.mxu2 %v8190_v29  ;;  %v11319_v57 = vld [vmem:[#allocation4 + $0x704] sm:$0xf]  ;;  %v8283_v43 = vld [vmem:[#allocation4 + $0x710] sm:$0xf0]  ;;  %v8158_v10 = vor.u32 %v11287_v54, %v8155_v56 }
 0x11b   :  { %5188 = vmatpush.bf16.msrb.mxu3 %v8318_v39  ;;  %v11379_v59 = vld [vmem:[#allocation4 + $0x8e4] sm:$0xf]  ;;  %v8523_v60 = vld [vmem:[#allocation4 + $0x8f0] sm:$0xf0]  ;;  %v8286_v16 = vor.u32 %v11319_v57, %v8283_v43 }
 0x11c   :  { %v11411_v62 = vld [vmem:[#allocation4 + $0x9e4] sm:$0xf]  ;;  %5150 = vmatpush.bf16.msrb.mxu0 %v7918_v47  ;;  %v8651_v3 = vld [vmem:[#allocation4 + $0x9f0] sm:$0xf0]  ;;  %v8526_v17 = vor.u32 %v11379_v59, %v8523_v60 }
 0x11d   :  { %v11443_v4 = vld [vmem:[#allocation4 + $0xae4] sm:$0xf]  ;;  %v8779_v6 = vld [vmem:[#allocation4 + $0xaf0] sm:$0xf0]  ;;  %5163 = vmatpush.bf16.msrb.mxu1 %v8046_v50  ;;  %v8654_v21 = vor.u32 %v11411_v62, %v8651_v3 }
 0x11e   :  { %5176 = vmatpush.bf16.msrb.mxu2 %v8174_v51  ;;  %v11475_v11 = vld [vmem:[#allocation4 + $0xbe4] sm:$0xf]  ;;  %v8907_v14 = vld [vmem:[#allocation4 + $0xbf0] sm:$0xf0]  ;;  %v8782_v28 = vor.u32 %v11443_v4, %v8779_v6 }
 0x11f   :  { %5189 = vmatpush.bf16.msrb.mxu3 %v8302_v55  ;;  %v11375_v29 = vld [vmem:[#allocation4 + $0x8c4] sm:$0xf]  ;;  %v8507_v30 = vld [vmem:[#allocation4 + $0x8d0] sm:$0xf0]  ;;  %v8910_v35 = vor.u32 %v11475_v11, %v8907_v14 }
 0x120   :  { %v11407_v33 = vld [vmem:[#allocation4 + $0x9c4] sm:$0xf]  ;;  %5151 = vmatpush.bf16.msrb.mxu0 %v7902_v0  ;;  %v8635_v39 = vld [vmem:[#allocation4 + $0x9d0] sm:$0xf0]  ;;  %v8510_v46 = vor.u32 %v11375_v29, %v8507_v30 }
 0x121   :  { %v11439_v41 = vld [vmem:[#allocation4 + $0xac4] sm:$0xf]  ;;  %v8763_v42 = vld [vmem:[#allocation4 + $0xad0] sm:$0xf0]  ;;  %5164 = vmatpush.bf16.msrb.mxu1 %v8030_v7  ;;  %v8638_v47 = vor.u32 %v11407_v33, %v8635_v39 }
 0x122   :  { %5177 = vmatpush.bf16.msrb.mxu2 %v8158_v10  ;;  %v11471_v44 = vld [vmem:[#allocation4 + $0xbc4] sm:$0xf]  ;;  %v8891_v45 = vld [vmem:[#allocation4 + $0xbd0] sm:$0xf0]  ;;  %v8766_v48 = vor.u32 %v11439_v41, %v8763_v42  ;;  %v4945_v7 = vpop.f32.mrf.mxu0 }
 0x123   :  { %5190 = vmatpush.bf16.msrb.mxu3 %v8286_v16  ;;  %v11371_v49 = vld [vmem:[#allocation4 + $0x8a4] sm:$0xf]  ;;  %v8491_v50 = vld [vmem:[#allocation4 + $0x8b0] sm:$0xf0]  ;;  %v8894_v52 = vor.u32 %v11471_v44, %v8891_v45  ;;  %5152 = vmatmul.bf16.vlgmr.msrb.gmra.mxu0 %v12295_v37  ;;  %v4946_v14 = vadd.f32 %v4945_v7, %v12411_v12 }
 0x124   :  { %5196 = vmatpush.bf16.msra.mxu0 %v8526_v17  ;;  %v11403_v51 = vld [vmem:[#allocation4 + $0x9a4] sm:$0xf]  ;;  %v8619_v53 = vld [vmem:[#allocation4 + $0x9b0] sm:$0xf0]  ;;  %v8494_v43 = vor.u32 %v11371_v49, %v8491_v50  ;;  %5165 = vmatmul.bf16.vlgmr.msrb.gmra.mxu1 %v12299_v40  ;;  %v4958_v17 = vpop.f32.mrf.mxu1 }
 0x125   :  { %5209 = vmatpush.bf16.msra.mxu1 %v8654_v21  ;;  %5178 = vmatmul.bf16.vlgmr.msrb.gmra.mxu2 %v12293_v34  ;;  %v11435_v54 = vld [vmem:[#allocation4 + $0xaa4] sm:$0xf]  ;;  %v8747_v55 = vld [vmem:[#allocation4 + $0xab0] sm:$0xf0]  ;;  %v8622_v58 = vor.u32 %v11403_v51, %v8619_v53  ;;  %v4959_v39 = vadd.f32 %v4958_v17, %v4946_v14 }
 0x126   :  { %5222 = vmatpush.bf16.msra.mxu2 %v8782_v28  ;;  %v11467_v56 = vld [vmem:[#allocation4 + $0xba4] sm:$0xf]  ;;  %v8875_v57 = vld [vmem:[#allocation4 + $0xbb0] sm:$0xf0]  ;;  %5191 = vmatmul.bf16.vlgmr.msrb.gmra.mxu3 %v12297_v38  ;;  %v8750_v59 = vor.u32 %v11435_v54, %v8747_v55 }
 0x127   :  { %5235 = vmatpush.bf16.msra.mxu3 %v8910_v35  ;;  %v11367_v60 = vld [vmem:[#allocation4 + $0x884] sm:$0xf]  ;;  %v8475_v62 = vld [vmem:[#allocation4 + $0x890] sm:$0xf0]  ;;  %v8878_v0 = vor.u32 %v11467_v56, %v8875_v57 }
 0x128   :  { %5197 = vmatpush.bf16.msra.mxu0 %v8510_v46  ;;  %v11399_v63 = vld [vmem:[#allocation4 + $0x984] sm:$0xf]  ;;  %v8603_v3 = vld [vmem:[#allocation4 + $0x990] sm:$0xf0]  ;;  %v8478_v16 = vor.u32 %v11367_v60, %v8475_v62  ;;  %v4971_v53 = vpop.f32.mrf.mxu2 }
 0x129   :  { %5210 = vmatpush.bf16.msra.mxu1 %v8638_v47  ;;  %v11431_v4 = vld [vmem:[#allocation4 + $0xa84] sm:$0xf]  ;;  %v8731_v6 = vld [vmem:[#allocation4 + $0xa90] sm:$0xf0]  ;;  %v8606_v21 = vor.u32 %v11399_v63, %v8603_v3  ;;  %v4972_v57 = vadd.f32 %v4971_v53, %v4959_v39 }
 0x12a   :  { %5223 = vmatpush.bf16.msra.mxu2 %v8766_v48  ;;  %v11463_v10 = vld [vmem:[#allocation4 + $0xb84] sm:$0xf]  ;;  %v8859_v11 = vld [vmem:[#allocation4 + $0xb90] sm:$0xf0]  ;;  %v8734_v28 = vor.u32 %v11431_v4, %v8731_v6  ;;  %v4947_v60 = vpop.f32.mrf.mxu0 }
 0x12b   :  { %5236 = vmatpush.bf16.msra.mxu3 %v8894_v52  ;;  %v11363_v29 = vld [vmem:[#allocation4 + $0x864] sm:$0xf]  ;;  %v8459_v30 = vld [vmem:[#allocation4 + $0x870] sm:$0xf0]  ;;  %v8862_v35 = vor.u32 %v11463_v10, %v8859_v11 }
 0x12c   :  { %5198 = vmatpush.bf16.msra.mxu0 %v8494_v43  ;;  %v11395_v33 = vld [vmem:[#allocation4 + $0x964] sm:$0xf]  ;;  %v8587_v41 = vld [vmem:[#allocation4 + $0x970] sm:$0xf0]  ;;  %v8462_v47 = vor.u32 %v11363_v29, %v8459_v30  ;;  %v4984_v43 = vpop.f32.mrf.mxu3  ;;  %v4960_v63 = vpop.f32.mrf.mxu1 }
 0x12d   :  { %5211 = vmatpush.bf16.msra.mxu1 %v8622_v58  ;;  %v11427_v42 = vld [vmem:[#allocation4 + $0xa64] sm:$0xf]  ;;  %v8715_v44 = vld [vmem:[#allocation4 + $0xa70] sm:$0xf0]  ;;  %v8590_v12 = vor.u32 %v11395_v33, %v8587_v41 }
 0x12e   :  { %5224 = vmatpush.bf16.msra.mxu2 %v8750_v59  ;;  %v11459_v45 = vld [vmem:[#allocation4 + $0xb64] sm:$0xf]  ;;  %v8843_v46 = vld [vmem:[#allocation4 + $0xb70] sm:$0xf0]  ;;  %v8718_v48 = vor.u32 %v11427_v42, %v8715_v44 }
 0x12f   :  { %5237 = vmatpush.bf16.msra.mxu3 %v8878_v0  ;;  %v11359_v49 = vld [vmem:[#allocation4 + $0x844] sm:$0xf]  ;;  %v8443_v50 = vld [vmem:[#allocation4 + $0x850] sm:$0xf0]  ;;  %v8846_v52 = vor.u32 %v11459_v45, %v8843_v46  ;;  %v12418_v0 = vadd.f32 %v4984_v43, %v4972_v57 }
 0x130   :  { %5199 = vmatpush.bf16.msra.mxu0 %v8478_v16  ;;  %v11391_v51 = vld [vmem:[#allocation4 + $0x944] sm:$0xf]  ;;  %v8571_v54 = vld [vmem:[#allocation4 + $0x950] sm:$0xf0]  ;;  %v8446_v62 = vor.u32 %v11359_v49, %v8443_v50 }
 0x131   :  { %5212 = vmatpush.bf16.msra.mxu1 %v8606_v21  ;;  %v11423_v55 = vld [vmem:[#allocation4 + $0xa44] sm:$0xf]  ;;  %v8699_v56 = vld [vmem:[#allocation4 + $0xa50] sm:$0xf0]  ;;  %v8574_v3 = vor.u32 %v11391_v51, %v8571_v54 }
 0x132   :  { %5225 = vmatpush.bf16.msra.mxu2 %v8734_v28  ;;  %v11455_v58 = vld [vmem:[#allocation4 + $0xb44] sm:$0xf]  ;;  %v8827_v59 = vld [vmem:[#allocation4 + $0xb50] sm:$0xf0]  ;;  %v8702_v4 = vor.u32 %v11423_v55, %v8699_v56 }
 0x133   :  { %5238 = vmatpush.bf16.msra.mxu3 %v8862_v35  ;;  %v11355_v6 = vld [vmem:[#allocation4 + $0x824] sm:$0xf]  ;;  %v8427_v7 = vld [vmem:[#allocation4 + $0x830] sm:$0xf0]  ;;  %v8830_v11 = vor.u32 %v11455_v58, %v8827_v59 }
 0x134   :  { %5200 = vmatpush.bf16.msra.mxu0 %v8462_v47  ;;  %v11387_v10 = vld [vmem:[#allocation4 + $0x924] sm:$0xf]  ;;  %v8555_v14 = vld [vmem:[#allocation4 + $0x930] sm:$0xf0]  ;;  %v8430_v29 = vor.u32 %v11355_v6, %v8427_v7 }
 0x135   :  { %5213 = vmatpush.bf16.msra.mxu1 %v8590_v12  ;;  %v11419_v16 = vld [vmem:[#allocation4 + $0xa24] sm:$0xf]  ;;  %v8683_v17 = vld [vmem:[#allocation4 + $0xa30] sm:$0xf0]  ;;  %v8558_v35 = vor.u32 %v11387_v10, %v8555_v14 }
 0x136   :  { %5226 = vmatpush.bf16.msra.mxu2 %v8718_v48  ;;  %v11451_v21 = vld [vmem:[#allocation4 + $0xb24] sm:$0xf]  ;;  %v8811_v28 = vld [vmem:[#allocation4 + $0xb30] sm:$0xf0]  ;;  %v8686_v39 = vor.u32 %v11419_v16, %v8683_v17  ;;  %v4973_v48 = vpop.f32.mrf.mxu2 }
 0x137   :  { %5239 = vmatpush.bf16.msra.mxu3 %v8846_v52  ;;  %v11351_v30 = vld [vmem:[#allocation4 + $0x804] sm:$0xf]  ;;  %v8411_v33 = vld [vmem:[#allocation4 + $0x810] sm:$0xf0]  ;;  %v8814_v45 = vor.u32 %v11451_v21, %v8811_v28  ;;  %v4986_v52 = vpop.f32.mrf.mxu3 }
 0x138   :  { %5201 = vmatpush.bf16.msra.mxu0 %v8446_v62  ;;  %v11383_v41 = vld [vmem:[#allocation4 + $0x904] sm:$0xf]  ;;  %v8539_v42 = vld [vmem:[#allocation4 + $0x910] sm:$0xf0]  ;;  %v8414_v53 = vor.u32 %v11351_v30, %v8411_v33 }
 0x139   :  { %5214 = vmatpush.bf16.msra.mxu1 %v8574_v3  ;;  %v11415_v44 = vld [vmem:[#allocation4 + $0xa04] sm:$0xf]  ;;  %v8667_v46 = vld [vmem:[#allocation4 + $0xa10] sm:$0xf0]  ;;  %v8542_v57 = vor.u32 %v11383_v41, %v8539_v42 }
 0x13a   :  { %5227 = vmatpush.bf16.msra.mxu2 %v8702_v4  ;;  %v11447_v47 = vld [vmem:[#allocation4 + $0xb04] sm:$0xf]  ;;  %v8795_v12 = vld [vmem:[#allocation4 + $0xb10] sm:$0xf0]  ;;  %v8670_v43 = vor.u32 %v11415_v44, %v8667_v46 }
 0x13b   :  { %5240 = vmatpush.bf16.msra.mxu3 %v8830_v11  ;;  %v11507_v49 = vld [vmem:[#allocation4 + $0xce4] sm:$0xf]  ;;  %v9035_v50 = vld [vmem:[#allocation4 + $0xcf0] sm:$0xf0]  ;;  %v8798_v60 = vor.u32 %v11447_v47, %v8795_v12 }
 0x13c   :  { %v11539_v51 = vld [vmem:[#allocation4 + $0xde4] sm:$0xf]  ;;  %5202 = vmatpush.bf16.msra.mxu0 %v8430_v29  ;;  %v9163_v54 = vld [vmem:[#allocation4 + $0xdf0] sm:$0xf0]  ;;  %v9038_v62 = vor.u32 %v11507_v49, %v9035_v50 }
 0x13d   :  { %v11571_v55 = vld [vmem:[#allocation4 + $0xee4] sm:$0xf]  ;;  %v9291_v56 = vld [vmem:[#allocation4 + $0xef0] sm:$0xf0]  ;;  %5215 = vmatpush.bf16.msra.mxu1 %v8558_v35  ;;  %v9166_v63 = vor.u32 %v11539_v51, %v9163_v54 }
 0x13e   :  { %5228 = vmatpush.bf16.msra.mxu2 %v8686_v39  ;;  %v11603_v58 = vld [vmem:[#allocation4 + $0xfe4] sm:$0xf]  ;;  %v9419_v59 = vld [vmem:[#allocation4 + $0xff0] sm:$0xf0]  ;;  %v9294_v3 = vor.u32 %v11571_v55, %v9291_v56 }
 0x13f   :  { %5241 = vmatpush.bf16.msra.mxu3 %v8814_v45  ;;  %v11503_v4 = vld [vmem:[#allocation4 + $0xcc4] sm:$0xf]  ;;  %v9019_v6 = vld [vmem:[#allocation4 + $0xcd0] sm:$0xf0]  ;;  %v9422_v10 = vor.u32 %v11603_v58, %v9419_v59 }
 0x140   :  { %v11535_v7 = vld [vmem:[#allocation4 + $0xdc4] sm:$0xf]  ;;  %5203 = vmatpush.bf16.msra.mxu0 %v8414_v53  ;;  %v9147_v11 = vld [vmem:[#allocation4 + $0xdd0] sm:$0xf0]  ;;  %v9022_v28 = vor.u32 %v11503_v4, %v9019_v6 }
 0x141   :  { %v11567_v14 = vld [vmem:[#allocation4 + $0xec4] sm:$0xf]  ;;  %v9275_v16 = vld [vmem:[#allocation4 + $0xed0] sm:$0xf0]  ;;  %5216 = vmatpush.bf16.msra.mxu1 %v8542_v57  ;;  %v9150_v29 = vor.u32 %v11535_v7, %v9147_v11 }
 0x142   :  { %5229 = vmatpush.bf16.msra.mxu2 %v8670_v43  ;;  %v11599_v17 = vld [vmem:[#allocation4 + $0xfc4] sm:$0xf]  ;;  %v9403_v21 = vld [vmem:[#allocation4 + $0xfd0] sm:$0xf0]  ;;  %v9278_v30 = vor.u32 %v11567_v14, %v9275_v16 }
 0x143   :  { %5242 = vmatpush.bf16.msra.mxu3 %v8798_v60  ;;  %v11499_v33 = vld [vmem:[#allocation4 + $0xca4] sm:$0xf]  ;;  %v9003_v35 = vld [vmem:[#allocation4 + $0xcb0] sm:$0xf0]  ;;  %5204 = vmatmul.bf16.vlgmr.msra.gmra.mxu0 %v12317_v18  ;;  %v9406_v41 = vor.u32 %v11599_v17, %v9403_v21  ;;  %v4997_v57 = vpop.f32.mrf.mxu0 }
 0x144   :  { %5248 = vmatpush.bf16.msrb.mxu0 %v9038_v62  ;;  %v11531_v39 = vld [vmem:[#allocation4 + $0xda4] sm:$0xf]  ;;  %v9131_v42 = vld [vmem:[#allocation4 + $0xdb0] sm:$0xf0]  ;;  %5217 = vmatmul.bf16.vlgmr.msra.gmra.mxu1 %v12321_v23  ;;  %v9006_v12 = vor.u32 %v11499_v33, %v9003_v35  ;;  %v4998_v59 = vadd.f32 %v4997_v57, %v12418_v0  ;;  %v5010_v62 = vpop.f32.mrf.mxu1 }
 0x145   :  { %5261 = vmatpush.bf16.msrb.mxu1 %v9166_v63  ;;  %v11563_v44 = vld [vmem:[#allocation4 + $0xea4] sm:$0xf]  ;;  %v9259_v45 = vld [vmem:[#allocation4 + $0xeb0] sm:$0xf0]  ;;  %5230 = vmatmul.bf16.vlgmr.msra.gmra.mxu2 %v12319_v22  ;;  %v9134_v48 = vor.u32 %v11531_v39, %v9131_v42 }
 0x146   :  { %5274 = vmatpush.bf16.msrb.mxu2 %v9294_v3  ;;  %v11595_v46 = vld [vmem:[#allocation4 + $0xfa4] sm:$0xf]  ;;  %v9387_v47 = vld [vmem:[#allocation4 + $0xfb0] sm:$0xf0]  ;;  %5243 = vmatmul.bf16.vlgmr.msra.gmra.mxu3 %v12323_v27  ;;  %v9262_v49 = vor.u32 %v11563_v44, %v9259_v45  ;;  %v5011_v11 = vadd.f32 %v5010_v62, %v4998_v59 }
 0x147   :  { %5287 = vmatpush.bf16.msrb.mxu3 %v9422_v10  ;;  %v11495_v50 = vld [vmem:[#allocation4 + $0xc84] sm:$0xf]  ;;  %v8987_v51 = vld [vmem:[#allocation4 + $0xc90] sm:$0xf0]  ;;  %v9390_v53 = vor.u32 %v11595_v46, %v9387_v47 }
 0x148   :  { %5249 = vmatpush.bf16.msrb.mxu0 %v9022_v28  ;;  %v11527_v52 = vld [vmem:[#allocation4 + $0xd84] sm:$0xf]  ;;  %v9115_v54 = vld [vmem:[#allocation4 + $0xd90] sm:$0xf0]  ;;  %v8990_v60 = vor.u32 %v11495_v50, %v8987_v51 }
 0x149   :  { %5262 = vmatpush.bf16.msrb.mxu1 %v9150_v29  ;;  %v11559_v55 = vld [vmem:[#allocation4 + $0xe84] sm:$0xf]  ;;  %v9243_v56 = vld [vmem:[#allocation4 + $0xe90] sm:$0xf0]  ;;  %v9118_v63 = vor.u32 %v11527_v52, %v9115_v54  ;;  %v5023_v42 = vpop.f32.mrf.mxu2 }
 0x14a   :  { %5275 = vmatpush.bf16.msrb.mxu2 %v9278_v30  ;;  %v11591_v43 = vld [vmem:[#allocation4 + $0xf84] sm:$0xf]  ;;  %v9371_v58 = vld [vmem:[#allocation4 + $0xf90] sm:$0xf0]  ;;  %v9246_v3 = vor.u32 %v11559_v55, %v9243_v56  ;;  %v5024_v47 = vadd.f32 %v5023_v42, %v5011_v11 }
 0x14b   :  { %5288 = vmatpush.bf16.msrb.mxu3 %v9406_v41  ;;  %v11491_v4 = vld [vmem:[#allocation4 + $0xc64] sm:$0xf]  ;;  %v8971_v6 = vld [vmem:[#allocation4 + $0xc70] sm:$0xf0]  ;;  %v9374_v10 = vor.u32 %v11591_v43, %v9371_v58  ;;  %v4999_v50 = vpop.f32.mrf.mxu0 }
 0x14c   :  { %5250 = vmatpush.bf16.msrb.mxu0 %v9006_v12  ;;  %v11523_v7 = vld [vmem:[#allocation4 + $0xd64] sm:$0xf]  ;;  %v9099_v14 = vld [vmem:[#allocation4 + $0xd70] sm:$0xf0]  ;;  %v8974_v29 = vor.u32 %v11491_v4, %v8971_v6  ;;  %v5036_v12 = vpop.f32.mrf.mxu3  ;;  %v5012_v52 = vpop.f32.mrf.mxu1 }
 0x14d   :  { %5263 = vmatpush.bf16.msrb.mxu1 %v9134_v48  ;;  %v11555_v16 = vld [vmem:[#allocation4 + $0xe64] sm:$0xf]  ;;  %v9227_v17 = vld [vmem:[#allocation4 + $0xe70] sm:$0xf0]  ;;  %v9102_v0 = vor.u32 %v11523_v7, %v9099_v14 }
 0x14e   :  { %5276 = vmatpush.bf16.msrb.mxu2 %v9262_v49  ;;  %v11587_v21 = vld [vmem:[#allocation4 + $0xf64] sm:$0xf]  ;;  %v9355_v28 = vld [vmem:[#allocation4 + $0xf70] sm:$0xf0]  ;;  %v9230_v30 = vor.u32 %v11555_v16, %v9227_v17 }
 0x14f   :  { %5289 = vmatpush.bf16.msrb.mxu3 %v9390_v53  ;;  %v11487_v33 = vld [vmem:[#allocation4 + $0xc44] sm:$0xf]  ;;  %v8955_v35 = vld [vmem:[#allocation4 + $0xc50] sm:$0xf0]  ;;  %v9358_v41 = vor.u32 %v11587_v21, %v9355_v28  ;;  %v12425_v53 = vadd.f32 %v5036_v12, %v5024_v47 }
 0x150   :  { %5251 = vmatpush.bf16.msrb.mxu0 %v8990_v60  ;;  %v11519_v39 = vld [vmem:[#allocation4 + $0xd44] sm:$0xf]  ;;  %v9083_v44 = vld [vmem:[#allocation4 + $0xd50] sm:$0xf0]  ;;  %v8958_v51 = vor.u32 %v11487_v33, %v8955_v35 }
 0x151   :  { %5264 = vmatpush.bf16.msrb.mxu1 %v9118_v63  ;;  %v11551_v45 = vld [vmem:[#allocation4 + $0xe44] sm:$0xf]  ;;  %v9211_v46 = vld [vmem:[#allocation4 + $0xe50] sm:$0xf0]  ;;  %v9086_v54 = vor.u32 %v11519_v39, %v9083_v44 }
 0x152   :  { %5277 = vmatpush.bf16.msrb.mxu2 %v9246_v3  ;;  %v11583_v48 = vld [vmem:[#allocation4 + $0xf44] sm:$0xf]  ;;  %v9339_v49 = vld [vmem:[#allocation4 + $0xf50] sm:$0xf0]  ;;  %v9214_v55 = vor.u32 %v11551_v45, %v9211_v46 }
 0x153   :  { %5290 = vmatpush.bf16.msrb.mxu3 %v9374_v10  ;;  %v11483_v56 = vld [vmem:[#allocation4 + $0xc24] sm:$0xf]  ;;  %v8939_v57 = vld [vmem:[#allocation4 + $0xc30] sm:$0xf0]  ;;  %v9342_v58 = vor.u32 %v11583_v48, %v9339_v49 }
 0x154   :  { %5252 = vmatpush.bf16.msrb.mxu0 %v8974_v29  ;;  %v11515_v43 = vld [vmem:[#allocation4 + $0xd24] sm:$0xf]  ;;  %v9067_v59 = vld [vmem:[#allocation4 + $0xd30] sm:$0xf0]  ;;  %v8942_v4 = vor.u32 %v11483_v56, %v8939_v57 }
 0x155   :  { %5265 = vmatpush.bf16.msrb.mxu1 %v9102_v0  ;;  %v11547_v60 = vld [vmem:[#allocation4 + $0xe24] sm:$0xf]  ;;  %v9195_v62 = vld [vmem:[#allocation4 + $0xe30] sm:$0xf0]  ;;  %v9070_v10 = vor.u32 %v11515_v43, %v9067_v59 }
 0x156   :  { %5278 = vmatpush.bf16.msrb.mxu2 %v9230_v30  ;;  %v11579_v63 = vld [vmem:[#allocation4 + $0xf24] sm:$0xf]  ;;  %v9323_v3 = vld [vmem:[#allocation4 + $0xf30] sm:$0xf0]  ;;  %v9198_v11 = vor.u32 %v11547_v60, %v9195_v62  ;;  %v5025_v30 = vpop.f32.mrf.mxu2 }
 0x157   :  { %5291 = vmatpush.bf16.msrb.mxu3 %v9358_v41  ;;  %v11479_v6 = vld [vmem:[#allocation4 + $0xc04] sm:$0xf]  ;;  %v8923_v7 = vld [vmem:[#allocation4 + $0xc10] sm:$0xf0]  ;;  %v9326_v21 = vor.u32 %v11579_v63, %v9323_v3  ;;  %v5038_v41 = vpop.f32.mrf.mxu3 }
 0x158   :  { %5253 = vmatpush.bf16.msrb.mxu0 %v8958_v51  ;;  %v11511_v14 = vld [vmem:[#allocation4 + $0xd04] sm:$0xf]  ;;  %v9051_v16 = vld [vmem:[#allocation4 + $0xd10] sm:$0xf0]  ;;  %v8926_v42 = vor.u32 %v11479_v6, %v8923_v7 }
 0x159   :  { %5266 = vmatpush.bf16.msrb.mxu1 %v9086_v54  ;;  %v11543_v17 = vld [vmem:[#allocation4 + $0xe04] sm:$0xf]  ;;  %v9179_v28 = vld [vmem:[#allocation4 + $0xe10] sm:$0xf0]  ;;  %v9054_v47 = vor.u32 %v11511_v14, %v9051_v16 }
 0x15a   :  { %5279 = vmatpush.bf16.msrb.mxu2 %v9214_v55  ;;  %v11575_v29 = vld [vmem:[#allocation4 + $0xf04] sm:$0xf]  ;;  %v9307_v0 = vld [vmem:[#allocation4 + $0xf10] sm:$0xf0]  ;;  %v9182_v12 = vor.u32 %v11543_v17, %v9179_v28 }
 0x15b   :  { %5292 = vmatpush.bf16.msrb.mxu3 %v9342_v58  ;;  %v11635_v33 = vld [vmem:[#allocation4 + $0x10e4] sm:$0xf]  ;;  %v9547_v35 = vld [vmem:[#allocation4 + $0x10f0] sm:$0xf0]  ;;  %v9310_v50 = vor.u32 %v11575_v29, %v9307_v0 }
 0x15c   :  { %v11667_v39 = vld [vmem:[#allocation4 + $0x11e4] sm:$0xf]  ;;  %5254 = vmatpush.bf16.msrb.mxu0 %v8942_v4  ;;  %v9675_v44 = vld [vmem:[#allocation4 + $0x11f0] sm:$0xf0]  ;;  %v9550_v51 = vor.u32 %v11635_v33, %v9547_v35 }
 0x15d   :  { %v11699_v45 = vld [vmem:[#allocation4 + $0x12e4] sm:$0xf]  ;;  %v9803_v46 = vld [vmem:[#allocation4 + $0x12f0] sm:$0xf0]  ;;  %5267 = vmatpush.bf16.msrb.mxu1 %v9070_v10  ;;  %v9678_v52 = vor.u32 %v11667_v39, %v9675_v44 }
 0x15e   :  { %5280 = vmatpush.bf16.msrb.mxu2 %v9198_v11  ;;  %v11731_v48 = vld [vmem:[#allocation4 + $0x13e4] sm:$0xf]  ;;  %v9931_v49 = vld [vmem:[#allocation4 + $0x13f0] sm:$0xf0]  ;;  %v9806_v54 = vor.u32 %v11699_v45, %v9803_v46 }
 0x15f   :  { %5293 = vmatpush.bf16.msrb.mxu3 %v9326_v21  ;;  %v11631_v55 = vld [vmem:[#allocation4 + $0x10c4] sm:$0xf]  ;;  %v9531_v56 = vld [vmem:[#allocation4 + $0x10d0] sm:$0xf0]  ;;  %v9934_v43 = vor.u32 %v11731_v48, %v9931_v49 }
 0x160   :  { %v11663_v57 = vld [vmem:[#allocation4 + $0x11c4] sm:$0xf]  ;;  %5255 = vmatpush.bf16.msrb.mxu0 %v8926_v42  ;;  %v9659_v58 = vld [vmem:[#allocation4 + $0x11d0] sm:$0xf0]  ;;  %v9534_v3 = vor.u32 %v11631_v55, %v9531_v56 }
 0x161   :  { %v11695_v59 = vld [vmem:[#allocation4 + $0x12c4] sm:$0xf]  ;;  %v9787_v60 = vld [vmem:[#allocation4 + $0x12d0] sm:$0xf0]  ;;  %5268 = vmatpush.bf16.msrb.mxu1 %v9054_v47  ;;  %v9662_v4 = vor.u32 %v11663_v57, %v9659_v58 }
 0x162   :  { %5281 = vmatpush.bf16.msrb.mxu2 %v9182_v12  ;;  %v11727_v62 = vld [vmem:[#allocation4 + $0x13c4] sm:$0xf]  ;;  %v9915_v63 = vld [vmem:[#allocation4 + $0x13d0] sm:$0xf0]  ;;  %v9790_v6 = vor.u32 %v11695_v59, %v9787_v60  ;;  %v5049_v47 = vpop.f32.mrf.mxu0 }
 0x163   :  { %5294 = vmatpush.bf16.msrb.mxu3 %v9310_v50  ;;  %v11627_v7 = vld [vmem:[#allocation4 + $0x10a4] sm:$0xf]  ;;  %v9515_v10 = vld [vmem:[#allocation4 + $0x10b0] sm:$0xf0]  ;;  %5256 = vmatmul.bf16.vlgmr.msrb.gmra.mxu0 %v12341_v13  ;;  %v9918_v14 = vor.u32 %v11727_v62, %v9915_v63  ;;  %v5050_v49 = vadd.f32 %v5049_v47, %v12425_v53 }
 0x164   :  { %5300 = vmatpush.bf16.msra.mxu0 %v9550_v51  ;;  %v11659_v11 = vld [vmem:[#allocation4 + $0x11a4] sm:$0xf]  ;;  %v9643_v16 = vld [vmem:[#allocation4 + $0x11b0] sm:$0xf0]  ;;  %5269 = vmatmul.bf16.vlgmr.msrb.gmra.mxu1 %v12345_v20  ;;  %v9518_v0 = vor.u32 %v11627_v7, %v9515_v10  ;;  %v5062_v51 = vpop.f32.mrf.mxu1 }
 0x165   :  { %5313 = vmatpush.bf16.msra.mxu1 %v9678_v52  ;;  %v11691_v17 = vld [vmem:[#allocation4 + $0x12a4] sm:$0xf]  ;;  %v9771_v21 = vld [vmem:[#allocation4 + $0x12b0] sm:$0xf0]  ;;  %5282 = vmatmul.bf16.vlgmr.msrb.gmra.mxu2 %v12343_v19  ;;  %v9646_v30 = vor.u32 %v11659_v11, %v9643_v16  ;;  %v5063_v58 = vadd.f32 %v5062_v51, %v5050_v49 }
 0x166   :  { %5326 = vmatpush.bf16.msra.mxu2 %v9806_v54  ;;  %v11723_v28 = vld [vmem:[#allocation4 + $0x13a4] sm:$0xf]  ;;  %v9899_v29 = vld [vmem:[#allocation4 + $0x13b0] sm:$0xf0]  ;;  %5295 = vmatmul.bf16.vlgmr.msrb.gmra.mxu3 %v12347_v26  ;;  %v9774_v33 = vor.u32 %v11691_v17, %v9771_v21 }
 0x167   :  { %5339 = vmatpush.bf16.msra.mxu3 %v9934_v43  ;;  %v11623_v35 = vld [vmem:[#allocation4 + $0x1084] sm:$0xf]  ;;  %v9499_v39 = vld [vmem:[#allocation4 + $0x1090] sm:$0xf0]  ;;  %v9902_v42 = vor.u32 %v11723_v28, %v9899_v29 }
 0x168   :  { %5301 = vmatpush.bf16.msra.mxu0 %v9534_v3  ;;  %v11655_v41 = vld [vmem:[#allocation4 + $0x1184] sm:$0xf]  ;;  %v9627_v44 = vld [vmem:[#allocation4 + $0x1190] sm:$0xf0]  ;;  %v9502_v50 = vor.u32 %v11623_v35, %v9499_v39 }
 0x169   :  { %5314 = vmatpush.bf16.msra.mxu1 %v9662_v4  ;;  %v11687_v45 = vld [vmem:[#allocation4 + $0x1284] sm:$0xf]  ;;  %v9755_v46 = vld [vmem:[#allocation4 + $0x1290] sm:$0xf0]  ;;  %v9630_v52 = vor.u32 %v11655_v41, %v9627_v44 }
 0x16a   :  { %5327 = vmatpush.bf16.msra.mxu2 %v9790_v6  ;;  %v11719_v12 = vld [vmem:[#allocation4 + $0x1384] sm:$0xf]  ;;  %v9883_v48 = vld [vmem:[#allocation4 + $0x1390] sm:$0xf0]  ;;  %v9758_v54 = vor.u32 %v11687_v45, %v9755_v46  ;;  %v5075_v16 = vpop.f32.mrf.mxu2  ;;  %v5051_v35 = vpop.f32.mrf.mxu0 }
 0x16b   :  { %5340 = vmatpush.bf16.msra.mxu3 %v9918_v14  ;;  %v11619_v55 = vld [vmem:[#allocation4 + $0x1064] sm:$0xf]  ;;  %v9483_v56 = vld [vmem:[#allocation4 + $0x1070] sm:$0xf0]  ;;  %v9886_v43 = vor.u32 %v11719_v12, %v9883_v48  ;;  %v5076_v29 = vadd.f32 %v5075_v16, %v5063_v58 }
 0x16c   :  { %5302 = vmatpush.bf16.msra.mxu0 %v9518_v0  ;;  %v11651_v57 = vld [vmem:[#allocation4 + $0x1164] sm:$0xf]  ;;  %v9611_v59 = vld [vmem:[#allocation4 + $0x1170] sm:$0xf0]  ;;  %v9486_v4 = vor.u32 %v11619_v55, %v9483_v56  ;;  %v5088_v0 = vpop.f32.mrf.mxu3  ;;  %v5064_v41 = vpop.f32.mrf.mxu1 }
 0x16d   :  { %5315 = vmatpush.bf16.msra.mxu1 %v9646_v30  ;;  %v11683_v60 = vld [vmem:[#allocation4 + $0x1264] sm:$0xf]  ;;  %v9739_v62 = vld [vmem:[#allocation4 + $0x1270] sm:$0xf0]  ;;  %v9614_v53 = vor.u32 %v11651_v57, %v9611_v59 }
 0x16e   :  { %5328 = vmatpush.bf16.msra.mxu2 %v9774_v33  ;;  %v11715_v63 = vld [vmem:[#allocation4 + $0x1364] sm:$0xf]  ;;  %v9867_v3 = vld [vmem:[#allocation4 + $0x1370] sm:$0xf0]  ;;  %v9742_v6 = vor.u32 %v11683_v60, %v9739_v62 }
 0x16f   :  { %5341 = vmatpush.bf16.msra.mxu3 %v9902_v42  ;;  %v11615_v7 = vld [vmem:[#allocation4 + $0x1044] sm:$0xf]  ;;  %v9467_v10 = vld [vmem:[#allocation4 + $0x1050] sm:$0xf0]  ;;  %v9870_v14 = vor.u32 %v11715_v63, %v9867_v3  ;;  %v12432_v42 = vadd.f32 %v5088_v0, %v5076_v29 }
 0x170   :  { %5303 = vmatpush.bf16.msra.mxu0 %v9502_v50  ;;  %v11647_v11 = vld [vmem:[#allocation4 + $0x1144] sm:$0xf]  ;;  %v9595_v17 = vld [vmem:[#allocation4 + $0x1150] sm:$0xf0]  ;;  %v9470_v39 = vor.u32 %v11615_v7, %v9467_v10 }
 0x171   :  { %5316 = vmatpush.bf16.msra.mxu1 %v9630_v52  ;;  %v11679_v21 = vld [vmem:[#allocation4 + $0x1244] sm:$0xf]  ;;  %v9723_v28 = vld [vmem:[#allocation4 + $0x1250] sm:$0xf0]  ;;  %v9598_v44 = vor.u32 %v11647_v11, %v9595_v17 }
 0x172   :  { %5329 = vmatpush.bf16.msra.mxu2 %v9758_v54  ;;  %v11711_v30 = vld [vmem:[#allocation4 + $0x1344] sm:$0xf]  ;;  %v9851_v33 = vld [vmem:[#allocation4 + $0x1350] sm:$0xf0]  ;;  %v9726_v45 = vor.u32 %v11679_v21, %v9723_v28 }
 0x173   :  { %5342 = vmatpush.bf16.msra.mxu3 %v9886_v43  ;;  %v11611_v46 = vld [vmem:[#allocation4 + $0x1024] sm:$0xf]  ;;  %v9451_v47 = vld [vmem:[#allocation4 + $0x1030] sm:$0xf0]  ;;  %v9854_v48 = vor.u32 %v11711_v30, %v9851_v33 }
 0x174   :  { %5304 = vmatpush.bf16.msra.mxu0 %v9486_v4  ;;  %v11643_v12 = vld [vmem:[#allocation4 + $0x1124] sm:$0xf]  ;;  %v9579_v49 = vld [vmem:[#allocation4 + $0x1130] sm:$0xf0]  ;;  %v9454_v55 = vor.u32 %v11611_v46, %v9451_v47 }
 0x175   :  { %5317 = vmatpush.bf16.msra.mxu1 %v9614_v53  ;;  %v11675_v50 = vld [vmem:[#allocation4 + $0x1224] sm:$0xf]  ;;  %v9707_v51 = vld [vmem:[#allocation4 + $0x1230] sm:$0xf0]  ;;  %v9582_v43 = vor.u32 %v11643_v12, %v9579_v49 }
 0x176   :  { %5330 = vmatpush.bf16.msra.mxu2 %v9742_v6  ;;  %v11707_v52 = vld [vmem:[#allocation4 + $0x1324] sm:$0xf]  ;;  %v9835_v54 = vld [vmem:[#allocation4 + $0x1330] sm:$0xf0]  ;;  %v9710_v58 = vor.u32 %v11675_v50, %v9707_v51  ;;  %v5077_v6 = vpop.f32.mrf.mxu2 }
 0x177   :  { %5343 = vmatpush.bf16.msra.mxu3 %v9870_v14  ;;  %v11607_v56 = vld [vmem:[#allocation4 + $0x1004] sm:$0xf]  ;;  %v9435_v57 = vld [vmem:[#allocation4 + $0x1010] sm:$0xf0]  ;;  %v9838_v63 = vor.u32 %v11707_v52, %v9835_v54  ;;  %v5090_v14 = vpop.f32.mrf.mxu3 }
 0x178   :  { %5305 = vmatpush.bf16.msra.mxu0 %v9470_v39  ;;  %v11639_v59 = vld [vmem:[#allocation4 + $0x1104] sm:$0xf]  ;;  %v9563_v60 = vld [vmem:[#allocation4 + $0x1110] sm:$0xf0]  ;;  %v9438_v16 = vor.u32 %v11607_v56, %v9435_v57 }
 0x179   :  { %5318 = vmatpush.bf16.msra.mxu1 %v9598_v44  ;;  %v11671_v62 = vld [vmem:[#allocation4 + $0x1204] sm:$0xf]  ;;  %v9691_v3 = vld [vmem:[#allocation4 + $0x1210] sm:$0xf0]  ;;  %v9566_v29 = vor.u32 %v11639_v59, %v9563_v60 }
 0x17a   :  { %5331 = vmatpush.bf16.msra.mxu2 %v9726_v45  ;;  %v11703_v4 = vld [vmem:[#allocation4 + $0x1304] sm:$0xf]  ;;  %v9819_v53 = vld [vmem:[#allocation4 + $0x1310] sm:$0xf0]  ;;  %v9694_v0 = vor.u32 %v11671_v62, %v9691_v3 }
 0x17b   :  { %5344 = vmatpush.bf16.msra.mxu3 %v9854_v48  ;;  %v11763_v7 = vld [vmem:[#allocation4 + $0x14e4] sm:$0xf]  ;;  %v10059_v10 = vld [vmem:[#allocation4 + $0x14f0] sm:$0xf0]  ;;  %v9822_v35 = vor.u32 %v11703_v4, %v9819_v53 }
 0x17c   :  { %v11795_v11 = vld [vmem:[#allocation4 + $0x15e4] sm:$0xf]  ;;  %5306 = vmatpush.bf16.msra.mxu0 %v9454_v55  ;;  %v10187_v17 = vld [vmem:[#allocation4 + $0x15f0] sm:$0xf0]  ;;  %v10062_v39 = vor.u32 %v11763_v7, %v10059_v10 }
 0x17d   :  { %v11827_v21 = vld [vmem:[#allocation4 + $0x16e4] sm:$0xf]  ;;  %v10315_v28 = vld [vmem:[#allocation4 + $0x16f0] sm:$0xf0]  ;;  %5319 = vmatpush.bf16.msra.mxu1 %v9582_v43  ;;  %v10190_v41 = vor.u32 %v11795_v11, %v10187_v17 }
 0x17e   :  { %5332 = vmatpush.bf16.msra.mxu2 %v9710_v58  ;;  %v11859_v30 = vld [vmem:[#allocation4 + $0x17e4] sm:$0xf]  ;;  %v10443_v33 = vld [vmem:[#allocation4 + $0x17f0] sm:$0xf0]  ;;  %v10318_v44 = vor.u32 %v11827_v21, %v10315_v28 }
 0x17f   :  { %5345 = vmatpush.bf16.msra.mxu3 %v9838_v63  ;;  %v11759_v45 = vld [vmem:[#allocation4 + $0x14c4] sm:$0xf]  ;;  %v10043_v46 = vld [vmem:[#allocation4 + $0x14d0] sm:$0xf0]  ;;  %v10446_v12 = vor.u32 %v11859_v30, %v10443_v33 }
 0x180   :  { %v11791_v47 = vld [vmem:[#allocation4 + $0x15c4] sm:$0xf]  ;;  %5307 = vmatpush.bf16.msra.mxu0 %v9438_v16  ;;  %v10171_v48 = vld [vmem:[#allocation4 + $0x15d0] sm:$0xf0]  ;;  %v10046_v54 = vor.u32 %v11759_v45, %v10043_v46  ;;  %v12034_v16 = vld [vmem:[#allocation6] sm:$0xf] }
 0x181   :  { %v11823_v49 = vld [vmem:[#allocation4 + $0x16c4] sm:$0xf]  ;;  %v10299_v50 = vld [vmem:[#allocation4 + $0x16d0] sm:$0xf0]  ;;  %5320 = vmatpush.bf16.msra.mxu1 %v9566_v29  ;;  %v10174_v55 = vor.u32 %v11791_v47, %v10171_v48  ;;  %v933_v17 = vperm.slane %v12034_v16, 1  ;;  %v5114_v48 = vpop.f32.mrf.mxu1 }
 0x182   :  { %5333 = vmatpush.bf16.msra.mxu2 %v9694_v0  ;;  %v11855_v51 = vld [vmem:[#allocation4 + $0x17c4] sm:$0xf]  ;;  %v10427_v52 = vld [vmem:[#allocation4 + $0x17d0] sm:$0xf0]  ;;  %v10302_v56 = vor.u32 %v11823_v49, %v10299_v50 }
 0x183   :  { %5346 = vmatpush.bf16.msra.mxu3 %v9822_v35  ;;  %v11755_v57 = vld [vmem:[#allocation4 + $0x14a4] sm:$0xf]  ;;  %v10027_v43 = vld [vmem:[#allocation4 + $0x14b0] sm:$0xf0]  ;;  %5308 = vmatmul.bf16.vlgmr.msra.gmra.mxu0 %v12365_v24  ;;  %v10430_v59 = vor.u32 %v11855_v51, %v10427_v52 }
 0x184   :  { %5352 = vmatpush.bf16.msrb.mxu0 %v10062_v39  ;;  %v11787_v58 = vld [vmem:[#allocation4 + $0x15a4] sm:$0xf]  ;;  %v10155_v60 = vld [vmem:[#allocation4 + $0x15b0] sm:$0xf0]  ;;  %5321 = vmatmul.bf16.vlgmr.msra.gmra.mxu1 %v12369_v32  ;;  %v10030_v53 = vor.u32 %v11755_v57, %v10027_v43  ;;  %v5101_v39 = vpop.f32.mrf.mxu0 }
 0x185   :  { %5365 = vmatpush.bf16.msrb.mxu1 %v10190_v41  ;;  %v11819_v62 = vld [vmem:[#allocation4 + $0x16a4] sm:$0xf]  ;;  %v10283_v63 = vld [vmem:[#allocation4 + $0x16b0] sm:$0xf0]  ;;  %5334 = vmatmul.bf16.vlgmr.msra.gmra.mxu2 %v12367_v31  ;;  %v10158_v7 = vor.u32 %v11787_v58, %v10155_v60 }
 0x186   :  { %5378 = vmatpush.bf16.msrb.mxu2 %v10318_v44  ;;  %v11851_v3 = vld [vmem:[#allocation4 + $0x17a4] sm:$0xf]  ;;  %v10411_v4 = vld [vmem:[#allocation4 + $0x17b0] sm:$0xf0]  ;;  %5347 = vmatmul.bf16.vlgmr.msra.gmra.mxu3 %v12371_v36  ;;  %v10286_v10 = vor.u32 %v11819_v62, %v10283_v63 }
 0x187   :  { %5391 = vmatpush.bf16.msrb.mxu3 %v10446_v12  ;;  %v11751_v6 = vld [vmem:[#allocation4 + $0x1484] sm:$0xf]  ;;  %v10011_v11 = vld [vmem:[#allocation4 + $0x1490] sm:$0xf0]  ;;  %v10414_v21 = vor.u32 %v11851_v3, %v10411_v4  ;;  %v5102_v12 = vadd.f32 %v5101_v39, %v933_v17 }
 0x188   :  { %5353 = vmatpush.bf16.msrb.mxu0 %v10046_v54  ;;  %v11783_v14 = vld [vmem:[#allocation4 + $0x1584] sm:$0xf]  ;;  %v10139_v28 = vld [vmem:[#allocation4 + $0x1590] sm:$0xf0]  ;;  %v10014_v35 = vor.u32 %v11751_v6, %v10011_v11  ;;  %v5127_v63 = vpop.f32.mrf.mxu2 }
 0x189   :  { %5366 = vmatpush.bf16.msrb.mxu1 %v10174_v55  ;;  %v11815_v29 = vld [vmem:[#allocation4 + $0x1684] sm:$0xf]  ;;  %v10267_v0 = vld [vmem:[#allocation4 + $0x1690] sm:$0xf0]  ;;  %v10142_v41 = vor.u32 %v11783_v14, %v10139_v28 }
 0x18a   :  { %5379 = vmatpush.bf16.msrb.mxu2 %v10302_v56  ;;  %v11847_v30 = vld [vmem:[#allocation4 + $0x1784] sm:$0xf]  ;;  %v10395_v33 = vld [vmem:[#allocation4 + $0x1790] sm:$0xf0]  ;;  %v10270_v44 = vor.u32 %v11815_v29, %v10267_v0  ;;  %v5115_v56 = vadd.f32 %v5114_v48, %v5102_v12 }
 0x18b   :  { %5392 = vmatpush.bf16.msrb.mxu3 %v10430_v59  ;;  %v11747_v45 = vld [vmem:[#allocation4 + $0x1464] sm:$0xf]  ;;  %v9995_v46 = vld [vmem:[#allocation4 + $0x1470] sm:$0xf0]  ;;  %v10398_v49 = vor.u32 %v11847_v30, %v10395_v33 }
 0x18c   :  { %5354 = vmatpush.bf16.msrb.mxu0 %v10030_v53  ;;  %v11779_v47 = vld [vmem:[#allocation4 + $0x1564] sm:$0xf]  ;;  %v10123_v50 = vld [vmem:[#allocation4 + $0x1570] sm:$0xf0]  ;;  %v9998_v57 = vor.u32 %v11747_v45, %v9995_v46 }
 0x18d   :  { %5367 = vmatpush.bf16.msrb.mxu1 %v10158_v7  ;;  %v11811_v51 = vld [vmem:[#allocation4 + $0x1664] sm:$0xf]  ;;  %v10251_v52 = vld [vmem:[#allocation4 + $0x1670] sm:$0xf0]  ;;  %v10126_v43 = vor.u32 %v11779_v47, %v10123_v50  ;;  %v5128_v7 = vadd.f32 %v5127_v63, %v5115_v56  ;;  %v11126_v63 = vld [vmem:[#allocation4 + $0xf4] sm:$0xf0] }
 0x18e   :  { %5380 = vmatpush.bf16.msrb.mxu2 %v10286_v10  ;;  %v11843_v54 = vld [vmem:[#allocation4 + $0x1764] sm:$0xf]  ;;  %v10379_v55 = vld [vmem:[#allocation4 + $0x1770] sm:$0xf0]  ;;  %v10254_v58 = vor.u32 %v11811_v51, %v10251_v52  ;;  %v5140_v10 = vpop.f32.mrf.mxu3 }
 0x18f   :  { %5393 = vmatpush.bf16.msrb.mxu3 %v10414_v21  ;;  %v11743_v59 = vld [vmem:[#allocation4 + $0x1444] sm:$0xf]  ;;  %v9979_v60 = vld [vmem:[#allocation4 + $0x1450] sm:$0xf0]  ;;  %v10382_v3 = vor.u32 %v11843_v54, %v10379_v55  ;;  %v12438_v17 = vadd.f32 %v5140_v10, %v5128_v7  ;;  %v5103_v21 = vpop.f32.mrf.mxu0  ;;  %v11190_v7 = vld [vmem:[#allocation4 + $0x2f4] sm:$0xf0] }
 0x190   :  { %5355 = vmatpush.bf16.msrb.mxu0 %v10014_v35  ;;  %v11775_v62 = vld [vmem:[#allocation4 + $0x1544] sm:$0xf]  ;;  %v10107_v4 = vld [vmem:[#allocation4 + $0x1550] sm:$0xf0]  ;;  %v9982_v16 = vor.u32 %v11743_v59, %v9979_v60  ;;  %v5116_v35 = vpop.f32.mrf.mxu1  ;;  %v5129_v56 = vpop.f32.mrf.mxu2 }
 0x191   :  { %5368 = vmatpush.bf16.msrb.mxu1 %v10142_v41  ;;  %v11807_v53 = vld [vmem:[#allocation4 + $0x1644] sm:$0xf]  ;;  %v10235_v6 = vld [vmem:[#allocation4 + $0x1650] sm:$0xf0]  ;;  %v10110_v28 = vor.u32 %v11775_v62, %v10107_v4  ;;  %v7505_v62 = vld [vmem:[#allocation4 + $0xe8] sm:$0xf] }
 0x192   :  { %5381 = vmatpush.bf16.msrb.mxu2 %v10270_v44  ;;  %v11839_v11 = vld [vmem:[#allocation4 + $0x1744] sm:$0xf]  ;;  %v10363_v14 = vld [vmem:[#allocation4 + $0x1750] sm:$0xf0]  ;;  %v10238_v29 = vor.u32 %v11807_v53, %v10235_v6  ;;  %v11158_v53 = vld [vmem:[#allocation4 + $0x1f4] sm:$0xf0] }
 0x193   :  { %5394 = vmatpush.bf16.msrb.mxu3 %v10398_v49  ;;  %v11739_v0 = vld [vmem:[#allocation4 + $0x1424] sm:$0xf]  ;;  %v9963_v30 = vld [vmem:[#allocation4 + $0x1430] sm:$0xf0]  ;;  %v10366_v39 = vor.u32 %v11839_v11, %v10363_v14  ;;  %v7761_v6 = vld [vmem:[#allocation4 + $0x2e8] sm:$0xf] }
 0x194   :  { %5356 = vmatpush.bf16.msrb.mxu0 %v9998_v57  ;;  %v11771_v33 = vld [vmem:[#allocation4 + $0x1524] sm:$0xf]  ;;  %v10091_v41 = vld [vmem:[#allocation4 + $0x1530] sm:$0xf0]  ;;  %v9966_v12 = vor.u32 %v11739_v0, %v9963_v30  ;;  %v7889_v14 = vld [vmem:[#allocation4 + $0x3e8] sm:$0xf]  ;;  %v7762_v0 = vor.u32 %v11190_v7, %v7761_v6 }
 0x195   :  { %5369 = vmatpush.bf16.msrb.mxu1 %v10126_v43  ;;  %v11803_v44 = vld [vmem:[#allocation4 + $0x1624] sm:$0xf]  ;;  %v10219_v45 = vld [vmem:[#allocation4 + $0x1630] sm:$0xf0]  ;;  %v10094_v50 = vor.u32 %v11771_v33, %v10091_v41  ;;  %v7489_v30 = vld [vmem:[#allocation4 + $0xc8] sm:$0xf] }
 0x196   :  { %5382 = vmatpush.bf16.msrb.mxu2 %v10254_v58  ;;  %v11835_v46 = vld [vmem:[#allocation4 + $0x1724] sm:$0xf]  ;;  %v10347_v47 = vld [vmem:[#allocation4 + $0x1730] sm:$0xf0]  ;;  %v10222_v51 = vor.u32 %v11803_v44, %v10219_v45  ;;  %v5142_v60 = vpop.f32.mrf.mxu3  ;;  %v11122_v33 = vld [vmem:[#allocation4 + $0xd4] sm:$0xf0] }
 0x197   :  { %5395 = vmatpush.bf16.msrb.mxu3 %v10382_v3  ;;  %v11735_v48 = vld [vmem:[#allocation4 + $0x1404] sm:$0xf]  ;;  %v9947_v49 = vld [vmem:[#allocation4 + $0x1410] sm:$0xf0]  ;;  %v10350_v57 = vor.u32 %v11835_v46, %v10347_v47  ;;  %v7633_v3 = vld [vmem:[#allocation4 + $0x1e8] sm:$0xf] }
 0x198   :  { %5357 = vmatpush.bf16.msrb.mxu0 %v9982_v16  ;;  %v11767_v52 = vld [vmem:[#allocation4 + $0x1504] sm:$0xf]  ;;  %v10075_v54 = vld [vmem:[#allocation4 + $0x1510] sm:$0xf0]  ;;  %v9950_v4 = vor.u32 %v11735_v48, %v9947_v49  ;;  %v11222_v16 = vld [vmem:[#allocation4 + $0x3f4] sm:$0xf0] }
 0x199   :  { %5370 = vmatpush.bf16.msrb.mxu1 %v10110_v28  ;;  %v11799_v55 = vld [vmem:[#allocation4 + $0x1604] sm:$0xf]  ;;  %v10203_v43 = vld [vmem:[#allocation4 + $0x1610] sm:$0xf0]  ;;  %v10078_v10 = vor.u32 %v11767_v52, %v10075_v54  ;;  %v7506_v28 = vor.u32 %v11126_v63, %v7505_v62  ;;  %v7617_v35 = vld [vmem:[#allocation4 + $0x1c8] sm:$0xf] }
 0x19a   :  { %5383 = vmatpush.bf16.msrb.mxu2 %v10238_v29  ;;  %v11831_v58 = vld [vmem:[#allocation4 + $0x1704] sm:$0xf]  ;;  %v10331_v59 = vld [vmem:[#allocation4 + $0x1710] sm:$0xf0]  ;;  %v10206_v11 = vor.u32 %v11799_v55, %v10203_v43  ;;  %v7634_v29 = vor.u32 %v11158_v53, %v7633_v3  ;;  %v11154_v41 = vld [vmem:[#allocation4 + $0x1d4] sm:$0xf0] }
 0x19b   :  { %5396 = vmatpush.bf16.msrb.mxu3 %v10366_v39  ;;  %v10334_v21 = vor.u32 %v11831_v58, %v10331_v59  ;;  %v7890_v39 = vor.u32 %v11222_v16, %v7889_v14  ;;  %v7745_v44 = vld [vmem:[#allocation4 + $0x2c8] sm:$0xf]  ;;  %v11186_v45 = vld [vmem:[#allocation4 + $0x2d4] sm:$0xf0]  ;;  %v7618_v48 = vor.u32 %v11154_v41, %v7617_v35 }
 0x19c   :  { %5358 = vmatpush.bf16.msrb.mxu0 %v9966_v12  ;;  %v7873_v46 = vld [vmem:[#allocation4 + $0x3c8] sm:$0xf]  ;;  %v11218_v47 = vld [vmem:[#allocation4 + $0x3d4] sm:$0xf0]  ;;  %v7490_v12 = vor.u32 %v11122_v33, %v7489_v30  ;;  %v7746_v49 = vor.u32 %v11186_v45, %v7745_v44 }
 0x19d   :  { %5371 = vmatpush.bf16.msrb.mxu1 %v10094_v50  ;;  %v7473_v50 = vld [vmem:[#allocation4 + $0xa8] sm:$0xf]  ;;  %v7874_v54 = vor.u32 %v11218_v47, %v7873_v46  ;;  %v11150_v55 = vld [vmem:[#allocation4 + $0x1b4] sm:$0xf0] }
 0x19e   :  { %5384 = vmatpush.bf16.msrb.mxu2 %v10222_v51  ;;  %v11118_v51 = vld [vmem:[#allocation4 + $0xb4] sm:$0xf0]  ;;  %v7601_v52 = vld [vmem:[#allocation4 + $0x1a8] sm:$0xf] }
 0x19f   :  { %5397 = vmatpush.bf16.msrb.mxu3 %v10350_v57  ;;  %v7729_v56 = vld [vmem:[#allocation4 + $0x2a8] sm:$0xf]  ;;  %v11182_v57 = vld [vmem:[#allocation4 + $0x2b4] sm:$0xf0]  ;;  %v7474_v59 = vor.u32 %v11118_v51, %v7473_v50  ;;  %v7602_v60 = vor.u32 %v11150_v55, %v7601_v52 }
 0x1a0   :  { %5359 = vmatpush.bf16.msrb.mxu0 %v9950_v4  ;;  %v7857_v43 = vld [vmem:[#allocation4 + $0x3a8] sm:$0xf]  ;;  %v11214_v58 = vld [vmem:[#allocation4 + $0x3b4] sm:$0xf0]  ;;  %v7730_v62 = vor.u32 %v11182_v57, %v7729_v56 }
 0x1a1   :  { %5372 = vmatpush.bf16.msrb.mxu1 %v10078_v10  ;;  %v7457_v63 = vld [vmem:[#allocation4 + $0x88] sm:$0xf]  ;;  %v11114_v3 = vld [vmem:[#allocation4 + $0x94] sm:$0xf0]  ;;  %v7858_v53 = vor.u32 %v11214_v58, %v7857_v43 }
 0x1a2   :  { %5385 = vmatpush.bf16.msrb.mxu2 %v10206_v11  ;;  %v7585_v4 = vld [vmem:[#allocation4 + $0x188] sm:$0xf]  ;;  %v11146_v6 = vld [vmem:[#allocation4 + $0x194] sm:$0xf0]  ;;  %v7458_v16 = vor.u32 %v11114_v3, %v7457_v63 }
 0x1a3   :  { %5398 = vmatpush.bf16.msrb.mxu3 %v10334_v21  ;;  %5360 = vmatmul.bf16.vlgmr.msrb.gmra.mxu0 %v12391_v61  ;;  %v7713_v7 = vld [vmem:[#allocation4 + $0x288] sm:$0xf]  ;;  %v11178_v10 = vld [vmem:[#allocation4 + $0x294] sm:$0xf0]  ;;  %v5153_v21 = vpop.f32.mrf.mxu0 }
 0x1a4   :  { %5404 = vmatpush.bf16.msra.mxu0 %v7506_v28  ;;  %5373 = vmatmul.bf16.vlgmr.msrb.gmra.mxu1 %v12395_v2  ;;  %v7841_v11 = vld [vmem:[#allocation4 + $0x388] sm:$0xf]  ;;  %v11210_v14 = vld [vmem:[#allocation4 + $0x394] sm:$0xf0]  ;;  %v7586_v28 = vor.u32 %v11146_v6, %v7585_v4  ;;  %v5154_v35 = vadd.f32 %v5153_v21, %v12438_v17 }
 0x1a5   :  { %5417 = vmatpush.bf16.msra.mxu1 %v7634_v29  ;;  %5386 = vmatmul.bf16.vlgmr.msrb.gmra.mxu2 %v12393_v1  ;;  %v7714_v29 = vor.u32 %v11178_v10, %v7713_v7  ;;  %v11110_v30 = vld [vmem:[#allocation4 + $0x74] sm:$0xf0]  ;;  %v7569_v33 = vld [vmem:[#allocation4 + $0x168] sm:$0xf]  ;;  %v7842_v41 = vor.u32 %v11210_v14, %v7841_v11 }
 0x1a6   :  { %5430 = vmatpush.bf16.msra.mxu2 %v7762_v0  ;;  %5399 = vmatmul.bf16.vlgmr.msrb.gmra.mxu3 %v12397_v5  ;;  %v7441_v0 = vld [vmem:[#allocation4 + $0x68] sm:$0xf]  ;;  %v11142_v44 = vld [vmem:[#allocation4 + $0x174] sm:$0xf0] }
 0x1a7   :  { %5443 = vmatpush.bf16.msra.mxu3 %v7890_v39  ;;  %v5166_v39 = vpop.f32.mrf.mxu1  ;;  %v7697_v45 = vld [vmem:[#allocation4 + $0x268] sm:$0xf]  ;;  %v11174_v46 = vld [vmem:[#allocation4 + $0x274] sm:$0xf0]  ;;  %v7570_v50 = vor.u32 %v11142_v44, %v7569_v33 }
 0x1a8   :  { %5405 = vmatpush.bf16.msra.mxu0 %v7490_v12  ;;  %v7825_v47 = vld [vmem:[#allocation4 + $0x368] sm:$0xf]  ;;  %v11206_v12 = vld [vmem:[#allocation4 + $0x374] sm:$0xf0]  ;;  %v7698_v51 = vor.u32 %v11174_v46, %v7697_v45  ;;  %v5179_v56 = vpop.f32.mrf.mxu2 }
 0x1a9   :  { %5418 = vmatpush.bf16.msra.mxu1 %v7618_v48  ;;  %v5167_v48 = vadd.f32 %v5166_v39, %v5154_v35  ;;  %v7425_v52 = vld [vmem:[#allocation4 + $0x48] sm:$0xf]  ;;  %v7826_v17 = vor.u32 %v11206_v12, %v7825_v47  ;;  %v11138_v57 = vld [vmem:[#allocation4 + $0x154] sm:$0xf0] }
 0x1aa   :  { %5431 = vmatpush.bf16.msra.mxu2 %v7746_v49  ;;  %v7442_v49 = vor.u32 %v11110_v30, %v7441_v0  ;;  %v7553_v55 = vld [vmem:[#allocation4 + $0x148] sm:$0xf]  ;;  %v11170_v58 = vld [vmem:[#allocation4 + $0x254] sm:$0xf0] }
 0x1ab   :  { %5444 = vmatpush.bf16.msra.mxu3 %v7874_v54  ;;  %v11106_v54 = vld [vmem:[#allocation4 + $0x54] sm:$0xf0]  ;;  %v7681_v43 = vld [vmem:[#allocation4 + $0x248] sm:$0xf]  ;;  %v7554_v6 = vor.u32 %v11138_v57, %v7553_v55 }
 0x1ac   :  { %5406 = vmatpush.bf16.msra.mxu0 %v7474_v59  ;;  %v5180_v59 = vadd.f32 %v5179_v56, %v5167_v48  ;;  %v11202_v63 = vld [vmem:[#allocation4 + $0x354] sm:$0xf0]  ;;  %v7426_v3 = vor.u32 %v11106_v54, %v7425_v52  ;;  %v7682_v7 = vor.u32 %v11170_v58, %v7681_v43  ;;  %v7409_v10 = vld [vmem:[#allocation4 + $0x28] sm:$0xf] }
 0x1ad   :  { %5419 = vmatpush.bf16.msra.mxu1 %v7602_v60  ;;  %v5192_v60 = vpop.f32.mrf.mxu3  ;;  %v11102_v11 = vld [vmem:[#allocation4 + $0x34] sm:$0xf0]  ;;  %v7537_v14 = vld [vmem:[#allocation4 + $0x128] sm:$0xf] }
 0x1ae   :  { %5432 = vmatpush.bf16.msra.mxu2 %v7730_v62  ;;  %v7809_v62 = vld [vmem:[#allocation4 + $0x348] sm:$0xf]  ;;  %v12445_v4 = vadd.f32 %v5192_v60, %v5180_v59  ;;  %v11166_v0 = vld [vmem:[#allocation4 + $0x234] sm:$0xf0]  ;;  %v7410_v35 = vor.u32 %v11102_v11, %v7409_v10 }
 0x1af   :  { %5445 = vmatpush.bf16.msra.mxu3 %v7858_v53  ;;  %v5155_v53 = vpop.f32.mrf.mxu0  ;;  %v7810_v21 = vor.u32 %v11202_v63, %v7809_v62  ;;  %v7793_v30 = vld [vmem:[#allocation4 + $0x328] sm:$0xf]  ;;  %v11198_v33 = vld [vmem:[#allocation4 + $0x334] sm:$0xf0] }
 0x1b0   :  { %5407 = vmatpush.bf16.msra.mxu0 %v7458_v16  ;;  %v5168_v16 = vpop.f32.mrf.mxu1  ;;  %v7393_v39 = vld [vmem:[#allocation4 + $0x8] sm:$0xf]  ;;  %v11130_v47 = vld [vmem:[#allocation4 + $0x114] sm:$0xf0]  ;;  %v5181_v48 = vpop.f32.mrf.mxu2 }
 0x1b1   :  { %5420 = vmatpush.bf16.msra.mxu1 %v7586_v28  ;;  %v11134_v28 = vld [vmem:[#allocation4 + $0x134] sm:$0xf0]  ;;  %v7521_v46 = vld [vmem:[#allocation4 + $0x108] sm:$0xf] }
 0x1b2   :  { %5433 = vmatpush.bf16.msra.mxu2 %v7714_v29  ;;  %v7665_v29 = vld [vmem:[#allocation4 + $0x228] sm:$0xf]  ;;  %v7538_v44 = vor.u32 %v11134_v28, %v7537_v14  ;;  %v11194_v52 = vld [vmem:[#allocation4 + $0x314] sm:$0xf0]  ;;  %v7522_v60 = vor.u32 %v11130_v47, %v7521_v46 }
 0x1b3   :  { %5446 = vmatpush.bf16.msra.mxu3 %v7842_v41  ;;  %v11098_v41 = vld [vmem:[#allocation4 + $0x14] sm:$0xf0]  ;;  %v7666_v45 = vor.u32 %v11166_v0, %v7665_v29  ;;  %v7649_v12 = vld [vmem:[#allocation4 + $0x208] sm:$0xf] }
 0x1b4   :  { %5408 = vmatpush.bf16.msra.mxu0 %v7442_v49  ;;  %v7794_v49 = vor.u32 %v11198_v33, %v7793_v30  ;;  %v8017_v55 = vld [vmem:[#allocation4 + $0x4e8] sm:$0xf]  ;;  %v11254_v56 = vld [vmem:[#allocation4 + $0x4f4] sm:$0xf0]  ;;  %v7394_v57 = vor.u32 %v11098_v41, %v7393_v39 }
 0x1b5   :  { %5421 = vmatpush.bf16.msra.mxu1 %v7570_v50  ;;  %v11162_v50 = vld [vmem:[#allocation4 + $0x214] sm:$0xf0]  ;;  %v5194_v54 = vpop.f32.mrf.mxu3  ;;  %v8273_v58 = vld [vmem:[#allocation4 + $0x6e8] sm:$0xf] }
 0x1b6   :  { %5434 = vmatpush.bf16.msra.mxu2 %v7698_v51  ;;  %v7777_v51 = vld [vmem:[#allocation4 + $0x308] sm:$0xf]  ;;  %v11286_v43 = vld [vmem:[#allocation4 + $0x5f4] sm:$0xf0]  ;;  %v7650_v62 = vor.u32 %v11162_v50, %v7649_v12 }
 0x1b7   :  { %5447 = vmatpush.bf16.msra.mxu3 %v7826_v17  ;;  %v8145_v17 = vld [vmem:[#allocation4 + $0x5e8] sm:$0xf]  ;;  %v11318_v59 = vld [vmem:[#allocation4 + $0x6f4] sm:$0xf0]  ;;  %v7778_v53 = vor.u32 %v11194_v52, %v7777_v51 }
 0x1b8   :  { %5409 = vmatpush.bf16.msra.mxu0 %v7426_v3  ;;  %v8401_v63 = vld [vmem:[#allocation4 + $0x7e8] sm:$0xf]  ;;  %v11350_v3 = vld [vmem:[#allocation4 + $0x7f4] sm:$0xf0]  ;;  %v8274_v10 = vor.u32 %v11318_v59, %v8273_v58 }
 0x1b9   :  { %5422 = vmatpush.bf16.msra.mxu1 %v7554_v6  ;;  %v8018_v6 = vor.u32 %v11254_v56, %v8017_v55  ;;  %v8001_v11 = vld [vmem:[#allocation4 + $0x4c8] sm:$0xf]  ;;  %v11250_v14 = vld [vmem:[#allocation4 + $0x4d4] sm:$0xf0] }
 0x1ba   :  { %5435 = vmatpush.bf16.msra.mxu2 %v7682_v7  ;;  %v8146_v7 = vor.u32 %v11286_v43, %v8145_v17  ;;  %v8129_v16 = vld [vmem:[#allocation4 + $0x5c8] sm:$0xf]  ;;  %v11282_v28 = vld [vmem:[#allocation4 + $0x5d4] sm:$0xf0] }
 0x1bb   :  { %5448 = vmatpush.bf16.msra.mxu3 %v7810_v21  ;;  %v8402_v21 = vor.u32 %v11350_v3, %v8401_v63  ;;  %v8257_v29 = vld [vmem:[#allocation4 + $0x6c8] sm:$0xf]  ;;  %v11314_v0 = vld [vmem:[#allocation4 + $0x6d4] sm:$0xf0]  ;;  %v8130_v39 = vor.u32 %v11282_v28, %v8129_v16 }
 0x1bc   :  { %5410 = vmatpush.bf16.msra.mxu0 %v7410_v35  ;;  %v8385_v30 = vld [vmem:[#allocation4 + $0x7c8] sm:$0xf]  ;;  %v11346_v33 = vld [vmem:[#allocation4 + $0x7d4] sm:$0xf0]  ;;  %v8002_v35 = vor.u32 %v11250_v14, %v8001_v11  ;;  %v8258_v41 = vor.u32 %v11314_v0, %v8257_v29 }
 0x1bd   :  { %5423 = vmatpush.bf16.msra.mxu1 %v7538_v44  ;;  %v7985_v44 = vld [vmem:[#allocation4 + $0x4a8] sm:$0xf]  ;;  %v8386_v47 = vor.u32 %v11346_v33, %v8385_v30  ;;  %v11278_v12 = vld [vmem:[#allocation4 + $0x5b4] sm:$0xf0] }
 0x1be   :  { %5436 = vmatpush.bf16.msra.mxu2 %v7666_v45  ;;  %v11246_v45 = vld [vmem:[#allocation4 + $0x4b4] sm:$0xf0]  ;;  %v8113_v46 = vld [vmem:[#allocation4 + $0x5a8] sm:$0xf] }
 0x1bf   :  { %5449 = vmatpush.bf16.msra.mxu3 %v7794_v49  ;;  %v8241_v48 = vld [vmem:[#allocation4 + $0x6a8] sm:$0xf]  ;;  %v11310_v49 = vld [vmem:[#allocation4 + $0x6b4] sm:$0xf0]  ;;  %v7986_v52 = vor.u32 %v11246_v45, %v7985_v44  ;;  %v8114_v54 = vor.u32 %v11278_v12, %v8113_v46 }
 0x1c0   :  { %5411 = vmatpush.bf16.msra.mxu0 %v7394_v57  ;;  %v8369_v50 = vld [vmem:[#allocation4 + $0x7a8] sm:$0xf]  ;;  %v11342_v51 = vld [vmem:[#allocation4 + $0x7b4] sm:$0xf0]  ;;  %v8242_v55 = vor.u32 %v11310_v49, %v8241_v48 }
 0x1c1   :  { %5424 = vmatpush.bf16.msra.mxu1 %v7522_v60  ;;  %v7969_v56 = vld [vmem:[#allocation4 + $0x488] sm:$0xf]  ;;  %v11242_v17 = vld [vmem:[#allocation4 + $0x494] sm:$0xf0]  ;;  %v8370_v43 = vor.u32 %v11342_v51, %v8369_v50 }
 0x1c2   :  { %5437 = vmatpush.bf16.msra.mxu2 %v7650_v62  ;;  %v8097_v57 = vld [vmem:[#allocation4 + $0x588] sm:$0xf]  ;;  %v11274_v58 = vld [vmem:[#allocation4 + $0x594] sm:$0xf0]  ;;  %v5205_v62 = vpop.f32.mrf.mxu0 }
 0x1c3   :  { %5450 = vmatpush.bf16.msra.mxu3 %v7778_v53  ;;  %5412 = vmatmul.bf16.vlgmr.msra.gmra.mxu0 %v12265_v9  ;;  %v8225_v59 = vld [vmem:[#allocation4 + $0x688] sm:$0xf]  ;;  %v11306_v60 = vld [vmem:[#allocation4 + $0x694] sm:$0xf0]  ;;  %v5206_v53 = vadd.f32 %v5205_v62, %v12445_v4 }
 0x1c4   :  { %5456 = vmatpush.bf16.msrb.mxu0 %v8018_v6  ;;  %5425 = vmatmul.bf16.vlgmr.msra.gmra.mxu1 %v12278_v25  ;;  %v8353_v63 = vld [vmem:[#allocation4 + $0x788] sm:$0xf]  ;;  %v11338_v3 = vld [vmem:[#allocation4 + $0x794] sm:$0xf0]  ;;  %v7970_v6 = vor.u32 %v11242_v17, %v7969_v56  ;;  %v8226_v11 = vor.u32 %v11306_v60, %v8225_v59 }
 0x1c5   :  { %5469 = vmatpush.bf16.msrb.mxu1 %v8146_v7  ;;  %5438 = vmatmul.bf16.vlgmr.msra.gmra.mxu2 %v12263_v8  ;;  %v5218_v7 = vpop.f32.mrf.mxu1  ;;  %v7953_v14 = vld [vmem:[#allocation4 + $0x468] sm:$0xf]  ;;  %v11238_v16 = vld [vmem:[#allocation4 + $0x474] sm:$0xf0]  ;;  %v8354_v28 = vor.u32 %v11338_v3, %v8353_v63 }
 0x1c6   :  { %5482 = vmatpush.bf16.msrb.mxu2 %v8274_v10  ;;  %5451 = vmatmul.bf16.vlgmr.msra.gmra.mxu3 %v12270_v15  ;;  %v8098_v10 = vor.u32 %v11274_v58, %v8097_v57  ;;  %v5219_v29 = vadd.f32 %v5218_v7, %v5206_v53  ;;  %v11270_v0 = vld [vmem:[#allocation4 + $0x574] sm:$0xf0]  ;;  %v8209_v30 = vld [vmem:[#allocation4 + $0x668] sm:$0xf] }
 0x1c7   :  { %5495 = vmatpush.bf16.msrb.mxu3 %v8402_v21  ;;  %v8081_v21 = vld [vmem:[#allocation4 + $0x568] sm:$0xf]  ;;  %v11302_v33 = vld [vmem:[#allocation4 + $0x674] sm:$0xf0] }
 0x1c8   :  { %5457 = vmatpush.bf16.msrb.mxu0 %v8002_v35  ;;  %v8337_v35 = vld [vmem:[#allocation4 + $0x768] sm:$0xf]  ;;  %v8082_v4 = vor.u32 %v11270_v0, %v8081_v21  ;;  %v8210_v44 = vor.u32 %v11302_v33, %v8209_v30  ;;  %v11234_v46 = vld [vmem:[#allocation4 + $0x454] sm:$0xf0]  ;;  %v5231_v48 = vpop.f32.mrf.mxu2 }
 0x1c9   :  { %5470 = vmatpush.bf16.msrb.mxu1 %v8130_v39  ;;  %v11334_v39 = vld [vmem:[#allocation4 + $0x774] sm:$0xf0]  ;;  %v7937_v45 = vld [vmem:[#allocation4 + $0x448] sm:$0xf] }
 0x1ca   :  { %5483 = vmatpush.bf16.msrb.mxu2 %v8258_v41  ;;  %v7954_v41 = vor.u32 %v11238_v16, %v7953_v14  ;;  %v8338_v12 = vor.u32 %v11334_v39, %v8337_v35  ;;  %v11266_v49 = vld [vmem:[#allocation4 + $0x554] sm:$0xf0]  ;;  %v8193_v50 = vld [vmem:[#allocation4 + $0x648] sm:$0xf]  ;;  %v5207_v17 = vpop.f32.mrf.mxu0  ;;  %v7938_v57 = vor.u32 %v11234_v46, %v7937_v45 }
 0x1cb   :  { %5496 = vmatpush.bf16.msrb.mxu3 %v8386_v47  ;;  %v8065_v47 = vld [vmem:[#allocation4 + $0x548] sm:$0xf]  ;;  %v11298_v51 = vld [vmem:[#allocation4 + $0x654] sm:$0xf0] }
 0x1cc   :  { %5458 = vmatpush.bf16.msrb.mxu0 %v7986_v52  ;;  %v5232_v52 = vadd.f32 %v5231_v48, %v5219_v29  ;;  %v11330_v56 = vld [vmem:[#allocation4 + $0x754] sm:$0xf0]  ;;  %v8066_v59 = vor.u32 %v11266_v49, %v8065_v47  ;;  %v8194_v60 = vor.u32 %v11298_v51, %v8193_v50  ;;  %v7921_v62 = vld [vmem:[#allocation4 + $0x428] sm:$0xf] }
 0x1cd   :  { %5471 = vmatpush.bf16.msrb.mxu1 %v8114_v54  ;;  %v5244_v54 = vpop.f32.mrf.mxu3  ;;  %v11230_v63 = vld [vmem:[#allocation4 + $0x434] sm:$0xf0]  ;;  %v8049_v3 = vld [vmem:[#allocation4 + $0x528] sm:$0xf] }
 0x1ce   :  { %5484 = vmatpush.bf16.msrb.mxu2 %v8242_v55  ;;  %v8321_v55 = vld [vmem:[#allocation4 + $0x748] sm:$0xf]  ;;  %v12452_v58 = vadd.f32 %v5244_v54, %v5232_v52  ;;  %v11326_v14 = vld [vmem:[#allocation4 + $0x734] sm:$0xf0]  ;;  %v7922_v16 = vor.u32 %v11230_v63, %v7921_v62 }
 0x1cf   :  { %5497 = vmatpush.bf16.msrb.mxu3 %v8370_v43  ;;  %v5220_v43 = vpop.f32.mrf.mxu1  ;;  %v8322_v53 = vor.u32 %v11330_v56, %v8321_v55  ;;  %v8177_v7 = vld [vmem:[#allocation4 + $0x628] sm:$0xf]  ;;  %v11258_v33 = vld [vmem:[#allocation4 + $0x514] sm:$0xf0] }
 0x1d0   :  { %5459 = vmatpush.bf16.msrb.mxu0 %v7970_v6  ;;  %v11262_v6 = vld [vmem:[#allocation4 + $0x534] sm:$0xf0]  ;;  %v7905_v21 = vld [vmem:[#allocation4 + $0x408] sm:$0xf]  ;;  %v5233_v45 = vpop.f32.mrf.mxu2 }
 0x1d1   :  { %5472 = vmatpush.bf16.msrb.mxu1 %v8098_v10  ;;  %v11294_v10 = vld [vmem:[#allocation4 + $0x634] sm:$0xf0]  ;;  %v8050_v29 = vor.u32 %v11262_v6, %v8049_v3  ;;  %v8033_v30 = vld [vmem:[#allocation4 + $0x508] sm:$0xf] }
 0x1d2   :  { %5485 = vmatpush.bf16.msrb.mxu2 %v8226_v11  ;;  %v8305_v11 = vld [vmem:[#allocation4 + $0x728] sm:$0xf]  ;;  %v8178_v0 = vor.u32 %v11294_v10, %v8177_v7  ;;  %v11382_v47 = vld [vmem:[#allocation4 + $0x8f4] sm:$0xf0]  ;;  %v8034_v54 = vor.u32 %v11258_v33, %v8033_v30 }
 0x1d3   :  { %5498 = vmatpush.bf16.msrb.mxu3 %v8354_v28  ;;  %v11226_v28 = vld [vmem:[#allocation4 + $0x414] sm:$0xf0]  ;;  %v8161_v35 = vld [vmem:[#allocation4 + $0x608] sm:$0xf]  ;;  %v8306_v39 = vor.u32 %v11326_v14, %v8305_v11 }
 0x1d4   :  { %5460 = vmatpush.bf16.msrb.mxu0 %v7954_v41  ;;  %v11290_v41 = vld [vmem:[#allocation4 + $0x614] sm:$0xf0]  ;;  %v8529_v46 = vld [vmem:[#allocation4 + $0x8e8] sm:$0xf]  ;;  %v7906_v49 = vor.u32 %v11226_v28, %v7905_v21 }
 0x1d5   :  { %5473 = vmatpush.bf16.msrb.mxu1 %v8082_v4  ;;  %v8289_v4 = vld [vmem:[#allocation4 + $0x708] sm:$0xf]  ;;  %v5246_v48 = vpop.f32.mrf.mxu3  ;;  %v11414_v50 = vld [vmem:[#allocation4 + $0x9f4] sm:$0xf0]  ;;  %v8162_v55 = vor.u32 %v11290_v41, %v8161_v35  ;;  %v8530_v43 = vor.u32 %v11382_v47, %v8529_v46 }
 0x1d6   :  { %5486 = vmatpush.bf16.msrb.mxu2 %v8210_v44  ;;  %v11322_v44 = vld [vmem:[#allocation4 + $0x714] sm:$0xf0]  ;;  %v8785_v51 = vld [vmem:[#allocation4 + $0xae8] sm:$0xf] }
 0x1d7   :  { %5499 = vmatpush.bf16.msrb.mxu3 %v8338_v12  ;;  %v8657_v12 = vld [vmem:[#allocation4 + $0x9e8] sm:$0xf]  ;;  %v11446_v52 = vld [vmem:[#allocation4 + $0xaf4] sm:$0xf0] }
 0x1d8   :  { %5461 = vmatpush.bf16.msrb.mxu0 %v7938_v57  ;;  %v8913_v56 = vld [vmem:[#allocation4 + $0xbe8] sm:$0xf]  ;;  %v11478_v17 = vld [vmem:[#allocation4 + $0xbf4] sm:$0xf0]  ;;  %v8290_v57 = vor.u32 %v11322_v44, %v8289_v4 }
 0x1d9   :  { %5474 = vmatpush.bf16.msrb.mxu1 %v8066_v59  ;;  %v8658_v59 = vor.u32 %v11414_v50, %v8657_v12  ;;  %v8513_v62 = vld [vmem:[#allocation4 + $0x8c8] sm:$0xf]  ;;  %v11378_v63 = vld [vmem:[#allocation4 + $0x8d4] sm:$0xf0] }
 0x1da   :  { %5487 = vmatpush.bf16.msrb.mxu2 %v8194_v60  ;;  %v8786_v60 = vor.u32 %v11446_v52, %v8785_v51  ;;  %v8641_v3 = vld [vmem:[#allocation4 + $0x9c8] sm:$0xf]  ;;  %v11410_v6 = vld [vmem:[#allocation4 + $0x9d4] sm:$0xf0] }
 0x1db   :  { %5500 = vmatpush.bf16.msrb.mxu3 %v8322_v53  ;;  %v8914_v53 = vor.u32 %v11478_v17, %v8913_v56  ;;  %v8769_v7 = vld [vmem:[#allocation4 + $0xac8] sm:$0xf]  ;;  %v11442_v10 = vld [vmem:[#allocation4 + $0xad4] sm:$0xf0]  ;;  %v8642_v21 = vor.u32 %v11410_v6, %v8641_v3 }
 0x1dc   :  { %5462 = vmatpush.bf16.msrb.mxu0 %v7922_v16  ;;  %v8897_v11 = vld [vmem:[#allocation4 + $0xbc8] sm:$0xf]  ;;  %v11474_v14 = vld [vmem:[#allocation4 + $0xbd4] sm:$0xf0]  ;;  %v8514_v16 = vor.u32 %v11378_v63, %v8513_v62  ;;  %v8770_v28 = vor.u32 %v11442_v10, %v8769_v7 }
 0x1dd   :  { %5475 = vmatpush.bf16.msrb.mxu1 %v8050_v29  ;;  %v8497_v29 = vld [vmem:[#allocation4 + $0x8a8] sm:$0xf]  ;;  %v8898_v33 = vor.u32 %v11474_v14, %v8897_v11  ;;  %v11406_v35 = vld [vmem:[#allocation4 + $0x9b4] sm:$0xf0] }
 0x1de   :  { %5488 = vmatpush.bf16.msrb.mxu2 %v8178_v0  ;;  %v11374_v0 = vld [vmem:[#allocation4 + $0x8b4] sm:$0xf0]  ;;  %v8625_v30 = vld [vmem:[#allocation4 + $0x9a8] sm:$0xf] }
 0x1df   :  { %5501 = vmatpush.bf16.msrb.mxu3 %v8306_v39  ;;  %v8753_v39 = vld [vmem:[#allocation4 + $0xaa8] sm:$0xf]  ;;  %v11438_v41 = vld [vmem:[#allocation4 + $0xab4] sm:$0xf0]  ;;  %v8498_v45 = vor.u32 %v11374_v0, %v8497_v29  ;;  %v8626_v46 = vor.u32 %v11406_v35, %v8625_v30 }
 0x1e0   :  { %5463 = vmatpush.bf16.msrb.mxu0 %v7906_v49  ;;  %v8881_v4 = vld [vmem:[#allocation4 + $0xba8] sm:$0xf]  ;;  %v11470_v44 = vld [vmem:[#allocation4 + $0xbb4] sm:$0xf0]  ;;  %v8754_v47 = vor.u32 %v11438_v41, %v8753_v39 }
 0x1e1   :  { %5476 = vmatpush.bf16.msrb.mxu1 %v8034_v54  ;;  %v8481_v12 = vld [vmem:[#allocation4 + $0x888] sm:$0xf]  ;;  %v11370_v48 = vld [vmem:[#allocation4 + $0x894] sm:$0xf0]  ;;  %v8882_v50 = vor.u32 %v11470_v44, %v8881_v4 }
 0x1e2   :  { %5489 = vmatpush.bf16.msrb.mxu2 %v8162_v55  ;;  %v8609_v49 = vld [vmem:[#allocation4 + $0x988] sm:$0xf]  ;;  %v11402_v51 = vld [vmem:[#allocation4 + $0x994] sm:$0xf0]  ;;  %v5257_v55 = vpop.f32.mrf.mxu0 }
 0x1e3   :  { %5502 = vmatpush.bf16.msrb.mxu3 %v8290_v57  ;;  %5464 = vmatmul.bf16.vlgmr.msrb.gmra.mxu0 %v12295_v37  ;;  %v8737_v52 = vld [vmem:[#allocation4 + $0xa88] sm:$0xf]  ;;  %v11434_v54 = vld [vmem:[#allocation4 + $0xa94] sm:$0xf0]  ;;  %v5258_v57 = vadd.f32 %v5257_v55, %v12452_v58 }
 0x1e4   :  { %5508 = vmatpush.bf16.msra.mxu0 %v8530_v43  ;;  %5477 = vmatmul.bf16.vlgmr.msrb.gmra.mxu1 %v12299_v40  ;;  %v8865_v56 = vld [vmem:[#allocation4 + $0xb88] sm:$0xf]  ;;  %v11466_v17 = vld [vmem:[#allocation4 + $0xb94] sm:$0xf0]  ;;  %v8482_v43 = vor.u32 %v11370_v48, %v8481_v12  ;;  %v8738_v62 = vor.u32 %v11434_v54, %v8737_v52 }
 0x1e5   :  { %5521 = vmatpush.bf16.msra.mxu1 %v8658_v59  ;;  %5490 = vmatmul.bf16.vlgmr.msrb.gmra.mxu2 %v12293_v34  ;;  %v5270_v59 = vpop.f32.mrf.mxu1  ;;  %v8465_v63 = vld [vmem:[#allocation4 + $0x868] sm:$0xf]  ;;  %v11366_v3 = vld [vmem:[#allocation4 + $0x874] sm:$0xf0]  ;;  %v8866_v6 = vor.u32 %v11466_v17, %v8865_v56 }
 0x1e6   :  { %5534 = vmatpush.bf16.msra.mxu2 %v8786_v60  ;;  %5503 = vmatmul.bf16.vlgmr.msrb.gmra.mxu3 %v12297_v38  ;;  %v8610_v60 = vor.u32 %v11402_v51, %v8609_v49  ;;  %v5271_v7 = vadd.f32 %v5270_v59, %v5258_v57  ;;  %v11398_v10 = vld [vmem:[#allocation4 + $0x974] sm:$0xf0]  ;;  %v8721_v11 = vld [vmem:[#allocation4 + $0xa68] sm:$0xf] }
 0x1e7   :  { %5547 = vmatpush.bf16.msra.mxu3 %v8914_v53  ;;  %v8593_v53 = vld [vmem:[#allocation4 + $0x968] sm:$0xf]  ;;  %v11430_v14 = vld [vmem:[#allocation4 + $0xa74] sm:$0xf0] }
 0x1e8   :  { %5509 = vmatpush.bf16.msra.mxu0 %v8514_v16  ;;  %v8849_v16 = vld [vmem:[#allocation4 + $0xb68] sm:$0xf]  ;;  %v8594_v58 = vor.u32 %v11398_v10, %v8593_v53  ;;  %v8722_v29 = vor.u32 %v11430_v14, %v8721_v11  ;;  %v11362_v30 = vld [vmem:[#allocation4 + $0x854] sm:$0xf0]  ;;  %v5283_v39 = vpop.f32.mrf.mxu2 }
 0x1e9   :  { %5522 = vmatpush.bf16.msra.mxu1 %v8642_v21  ;;  %v11462_v21 = vld [vmem:[#allocation4 + $0xb74] sm:$0xf0]  ;;  %v8449_v0 = vld [vmem:[#allocation4 + $0x848] sm:$0xf] }
 0x1ea   :  { %5535 = vmatpush.bf16.msra.mxu2 %v8770_v28  ;;  %v8466_v28 = vor.u32 %v11366_v3, %v8465_v63  ;;  %v8850_v35 = vor.u32 %v11462_v21, %v8849_v16  ;;  %v11394_v41 = vld [vmem:[#allocation4 + $0x954] sm:$0xf0]  ;;  %v8705_v4 = vld [vmem:[#allocation4 + $0xa48] sm:$0xf]  ;;  %v5259_v48 = vpop.f32.mrf.mxu0  ;;  %v8450_v49 = vor.u32 %v11362_v30, %v8449_v0 }
 0x1eb   :  { %5548 = vmatpush.bf16.msra.mxu3 %v8898_v33  ;;  %v8577_v33 = vld [vmem:[#allocation4 + $0x948] sm:$0xf]  ;;  %v11426_v44 = vld [vmem:[#allocation4 + $0xa54] sm:$0xf0] }
 0x1ec   :  { %5510 = vmatpush.bf16.msra.mxu0 %v8498_v45  ;;  %v5284_v45 = vadd.f32 %v5283_v39, %v5271_v7  ;;  %v11458_v12 = vld [vmem:[#allocation4 + $0xb54] sm:$0xf0]  ;;  %v8578_v52 = vor.u32 %v11394_v41, %v8577_v33  ;;  %v8706_v54 = vor.u32 %v11426_v44, %v8705_v4  ;;  %v8433_v55 = vld [vmem:[#allocation4 + $0x828] sm:$0xf] }
 0x1ed   :  { %5523 = vmatpush.bf16.msra.mxu1 %v8626_v46  ;;  %v5296_v46 = vpop.f32.mrf.mxu3  ;;  %v11358_v56 = vld [vmem:[#allocation4 + $0x834] sm:$0xf0]  ;;  %v8561_v17 = vld [vmem:[#allocation4 + $0x928] sm:$0xf] }
 0x1ee   :  { %5536 = vmatpush.bf16.msra.mxu2 %v8754_v47  ;;  %v8833_v47 = vld [vmem:[#allocation4 + $0xb48] sm:$0xf]  ;;  %v12459_v51 = vadd.f32 %v5296_v46, %v5284_v45  ;;  %v11454_v63 = vld [vmem:[#allocation4 + $0xb34] sm:$0xf0]  ;;  %v8434_v3 = vor.u32 %v11358_v56, %v8433_v55 }
 0x1ef   :  { %5549 = vmatpush.bf16.msra.mxu3 %v8882_v50  ;;  %v5272_v50 = vpop.f32.mrf.mxu1  ;;  %v8834_v57 = vor.u32 %v11458_v12, %v8833_v47  ;;  %v8689_v59 = vld [vmem:[#allocation4 + $0xa28] sm:$0xf]  ;;  %v11386_v14 = vld [vmem:[#allocation4 + $0x914] sm:$0xf0] }
 0x1f0   :  { %5511 = vmatpush.bf16.msra.mxu0 %v8482_v43  ;;  %v11390_v43 = vld [vmem:[#allocation4 + $0x934] sm:$0xf0]  ;;  %v8417_v53 = vld [vmem:[#allocation4 + $0x808] sm:$0xf]  ;;  %v5285_v0 = vpop.f32.mrf.mxu2 }
 0x1f1   :  { %5524 = vmatpush.bf16.msra.mxu1 %v8610_v60  ;;  %v11422_v60 = vld [vmem:[#allocation4 + $0xa34] sm:$0xf0]  ;;  %v8562_v7 = vor.u32 %v11390_v43, %v8561_v17  ;;  %v8545_v11 = vld [vmem:[#allocation4 + $0x908] sm:$0xf] }
 0x1f2   :  { %5537 = vmatpush.bf16.msra.mxu2 %v8738_v62  ;;  %v8817_v62 = vld [vmem:[#allocation4 + $0xb28] sm:$0xf]  ;;  %v8690_v10 = vor.u32 %v11422_v60, %v8689_v59  ;;  %v11510_v33 = vld [vmem:[#allocation4 + $0xcf4] sm:$0xf0]  ;;  %v8546_v46 = vor.u32 %v11386_v14, %v8545_v11 }
 0x1f3   :  { %5550 = vmatpush.bf16.msra.mxu3 %v8866_v6  ;;  %v11354_v6 = vld [vmem:[#allocation4 + $0x814] sm:$0xf0]  ;;  %v8673_v16 = vld [vmem:[#allocation4 + $0xa08] sm:$0xf]  ;;  %v8818_v21 = vor.u32 %v11454_v63, %v8817_v62 }
 0x1f4   :  { %5512 = vmatpush.bf16.msra.mxu0 %v8466_v28  ;;  %v11418_v28 = vld [vmem:[#allocation4 + $0xa14] sm:$0xf0]  ;;  %v9041_v30 = vld [vmem:[#allocation4 + $0xce8] sm:$0xf]  ;;  %v8418_v41 = vor.u32 %v11354_v6, %v8417_v53 }
 0x1f5   :  { %5525 = vmatpush.bf16.msra.mxu1 %v8594_v58  ;;  %v8801_v58 = vld [vmem:[#allocation4 + $0xb08] sm:$0xf]  ;;  %v5298_v39 = vpop.f32.mrf.mxu3  ;;  %v11542_v4 = vld [vmem:[#allocation4 + $0xdf4] sm:$0xf0]  ;;  %v8674_v47 = vor.u32 %v11418_v28, %v8673_v16  ;;  %v9042_v50 = vor.u32 %v11510_v33, %v9041_v30 }
 0x1f6   :  { %5538 = vmatpush.bf16.msra.mxu2 %v8722_v29  ;;  %v11450_v29 = vld [vmem:[#allocation4 + $0xb14] sm:$0xf0]  ;;  %v9297_v44 = vld [vmem:[#allocation4 + $0xee8] sm:$0xf] }
 0x1f7   :  { %5551 = vmatpush.bf16.msra.mxu3 %v8850_v35  ;;  %v9169_v35 = vld [vmem:[#allocation4 + $0xde8] sm:$0xf]  ;;  %v11574_v45 = vld [vmem:[#allocation4 + $0xef4] sm:$0xf0] }
 0x1f8   :  { %5513 = vmatpush.bf16.msra.mxu0 %v8450_v49  ;;  %v9425_v12 = vld [vmem:[#allocation4 + $0xfe8] sm:$0xf]  ;;  %v11606_v48 = vld [vmem:[#allocation4 + $0xff4] sm:$0xf0]  ;;  %v8802_v49 = vor.u32 %v11450_v29, %v8801_v58 }
 0x1f9   :  { %5526 = vmatpush.bf16.msra.mxu1 %v8578_v52  ;;  %v9170_v52 = vor.u32 %v11542_v4, %v9169_v35  ;;  %v9025_v55 = vld [vmem:[#allocation4 + $0xcc8] sm:$0xf]  ;;  %v11506_v56 = vld [vmem:[#allocation4 + $0xcd4] sm:$0xf0] }
 0x1fa   :  { %5539 = vmatpush.bf16.msra.mxu2 %v8706_v54  ;;  %v9298_v54 = vor.u32 %v11574_v45, %v9297_v44  ;;  %v9153_v17 = vld [vmem:[#allocation4 + $0xdc8] sm:$0xf]  ;;  %v11538_v43 = vld [vmem:[#allocation4 + $0xdd4] sm:$0xf0] }
 0x1fb   :  { %5552 = vmatpush.bf16.msra.mxu3 %v8834_v57  ;;  %v9426_v57 = vor.u32 %v11606_v48, %v9425_v12  ;;  %v9281_v59 = vld [vmem:[#allocation4 + $0xec8] sm:$0xf]  ;;  %v11570_v60 = vld [vmem:[#allocation4 + $0xed4] sm:$0xf0]  ;;  %v9154_v53 = vor.u32 %v11538_v43, %v9153_v17 }
 0x1fc   :  { %5514 = vmatpush.bf16.msra.mxu0 %v8434_v3  ;;  %v9409_v62 = vld [vmem:[#allocation4 + $0xfc8] sm:$0xf]  ;;  %v11602_v63 = vld [vmem:[#allocation4 + $0xfd4] sm:$0xf0]  ;;  %v9026_v3 = vor.u32 %v11506_v56, %v9025_v55  ;;  %v9282_v6 = vor.u32 %v11570_v60, %v9281_v59 }
 0x1fd   :  { %5527 = vmatpush.bf16.msra.mxu1 %v8562_v7  ;;  %v9009_v7 = vld [vmem:[#allocation4 + $0xca8] sm:$0xf]  ;;  %v9410_v14 = vor.u32 %v11602_v63, %v9409_v62  ;;  %v11534_v16 = vld [vmem:[#allocation4 + $0xdb4] sm:$0xf0] }
 0x1fe   :  { %5540 = vmatpush.bf16.msra.mxu2 %v8690_v10  ;;  %v11502_v10 = vld [vmem:[#allocation4 + $0xcb4] sm:$0xf0]  ;;  %v9137_v11 = vld [vmem:[#allocation4 + $0xda8] sm:$0xf] }
 0x1ff   :  { %5553 = vmatpush.bf16.msra.mxu3 %v8818_v21  ;;  %v9265_v21 = vld [vmem:[#allocation4 + $0xea8] sm:$0xf]  ;;  %v11566_v28 = vld [vmem:[#allocation4 + $0xeb4] sm:$0xf0]  ;;  %v9010_v0 = vor.u32 %v11502_v10, %v9009_v7  ;;  %v9138_v30 = vor.u32 %v11534_v16, %v9137_v11 }
 0x200   :  { %5515 = vmatpush.bf16.msra.mxu0 %v8418_v41  ;;  %v9393_v58 = vld [vmem:[#allocation4 + $0xfa8] sm:$0xf]  ;;  %v11598_v29 = vld [vmem:[#allocation4 + $0xfb4] sm:$0xf0]  ;;  %v9266_v33 = vor.u32 %v11566_v28, %v9265_v21 }
 0x201   :  { %5528 = vmatpush.bf16.msra.mxu1 %v8546_v46  ;;  %v8993_v35 = vld [vmem:[#allocation4 + $0xc88] sm:$0xf]  ;;  %v11498_v39 = vld [vmem:[#allocation4 + $0xc94] sm:$0xf0]  ;;  %v9394_v4 = vor.u32 %v11598_v29, %v9393_v58 }
 0x202   :  { %5541 = vmatpush.bf16.msra.mxu2 %v8674_v47  ;;  %v9121_v41 = vld [vmem:[#allocation4 + $0xd88] sm:$0xf]  ;;  %v11530_v44 = vld [vmem:[#allocation4 + $0xd94] sm:$0xf0]  ;;  %v5309_v47 = vpop.f32.mrf.mxu0 }
 0x203   :  { %5554 = vmatpush.bf16.msra.mxu3 %v8802_v49  ;;  %5516 = vmatmul.bf16.vlgmr.msra.gmra.mxu0 %v12317_v18  ;;  %v9249_v45 = vld [vmem:[#allocation4 + $0xe88] sm:$0xf]  ;;  %v11562_v46 = vld [vmem:[#allocation4 + $0xe94] sm:$0xf0]  ;;  %v5310_v49 = vadd.f32 %v5309_v47, %v12459_v51 }
 0x204   :  { %5560 = vmatpush.bf16.msrb.mxu0 %v9042_v50  ;;  %5529 = vmatmul.bf16.vlgmr.msra.gmra.mxu1 %v12321_v23  ;;  %v9377_v12 = vld [vmem:[#allocation4 + $0xf88] sm:$0xf]  ;;  %v11594_v48 = vld [vmem:[#allocation4 + $0xf94] sm:$0xf0]  ;;  %v8994_v50 = vor.u32 %v11498_v39, %v8993_v35  ;;  %v9250_v55 = vor.u32 %v11562_v46, %v9249_v45 }
 0x205   :  { %5573 = vmatpush.bf16.msrb.mxu1 %v9170_v52  ;;  %5542 = vmatmul.bf16.vlgmr.msra.gmra.mxu2 %v12319_v22  ;;  %v5322_v52 = vpop.f32.mrf.mxu1  ;;  %v8977_v56 = vld [vmem:[#allocation4 + $0xc68] sm:$0xf]  ;;  %v11494_v17 = vld [vmem:[#allocation4 + $0xc74] sm:$0xf0]  ;;  %v9378_v43 = vor.u32 %v11594_v48, %v9377_v12 }
 0x206   :  { %5586 = vmatpush.bf16.msrb.mxu2 %v9298_v54  ;;  %5555 = vmatmul.bf16.vlgmr.msra.gmra.mxu3 %v12323_v27  ;;  %v9122_v54 = vor.u32 %v11530_v44, %v9121_v41  ;;  %v5323_v59 = vadd.f32 %v5322_v52, %v5310_v49  ;;  %v11526_v60 = vld [vmem:[#allocation4 + $0xd74] sm:$0xf0]  ;;  %v9233_v62 = vld [vmem:[#allocation4 + $0xe68] sm:$0xf] }
 0x207   :  { %5599 = vmatpush.bf16.msrb.mxu3 %v9426_v57  ;;  %v9105_v57 = vld [vmem:[#allocation4 + $0xd68] sm:$0xf]  ;;  %v11558_v63 = vld [vmem:[#allocation4 + $0xe74] sm:$0xf0] }
 0x208   :  { %5561 = vmatpush.bf16.msrb.mxu0 %v9026_v3  ;;  %v9361_v3 = vld [vmem:[#allocation4 + $0xf68] sm:$0xf]  ;;  %v9106_v51 = vor.u32 %v11526_v60, %v9105_v57  ;;  %v9234_v7 = vor.u32 %v11558_v63, %v9233_v62  ;;  %v11490_v11 = vld [vmem:[#allocation4 + $0xc54] sm:$0xf0]  ;;  %v5335_v21 = vpop.f32.mrf.mxu2 }
 0x209   :  { %5574 = vmatpush.bf16.msrb.mxu1 %v9154_v53  ;;  %v11590_v53 = vld [vmem:[#allocation4 + $0xf74] sm:$0xf0]  ;;  %v8961_v10 = vld [vmem:[#allocation4 + $0xc48] sm:$0xf] }
 0x20a   :  { %5587 = vmatpush.bf16.msrb.mxu2 %v9282_v6  ;;  %v8978_v6 = vor.u32 %v11494_v17, %v8977_v56  ;;  %v9362_v16 = vor.u32 %v11590_v53, %v9361_v3  ;;  %v11522_v28 = vld [vmem:[#allocation4 + $0xd54] sm:$0xf0]  ;;  %v9217_v58 = vld [vmem:[#allocation4 + $0xe48] sm:$0xf]  ;;  %v5311_v39 = vpop.f32.mrf.mxu0  ;;  %v8962_v41 = vor.u32 %v11490_v11, %v8961_v10 }
 0x20b   :  { %5600 = vmatpush.bf16.msrb.mxu3 %v9410_v14  ;;  %v9089_v14 = vld [vmem:[#allocation4 + $0xd48] sm:$0xf]  ;;  %v11554_v29 = vld [vmem:[#allocation4 + $0xe54] sm:$0xf0] }
 0x20c   :  { %5562 = vmatpush.bf16.msrb.mxu0 %v9010_v0  ;;  %v5336_v0 = vadd.f32 %v5335_v21, %v5323_v59  ;;  %v11586_v35 = vld [vmem:[#allocation4 + $0xf54] sm:$0xf0]  ;;  %v9090_v45 = vor.u32 %v11522_v28, %v9089_v14  ;;  %v9218_v46 = vor.u32 %v11554_v29, %v9217_v58  ;;  %v8945_v47 = vld [vmem:[#allocation4 + $0xc28] sm:$0xf] }
 0x20d   :  { %5575 = vmatpush.bf16.msrb.mxu1 %v9138_v30  ;;  %v5348_v30 = vpop.f32.mrf.mxu3  ;;  %v11486_v12 = vld [vmem:[#allocation4 + $0xc34] sm:$0xf0]  ;;  %v9073_v48 = vld [vmem:[#allocation4 + $0xd28] sm:$0xf] }
 0x20e   :  { %5588 = vmatpush.bf16.msrb.mxu2 %v9266_v33  ;;  %v9345_v33 = vld [vmem:[#allocation4 + $0xf48] sm:$0xf]  ;;  %v12466_v44 = vadd.f32 %v5348_v30, %v5336_v0  ;;  %v11582_v56 = vld [vmem:[#allocation4 + $0xf34] sm:$0xf0]  ;;  %v8946_v17 = vor.u32 %v11486_v12, %v8945_v47 }
 0x20f   :  { %5601 = vmatpush.bf16.msrb.mxu3 %v9394_v4  ;;  %v5324_v4 = vpop.f32.mrf.mxu1  ;;  %v9346_v49 = vor.u32 %v11586_v35, %v9345_v33  ;;  %v9201_v52 = vld [vmem:[#allocation4 + $0xe28] sm:$0xf]  ;;  %v11514_v63 = vld [vmem:[#allocation4 + $0xd14] sm:$0xf0] }
 0x210   :  { %5563 = vmatpush.bf16.msrb.mxu0 %v8994_v50  ;;  %v11518_v50 = vld [vmem:[#allocation4 + $0xd34] sm:$0xf0]  ;;  %v8929_v57 = vld [vmem:[#allocation4 + $0xc08] sm:$0xf]  ;;  %v5337_v10 = vpop.f32.mrf.mxu2 }
 0x211   :  { %5576 = vmatpush.bf16.msrb.mxu1 %v9122_v54  ;;  %v11550_v54 = vld [vmem:[#allocation4 + $0xe34] sm:$0xf0]  ;;  %v9074_v59 = vor.u32 %v11518_v50, %v9073_v48  ;;  %v9057_v62 = vld [vmem:[#allocation4 + $0xd08] sm:$0xf] }
 0x212   :  { %5589 = vmatpush.bf16.msrb.mxu2 %v9250_v55  ;;  %v9329_v55 = vld [vmem:[#allocation4 + $0xf28] sm:$0xf]  ;;  %v9202_v60 = vor.u32 %v11550_v54, %v9201_v52  ;;  %v11638_v14 = vld [vmem:[#allocation4 + $0x10f4] sm:$0xf0]  ;;  %v9058_v30 = vor.u32 %v11514_v63, %v9057_v62 }
 0x213   :  { %5602 = vmatpush.bf16.msrb.mxu3 %v9378_v43  ;;  %v11482_v43 = vld [vmem:[#allocation4 + $0xc14] sm:$0xf0]  ;;  %v9185_v3 = vld [vmem:[#allocation4 + $0xe08] sm:$0xf]  ;;  %v9330_v53 = vor.u32 %v11582_v56, %v9329_v55 }
 0x214   :  { %5564 = vmatpush.bf16.msrb.mxu0 %v8978_v6  ;;  %v11546_v6 = vld [vmem:[#allocation4 + $0xe14] sm:$0xf0]  ;;  %v9553_v11 = vld [vmem:[#allocation4 + $0x10e8] sm:$0xf]  ;;  %v8930_v28 = vor.u32 %v11482_v43, %v8929_v57 }
 0x215   :  { %5577 = vmatpush.bf16.msrb.mxu1 %v9106_v51  ;;  %v9313_v51 = vld [vmem:[#allocation4 + $0xf08] sm:$0xf]  ;;  %v5350_v21 = vpop.f32.mrf.mxu3  ;;  %v11670_v58 = vld [vmem:[#allocation4 + $0x11f4] sm:$0xf0]  ;;  %v9186_v33 = vor.u32 %v11546_v6, %v9185_v3  ;;  %v9554_v4 = vor.u32 %v11638_v14, %v9553_v11 }
 0x216   :  { %5590 = vmatpush.bf16.msrb.mxu2 %v9234_v7  ;;  %v11578_v7 = vld [vmem:[#allocation4 + $0xf14] sm:$0xf0]  ;;  %v9809_v29 = vld [vmem:[#allocation4 + $0x12e8] sm:$0xf] }
 0x217   :  { %5603 = vmatpush.bf16.msrb.mxu3 %v9362_v16  ;;  %v9681_v16 = vld [vmem:[#allocation4 + $0x11e8] sm:$0xf]  ;;  %v11702_v0 = vld [vmem:[#allocation4 + $0x12f4] sm:$0xf0] }
 0x218   :  { %5565 = vmatpush.bf16.msrb.mxu0 %v8962_v41  ;;  %v9937_v35 = vld [vmem:[#allocation4 + $0x13e8] sm:$0xf]  ;;  %v11734_v39 = vld [vmem:[#allocation4 + $0x13f4] sm:$0xf0]  ;;  %v9314_v41 = vor.u32 %v11578_v7, %v9313_v51 }
 0x219   :  { %5578 = vmatpush.bf16.msrb.mxu1 %v9090_v45  ;;  %v9682_v45 = vor.u32 %v11670_v58, %v9681_v16  ;;  %v9537_v47 = vld [vmem:[#allocation4 + $0x10c8] sm:$0xf]  ;;  %v11634_v12 = vld [vmem:[#allocation4 + $0x10d4] sm:$0xf0] }
 0x21a   :  { %5591 = vmatpush.bf16.msrb.mxu2 %v9218_v46  ;;  %v9810_v46 = vor.u32 %v11702_v0, %v9809_v29  ;;  %v9665_v48 = vld [vmem:[#allocation4 + $0x11c8] sm:$0xf]  ;;  %v11666_v50 = vld [vmem:[#allocation4 + $0x11d4] sm:$0xf0] }
 0x21b   :  { %5604 = vmatpush.bf16.msrb.mxu3 %v9346_v49  ;;  %v9938_v49 = vor.u32 %v11734_v39, %v9937_v35  ;;  %v9793_v52 = vld [vmem:[#allocation4 + $0x12c8] sm:$0xf]  ;;  %v11698_v54 = vld [vmem:[#allocation4 + $0x12d4] sm:$0xf0]  ;;  %v9666_v57 = vor.u32 %v11666_v50, %v9665_v48 }
 0x21c   :  { %5566 = vmatpush.bf16.msrb.mxu0 %v8946_v17  ;;  %v9921_v55 = vld [vmem:[#allocation4 + $0x13c8] sm:$0xf]  ;;  %v11730_v56 = vld [vmem:[#allocation4 + $0x13d4] sm:$0xf0]  ;;  %v9538_v17 = vor.u32 %v11634_v12, %v9537_v47  ;;  %v9794_v43 = vor.u32 %v11698_v54, %v9793_v52 }
 0x21d   :  { %5579 = vmatpush.bf16.msrb.mxu1 %v9074_v59  ;;  %v9521_v59 = vld [vmem:[#allocation4 + $0x10a8] sm:$0xf]  ;;  %v9922_v63 = vor.u32 %v11730_v56, %v9921_v55  ;;  %v11662_v3 = vld [vmem:[#allocation4 + $0x11b4] sm:$0xf0] }
 0x21e   :  { %5592 = vmatpush.bf16.msrb.mxu2 %v9202_v60  ;;  %v11630_v60 = vld [vmem:[#allocation4 + $0x10b4] sm:$0xf0]  ;;  %v9649_v62 = vld [vmem:[#allocation4 + $0x11a8] sm:$0xf] }
 0x21f   :  { %5605 = vmatpush.bf16.msrb.mxu3 %v9330_v53  ;;  %v9777_v53 = vld [vmem:[#allocation4 + $0x12a8] sm:$0xf]  ;;  %v11694_v6 = vld [vmem:[#allocation4 + $0x12b4] sm:$0xf0]  ;;  %v9522_v10 = vor.u32 %v11630_v60, %v9521_v59  ;;  %v9650_v11 = vor.u32 %v11662_v3, %v9649_v62 }
 0x220   :  { %5567 = vmatpush.bf16.msrb.mxu0 %v8930_v28  ;;  %v9905_v51 = vld [vmem:[#allocation4 + $0x13a8] sm:$0xf]  ;;  %v11726_v7 = vld [vmem:[#allocation4 + $0x13b4] sm:$0xf0]  ;;  %v9778_v14 = vor.u32 %v11694_v6, %v9777_v53 }
 0x221   :  { %5580 = vmatpush.bf16.msrb.mxu1 %v9058_v30  ;;  %v9505_v16 = vld [vmem:[#allocation4 + $0x1088] sm:$0xf]  ;;  %v11626_v21 = vld [vmem:[#allocation4 + $0x1094] sm:$0xf0]  ;;  %v9906_v58 = vor.u32 %v11726_v7, %v9905_v51 }
 0x222   :  { %5593 = vmatpush.bf16.msrb.mxu2 %v9186_v33  ;;  %v9633_v28 = vld [vmem:[#allocation4 + $0x1188] sm:$0xf]  ;;  %v11658_v29 = vld [vmem:[#allocation4 + $0x1194] sm:$0xf0]  ;;  %v5361_v33 = vpop.f32.mrf.mxu0 }
 0x223   :  { %5606 = vmatpush.bf16.msrb.mxu3 %v9314_v41  ;;  %5568 = vmatmul.bf16.vlgmr.msrb.gmra.mxu0 %v12341_v13  ;;  %v9761_v0 = vld [vmem:[#allocation4 + $0x1288] sm:$0xf]  ;;  %v11690_v30 = vld [vmem:[#allocation4 + $0x1294] sm:$0xf0]  ;;  %v5362_v41 = vadd.f32 %v5361_v33, %v12466_v44 }
 0x224   :  { %5612 = vmatpush.bf16.msra.mxu0 %v9554_v4  ;;  %5581 = vmatmul.bf16.vlgmr.msrb.gmra.mxu1 %v12345_v20  ;;  %v9889_v35 = vld [vmem:[#allocation4 + $0x1388] sm:$0xf]  ;;  %v11722_v39 = vld [vmem:[#allocation4 + $0x1394] sm:$0xf0]  ;;  %v9506_v4 = vor.u32 %v11626_v21, %v9505_v16  ;;  %v9762_v47 = vor.u32 %v11690_v30, %v9761_v0 }
 0x225   :  { %5625 = vmatpush.bf16.msra.mxu1 %v9682_v45  ;;  %5594 = vmatmul.bf16.vlgmr.msrb.gmra.mxu2 %v12343_v19  ;;  %v5374_v45 = vpop.f32.mrf.mxu1  ;;  %v9489_v12 = vld [vmem:[#allocation4 + $0x1068] sm:$0xf]  ;;  %v11622_v48 = vld [vmem:[#allocation4 + $0x1074] sm:$0xf0]  ;;  %v9890_v50 = vor.u32 %v11722_v39, %v9889_v35 }
 0x226   :  { %5638 = vmatpush.bf16.msra.mxu2 %v9810_v46  ;;  %5607 = vmatmul.bf16.vlgmr.msrb.gmra.mxu3 %v12347_v26  ;;  %v9634_v46 = vor.u32 %v11658_v29, %v9633_v28  ;;  %v5375_v52 = vadd.f32 %v5374_v45, %v5362_v41  ;;  %v11654_v54 = vld [vmem:[#allocation4 + $0x1174] sm:$0xf0]  ;;  %v9745_v55 = vld [vmem:[#allocation4 + $0x1268] sm:$0xf] }
 0x227   :  { %5651 = vmatpush.bf16.msra.mxu3 %v9938_v49  ;;  %v9617_v49 = vld [vmem:[#allocation4 + $0x1168] sm:$0xf]  ;;  %v11686_v56 = vld [vmem:[#allocation4 + $0x1274] sm:$0xf0] }
 0x228   :  { %5613 = vmatpush.bf16.msra.mxu0 %v9538_v17  ;;  %v9873_v17 = vld [vmem:[#allocation4 + $0x1368] sm:$0xf]  ;;  %v9618_v44 = vor.u32 %v11654_v54, %v9617_v49  ;;  %v9746_v59 = vor.u32 %v11686_v56, %v9745_v55  ;;  %v11618_v62 = vld [vmem:[#allocation4 + $0x1054] sm:$0xf0]  ;;  %v5387_v53 = vpop.f32.mrf.mxu2 }
 0x229   :  { %5626 = vmatpush.bf16.msra.mxu1 %v9666_v57  ;;  %v11718_v57 = vld [vmem:[#allocation4 + $0x1374] sm:$0xf0]  ;;  %v9473_v60 = vld [vmem:[#allocation4 + $0x1048] sm:$0xf] }
 0x22a   :  { %5639 = vmatpush.bf16.msra.mxu2 %v9794_v43  ;;  %v9490_v43 = vor.u32 %v11622_v48, %v9489_v12  ;;  %v9874_v3 = vor.u32 %v11718_v57, %v9873_v17  ;;  %v11650_v6 = vld [vmem:[#allocation4 + $0x1154] sm:$0xf0]  ;;  %v9729_v51 = vld [vmem:[#allocation4 + $0x1248] sm:$0xf]  ;;  %v5363_v21 = vpop.f32.mrf.mxu0  ;;  %v9474_v28 = vor.u32 %v11618_v62, %v9473_v60 }
 0x22b   :  { %5652 = vmatpush.bf16.msra.mxu3 %v9922_v63  ;;  %v9601_v63 = vld [vmem:[#allocation4 + $0x1148] sm:$0xf]  ;;  %v11682_v7 = vld [vmem:[#allocation4 + $0x1254] sm:$0xf0] }
 0x22c   :  { %5614 = vmatpush.bf16.msra.mxu0 %v9522_v10  ;;  %v5388_v10 = vadd.f32 %v5387_v53, %v5375_v52  ;;  %v11714_v16 = vld [vmem:[#allocation4 + $0x1354] sm:$0xf0]  ;;  %v9602_v0 = vor.u32 %v11650_v6, %v9601_v63  ;;  %v9730_v30 = vor.u32 %v11682_v7, %v9729_v51  ;;  %v9457_v33 = vld [vmem:[#allocation4 + $0x1028] sm:$0xf] }
 0x22d   :  { %5627 = vmatpush.bf16.msra.mxu1 %v9650_v11  ;;  %v5400_v11 = vpop.f32.mrf.mxu3  ;;  %v11614_v35 = vld [vmem:[#allocation4 + $0x1034] sm:$0xf0]  ;;  %v9585_v39 = vld [vmem:[#allocation4 + $0x1128] sm:$0xf] }
 0x22e   :  { %5640 = vmatpush.bf16.msra.mxu2 %v9778_v14  ;;  %v9857_v14 = vld [vmem:[#allocation4 + $0x1348] sm:$0xf]  ;;  %v5401_v29 = vadd.f32 %v5400_v11, %v5388_v10  ;;  %v11710_v49 = vld [vmem:[#allocation4 + $0x1334] sm:$0xf0] }
 0x22f   :  { %5653 = vmatpush.bf16.msra.mxu3 %v9906_v58  ;;  %v5376_v58 = vpop.f32.mrf.mxu1  ;;  %v9858_v41 = vor.u32 %v11714_v16, %v9857_v14  ;;  %v9713_v45 = vld [vmem:[#allocation4 + $0x1228] sm:$0xf]  ;;  %v11610_v54 = vld [vmem:[#allocation4 + $0x1014] sm:$0xf0] }
 0x230   :  { %5615 = vmatpush.bf16.msra.mxu0 %v9506_v4  ;;  %v11646_v4 = vld [vmem:[#allocation4 + $0x1134] sm:$0xf0]  ;;  %v6029_v12 = vmax.f32 %v5401_v29, 0.0  ;;  %v9841_v48 = vld [vmem:[#allocation4 + $0x1328] sm:$0xf]  ;;  %v5389_v63 = vpop.f32.mrf.mxu2 }
 0x231   :  { %5628 = vmatpush.bf16.msra.mxu1 %v9634_v46  ;;  %v11678_v46 = vld [vmem:[#allocation4 + $0x1234] sm:$0xf0]  ;;  %v9441_v52 = vld [vmem:[#allocation4 + $0x1008] sm:$0xf]  ;;  %v9586_v56 = vor.u32 %v11646_v4, %v9585_v39 }
 0x232   :  { %5641 = vmatpush.bf16.msra.mxu2 %v9762_v47  ;;  %v6028_v47 = vmax.f32 %v12432_v42, 0.0  ;;  %v9714_v17 = vor.u32 %v11678_v46, %v9713_v45  ;;  %v9569_v57 = vld [vmem:[#allocation4 + $0x1108] sm:$0xf]  ;;  %v11674_v60 = vld [vmem:[#allocation4 + $0x1214] sm:$0xf0]  ;;  %v9442_v7 = vor.u32 %v11610_v54, %v9441_v52 }
 0x233   :  { %5654 = vmatpush.bf16.msra.mxu3 %v9890_v50  ;;  %v9458_v50 = vor.u32 %v11614_v35, %v9457_v33  ;;  %v9825_v42 = vld [vmem:[#allocation4 + $0x1308] sm:$0xf]  ;;  %v11706_v62 = vld [vmem:[#allocation4 + $0x1314] sm:$0xf0] }
 0x234   :  { %5616 = vmatpush.bf16.msra.mxu0 %v9490_v43  ;;  %v12474_v55 = vpack.c.bf16 %v6029_v12, %v6028_v47  ;;  %v11642_v43 = vld [vmem:[#allocation4 + $0x1114] sm:$0xf0]  ;;  %v10193_v6 = vld [vmem:[#allocation4 + $0x15e8] sm:$0xf]  ;;  %v9826_v29 = vor.u32 %v11706_v62, %v9825_v42 }
 0x235   :  { %5629 = vmatpush.bf16.msra.mxu1 %v9618_v44  ;;  %v9697_v44 = vld [vmem:[#allocation4 + $0x1208] sm:$0xf]  ;;  %v11766_v53 = vld [vmem:[#allocation4 + $0x14f4] sm:$0xf0]  ;;  %v5402_v51 = vpop.f32.mrf.mxu3  ;;  %v9570_v16 = vor.u32 %v11642_v43, %v9569_v57 }
 0x236   :  { %5642 = vmatpush.bf16.msra.mxu2 %v9746_v59  ;;  %v9842_v59 = vor.u32 %v11710_v49, %v9841_v48  ;;  %v11798_v10 = vld [vmem:[#allocation4 + $0x15f4] sm:$0xf0]  ;;  %v10321_v11 = vld [vmem:[#allocation4 + $0x16e8] sm:$0xf]  ;;  %v9698_v21 = vor.u32 %v11674_v60, %v9697_v44 }
 0x237   :  { %5655 = vmatpush.bf16.msra.mxu3 %v9874_v3  ;;  %v10065_v3 = vld [vmem:[#allocation4 + $0x14e8] sm:$0xf]  ;;  %v11830_v14 = vld [vmem:[#allocation4 + $0x16f4] sm:$0xf0] }
 0x238   :  { %5617 = vmatpush.bf16.msra.mxu0 %v9474_v28  ;;  %v10449_v28 = vld [vmem:[#allocation4 + $0x17e8] sm:$0xf]  ;;  %v11862_v58 = vld [vmem:[#allocation4 + $0x17f4] sm:$0xf0]  ;;  %v10322_v33 = vor.u32 %v11830_v14, %v10321_v11 }
 0x239   :  { %5630 = vmatpush.bf16.msra.mxu1 %v9602_v0  ;;  %v10066_v0 = vor.u32 %v11766_v53, %v10065_v3  ;;  %v10049_v35 = vld [vmem:[#allocation4 + $0x14c8] sm:$0xf]  ;;  %v11762_v39 = vld [vmem:[#allocation4 + $0x14d4] sm:$0xf0]  ;;  %v10450_v4 = vor.u32 %v11862_v58, %v10449_v28 }
 0x23a   :  { %5643 = vmatpush.bf16.msra.mxu2 %v9730_v30  ;;  %v10194_v30 = vor.u32 %v11798_v10, %v10193_v6  ;;  %v11794_v45 = vld [vmem:[#allocation4 + $0x15d4] sm:$0xf0]  ;;  %v10305_v46 = vld [vmem:[#allocation4 + $0x16c8] sm:$0xf]  ;;  %v10050_v49 = vor.u32 %v11762_v39, %v10049_v35 }
 0x23b   :  { %5656 = vmatpush.bf16.msra.mxu3 %v9858_v41  ;;  %v10177_v41 = vld [vmem:[#allocation4 + $0x15c8] sm:$0xf]  ;;  %v11826_v47 = vld [vmem:[#allocation4 + $0x16d4] sm:$0xf0] }
 0x23c   :  { %5618 = vmatpush.bf16.msra.mxu0 %v9458_v50  ;;  %v10433_v12 = vld [vmem:[#allocation4 + $0x17c8] sm:$0xf]  ;;  %v11858_v48 = vld [vmem:[#allocation4 + $0x17d4] sm:$0xf0]  ;;  %v10178_v50 = vor.u32 %v11794_v45, %v10177_v41  ;;  %v10306_v52 = vor.u32 %v11826_v47, %v10305_v46 }
 0x23d   :  { %5631 = vmatpush.bf16.msra.mxu1 %v9586_v56  ;;  %v10033_v54 = vld [vmem:[#allocation4 + $0x14a8] sm:$0xf]  ;;  %v11758_v56 = vld [vmem:[#allocation4 + $0x14b4] sm:$0xf0]  ;;  %v10434_v57 = vor.u32 %v11858_v48, %v10433_v12 }
 0x23e   :  { %5644 = vmatpush.bf16.msra.mxu2 %v9714_v17  ;;  %v10161_v17 = vld [vmem:[#allocation4 + $0x15a8] sm:$0xf]  ;;  %v11790_v43 = vld [vmem:[#allocation4 + $0x15b4] sm:$0xf0]  ;;  %v10034_v62 = vor.u32 %v11758_v56, %v10033_v54 }
 0x23f   :  { %5657 = vmatpush.bf16.msra.mxu3 %v9842_v59  ;;  %v10289_v44 = vld [vmem:[#allocation4 + $0x16a8] sm:$0xf]  ;;  %v11822_v59 = vld [vmem:[#allocation4 + $0x16b4] sm:$0xf0]  ;;  %v10162_v3 = vor.u32 %v11790_v43, %v10161_v17 }
 0x240   :  { %5619 = vmatpush.bf16.msra.mxu0 %v9442_v7  ;;  %v10417_v60 = vld [vmem:[#allocation4 + $0x17a8] sm:$0xf]  ;;  %v11854_v42 = vld [vmem:[#allocation4 + $0x17b4] sm:$0xf0]  ;;  %v10290_v53 = vor.u32 %v11822_v59, %v10289_v44  ;;  %v12035_v7 = vld [vmem:[#allocation6] sm:$0xf] }
 0x241   :  { %5632 = vmatpush.bf16.msra.mxu1 %v9570_v16  ;;  %v10017_v63 = vld [vmem:[#allocation4 + $0x1488] sm:$0xf]  ;;  %v11754_v6 = vld [vmem:[#allocation4 + $0x1494] sm:$0xf0]  ;;  %v934_v10 = vperm.slane %v12035_v7, 2  ;;  %v10418_v11 = vor.u32 %v11854_v42, %v10417_v60  ;;  %v5426_v45 = vpop.f32.mrf.mxu1 }
 0x242   :  { %5645 = vmatpush.bf16.msra.mxu2 %v9698_v21  ;;  %v10145_v51 = vld [vmem:[#allocation4 + $0x1588] sm:$0xf]  ;;  %v11786_v14 = vld [vmem:[#allocation4 + $0x1594] sm:$0xf0] }
 0x243   :  { %5658 = vmatpush.bf16.msra.mxu3 %v9826_v29  ;;  %5620 = vmatmul.bf16.vlgmr.msra.gmra.mxu0 %v12365_v24  ;;  %v10273_v16 = vld [vmem:[#allocation4 + $0x1688] sm:$0xf]  ;;  %v11818_v21 = vld [vmem:[#allocation4 + $0x1694] sm:$0xf0]  ;;  %v10018_v29 = vor.u32 %v11754_v6, %v10017_v63 }
 0x244   :  { %5664 = vmatpush.bf16.msrb.mxu0 %v10066_v0  ;;  %5633 = vmatmul.bf16.vlgmr.msra.gmra.mxu1 %v12369_v32  ;;  %v10401_v28 = vld [vmem:[#allocation4 + $0x1788] sm:$0xf]  ;;  %v11850_v58 = vld [vmem:[#allocation4 + $0x1794] sm:$0xf0]  ;;  %v5413_v0 = vpop.f32.mrf.mxu0 }
 0x245   :  { %5677 = vmatpush.bf16.msrb.mxu1 %v10194_v30  ;;  %5646 = vmatmul.bf16.vlgmr.msra.gmra.mxu2 %v12367_v31  ;;  %v10146_v30 = vor.u32 %v11786_v14, %v10145_v51  ;;  %v10001_v35 = vld [vmem:[#allocation4 + $0x1468] sm:$0xf]  ;;  %v11750_v39 = vld [vmem:[#allocation4 + $0x1474] sm:$0xf0]  ;;  %v10402_v46 = vor.u32 %v11850_v58, %v10401_v28 }
 0x246   :  { %5690 = vmatpush.bf16.msrb.mxu2 %v10322_v33  ;;  %5659 = vmatmul.bf16.vlgmr.msra.gmra.mxu3 %v12371_v36  ;;  %v10274_v33 = vor.u32 %v11818_v21, %v10273_v16  ;;  %v10129_v41 = vld [vmem:[#allocation4 + $0x1568] sm:$0xf]  ;;  %v11782_v47 = vld [vmem:[#allocation4 + $0x1574] sm:$0xf0]  ;;  %v10002_v54 = vor.u32 %v11750_v39, %v10001_v35 }
 0x247   :  { %5703 = vmatpush.bf16.msrb.mxu3 %v10450_v4  ;;  %v5414_v4 = vadd.f32 %v5413_v0, %v934_v10  ;;  %v10257_v12 = vld [vmem:[#allocation4 + $0x1668] sm:$0xf]  ;;  %v11814_v48 = vld [vmem:[#allocation4 + $0x1674] sm:$0xf0]  ;;  %v10130_v56 = vor.u32 %v11782_v47, %v10129_v41 }
 0x248   :  { %5665 = vmatpush.bf16.msrb.mxu0 %v10050_v49  ;;  %v10385_v49 = vld [vmem:[#allocation4 + $0x1768] sm:$0xf]  ;;  %v10258_v17 = vor.u32 %v11814_v48, %v10257_v12  ;;  %v11746_v43 = vld [vmem:[#allocation4 + $0x1454] sm:$0xf0]  ;;  %v5439_v59 = vpop.f32.mrf.mxu2 }
 0x249   :  { %5678 = vmatpush.bf16.msrb.mxu1 %v10178_v50  ;;  %v11846_v50 = vld [vmem:[#allocation4 + $0x1774] sm:$0xf0]  ;;  %v10113_v44 = vld [vmem:[#allocation4 + $0x1548] sm:$0xf] }
 0x24a   :  { %5691 = vmatpush.bf16.msrb.mxu2 %v10306_v52  ;;  %v5427_v52 = vadd.f32 %v5426_v45, %v5414_v4  ;;  %v10386_v60 = vor.u32 %v11846_v50, %v10385_v49  ;;  %v11778_v42 = vld [vmem:[#allocation4 + $0x1554] sm:$0xf0]  ;;  %v10369_v6 = vld [vmem:[#allocation4 + $0x1748] sm:$0xf] }
 0x24b   :  { %5704 = vmatpush.bf16.msrb.mxu3 %v10434_v57  ;;  %v9985_v57 = vld [vmem:[#allocation4 + $0x1448] sm:$0xf]  ;;  %v11810_v63 = vld [vmem:[#allocation4 + $0x1654] sm:$0xf0]  ;;  %v10114_v14 = vor.u32 %v11778_v42, %v10113_v44  ;;  %v11124_v44 = vld [vmem:[#allocation4 + $0xec] sm:$0xf] }
 0x24c   :  { %5666 = vmatpush.bf16.msrb.mxu0 %v10034_v62  ;;  %v10241_v62 = vld [vmem:[#allocation4 + $0x1648] sm:$0xf]  ;;  %v11842_v51 = vld [vmem:[#allocation4 + $0x1754] sm:$0xf0]  ;;  %v9986_v7 = vor.u32 %v11746_v43, %v9985_v57 }
 0x24d   :  { %5679 = vmatpush.bf16.msrb.mxu1 %v10162_v3  ;;  %v5440_v3 = vadd.f32 %v5439_v59, %v5427_v52  ;;  %v10242_v16 = vor.u32 %v11810_v63, %v10241_v62  ;;  %v9969_v21 = vld [vmem:[#allocation4 + $0x1428] sm:$0xf]  ;;  %v11742_v28 = vld [vmem:[#allocation4 + $0x1434] sm:$0xf0]  ;;  %v10370_v0 = vor.u32 %v11842_v51, %v10369_v6  ;;  %v7507_v59 = vld [vmem:[#allocation4 + $0xf8] sm:$0xf0] }
 0x24e   :  { %5692 = vmatpush.bf16.msrb.mxu2 %v10290_v53  ;;  %v5452_v53 = vpop.f32.mrf.mxu3  ;;  %v10097_v58 = vld [vmem:[#allocation4 + $0x1528] sm:$0xf]  ;;  %v11806_v35 = vld [vmem:[#allocation4 + $0x1634] sm:$0xf0]  ;;  %v9970_v4 = vor.u32 %v11742_v28, %v9969_v21  ;;  %v7635_v62 = vld [vmem:[#allocation4 + $0x1f8] sm:$0xf0] }
 0x24f   :  { %5705 = vmatpush.bf16.msrb.mxu3 %v10418_v11  ;;  %v12480_v10 = vadd.f32 %v5452_v53, %v5440_v3  ;;  %v5415_v11 = vpop.f32.mrf.mxu0  ;;  %v10353_v39 = vld [vmem:[#allocation4 + $0x1728] sm:$0xf]  ;;  %v11838_v41 = vld [vmem:[#allocation4 + $0x1734] sm:$0xf0]  ;;  %v11188_v63 = vld [vmem:[#allocation4 + $0x2ec] sm:$0xf] }
 0x250   :  { %5667 = vmatpush.bf16.msrb.mxu0 %v10018_v29  ;;  %v5428_v29 = vpop.f32.mrf.mxu1  ;;  %v9953_v45 = vld [vmem:[#allocation4 + $0x1408] sm:$0xf]  ;;  %v11770_v49 = vld [vmem:[#allocation4 + $0x1514] sm:$0xf0]  ;;  %v5441_v52 = vpop.f32.mrf.mxu2  ;;  %v7763_v3 = vld [vmem:[#allocation4 + $0x2f8] sm:$0xf0] }
 0x251   :  { %5680 = vmatpush.bf16.msrb.mxu1 %v10146_v30  ;;  %v11774_v30 = vld [vmem:[#allocation4 + $0x1534] sm:$0xf0]  ;;  %v10081_v48 = vld [vmem:[#allocation4 + $0x1508] sm:$0xf]  ;;  %v11220_v51 = vld [vmem:[#allocation4 + $0x3ec] sm:$0xf]  ;;  %v7766_v21 = vor.u32 %v11188_v63, %v7763_v3 }
 0x252   :  { %5693 = vmatpush.bf16.msrb.mxu2 %v10274_v33  ;;  %v10225_v33 = vld [vmem:[#allocation4 + $0x1628] sm:$0xf]  ;;  %v10098_v47 = vor.u32 %v11774_v30, %v10097_v58  ;;  %v11834_v57 = vld [vmem:[#allocation4 + $0x1714] sm:$0xf0]  ;;  %v10082_v53 = vor.u32 %v11770_v49, %v10081_v48  ;;  %v11120_v28 = vld [vmem:[#allocation4 + $0xcc] sm:$0xf] }
 0x253   :  { %5706 = vmatpush.bf16.msrb.mxu3 %v10402_v46  ;;  %v11738_v46 = vld [vmem:[#allocation4 + $0x1414] sm:$0xf0]  ;;  %v10226_v12 = vor.u32 %v11806_v35, %v10225_v33  ;;  %v10209_v50 = vld [vmem:[#allocation4 + $0x1608] sm:$0xf]  ;;  %v7491_v58 = vld [vmem:[#allocation4 + $0xd8] sm:$0xf0] }
 0x254   :  { %5668 = vmatpush.bf16.msrb.mxu0 %v10002_v54  ;;  %v10354_v54 = vor.u32 %v11838_v41, %v10353_v39  ;;  %v9954_v42 = vor.u32 %v11738_v46, %v9953_v45  ;;  %v11152_v29 = vld [vmem:[#allocation4 + $0x1cc] sm:$0xf]  ;;  %v7619_v30 = vld [vmem:[#allocation4 + $0x1d8] sm:$0xf0] }
 0x255   :  { %5681 = vmatpush.bf16.msrb.mxu1 %v10130_v56  ;;  %v11802_v56 = vld [vmem:[#allocation4 + $0x1614] sm:$0xf0]  ;;  %v11184_v33 = vld [vmem:[#allocation4 + $0x2cc] sm:$0xf]  ;;  %v7747_v35 = vld [vmem:[#allocation4 + $0x2d8] sm:$0xf0]  ;;  %v7622_v45 = vor.u32 %v11152_v29, %v7619_v30 }
 0x256   :  { %5694 = vmatpush.bf16.msrb.mxu2 %v10258_v17  ;;  %v10337_v17 = vld [vmem:[#allocation4 + $0x1708] sm:$0xf]  ;;  %v5454_v43 = vpop.f32.mrf.mxu3  ;;  %v10210_v6 = vor.u32 %v11802_v56, %v10209_v50  ;;  %v11216_v39 = vld [vmem:[#allocation4 + $0x3cc] sm:$0xf]  ;;  %v7875_v41 = vld [vmem:[#allocation4 + $0x3d8] sm:$0xf0]  ;;  %v7750_v46 = vor.u32 %v11184_v33, %v7747_v35 }
 0x257   :  { %5707 = vmatpush.bf16.msrb.mxu3 %v10386_v60  ;;  %v11156_v60 = vld [vmem:[#allocation4 + $0x1ec] sm:$0xf]  ;;  %v10338_v11 = vor.u32 %v11834_v57, %v10337_v17  ;;  %v7878_v49 = vor.u32 %v11216_v39, %v7875_v41  ;;  %v7603_v50 = vld [vmem:[#allocation4 + $0x1b8] sm:$0xf0] }
 0x258   :  { %5669 = vmatpush.bf16.msrb.mxu0 %v9986_v7  ;;  %v7891_v7 = vld [vmem:[#allocation4 + $0x3f8] sm:$0xf0]  ;;  %v11148_v48 = vld [vmem:[#allocation4 + $0x1ac] sm:$0xf] }
 0x259   :  { %5682 = vmatpush.bf16.msrb.mxu1 %v10114_v14  ;;  %v7510_v14 = vor.u32 %v11124_v44, %v7507_v59  ;;  %v11180_v52 = vld [vmem:[#allocation4 + $0x2ac] sm:$0xf]  ;;  %v7859_v17 = vld [vmem:[#allocation4 + $0x3b8] sm:$0xf0]  ;;  %v7606_v43 = vor.u32 %v11148_v48, %v7603_v50 }
 0x25a   :  { %5695 = vmatpush.bf16.msrb.mxu2 %v10242_v16  ;;  %v7638_v16 = vor.u32 %v11156_v60, %v7635_v62  ;;  %v11212_v56 = vld [vmem:[#allocation4 + $0x3ac] sm:$0xf]  ;;  %v7459_v60 = vld [vmem:[#allocation4 + $0x98] sm:$0xf0] }
 0x25b   :  { %5708 = vmatpush.bf16.msrb.mxu3 %v10370_v0  ;;  %v7894_v0 = vor.u32 %v11220_v51, %v7891_v7  ;;  %v11112_v59 = vld [vmem:[#allocation4 + $0x8c] sm:$0xf]  ;;  %v7862_v62 = vor.u32 %v11212_v56, %v7859_v17  ;;  %v7587_v63 = vld [vmem:[#allocation4 + $0x198] sm:$0xf0] }
 0x25c   :  { %5670 = vmatpush.bf16.msrb.mxu0 %v9970_v4  ;;  %v7494_v4 = vor.u32 %v11120_v28, %v7491_v58  ;;  %v11176_v3 = vld [vmem:[#allocation4 + $0x28c] sm:$0xf]  ;;  %v7843_v51 = vld [vmem:[#allocation4 + $0x398] sm:$0xf0]  ;;  %v7462_v7 = vor.u32 %v11112_v59, %v7459_v60 }
 0x25d   :  { %5683 = vmatpush.bf16.msrb.mxu1 %v10098_v47  ;;  %v11116_v47 = vld [vmem:[#allocation4 + $0xac] sm:$0xf]  ;;  %v7443_v28 = vld [vmem:[#allocation4 + $0x78] sm:$0xf0] }
 0x25e   :  { %5696 = vmatpush.bf16.msrb.mxu2 %v10226_v12  ;;  %v7475_v12 = vld [vmem:[#allocation4 + $0xb8] sm:$0xf0]  ;;  %v11140_v58 = vld [vmem:[#allocation4 + $0x16c] sm:$0xf] }
 0x25f   :  { %5709 = vmatpush.bf16.msrb.mxu3 %v10354_v54  ;;  %v7731_v54 = vld [vmem:[#allocation4 + $0x2b8] sm:$0xf0]  ;;  %v7478_v57 = vor.u32 %v11116_v47, %v7475_v12  ;;  %v11172_v35 = vld [vmem:[#allocation4 + $0x26c] sm:$0xf] }
 0x260   :  { %5671 = vmatpush.bf16.msrb.mxu0 %v9954_v42  ;;  %v7734_v44 = vor.u32 %v11180_v52, %v7731_v54  ;;  %v11144_v42 = vld [vmem:[#allocation4 + $0x18c] sm:$0xf]  ;;  %v7571_v33 = vld [vmem:[#allocation4 + $0x178] sm:$0xf0] }
 0x261   :  { %5684 = vmatpush.bf16.msrb.mxu1 %v10082_v53  ;;  %v7715_v53 = vld [vmem:[#allocation4 + $0x298] sm:$0xf0]  ;;  %v11204_v41 = vld [vmem:[#allocation4 + $0x36c] sm:$0xf]  ;;  %v7574_v47 = vor.u32 %v11140_v58, %v7571_v33 }
 0x262   :  { %5697 = vmatpush.bf16.msrb.mxu2 %v10210_v6  ;;  %v11208_v6 = vld [vmem:[#allocation4 + $0x38c] sm:$0xf]  ;;  %v7699_v39 = vld [vmem:[#allocation4 + $0x278] sm:$0xf0] }
 0x263   :  { %5710 = vmatpush.bf16.msrb.mxu3 %v10338_v11  ;;  %5672 = vmatmul.bf16.vlgmr.msrb.gmra.mxu0 %v12391_v61  ;;  %v5465_v11 = vpop.f32.mrf.mxu0  ;;  %v7846_v30 = vor.u32 %v11208_v6, %v7843_v51  ;;  %v7702_v12 = vor.u32 %v11172_v35, %v7699_v39  ;;  %v11104_v48 = vld [vmem:[#allocation4 + $0x4c] sm:$0xf]  ;;  %v7555_v54 = vld [vmem:[#allocation4 + $0x158] sm:$0xf0] }
 0x264   :  { %5716 = vmatpush.bf16.msra.mxu0 %v7510_v14  ;;  %5685 = vmatmul.bf16.vlgmr.msrb.gmra.mxu1 %v12395_v2  ;;  %v7590_v14 = vor.u32 %v11144_v42, %v7587_v63  ;;  %v5466_v29 = vadd.f32 %v5465_v11, %v12480_v10  ;;  %v11136_v50 = vld [vmem:[#allocation4 + $0x14c] sm:$0xf]  ;;  %v7683_v17 = vld [vmem:[#allocation4 + $0x258] sm:$0xf0] }
 0x265   :  { %5729 = vmatpush.bf16.msra.mxu1 %v7638_v16  ;;  %5698 = vmatmul.bf16.vlgmr.msrb.gmra.mxu2 %v12393_v1  ;;  %v7718_v16 = vor.u32 %v11176_v3, %v7715_v53  ;;  %v11168_v56 = vld [vmem:[#allocation4 + $0x24c] sm:$0xf]  ;;  %v7811_v59 = vld [vmem:[#allocation4 + $0x358] sm:$0xf0]  ;;  %v7558_v63 = vor.u32 %v11136_v50, %v7555_v54 }
 0x266   :  { %5742 = vmatpush.bf16.msra.mxu2 %v7766_v21  ;;  %5711 = vmatmul.bf16.vlgmr.msrb.gmra.mxu3 %v12397_v5  ;;  %v11108_v21 = vld [vmem:[#allocation4 + $0x6c] sm:$0xf]  ;;  %v7686_v3 = vor.u32 %v11168_v56, %v7683_v17  ;;  %v7411_v6 = vld [vmem:[#allocation4 + $0x38] sm:$0xf0] }
 0x267   :  { %5755 = vmatpush.bf16.msra.mxu3 %v7894_v0  ;;  %v5478_v0 = vpop.f32.mrf.mxu1  ;;  %v11100_v53 = vld [vmem:[#allocation4 + $0x2c] sm:$0xf]  ;;  %v7795_v58 = vld [vmem:[#allocation4 + $0x338] sm:$0xf0] }
 0x268   :  { %5717 = vmatpush.bf16.msra.mxu0 %v7494_v4  ;;  %v7827_v4 = vld [vmem:[#allocation4 + $0x378] sm:$0xf0]  ;;  %v5491_v52 = vpop.f32.mrf.mxu2  ;;  %v11132_v51 = vld [vmem:[#allocation4 + $0x12c] sm:$0xf] }
 0x269   :  { %5730 = vmatpush.bf16.msra.mxu1 %v7622_v45  ;;  %v5479_v45 = vadd.f32 %v5478_v0, %v5466_v29  ;;  %v7830_v10 = vor.u32 %v11204_v41, %v7827_v4  ;;  %v7414_v29 = vor.u32 %v11100_v53, %v7411_v6  ;;  %v11096_v0 = vld [vmem:[#allocation4 + $0xc] sm:$0xf]  ;;  %v7523_v41 = vld [vmem:[#allocation4 + $0x118] sm:$0xf0] }
 0x26a   :  { %5743 = vmatpush.bf16.msra.mxu2 %v7750_v46  ;;  %v7446_v46 = vor.u32 %v11108_v21, %v7443_v28  ;;  %v7667_v21 = vld [vmem:[#allocation4 + $0x238] sm:$0xf0]  ;;  %v11196_v28 = vld [vmem:[#allocation4 + $0x32c] sm:$0xf] }
 0x26b   :  { %5756 = vmatpush.bf16.msra.mxu3 %v7878_v49  ;;  %v7427_v49 = vld [vmem:[#allocation4 + $0x58] sm:$0xf0]  ;;  %v11128_v39 = vld [vmem:[#allocation4 + $0x10c] sm:$0xf] }
 0x26c   :  { %5718 = vmatpush.bf16.msra.mxu0 %v7478_v57  ;;  %v5492_v57 = vadd.f32 %v5491_v52, %v5479_v45  ;;  %v7430_v60 = vor.u32 %v11104_v48, %v7427_v49  ;;  %v11160_v4 = vld [vmem:[#allocation4 + $0x20c] sm:$0xf]  ;;  %v7779_v48 = vld [vmem:[#allocation4 + $0x318] sm:$0xf0] }
 0x26d   :  { %5731 = vmatpush.bf16.msra.mxu1 %v7606_v43  ;;  %v5504_v43 = vpop.f32.mrf.mxu3  ;;  %v11252_v50 = vld [vmem:[#allocation4 + $0x4ec] sm:$0xf]  ;;  %v8019_v52 = vld [vmem:[#allocation4 + $0x4f8] sm:$0xf0] }
 0x26e   :  { %5744 = vmatpush.bf16.msra.mxu2 %v7734_v44  ;;  %v11200_v44 = vld [vmem:[#allocation4 + $0x34c] sm:$0xf]  ;;  %v12487_v42 = vadd.f32 %v5504_v43, %v5492_v57  ;;  %v8147_v56 = vld [vmem:[#allocation4 + $0x5f8] sm:$0xf0]  ;;  %v7526_v43 = vor.u32 %v11128_v39, %v7523_v41 }
 0x26f   :  { %5757 = vmatpush.bf16.msra.mxu3 %v7862_v62  ;;  %v5467_v62 = vpop.f32.mrf.mxu0  ;;  %v7814_v11 = vor.u32 %v11200_v44, %v7811_v59  ;;  %v11316_v17 = vld [vmem:[#allocation4 + $0x6ec] sm:$0xf]  ;;  %v8275_v57 = vld [vmem:[#allocation4 + $0x6f8] sm:$0xf0] }
 0x270   :  { %5719 = vmatpush.bf16.msra.mxu0 %v7462_v7  ;;  %v5480_v7 = vpop.f32.mrf.mxu1  ;;  %v5493_v45 = vpop.f32.mrf.mxu2  ;;  %v11348_v59 = vld [vmem:[#allocation4 + $0x7ec] sm:$0xf]  ;;  %v8278_v53 = vor.u32 %v11316_v17, %v8275_v57  ;;  %v8227_v57 = vld [vmem:[#allocation4 + $0x698] sm:$0xf0] }
 0x271   :  { %5732 = vmatpush.bf16.msra.mxu1 %v7590_v14  ;;  %v7539_v14 = vld [vmem:[#allocation4 + $0x138] sm:$0xf0]  ;;  %v11248_v6 = vld [vmem:[#allocation4 + $0x4cc] sm:$0xf] }
 0x272   :  { %5745 = vmatpush.bf16.msra.mxu2 %v7718_v16  ;;  %v11164_v16 = vld [vmem:[#allocation4 + $0x22c] sm:$0xf]  ;;  %v7542_v33 = vor.u32 %v11132_v51, %v7539_v14  ;;  %v8003_v51 = vld [vmem:[#allocation4 + $0x4d8] sm:$0xf0] }
 0x273   :  { %5758 = vmatpush.bf16.msra.mxu3 %v7846_v30  ;;  %v7395_v30 = vld [vmem:[#allocation4 + $0x18] sm:$0xf0]  ;;  %v7670_v35 = vor.u32 %v11164_v16, %v7667_v21  ;;  %v11280_v7 = vld [vmem:[#allocation4 + $0x5cc] sm:$0xf] }
 0x274   :  { %5720 = vmatpush.bf16.msra.mxu0 %v7446_v46  ;;  %v7798_v46 = vor.u32 %v11196_v28, %v7795_v58  ;;  %v7398_v54 = vor.u32 %v11096_v0, %v7395_v30  ;;  %v8131_v14 = vld [vmem:[#allocation4 + $0x5d8] sm:$0xf0]  ;;  %v11312_v16 = vld [vmem:[#allocation4 + $0x6cc] sm:$0xf] }
 0x275   :  { %5733 = vmatpush.bf16.msra.mxu1 %v7574_v47  ;;  %v7651_v47 = vld [vmem:[#allocation4 + $0x218] sm:$0xf0]  ;;  %v5506_v49 = vpop.f32.mrf.mxu3  ;;  %v11344_v28 = vld [vmem:[#allocation4 + $0x7cc] sm:$0xf]  ;;  %v8134_v0 = vor.u32 %v11280_v7, %v8131_v14 }
 0x276   :  { %5746 = vmatpush.bf16.msra.mxu2 %v7702_v12  ;;  %v11192_v12 = vld [vmem:[#allocation4 + $0x30c] sm:$0xf]  ;;  %v7654_v44 = vor.u32 %v11160_v4, %v7651_v47  ;;  %v8259_v21 = vld [vmem:[#allocation4 + $0x6d8] sm:$0xf0] }
 0x277   :  { %5759 = vmatpush.bf16.msra.mxu3 %v7830_v10  ;;  %v11284_v10 = vld [vmem:[#allocation4 + $0x5ec] sm:$0xf]  ;;  %v7782_v62 = vor.u32 %v11192_v12, %v7779_v48  ;;  %v8387_v58 = vld [vmem:[#allocation4 + $0x7d8] sm:$0xf0]  ;;  %v8262_v30 = vor.u32 %v11312_v16, %v8259_v21 }
 0x278   :  { %5721 = vmatpush.bf16.msra.mxu0 %v7430_v60  ;;  %v8403_v60 = vld [vmem:[#allocation4 + $0x7f8] sm:$0xf0]  ;;  %v11276_v39 = vld [vmem:[#allocation4 + $0x5ac] sm:$0xf]  ;;  %v8390_v41 = vor.u32 %v11344_v28, %v8387_v58 }
 0x279   :  { %5734 = vmatpush.bf16.msra.mxu1 %v7558_v63  ;;  %v8022_v63 = vor.u32 %v11252_v50, %v8019_v52  ;;  %v8115_v4 = vld [vmem:[#allocation4 + $0x5b8] sm:$0xf0]  ;;  %v11308_v45 = vld [vmem:[#allocation4 + $0x6ac] sm:$0xf] }
 0x27a   :  { %5747 = vmatpush.bf16.msra.mxu2 %v7686_v3  ;;  %v8150_v3 = vor.u32 %v11284_v10, %v8147_v56  ;;  %v11340_v47 = vld [vmem:[#allocation4 + $0x7ac] sm:$0xf]  ;;  %v8371_v12 = vld [vmem:[#allocation4 + $0x7b8] sm:$0xf0]  ;;  %v8118_v49 = vor.u32 %v11276_v39, %v8115_v4 }
 0x27b   :  { %5760 = vmatpush.bf16.msra.mxu3 %v7814_v11  ;;  %v8406_v11 = vor.u32 %v11348_v59, %v8403_v60  ;;  %v11240_v52 = vld [vmem:[#allocation4 + $0x48c] sm:$0xf]  ;;  %v7971_v10 = vld [vmem:[#allocation4 + $0x498] sm:$0xf0]  ;;  %v8374_v56 = vor.u32 %v11340_v47, %v8371_v12 }
 0x27c   :  { %5722 = vmatpush.bf16.msra.mxu0 %v7414_v29  ;;  %v8006_v29 = vor.u32 %v11248_v6, %v8003_v51  ;;  %v11304_v17 = vld [vmem:[#allocation4 + $0x68c] sm:$0xf]  ;;  %v7974_v59 = vor.u32 %v11240_v52, %v7971_v10  ;;  %v8083_v7 = vld [vmem:[#allocation4 + $0x578] sm:$0xf0] }
 0x27d   :  { %5735 = vmatpush.bf16.msra.mxu1 %v7542_v33  ;;  %v11244_v33 = vld [vmem:[#allocation4 + $0x4ac] sm:$0xf]  ;;  %v8211_v14 = vld [vmem:[#allocation4 + $0x678] sm:$0xf0] }
 0x27e   :  { %5748 = vmatpush.bf16.msra.mxu2 %v7670_v35  ;;  %v7987_v35 = vld [vmem:[#allocation4 + $0x4b8] sm:$0xf0]  ;;  %v11332_v16 = vld [vmem:[#allocation4 + $0x76c] sm:$0xf] }
 0x27f   :  { %5761 = vmatpush.bf16.msra.mxu3 %v7798_v46  ;;  %v8243_v46 = vld [vmem:[#allocation4 + $0x6b8] sm:$0xf0]  ;;  %v7990_v48 = vor.u32 %v11244_v33, %v7987_v35  ;;  %v11328_v47 = vld [vmem:[#allocation4 + $0x74c] sm:$0xf] }
 0x280   :  { %5723 = vmatpush.bf16.msra.mxu0 %v7398_v54  ;;  %v8246_v50 = vor.u32 %v11308_v45, %v8243_v46  ;;  %v11272_v54 = vld [vmem:[#allocation4 + $0x58c] sm:$0xf]  ;;  %v8339_v21 = vld [vmem:[#allocation4 + $0x778] sm:$0xf0] }
 0x281   :  { %5736 = vmatpush.bf16.msra.mxu1 %v7526_v43  ;;  %v5517_v43 = vpop.f32.mrf.mxu0  ;;  %v8342_v33 = vor.u32 %v11332_v16, %v8339_v21  ;;  %v8067_v39 = vld [vmem:[#allocation4 + $0x558] sm:$0xf0] }
 0x282   :  { %5749 = vmatpush.bf16.msra.mxu2 %v7654_v44  ;;  %v8355_v44 = vld [vmem:[#allocation4 + $0x798] sm:$0xf0] }
 0x283   :  { %5762 = vmatpush.bf16.msra.mxu3 %v7782_v62  ;;  %5724 = vmatmul.bf16.vlgmr.msra.gmra.mxu0 %v12265_v9  ;;  %v11336_v9 = vld [vmem:[#allocation4 + $0x78c] sm:$0xf]  ;;  %v8230_v62 = vor.u32 %v11304_v17, %v8227_v57  ;;  %v8195_v4 = vld [vmem:[#allocation4 + $0x658] sm:$0xf0] }
 0x284   :  { %5768 = vmatpush.bf16.msrb.mxu0 %v8022_v63  ;;  %5737 = vmatmul.bf16.vlgmr.msra.gmra.mxu1 %v12278_v25  ;;  %v5530_v25 = vpop.f32.mrf.mxu1  ;;  %v11236_v63 = vld [vmem:[#allocation4 + $0x46c] sm:$0xf]  ;;  %v8358_v6 = vor.u32 %v11336_v9, %v8355_v44  ;;  %v8323_v12 = vld [vmem:[#allocation4 + $0x758] sm:$0xf0] }
 0x285   :  { %5781 = vmatpush.bf16.msrb.mxu1 %v8150_v3  ;;  %5750 = vmatmul.bf16.vlgmr.msra.gmra.mxu2 %v12263_v8  ;;  %v8099_v8 = vld [vmem:[#allocation4 + $0x598] sm:$0xf0]  ;;  %v11260_v17 = vld [vmem:[#allocation4 + $0x52c] sm:$0xf]  ;;  %v8326_v57 = vor.u32 %v11328_v47, %v8323_v12 }
 0x286   :  { %5794 = vmatpush.bf16.msrb.mxu2 %v8278_v53  ;;  %5763 = vmatmul.bf16.vlgmr.msra.gmra.mxu3 %v12270_v15  ;;  %v5518_v15 = vadd.f32 %v5517_v43, %v12487_v42  ;;  %v8102_v60 = vor.u32 %v11272_v54, %v8099_v8  ;;  %v7955_v3 = vld [vmem:[#allocation4 + $0x478] sm:$0xf0]  ;;  %v11268_v53 = vld [vmem:[#allocation4 + $0x56c] sm:$0xf] }
 0x287   :  { %5807 = vmatpush.bf16.msrb.mxu3 %v8406_v11  ;;  %v11300_v11 = vld [vmem:[#allocation4 + $0x66c] sm:$0xf]  ;;  %v7958_v28 = vor.u32 %v11236_v63, %v7955_v3  ;;  %v8086_v42 = vor.u32 %v11268_v53, %v8083_v7  ;;  %v7923_v8 = vld [vmem:[#allocation4 + $0x438] sm:$0xf0] }
 0x288   :  { %5769 = vmatpush.bf16.msrb.mxu0 %v8006_v29  ;;  %v5531_v51 = vadd.f32 %v5530_v25, %v5518_v15  ;;  %v8214_v58 = vor.u32 %v11300_v11, %v8211_v14  ;;  %v11232_v29 = vld [vmem:[#allocation4 + $0x44c] sm:$0xf]  ;;  %v5543_v35 = vpop.f32.mrf.mxu2  ;;  %v8051_v43 = vld [vmem:[#allocation4 + $0x538] sm:$0xf0] }
 0x289   :  { %5782 = vmatpush.bf16.msrb.mxu1 %v8134_v0  ;;  %v7939_v0 = vld [vmem:[#allocation4 + $0x458] sm:$0xf0]  ;;  %v5556_v46 = vpop.f32.mrf.mxu3  ;;  %v11292_v9 = vld [vmem:[#allocation4 + $0x62c] sm:$0xf]  ;;  %v8054_v63 = vor.u32 %v11260_v17, %v8051_v43 }
 0x28a   :  { %5795 = vmatpush.bf16.msrb.mxu2 %v8262_v30  ;;  %v11264_v30 = vld [vmem:[#allocation4 + $0x54c] sm:$0xf]  ;;  %v5544_v45 = vadd.f32 %v5543_v35, %v5531_v51  ;;  %v8179_v44 = vld [vmem:[#allocation4 + $0x638] sm:$0xf0] }
 0x28b   :  { %5808 = vmatpush.bf16.msrb.mxu3 %v8390_v41  ;;  %v11296_v41 = vld [vmem:[#allocation4 + $0x64c] sm:$0xf]  ;;  %v8070_v10 = vor.u32 %v11264_v30, %v8067_v39  ;;  %v8182_v3 = vor.u32 %v11292_v9, %v8179_v44  ;;  %v8163_v11 = vld [vmem:[#allocation4 + $0x618] sm:$0xf0] }
 0x28c   :  { %5770 = vmatpush.bf16.msrb.mxu0 %v7990_v48  ;;  %v5519_v48 = vpop.f32.mrf.mxu0  ;;  %v12494_v52 = vadd.f32 %v5556_v46, %v5544_v45  ;;  %v8198_v54 = vor.u32 %v11296_v41, %v8195_v4  ;;  %v11324_v15 = vld [vmem:[#allocation4 + $0x72c] sm:$0xf]  ;;  %v8291_v16 = vld [vmem:[#allocation4 + $0x718] sm:$0xf0] }
 0x28d   :  { %5783 = vmatpush.bf16.msrb.mxu1 %v8118_v49  ;;  %v7942_v49 = vor.u32 %v11232_v29, %v7939_v0  ;;  %v11256_v53 = vld [vmem:[#allocation4 + $0x50c] sm:$0xf]  ;;  %v8659_v30 = vld [vmem:[#allocation4 + $0x9f8] sm:$0xf0] }
 0x28e   :  { %5796 = vmatpush.bf16.msrb.mxu2 %v8246_v50  ;;  %v5532_v50 = vpop.f32.mrf.mxu1  ;;  %v11288_v51 = vld [vmem:[#allocation4 + $0x60c] sm:$0xf]  ;;  %v8787_v35 = vld [vmem:[#allocation4 + $0xaf8] sm:$0xf0] }
 0x28f   :  { %5809 = vmatpush.bf16.msrb.mxu3 %v8374_v56  ;;  %v11228_v56 = vld [vmem:[#allocation4 + $0x42c] sm:$0xf]  ;;  %v8166_v41 = vor.u32 %v11288_v51, %v8163_v11  ;;  %v8915_v45 = vld [vmem:[#allocation4 + $0xbf8] sm:$0xf0] }
 0x290   :  { %5771 = vmatpush.bf16.msrb.mxu0 %v7974_v59  ;;  %v8307_v59 = vld [vmem:[#allocation4 + $0x738] sm:$0xf0]  ;;  %v7926_v25 = vor.u32 %v11228_v56, %v7923_v8  ;;  %v11320_v14 = vld [vmem:[#allocation4 + $0x70c] sm:$0xf]  ;;  %v5545_v21 = vpop.f32.mrf.mxu2 }
 0x291   :  { %5784 = vmatpush.bf16.msrb.mxu1 %v8102_v60  ;;  %v11224_v60 = vld [vmem:[#allocation4 + $0x40c] sm:$0xf]  ;;  %v8310_v7 = vor.u32 %v11324_v15, %v8307_v59  ;;  %v5558_v29 = vpop.f32.mrf.mxu3  ;;  %v8294_v46 = vor.u32 %v11320_v14, %v8291_v16  ;;  %v8515_v50 = vld [vmem:[#allocation4 + $0x8d8] sm:$0xf0] }
 0x292   :  { %5797 = vmatpush.bf16.msrb.mxu2 %v8230_v62  ;;  %v7907_v62 = vld [vmem:[#allocation4 + $0x418] sm:$0xf0]  ;;  %v11476_v4 = vld [vmem:[#allocation4 + $0xbec] sm:$0xf] }
 0x293   :  { %5810 = vmatpush.bf16.msrb.mxu3 %v8358_v6  ;;  %v8035_v6 = vld [vmem:[#allocation4 + $0x518] sm:$0xf0]  ;;  %v7910_v0 = vor.u32 %v11224_v60, %v7907_v62  ;;  %v11440_v8 = vld [vmem:[#allocation4 + $0xacc] sm:$0xf] }
 0x294   :  { %5772 = vmatpush.bf16.msrb.mxu0 %v7958_v28  ;;  %v11380_v28 = vld [vmem:[#allocation4 + $0x8ec] sm:$0xf]  ;;  %v8038_v39 = vor.u32 %v11256_v53, %v8035_v6  ;;  %v8643_v56 = vld [vmem:[#allocation4 + $0x9d8] sm:$0xf0] }
 0x295   :  { %5785 = vmatpush.bf16.msrb.mxu1 %v8086_v42  ;;  %v8531_v42 = vld [vmem:[#allocation4 + $0x8f8] sm:$0xf0]  ;;  %v11372_v59 = vld [vmem:[#allocation4 + $0x8ac] sm:$0xf] }
 0x296   :  { %5798 = vmatpush.bf16.msrb.mxu2 %v8214_v58  ;;  %v11412_v58 = vld [vmem:[#allocation4 + $0x9ec] sm:$0xf]  ;;  %v8534_v47 = vor.u32 %v11380_v28, %v8531_v42  ;;  %v8771_v17 = vld [vmem:[#allocation4 + $0xad8] sm:$0xf0] }
 0x297   :  { %5811 = vmatpush.bf16.msrb.mxu3 %v8342_v33  ;;  %v11444_v33 = vld [vmem:[#allocation4 + $0xaec] sm:$0xf]  ;;  %v8662_v12 = vor.u32 %v11412_v58, %v8659_v30  ;;  %v8899_v43 = vld [vmem:[#allocation4 + $0xbd8] sm:$0xf0]  ;;  %v8774_v15 = vor.u32 %v11440_v8, %v8771_v17 }
 0x298   :  { %5773 = vmatpush.bf16.msrb.mxu0 %v7942_v49  ;;  %v8790_v48 = vor.u32 %v11444_v33, %v8787_v35  ;;  %v11376_v49 = vld [vmem:[#allocation4 + $0x8cc] sm:$0xf]  ;;  %v8755_v53 = vld [vmem:[#allocation4 + $0xab8] sm:$0xf0] }
 0x299   :  { %5786 = vmatpush.bf16.msrb.mxu1 %v8070_v10  ;;  %v11408_v10 = vld [vmem:[#allocation4 + $0x9cc] sm:$0xf]  ;;  %v8518_v9 = vor.u32 %v11376_v49, %v8515_v50  ;;  %v8883_v51 = vld [vmem:[#allocation4 + $0xbb8] sm:$0xf0] }
 0x29a   :  { %5799 = vmatpush.bf16.msrb.mxu2 %v8198_v54  ;;  %v8918_v54 = vor.u32 %v11476_v4, %v8915_v45  ;;  %v8646_v44 = vor.u32 %v11408_v10, %v8643_v56  ;;  %v11404_v60 = vld [vmem:[#allocation4 + $0x9ac] sm:$0xf]  ;;  %v8483_v21 = vld [vmem:[#allocation4 + $0x898] sm:$0xf0] }
 0x29b   :  { %5812 = vmatpush.bf16.msrb.mxu3 %v8326_v57  ;;  %v11472_v57 = vld [vmem:[#allocation4 + $0xbcc] sm:$0xf]  ;;  %v8611_v42 = vld [vmem:[#allocation4 + $0x998] sm:$0xf0] }
 0x29c   :  { %5774 = vmatpush.bf16.msrb.mxu0 %v7926_v25  ;;  %v8499_v25 = vld [vmem:[#allocation4 + $0x8b8] sm:$0xf0]  ;;  %v8902_v62 = vor.u32 %v11472_v57, %v8899_v43  ;;  %v11468_v6 = vld [vmem:[#allocation4 + $0xbac] sm:$0xf] }
 0x29d   :  { %5787 = vmatpush.bf16.msrb.mxu1 %v8054_v63  ;;  %v8627_v63 = vld [vmem:[#allocation4 + $0x9b8] sm:$0xf0]  ;;  %v11368_v16 = vld [vmem:[#allocation4 + $0x88c] sm:$0xf]  ;;  %v8886_v28 = vor.u32 %v11468_v6, %v8883_v51 }
 0x29e   :  { %5800 = vmatpush.bf16.msrb.mxu2 %v8182_v3  ;;  %v11436_v3 = vld [vmem:[#allocation4 + $0xaac] sm:$0xf]  ;;  %v8630_v11 = vor.u32 %v11404_v60, %v8627_v63  ;;  %v8739_v29 = vld [vmem:[#allocation4 + $0xa98] sm:$0xf0]  ;;  %v8486_v33 = vor.u32 %v11368_v16, %v8483_v21 }
 0x29f   :  { %5813 = vmatpush.bf16.msrb.mxu3 %v8310_v7  ;;  %v8502_v7 = vor.u32 %v11372_v59, %v8499_v25  ;;  %v8758_v14 = vor.u32 %v11436_v3, %v8755_v53  ;;  %v11432_v58 = vld [vmem:[#allocation4 + $0xa8c] sm:$0xf]  ;;  %v8867_v30 = vld [vmem:[#allocation4 + $0xb98] sm:$0xf0] }
 0x2a0   :  { %5775 = vmatpush.bf16.msrb.mxu0 %v7910_v0  ;;  %v5569_v0 = vpop.f32.mrf.mxu0  ;;  %v8467_v4 = vld [vmem:[#allocation4 + $0x878] sm:$0xf0]  ;;  %v11396_v45 = vld [vmem:[#allocation4 + $0x96c] sm:$0xf] }
 0x2a1   :  { %5788 = vmatpush.bf16.msrb.mxu1 %v8038_v39  ;;  %v8742_v39 = vor.u32 %v11432_v58, %v8739_v29  ;;  %v8723_v49 = vld [vmem:[#allocation4 + $0xa78] sm:$0xf0]  ;;  %v11460_v50 = vld [vmem:[#allocation4 + $0xb6c] sm:$0xf] }
 0x2a2   :  { %5801 = vmatpush.bf16.msrb.mxu2 %v8166_v41  ;;  %v11364_v41 = vld [vmem:[#allocation4 + $0x86c] sm:$0xf]  ;;  %v8851_v10 = vld [vmem:[#allocation4 + $0xb78] sm:$0xf0] }
 0x2a3   :  { %5814 = vmatpush.bf16.msrb.mxu3 %v8294_v46  ;;  %5776 = vmatmul.bf16.vlgmr.msrb.gmra.mxu0 %v12295_v37  ;;  %v11464_v37 = vld [vmem:[#allocation4 + $0xb8c] sm:$0xf]  ;;  %v8451_v17 = vld [vmem:[#allocation4 + $0x858] sm:$0xf0]  ;;  %v8854_v43 = vor.u32 %v11460_v50, %v8851_v10 }
 0x2a4   :  { %5820 = vmatpush.bf16.msra.mxu0 %v8534_v47  ;;  %5789 = vmatmul.bf16.vlgmr.msrb.gmra.mxu1 %v12299_v40  ;;  %v5582_v40 = vpop.f32.mrf.mxu1  ;;  %v8870_v46 = vor.u32 %v11464_v37, %v8867_v30  ;;  %v11360_v8 = vld [vmem:[#allocation4 + $0x84c] sm:$0xf]  ;;  %v8707_v59 = vld [vmem:[#allocation4 + $0xa58] sm:$0xf0] }
 0x2a5   :  { %5833 = vmatpush.bf16.msra.mxu1 %v8662_v12  ;;  %5802 = vmatmul.bf16.vlgmr.msrb.gmra.mxu2 %v12293_v34  ;;  %v11400_v34 = vld [vmem:[#allocation4 + $0x98c] sm:$0xf]  ;;  %v8595_v12 = vld [vmem:[#allocation4 + $0x978] sm:$0xf0]  ;;  %v8454_v53 = vor.u32 %v11360_v8, %v8451_v17 }
 0x2a6   :  { %5846 = vmatpush.bf16.msra.mxu2 %v8790_v48  ;;  %5815 = vmatmul.bf16.vlgmr.msrb.gmra.mxu3 %v12297_v38  ;;  %v5570_v38 = vadd.f32 %v5569_v0, %v12494_v52  ;;  %v8614_v35 = vor.u32 %v11400_v34, %v8611_v42  ;;  %v11428_v48 = vld [vmem:[#allocation4 + $0xa6c] sm:$0xf]  ;;  %v8598_v52 = vor.u32 %v11396_v45, %v8595_v12  ;;  %v8835_v63 = vld [vmem:[#allocation4 + $0xb58] sm:$0xf0] }
 0x2a7   :  { %5859 = vmatpush.bf16.msra.mxu3 %v8918_v54  ;;  %v8470_v54 = vor.u32 %v11364_v41, %v8467_v4  ;;  %v8726_v56 = vor.u32 %v11428_v48, %v8723_v49  ;;  %v11392_v57 = vld [vmem:[#allocation4 + $0x94c] sm:$0xf]  ;;  %v8435_v16 = vld [vmem:[#allocation4 + $0x838] sm:$0xf0] }
 0x2a8   :  { %5821 = vmatpush.bf16.msra.mxu0 %v8518_v9  ;;  %v5583_v47 = vadd.f32 %v5582_v40, %v5570_v38  ;;  %v5595_v9 = vpop.f32.mrf.mxu2  ;;  %v5571_v3 = vpop.f32.mrf.mxu0  ;;  %v11388_v21 = vld [vmem:[#allocation4 + $0x92c] sm:$0xf]  ;;  %v8691_v58 = vld [vmem:[#allocation4 + $0xa38] sm:$0xf0] }
 0x2a9   :  { %5834 = vmatpush.bf16.msra.mxu1 %v8646_v44  ;;  %v8579_v44 = vld [vmem:[#allocation4 + $0x958] sm:$0xf0]  ;;  %v5608_v60 = vpop.f32.mrf.mxu3  ;;  %v11420_v42 = vld [vmem:[#allocation4 + $0xa2c] sm:$0xf] }
 0x2aa   :  { %5847 = vmatpush.bf16.msra.mxu2 %v8774_v15  ;;  %v11424_v15 = vld [vmem:[#allocation4 + $0xa4c] sm:$0xf]  ;;  %v5596_v25 = vadd.f32 %v5595_v9, %v5583_v47  ;;  %v8819_v0 = vld [vmem:[#allocation4 + $0xb38] sm:$0xf0]  ;;  %v8694_v40 = vor.u32 %v11420_v42, %v8691_v58 }
 0x2ab   :  { %5860 = vmatpush.bf16.msra.mxu3 %v8902_v62  ;;  %v11456_v62 = vld [vmem:[#allocation4 + $0xb4c] sm:$0xf]  ;;  %v8419_v38 = vld [vmem:[#allocation4 + $0x818] sm:$0xf0] }
 0x2ac   :  { %5822 = vmatpush.bf16.msra.mxu0 %v8502_v7  ;;  %v5584_v6 = vpop.f32.mrf.mxu1  ;;  %v12501_v51 = vadd.f32 %v5608_v60, %v5596_v25  ;;  %v8582_v7 = vor.u32 %v11392_v57, %v8579_v44  ;;  %v8838_v34 = vor.u32 %v11456_v62, %v8835_v63  ;;  %v11452_v29 = vld [vmem:[#allocation4 + $0xb2c] sm:$0xf]  ;;  %v8675_v45 = vld [vmem:[#allocation4 + $0xa18] sm:$0xf0] }
 0x2ad   :  { %5835 = vmatpush.bf16.msra.mxu1 %v8630_v11  ;;  %v8710_v11 = vor.u32 %v11424_v15, %v8707_v59  ;;  %v11352_v30 = vld [vmem:[#allocation4 + $0x80c] sm:$0xf]  ;;  %v8822_v4 = vor.u32 %v11452_v29, %v8819_v0  ;;  %v8803_v47 = vld [vmem:[#allocation4 + $0xb18] sm:$0xf0] }
 0x2ae   :  { %5848 = vmatpush.bf16.msra.mxu2 %v8758_v14  ;;  %v11356_v14 = vld [vmem:[#allocation4 + $0x82c] sm:$0xf]  ;;  %v9043_v49 = vld [vmem:[#allocation4 + $0xcf8] sm:$0xf0] }
 0x2af   :  { %5861 = vmatpush.bf16.msra.mxu3 %v8886_v28  ;;  %v8563_v28 = vld [vmem:[#allocation4 + $0x938] sm:$0xf0]  ;;  %v8438_v37 = vor.u32 %v11356_v14, %v8435_v16  ;;  %v11416_v41 = vld [vmem:[#allocation4 + $0xa0c] sm:$0xf] }
 0x2b0   :  { %5823 = vmatpush.bf16.msra.mxu0 %v8486_v33  ;;  %v8566_v33 = vor.u32 %v11388_v21, %v8563_v28  ;;  %v5597_v12 = vpop.f32.mrf.mxu2  ;;  %v11508_v48 = vld [vmem:[#allocation4 + $0xcec] sm:$0xf]  ;;  %v9299_v8 = vld [vmem:[#allocation4 + $0xef8] sm:$0xf0]  ;;  %v8678_v57 = vor.u32 %v11416_v41, %v8675_v45 }
 0x2b1   :  { %5836 = vmatpush.bf16.msra.mxu1 %v8614_v35  ;;  %v11384_v35 = vld [vmem:[#allocation4 + $0x90c] sm:$0xf]  ;;  %v5610_v10 = vpop.f32.mrf.mxu3  ;;  %v9427_v9 = vld [vmem:[#allocation4 + $0xff8] sm:$0xf0]  ;;  %v9046_v15 = vor.u32 %v11508_v48, %v9043_v49 }
 0x2b2   :  { %5849 = vmatpush.bf16.msra.mxu2 %v8742_v39  ;;  %v8547_v39 = vld [vmem:[#allocation4 + $0x918] sm:$0xf0]  ;;  %v11540_v50 = vld [vmem:[#allocation4 + $0xdec] sm:$0xf] }
 0x2b3   :  { %5862 = vmatpush.bf16.msra.mxu3 %v8870_v46  ;;  %v11448_v46 = vld [vmem:[#allocation4 + $0xb0c] sm:$0xf]  ;;  %v8550_v17 = vor.u32 %v11384_v35, %v8547_v39  ;;  %v9027_v62 = vld [vmem:[#allocation4 + $0xcd8] sm:$0xf0] }
 0x2b4   :  { %5824 = vmatpush.bf16.msra.mxu0 %v8470_v54  ;;  %v8422_v54 = vor.u32 %v11352_v30, %v8419_v38  ;;  %v8806_v44 = vor.u32 %v11448_v46, %v8803_v47  ;;  %v11504_v60 = vld [vmem:[#allocation4 + $0xccc] sm:$0xf]  ;;  %v9411_v14 = vld [vmem:[#allocation4 + $0xfd8] sm:$0xf0] }
 0x2b5   :  { %5837 = vmatpush.bf16.msra.mxu1 %v8598_v52  ;;  %v9171_v52 = vld [vmem:[#allocation4 + $0xdf8] sm:$0xf0]  ;;  %v11536_v63 = vld [vmem:[#allocation4 + $0xdcc] sm:$0xf]  ;;  %v9030_v16 = vor.u32 %v11504_v60, %v9027_v62 }
 0x2b6   :  { %5850 = vmatpush.bf16.msra.mxu2 %v8726_v56  ;;  %v11572_v56 = vld [vmem:[#allocation4 + $0xeec] sm:$0xf]  ;;  %v9174_v59 = vor.u32 %v11540_v50, %v9171_v52  ;;  %v9011_v42 = vld [vmem:[#allocation4 + $0xcb8] sm:$0xf0] }
 0x2b7   :  { %5863 = vmatpush.bf16.msra.mxu3 %v8854_v43  ;;  %v11604_v43 = vld [vmem:[#allocation4 + $0xfec] sm:$0xf]  ;;  %v9302_v25 = vor.u32 %v11572_v56, %v9299_v8  ;;  %v9139_v0 = vld [vmem:[#allocation4 + $0xdb8] sm:$0xf0] }
 0x2b8   :  { %5825 = vmatpush.bf16.msra.mxu0 %v8454_v53  ;;  %v9430_v3 = vor.u32 %v11604_v43, %v9427_v9  ;;  %v9155_v53 = vld [vmem:[#allocation4 + $0xdd8] sm:$0xf0]  ;;  %v11568_v6 = vld [vmem:[#allocation4 + $0xecc] sm:$0xf] }
 0x2b9   :  { %5838 = vmatpush.bf16.msra.mxu1 %v8582_v7  ;;  %v9283_v7 = vld [vmem:[#allocation4 + $0xed8] sm:$0xf0]  ;;  %v9158_v21 = vor.u32 %v11536_v63, %v9155_v53  ;;  %v11500_v28 = vld [vmem:[#allocation4 + $0xcac] sm:$0xf] }
 0x2ba   :  { %5851 = vmatpush.bf16.msra.mxu2 %v8710_v11  ;;  %v11600_v11 = vld [vmem:[#allocation4 + $0xfcc] sm:$0xf]  ;;  %v9267_v30 = vld [vmem:[#allocation4 + $0xeb8] sm:$0xf0] }
 0x2bb   :  { %5864 = vmatpush.bf16.msra.mxu3 %v8838_v34  ;;  %v9286_v34 = vor.u32 %v11568_v6, %v9283_v7  ;;  %v11532_v58 = vld [vmem:[#allocation4 + $0xdac] sm:$0xf]  ;;  %v9414_v29 = vor.u32 %v11600_v11, %v9411_v14  ;;  %v9123_v46 = vld [vmem:[#allocation4 + $0xd98] sm:$0xf0] }
 0x2bc   :  { %5826 = vmatpush.bf16.msra.mxu0 %v8438_v37  ;;  %v11564_v37 = vld [vmem:[#allocation4 + $0xeac] sm:$0xf]  ;;  %v9142_v35 = vor.u32 %v11532_v58, %v9139_v0  ;;  %v9379_v48 = vld [vmem:[#allocation4 + $0xf98] sm:$0xf0] }
 0x2bd   :  { %5839 = vmatpush.bf16.msra.mxu1 %v8566_v33  ;;  %v11596_v38 = vld [vmem:[#allocation4 + $0xfac] sm:$0xf]  ;;  %v9395_v33 = vld [vmem:[#allocation4 + $0xfb8] sm:$0xf0]  ;;  %v9270_v39 = vor.u32 %v11564_v37, %v9267_v30 }
 0x2be   :  { %5852 = vmatpush.bf16.msra.mxu2 %v8694_v40  ;;  %v9014_v40 = vor.u32 %v11500_v28, %v9011_v42  ;;  %v11496_v41 = vld [vmem:[#allocation4 + $0xc8c] sm:$0xf]  ;;  %v9398_v45 = vor.u32 %v11596_v38, %v9395_v33  ;;  %v8979_v56 = vld [vmem:[#allocation4 + $0xc78] sm:$0xf0] }
 0x2bf   :  { %5865 = vmatpush.bf16.msra.mxu3 %v8822_v4  ;;  %v11528_v4 = vld [vmem:[#allocation4 + $0xd8c] sm:$0xf]  ;;  %v9107_v43 = vld [vmem:[#allocation4 + $0xd78] sm:$0xf0] }
 0x2c0   :  { %5827 = vmatpush.bf16.msra.mxu0 %v8422_v54  ;;  %v11560_v47 = vld [vmem:[#allocation4 + $0xe8c] sm:$0xf]  ;;  %v5621_v12 = vpop.f32.mrf.mxu0  ;;  %v9126_v10 = vor.u32 %v11528_v4, %v9123_v46  ;;  %v8963_v63 = vld [vmem:[#allocation4 + $0xc58] sm:$0xf0] }
 0x2c1   :  { %5840 = vmatpush.bf16.msra.mxu1 %v8550_v17  ;;  %v5634_v50 = vpop.f32.mrf.mxu1  ;;  %v11492_v52 = vld [vmem:[#allocation4 + $0xc6c] sm:$0xf]  ;;  %v9091_v7 = vld [vmem:[#allocation4 + $0xd58] sm:$0xf0] }
 0x2c2   :  { %5853 = vmatpush.bf16.msra.mxu2 %v8678_v57  ;;  %v11524_v8 = vld [vmem:[#allocation4 + $0xd6c] sm:$0xf]  ;;  %v9219_v14 = vld [vmem:[#allocation4 + $0xe58] sm:$0xf0] }
 0x2c3   :  { %5866 = vmatpush.bf16.msra.mxu3 %v8806_v44  ;;  %5828 = vmatmul.bf16.vlgmr.msra.gmra.mxu0 %v12317_v18  ;;  %v8995_v18 = vld [vmem:[#allocation4 + $0xc98] sm:$0xf0]  ;;  %v11556_v9 = vld [vmem:[#allocation4 + $0xe6c] sm:$0xf] }
 0x2c4   :  { %5872 = vmatpush.bf16.msrb.mxu0 %v9046_v15  ;;  %5841 = vmatmul.bf16.vlgmr.msra.gmra.mxu1 %v12321_v23  ;;  %v11592_v23 = vld [vmem:[#allocation4 + $0xf8c] sm:$0xf]  ;;  %v8998_v49 = vor.u32 %v11496_v41, %v8995_v18  ;;  %v9235_v44 = vld [vmem:[#allocation4 + $0xe78] sm:$0xf0] }
 0x2c5   :  { %5885 = vmatpush.bf16.msrb.mxu1 %v9174_v59  ;;  %5854 = vmatmul.bf16.vlgmr.msra.gmra.mxu2 %v12319_v22  ;;  %v9251_v22 = vld [vmem:[#allocation4 + $0xe98] sm:$0xf0]  ;;  %v9382_v17 = vor.u32 %v11592_v23, %v9379_v48  ;;  %v11588_v15 = vld [vmem:[#allocation4 + $0xf6c] sm:$0xf]  ;;  %v9238_v60 = vor.u32 %v11556_v9, %v9235_v44 }
 0x2c6   :  { %5898 = vmatpush.bf16.msrb.mxu2 %v9302_v25  ;;  %5867 = vmatmul.bf16.vlgmr.msra.gmra.mxu3 %v12323_v27  ;;  %v5622_v27 = vadd.f32 %v5621_v12, %v12501_v51  ;;  %v9254_v54 = vor.u32 %v11560_v47, %v9251_v22  ;;  %v9363_v59 = vld [vmem:[#allocation4 + $0xf78] sm:$0xf0]  ;;  %v8982_v25 = vor.u32 %v11492_v52, %v8979_v56  ;;  %v11488_v62 = vld [vmem:[#allocation4 + $0xc4c] sm:$0xf] }
 0x2c7   :  { %5911 = vmatpush.bf16.msrb.mxu3 %v9430_v3  ;;  %v9110_v51 = vor.u32 %v11524_v8, %v9107_v43  ;;  %v11520_v3 = vld [vmem:[#allocation4 + $0xd4c] sm:$0xf]  ;;  %v9366_v53 = vor.u32 %v11588_v15, %v9363_v59  ;;  %v9347_v28 = vld [vmem:[#allocation4 + $0xf58] sm:$0xf0]  ;;  %v8966_v58 = vor.u32 %v11488_v62, %v8963_v63 }
 0x2c8   :  { %5873 = vmatpush.bf16.msrb.mxu0 %v9030_v16  ;;  %v5635_v57 = vadd.f32 %v5634_v50, %v5622_v27  ;;  %v5647_v6 = vpop.f32.mrf.mxu2  ;;  %v11552_v11 = vld [vmem:[#allocation4 + $0xe4c] sm:$0xf]  ;;  %v5623_v42 = vpop.f32.mrf.mxu0  ;;  %v9094_v37 = vor.u32 %v11520_v3, %v9091_v7  ;;  %v8947_v33 = vld [vmem:[#allocation4 + $0xc38] sm:$0xf0] }
 0x2c9   :  { %5886 = vmatpush.bf16.msrb.mxu1 %v9158_v21  ;;  %v5660_v21 = vpop.f32.mrf.mxu3  ;;  %v9222_v30 = vor.u32 %v11552_v11, %v9219_v14  ;;  %v11484_v38 = vld [vmem:[#allocation4 + $0xc2c] sm:$0xf]  ;;  %v9203_v18 = vld [vmem:[#allocation4 + $0xe38] sm:$0xf0] }
 0x2ca   :  { %5899 = vmatpush.bf16.msrb.mxu2 %v9286_v34  ;;  %v5648_v16 = vadd.f32 %v5647_v6, %v5635_v57  ;;  %v11584_v34 = vld [vmem:[#allocation4 + $0xf4c] sm:$0xf]  ;;  %v8950_v46 = vor.u32 %v11484_v38, %v8947_v33  ;;  %v8931_v22 = vld [vmem:[#allocation4 + $0xc18] sm:$0xf0] }
 0x2cb   :  { %5912 = vmatpush.bf16.msrb.mxu3 %v9414_v29  ;;  %v5636_v29 = vpop.f32.mrf.mxu1  ;;  %v11548_v41 = vld [vmem:[#allocation4 + $0xe2c] sm:$0xf]  ;;  %v9059_v27 = vld [vmem:[#allocation4 + $0xd18] sm:$0xf0] }
 0x2cc   :  { %5874 = vmatpush.bf16.msrb.mxu0 %v9014_v40  ;;  %v12508_v0 = vadd.f32 %v5660_v21, %v5648_v16  ;;  %v11516_v40 = vld [vmem:[#allocation4 + $0xd2c] sm:$0xf]  ;;  %v9206_v23 = vor.u32 %v11548_v41, %v9203_v18  ;;  %v9315_v52 = vld [vmem:[#allocation4 + $0xf18] sm:$0xf0] }
 0x2cd   :  { %5887 = vmatpush.bf16.msrb.mxu1 %v9142_v35  ;;  %v9350_v35 = vor.u32 %v11584_v34, %v9347_v28  ;;  %v11580_v4 = vld [vmem:[#allocation4 + $0xf2c] sm:$0xf]  ;;  %v9683_v44 = vld [vmem:[#allocation4 + $0x11f8] sm:$0xf0] }
 0x2ce   :  { %5900 = vmatpush.bf16.msrb.mxu2 %v9270_v39  ;;  %v9075_v39 = vld [vmem:[#allocation4 + $0xd38] sm:$0xf0]  ;;  %v11480_v47 = vld [vmem:[#allocation4 + $0xc0c] sm:$0xf] }
 0x2cf   :  { %5913 = vmatpush.bf16.msrb.mxu3 %v9398_v45  ;;  %v9331_v45 = vld [vmem:[#allocation4 + $0xf38] sm:$0xf0]  ;;  %v9078_v12 = vor.u32 %v11516_v40, %v9075_v39  ;;  %v11512_v48 = vld [vmem:[#allocation4 + $0xd0c] sm:$0xf]  ;;  %v8934_v9 = vor.u32 %v11480_v47, %v8931_v22 }
 0x2d0   :  { %5875 = vmatpush.bf16.msrb.mxu0 %v8998_v49  ;;  %v11544_v49 = vld [vmem:[#allocation4 + $0xe0c] sm:$0xf]  ;;  %v9334_v50 = vor.u32 %v11580_v4, %v9331_v45  ;;  %v5649_v56 = vpop.f32.mrf.mxu2  ;;  %v9811_v59 = vld [vmem:[#allocation4 + $0x12f8] sm:$0xf0] }
 0x2d1   :  { %5888 = vmatpush.bf16.msrb.mxu1 %v9126_v10  ;;  %v9187_v10 = vld [vmem:[#allocation4 + $0xe18] sm:$0xf0]  ;;  %v11636_v8 = vld [vmem:[#allocation4 + $0x10ec] sm:$0xf]  ;;  %v5662_v43 = vpop.f32.mrf.mxu3 }
 0x2d2   :  { %5901 = vmatpush.bf16.msrb.mxu2 %v9254_v54  ;;  %v11576_v54 = vld [vmem:[#allocation4 + $0xf0c] sm:$0xf]  ;;  %v9939_v62 = vld [vmem:[#allocation4 + $0x13f8] sm:$0xf0] }
 0x2d3   :  { %5914 = vmatpush.bf16.msrb.mxu3 %v9382_v17  ;;  %v9555_v17 = vld [vmem:[#allocation4 + $0x10f8] sm:$0xf0]  ;;  %v11668_v57 = vld [vmem:[#allocation4 + $0x11ec] sm:$0xf]  ;;  %v9318_v63 = vor.u32 %v11576_v54, %v9315_v52 }
 0x2d4   :  { %5876 = vmatpush.bf16.msrb.mxu0 %v8982_v25  ;;  %v11700_v15 = vld [vmem:[#allocation4 + $0x12ec] sm:$0xf]  ;;  %v9062_v25 = vor.u32 %v11512_v48, %v9059_v27  ;;  %v9558_v3 = vor.u32 %v11636_v8, %v9555_v17  ;;  %v9539_v11 = vld [vmem:[#allocation4 + $0x10d8] sm:$0xf0] }
 0x2d5   :  { %5889 = vmatpush.bf16.msrb.mxu1 %v9110_v51  ;;  %v9190_v51 = vor.u32 %v11544_v49, %v9187_v10  ;;  %v9814_v6 = vor.u32 %v11700_v15, %v9811_v59  ;;  %v11632_v7 = vld [vmem:[#allocation4 + $0x10cc] sm:$0xf]  ;;  %v9667_v21 = vld [vmem:[#allocation4 + $0x11d8] sm:$0xf0] }
 0x2d6   :  { %5902 = vmatpush.bf16.msrb.mxu2 %v9238_v60  ;;  %v11732_v60 = vld [vmem:[#allocation4 + $0x13ec] sm:$0xf]  ;;  %v9795_v28 = vld [vmem:[#allocation4 + $0x12d8] sm:$0xf0]  ;;  %v9542_v29 = vor.u32 %v11632_v7, %v9539_v11 }
 0x2d7   :  { %5915 = vmatpush.bf16.msrb.mxu3 %v9366_v53  ;;  %v9686_v53 = vor.u32 %v11668_v57, %v9683_v44  ;;  %v11664_v14 = vld [vmem:[#allocation4 + $0x11cc] sm:$0xf]  ;;  %v9942_v16 = vor.u32 %v11732_v60, %v9939_v62  ;;  %v9523_v33 = vld [vmem:[#allocation4 + $0x10b8] sm:$0xf0] }
 0x2d8   :  { %5877 = vmatpush.bf16.msrb.mxu0 %v8966_v58  ;;  %v11696_v34 = vld [vmem:[#allocation4 + $0x12cc] sm:$0xf]  ;;  %v9923_v58 = vld [vmem:[#allocation4 + $0x13d8] sm:$0xf0] }
 0x2d9   :  { %5890 = vmatpush.bf16.msrb.mxu1 %v9094_v37  ;;  %v11728_v42 = vld [vmem:[#allocation4 + $0x13cc] sm:$0xf]  ;;  %v9670_v37 = vor.u32 %v11664_v14, %v9667_v21  ;;  %v9651_v39 = vld [vmem:[#allocation4 + $0x11b8] sm:$0xf0] }
 0x2da   :  { %5903 = vmatpush.bf16.msrb.mxu2 %v9222_v30  ;;  %v9798_v30 = vor.u32 %v11696_v34, %v9795_v28  ;;  %v11628_v38 = vld [vmem:[#allocation4 + $0x10ac] sm:$0xf]  ;;  %v9779_v18 = vld [vmem:[#allocation4 + $0x12b8] sm:$0xf0] }
 0x2db   :  { %5916 = vmatpush.bf16.msrb.mxu3 %v9350_v35  ;;  %v11660_v40 = vld [vmem:[#allocation4 + $0x11ac] sm:$0xf]  ;;  %v9926_v35 = vor.u32 %v11728_v42, %v9923_v58  ;;  %v9907_v45 = vld [vmem:[#allocation4 + $0x13b8] sm:$0xf0] }
 0x2dc   :  { %5878 = vmatpush.bf16.msrb.mxu0 %v8950_v46  ;;  %v11692_v41 = vld [vmem:[#allocation4 + $0x12ac] sm:$0xf]  ;;  %v9526_v46 = vor.u32 %v11628_v38, %v9523_v33  ;;  %v9654_v47 = vor.u32 %v11660_v40, %v9651_v39  ;;  %v9635_v27 = vld [vmem:[#allocation4 + $0x1198] sm:$0xf0] }
 0x2dd   :  { %5891 = vmatpush.bf16.msrb.mxu1 %v9078_v12  ;;  %v11724_v4 = vld [vmem:[#allocation4 + $0x13ac] sm:$0xf]  ;;  %v9782_v22 = vor.u32 %v11692_v41, %v9779_v18  ;;  %v9891_v10 = vld [vmem:[#allocation4 + $0x1398] sm:$0xf0] }
 0x2de   :  { %5904 = vmatpush.bf16.msrb.mxu2 %v9206_v23  ;;  %v11624_v12 = vld [vmem:[#allocation4 + $0x108c] sm:$0xf]  ;;  %v9910_v48 = vor.u32 %v11724_v4, %v9907_v45  ;;  %v9491_v57 = vld [vmem:[#allocation4 + $0x1078] sm:$0xf0] }
 0x2df   :  { %5917 = vmatpush.bf16.msrb.mxu3 %v9334_v50  ;;  %v11656_v23 = vld [vmem:[#allocation4 + $0x118c] sm:$0xf]  ;;  %v9619_v15 = vld [vmem:[#allocation4 + $0x1178] sm:$0xf0] }
 0x2e0   :  { %5879 = vmatpush.bf16.msrb.mxu0 %v8934_v9  ;;  %v11688_v49 = vld [vmem:[#allocation4 + $0x128c] sm:$0xf]  ;;  %v5673_v50 = vpop.f32.mrf.mxu0  ;;  %v9638_v56 = vor.u32 %v11656_v23, %v9635_v27  ;;  %v9875_v60 = vld [vmem:[#allocation4 + $0x1378] sm:$0xf0] }
 0x2e1   :  { %5892 = vmatpush.bf16.msrb.mxu1 %v9062_v25  ;;  %v5686_v52 = vpop.f32.mrf.mxu1  ;;  %v11620_v17 = vld [vmem:[#allocation4 + $0x106c] sm:$0xf]  ;;  %v9747_v25 = vld [vmem:[#allocation4 + $0x1278] sm:$0xf0] }
 0x2e2   :  { %5905 = vmatpush.bf16.msrb.mxu2 %v9190_v51  ;;  %v11652_v43 = vld [vmem:[#allocation4 + $0x116c] sm:$0xf]  ;;  %v9494_v62 = vor.u32 %v11620_v17, %v9491_v57  ;;  %v9603_v14 = vld [vmem:[#allocation4 + $0x1158] sm:$0xf0] }
 0x2e3   :  { %5918 = vmatpush.bf16.msrb.mxu3 %v9318_v63  ;;  %5880 = vmatmul.bf16.vlgmr.msrb.gmra.mxu0 %v12341_v13  ;;  %v9507_v13 = vld [vmem:[#allocation4 + $0x1098] sm:$0xf0]  ;;  %v11684_v59 = vld [vmem:[#allocation4 + $0x126c] sm:$0xf] }
 0x2e4   :  { %5924 = vmatpush.bf16.msra.mxu0 %v9558_v3  ;;  %5893 = vmatmul.bf16.vlgmr.msrb.gmra.mxu1 %v12345_v20  ;;  %v11720_v20 = vld [vmem:[#allocation4 + $0x138c] sm:$0xf]  ;;  %v9510_v54 = vor.u32 %v11624_v12, %v9507_v13  ;;  %v9750_v63 = vor.u32 %v11684_v59, %v9747_v25  ;;  %v9731_v21 = vld [vmem:[#allocation4 + $0x1258] sm:$0xf0] }
 0x2e5   :  { %5937 = vmatpush.bf16.msra.mxu1 %v9686_v53  ;;  %5906 = vmatmul.bf16.vlgmr.msrb.gmra.mxu2 %v12343_v19  ;;  %v9763_v19 = vld [vmem:[#allocation4 + $0x1298] sm:$0xf0]  ;;  %v9894_v9 = vor.u32 %v11720_v20, %v9891_v10  ;;  %v11716_v51 = vld [vmem:[#allocation4 + $0x136c] sm:$0xf] }
 0x2e6   :  { %5950 = vmatpush.bf16.msra.mxu2 %v9814_v6  ;;  %5919 = vmatmul.bf16.vlgmr.msrb.gmra.mxu3 %v12347_v26  ;;  %v5674_v26 = vadd.f32 %v5673_v50, %v12508_v0  ;;  %v9766_v8 = vor.u32 %v11688_v49, %v9763_v19  ;;  %v9622_v0 = vor.u32 %v11652_v43, %v9619_v15  ;;  %v11616_v3 = vld [vmem:[#allocation4 + $0x104c] sm:$0xf]  ;;  %v9475_v53 = vld [vmem:[#allocation4 + $0x1058] sm:$0xf0] }
 0x2e7   :  { %5963 = vmatpush.bf16.msra.mxu3 %v9942_v16  ;;  %v11648_v6 = vld [vmem:[#allocation4 + $0x114c] sm:$0xf]  ;;  %v9878_v7 = vor.u32 %v11716_v51, %v9875_v60  ;;  %v9859_v58 = vld [vmem:[#allocation4 + $0x1358] sm:$0xf0] }
 0x2e8   :  { %5925 = vmatpush.bf16.msra.mxu0 %v9542_v29  ;;  %v5687_v44 = vadd.f32 %v5686_v52, %v5674_v26  ;;  %v5699_v11 = vpop.f32.mrf.mxu2  ;;  %v11680_v16 = vld [vmem:[#allocation4 + $0x124c] sm:$0xf]  ;;  %v5675_v29 = vpop.f32.mrf.mxu0  ;;  %v9606_v33 = vor.u32 %v11648_v6, %v9603_v14  ;;  %v9459_v39 = vld [vmem:[#allocation4 + $0x1038] sm:$0xf0] }
 0x2e9   :  { %5938 = vmatpush.bf16.msra.mxu1 %v9670_v37  ;;  %v5712_v28 = vpop.f32.mrf.mxu3  ;;  %v11712_v42 = vld [vmem:[#allocation4 + $0x134c] sm:$0xf]  ;;  %v9478_v37 = vor.u32 %v11616_v3, %v9475_v53  ;;  %v9734_v40 = vor.u32 %v11680_v16, %v9731_v21  ;;  %v9587_v4 = vld [vmem:[#allocation4 + $0x1138] sm:$0xf0] }
 0x2ea   :  { %5951 = vmatpush.bf16.msra.mxu2 %v9798_v30  ;;  %v5700_v34 = vadd.f32 %v5699_v11, %v5687_v44  ;;  %v5688_v30 = vpop.f32.mrf.mxu1  ;;  %v11644_v41 = vld [vmem:[#allocation4 + $0x112c] sm:$0xf]  ;;  %v9862_v18 = vor.u32 %v11712_v42, %v9859_v58  ;;  %v9443_v23 = vld [vmem:[#allocation4 + $0x1018] sm:$0xf0] }
 0x2eb   :  { %5964 = vmatpush.bf16.msra.mxu3 %v9926_v35  ;;  %v11612_v35 = vld [vmem:[#allocation4 + $0x102c] sm:$0xf]  ;;  %v9571_v19 = vld [vmem:[#allocation4 + $0x1118] sm:$0xf0] }
 0x2ec   :  { %5926 = vmatpush.bf16.msra.mxu0 %v9526_v46  ;;  %v12515_v38 = vadd.f32 %v5712_v28, %v5700_v34  ;;  %v11676_v45 = vld [vmem:[#allocation4 + $0x122c] sm:$0xf]  ;;  %v9715_v46 = vld [vmem:[#allocation4 + $0x1238] sm:$0xf0]  ;;  %v9462_v12 = vor.u32 %v11612_v35, %v9459_v39 }
 0x2ed   :  { %5939 = vmatpush.bf16.msra.mxu1 %v9654_v47  ;;  %v11708_v47 = vld [vmem:[#allocation4 + $0x132c] sm:$0xf]  ;;  %v9718_v27 = vor.u32 %v11676_v45, %v9715_v46  ;;  %v9699_v10 = vld [vmem:[#allocation4 + $0x1218] sm:$0xf0] }
 0x2ee   :  { %5952 = vmatpush.bf16.msra.mxu2 %v9782_v22  ;;  %v9843_v22 = vld [vmem:[#allocation4 + $0x1338] sm:$0xf0]  ;;  %v11608_v13 = vld [vmem:[#allocation4 + $0x100c] sm:$0xf] }
 0x2ef   :  { %5965 = vmatpush.bf16.msra.mxu3 %v9910_v48  ;;  %v9590_v48 = vor.u32 %v11644_v41, %v9587_v4  ;;  %v11640_v49 = vld [vmem:[#allocation4 + $0x110c] sm:$0xf]  ;;  %v9846_v20 = vor.u32 %v11708_v47, %v9843_v22  ;;  %v9446_v43 = vor.u32 %v11608_v13, %v9443_v23  ;;  %v10323_v15 = vld [vmem:[#allocation4 + $0x16f8] sm:$0xf0]  ;;  %v12036_v13 = vld [vmem:[#allocation6] sm:$0xf] }
 0x2f0   :  { %5927 = vmatpush.bf16.msra.mxu0 %v9510_v54  ;;  %v11672_v50 = vld [vmem:[#allocation4 + $0x120c] sm:$0xf]  ;;  %v9827_v54 = vld [vmem:[#allocation4 + $0x1318] sm:$0xf0]  ;;  %v5701_v52 = vpop.f32.mrf.mxu2  ;;  %v9574_v59 = vor.u32 %v11640_v49, %v9571_v19  ;;  %v935_v23 = vperm.slane %v12036_v13, 3 }
 0x2f1   :  { %5940 = vmatpush.bf16.msra.mxu1 %v9638_v56  ;;  %v11704_v26 = vld [vmem:[#allocation4 + $0x130c] sm:$0xf]  ;;  %v5714_v57 = vpop.f32.mrf.mxu3  ;;  %v9702_v25 = vor.u32 %v11672_v50, %v9699_v10  ;;  %v10451_v60 = vld [vmem:[#allocation4 + $0x17f8] sm:$0xf0] }
 0x2f2   :  { %5953 = vmatpush.bf16.msra.mxu2 %v9766_v8  ;;  %v11764_v56 = vld [vmem:[#allocation4 + $0x14ec] sm:$0xf]  ;;  %v10067_v8 = vld [vmem:[#allocation4 + $0x14f8] sm:$0xf0] }
 0x2f3   :  { %5966 = vmatpush.bf16.msra.mxu3 %v9894_v9  ;;  %v11796_v17 = vld [vmem:[#allocation4 + $0x15ec] sm:$0xf]  ;;  %v10195_v9 = vld [vmem:[#allocation4 + $0x15f8] sm:$0xf0] }
 0x2f4   :  { %5928 = vmatpush.bf16.msra.mxu0 %v9494_v62  ;;  %v11828_v44 = vld [vmem:[#allocation4 + $0x16ec] sm:$0xf]  ;;  %v9830_v62 = vor.u32 %v11704_v26, %v9827_v54  ;;  %v10051_v6 = vld [vmem:[#allocation4 + $0x14d8] sm:$0xf0] }
 0x2f5   :  { %5941 = vmatpush.bf16.msra.mxu1 %v9622_v0  ;;  %v11860_v51 = vld [vmem:[#allocation4 + $0x17ec] sm:$0xf]  ;;  %v10070_v0 = vor.u32 %v11764_v56, %v10067_v8  ;;  %v10326_v3 = vor.u32 %v11828_v44, %v10323_v15  ;;  %v10179_v14 = vld [vmem:[#allocation4 + $0x15d8] sm:$0xf0] }
 0x2f6   :  { %5954 = vmatpush.bf16.msra.mxu2 %v9750_v63  ;;  %v10198_v63 = vor.u32 %v11796_v17, %v10195_v9  ;;  %v11760_v53 = vld [vmem:[#allocation4 + $0x14cc] sm:$0xf]  ;;  %v10454_v11 = vor.u32 %v11860_v51, %v10451_v60  ;;  %v10307_v21 = vld [vmem:[#allocation4 + $0x16d8] sm:$0xf0] }
 0x2f7   :  { %5967 = vmatpush.bf16.msra.mxu3 %v9878_v7  ;;  %v11792_v7 = vld [vmem:[#allocation4 + $0x15cc] sm:$0xf]  ;;  %v10435_v28 = vld [vmem:[#allocation4 + $0x17d8] sm:$0xf0]  ;;  %v10054_v42 = vor.u32 %v11760_v53, %v10051_v6 }
 0x2f8   :  { %5929 = vmatpush.bf16.msra.mxu0 %v9478_v37  ;;  %v11824_v16 = vld [vmem:[#allocation4 + $0x16cc] sm:$0xf]  ;;  %v10182_v58 = vor.u32 %v11792_v7, %v10179_v14  ;;  %v10035_v30 = vld [vmem:[#allocation4 + $0x14b8] sm:$0xf0] }
 0x2f9   :  { %5942 = vmatpush.bf16.msra.mxu1 %v9606_v33  ;;  %v11856_v34 = vld [vmem:[#allocation4 + $0x17cc] sm:$0xf]  ;;  %v10310_v29 = vor.u32 %v11824_v16, %v10307_v21  ;;  %v10163_v35 = vld [vmem:[#allocation4 + $0x15b8] sm:$0xf0] }
 0x2fa   :  { %5955 = vmatpush.bf16.msra.mxu2 %v9734_v40  ;;  %v11756_v37 = vld [vmem:[#allocation4 + $0x14ac] sm:$0xf]  ;;  %v10438_v40 = vor.u32 %v11856_v34, %v10435_v28  ;;  %v10291_v41 = vld [vmem:[#allocation4 + $0x16b8] sm:$0xf0] }
 0x2fb   :  { %5968 = vmatpush.bf16.msra.mxu3 %v9862_v18  ;;  %v11788_v33 = vld [vmem:[#allocation4 + $0x15ac] sm:$0xf]  ;;  %v10419_v4 = vld [vmem:[#allocation4 + $0x17b8] sm:$0xf0]  ;;  %v10038_v45 = vor.u32 %v11756_v37, %v10035_v30 }
 0x2fc   :  { %5930 = vmatpush.bf16.msra.mxu0 %v9462_v12  ;;  %v11820_v39 = vld [vmem:[#allocation4 + $0x16ac] sm:$0xf]  ;;  %v10166_v47 = vor.u32 %v11788_v33, %v10163_v35  ;;  %v10403_v19 = vld [vmem:[#allocation4 + $0x1798] sm:$0xf0] }
 0x2fd   :  { %5943 = vmatpush.bf16.msra.mxu1 %v9590_v48  ;;  %v11852_v18 = vld [vmem:[#allocation4 + $0x17ac] sm:$0xf]  ;;  %v10294_v22 = vor.u32 %v11820_v39, %v10291_v41  ;;  %v10003_v54 = vld [vmem:[#allocation4 + $0x1478] sm:$0xf0] }
 0x2fe   :  { %5956 = vmatpush.bf16.msra.mxu2 %v9718_v27  ;;  %v11752_v46 = vld [vmem:[#allocation4 + $0x148c] sm:$0xf]  ;;  %v10422_v48 = vor.u32 %v11852_v18, %v10419_v4  ;;  %v10131_v57 = vld [vmem:[#allocation4 + $0x1578] sm:$0xf0] }
 0x2ff   :  { %5969 = vmatpush.bf16.msra.mxu3 %v9846_v20  ;;  %v11784_v12 = vld [vmem:[#allocation4 + $0x158c] sm:$0xf]  ;;  %v10259_v9 = vld [vmem:[#allocation4 + $0x1678] sm:$0xf0] }
 0x300   :  { %5931 = vmatpush.bf16.msra.mxu0 %v9446_v43  ;;  %v11816_v27 = vld [vmem:[#allocation4 + $0x168c] sm:$0xf]  ;;  %v5725_v50 = vpop.f32.mrf.mxu0  ;;  %v10387_v15 = vld [vmem:[#allocation4 + $0x1778] sm:$0xf0] }
 0x301   :  { %5944 = vmatpush.bf16.msra.mxu1 %v9574_v59  ;;  %v11848_v49 = vld [vmem:[#allocation4 + $0x178c] sm:$0xf]  ;;  %v5726_v56 = vadd.f32 %v5725_v50, %v935_v23  ;;  %v5738_v8 = vpop.f32.mrf.mxu1  ;;  %v10115_v6 = vld [vmem:[#allocation4 + $0x1558] sm:$0xf0] }
 0x302   :  { %5957 = vmatpush.bf16.msra.mxu2 %v9702_v25  ;;  %v11748_v26 = vld [vmem:[#allocation4 + $0x146c] sm:$0xf]  ;;  %v10406_v17 = vor.u32 %v11848_v49, %v10403_v19  ;;  %v10371_v34 = vld [vmem:[#allocation4 + $0x1758] sm:$0xf0] }
 0x303   :  { %5970 = vmatpush.bf16.msra.mxu3 %v9830_v62  ;;  %5932 = vmatmul.bf16.vlgmr.msra.gmra.mxu0 %v12365_v24  ;;  %v10019_v24 = vld [vmem:[#allocation4 + $0x1498] sm:$0xf0]  ;;  %v11780_v52 = vld [vmem:[#allocation4 + $0x156c] sm:$0xf]  ;;  %v5739_v59 = vadd.f32 %v5738_v8, %v5726_v56  ;;  %v10006_v25 = vor.u32 %v11748_v26, %v10003_v54  ;;  %v10697_v54 = vld [vmem:[#allocation8 + $0x1e0] sm:$0xf] }
 0x304   :  { %5976 = vmatpush.bf16.msrb.mxu0 %v10070_v0  ;;  %5945 = vmatmul.bf16.vlgmr.msra.gmra.mxu1 %v12369_v32  ;;  %v10275_v32 = vld [vmem:[#allocation4 + $0x1698] sm:$0xf0]  ;;  %v11812_v43 = vld [vmem:[#allocation4 + $0x166c] sm:$0xf]  ;;  %v10134_v51 = vor.u32 %v11780_v52, %v10131_v57  ;;  %v11925_v52 = vld [vmem:[#allocation8 + $0x1ec] sm:$0xf0] }
 0x305   :  { %5989 = vmatpush.bf16.msrb.mxu1 %v10198_v63  ;;  %5958 = vmatmul.bf16.vlgmr.msra.gmra.mxu2 %v12367_v31  ;;  %v10147_v31 = vld [vmem:[#allocation4 + $0x1598] sm:$0xf0]  ;;  %v10278_v10 = vor.u32 %v11816_v27, %v10275_v32  ;;  %v11844_v44 = vld [vmem:[#allocation4 + $0x176c] sm:$0xf]  ;;  %v10262_v60 = vor.u32 %v11812_v43, %v10259_v9  ;;  %v10698_v43 = vor.u32 %v11925_v52, %v10697_v54  ;;  %v10553_v9 = vld [vmem:[#allocation8 + $0xc0] sm:$0xf] }
 0x306   :  { %6002 = vmatpush.bf16.msrb.mxu2 %v10326_v3  ;;  %5971 = vmatmul.bf16.vlgmr.msra.gmra.mxu3 %v12371_v36  ;;  %v10022_v36 = vor.u32 %v11752_v46, %v10019_v24  ;;  %v10150_v20 = vor.u32 %v11784_v12, %v10147_v31  ;;  %v11744_v62 = vld [vmem:[#allocation4 + $0x144c] sm:$0xf]  ;;  %v9987_v0 = vld [vmem:[#allocation4 + $0x1458] sm:$0xf0]  ;;  %v10390_v53 = vor.u32 %v11844_v44, %v10387_v15  ;;  %v11889_v44 = vld [vmem:[#allocation8 + $0xcc] sm:$0xf0] }
 0x307   :  { %6015 = vmatpush.bf16.msrb.mxu3 %v10454_v11  ;;  %v11776_v63 = vld [vmem:[#allocation4 + $0x154c] sm:$0xf]  ;;  %v10243_v11 = vld [vmem:[#allocation4 + $0x1658] sm:$0xf0]  ;;  %v9990_v28 = vor.u32 %v11744_v62, %v9987_v0  ;;  %v10681_v15 = vld [vmem:[#allocation8 + $0x1c0] sm:$0xf] }
 0x308   :  { %5977 = vmatpush.bf16.msrb.mxu0 %v10054_v42  ;;  %v5751_v3 = vpop.f32.mrf.mxu2  ;;  %v11808_v7 = vld [vmem:[#allocation4 + $0x164c] sm:$0xf]  ;;  %v9971_v33 = vld [vmem:[#allocation4 + $0x1438] sm:$0xf0]  ;;  %v11885_v62 = vld [vmem:[#allocation8 + $0xac] sm:$0xf0] }
 0x309   :  { %5990 = vmatpush.bf16.msrb.mxu1 %v10182_v58  ;;  %v5752_v14 = vadd.f32 %v5751_v3, %v5739_v59  ;;  %v5764_v16 = vpop.f32.mrf.mxu3  ;;  %v11840_v21 = vld [vmem:[#allocation4 + $0x174c] sm:$0xf]  ;;  %v5727_v58 = vpop.f32.mrf.mxu0  ;;  %v10246_v37 = vor.u32 %v11808_v7, %v10243_v11  ;;  %v10099_v41 = vld [vmem:[#allocation4 + $0x1538] sm:$0xf0]  ;;  %v11921_v59 = vld [vmem:[#allocation8 + $0x1cc] sm:$0xf0] }
 0x30a   :  { %6003 = vmatpush.bf16.msrb.mxu2 %v10310_v29  ;;  %v10118_v29 = vor.u32 %v11776_v63, %v10115_v6  ;;  %v11740_v30 = vld [vmem:[#allocation4 + $0x142c] sm:$0xf]  ;;  %v5740_v35 = vpop.f32.mrf.mxu1  ;;  %v10374_v39 = vor.u32 %v11840_v21, %v10371_v34  ;;  %v10227_v4 = vld [vmem:[#allocation4 + $0x1638] sm:$0xf0]  ;;  %v10665_v0 = vld [vmem:[#allocation8 + $0x1a0] sm:$0xf] }
 0x30b   :  { %6016 = vmatpush.bf16.msrb.mxu3 %v10438_v40  ;;  %v12521_v42 = vadd.f32 %v5764_v16, %v5752_v14  ;;  %v11772_v40 = vld [vmem:[#allocation4 + $0x152c] sm:$0xf]  ;;  %v10355_v46 = vld [vmem:[#allocation4 + $0x1738] sm:$0xf0]  ;;  %v11917_v63 = vld [vmem:[#allocation8 + $0x1ac] sm:$0xf0] }
 0x30c   :  { %5978 = vmatpush.bf16.msrb.mxu0 %v10038_v45  ;;  %v11804_v18 = vld [vmem:[#allocation4 + $0x162c] sm:$0xf]  ;;  %v10102_v24 = vor.u32 %v11772_v40, %v10099_v41  ;;  %v9955_v13 = vld [vmem:[#allocation4 + $0x1418] sm:$0xf0]  ;;  %v10521_v6 = vld [vmem:[#allocation8 + $0x80] sm:$0xf] }
 0x30d   :  { %5991 = vmatpush.bf16.msrb.mxu1 %v10166_v47  ;;  %v11836_v45 = vld [vmem:[#allocation4 + $0x172c] sm:$0xf]  ;;  %v9974_v47 = vor.u32 %v11740_v30, %v9971_v33  ;;  %v10230_v12 = vor.u32 %v11804_v18, %v10227_v4  ;;  %v10211_v49 = vld [vmem:[#allocation4 + $0x1618] sm:$0xf0]  ;;  %v11881_v7 = vld [vmem:[#allocation8 + $0x8c] sm:$0xf0] }
 0x30e   :  { %6004 = vmatpush.bf16.msrb.mxu2 %v10294_v22  ;;  %v11736_v22 = vld [vmem:[#allocation4 + $0x140c] sm:$0xf]  ;;  %v10358_v27 = vor.u32 %v11836_v45, %v10355_v46  ;;  %v10339_v50 = vld [vmem:[#allocation4 + $0x1718] sm:$0xf0]  ;;  %v10649_v11 = vld [vmem:[#allocation8 + $0x180] sm:$0xf] }
 0x30f   :  { %6017 = vmatpush.bf16.msrb.mxu3 %v10422_v48  ;;  %v11768_v23 = vld [vmem:[#allocation4 + $0x150c] sm:$0xf]  ;;  %v10083_v48 = vld [vmem:[#allocation4 + $0x1518] sm:$0xf0]  ;;  %v9958_v26 = vor.u32 %v11736_v22, %v9955_v13  ;;  %v11913_v14 = vld [vmem:[#allocation8 + $0x18c] sm:$0xf0] }
 0x310   :  { %5979 = vmatpush.bf16.msrb.mxu0 %v10022_v36  ;;  %v5753_v31 = vpop.f32.mrf.mxu2  ;;  %v11800_v32 = vld [vmem:[#allocation4 + $0x160c] sm:$0xf]  ;;  %v10086_v56 = vor.u32 %v11768_v23, %v10083_v48  ;;  %v10650_v21 = vor.u32 %v11913_v14, %v10649_v11  ;;  %v11877_v34 = vld [vmem:[#allocation8 + $0x6c] sm:$0xf0]  ;;  %v10633_v58 = vld [vmem:[#allocation8 + $0x160] sm:$0xf] }
 0x311   :  { %5992 = vmatpush.bf16.msrb.mxu1 %v10150_v20  ;;  %v11832_v19 = vld [vmem:[#allocation4 + $0x170c] sm:$0xf]  ;;  %v5766_v36 = vpop.f32.mrf.mxu3  ;;  %v10569_v20 = vld [vmem:[#allocation8 + $0xe0] sm:$0xf]  ;;  %v10214_v8 = vor.u32 %v11800_v32, %v10211_v49  ;;  %v11873_v40 = vld [vmem:[#allocation8 + $0x4c] sm:$0xf0] }
 0x312   :  { %6005 = vmatpush.bf16.msrb.mxu2 %v10278_v10  ;;  %v11893_v10 = vld [vmem:[#allocation8 + $0xec] sm:$0xf0]  ;;  %v10489_v33 = vld [vmem:[#allocation8 + $0x40] sm:$0xf]  ;;  %v10699_v54 = vld [vmem:[#allocation8 + $0x1f0] sm:$0xf0] }
 0x313   :  { %6018 = vmatpush.bf16.msrb.mxu3 %v10406_v17  ;;  %v10342_v17 = vor.u32 %v11832_v19, %v10339_v50  ;;  %v10570_v57 = vor.u32 %v11893_v10, %v10569_v20  ;;  %v11905_v41 = vld [vmem:[#allocation8 + $0x14c] sm:$0xf0]  ;;  %v10490_v45 = vor.u32 %v11873_v40, %v10489_v33  ;;  %v10473_v22 = vld [vmem:[#allocation8 + $0x20] sm:$0xf]  ;;  %v11891_v50 = vld [vmem:[#allocation8 + $0xe4] sm:$0xf] }
 0x314   :  { %5980 = vmatpush.bf16.msrb.mxu0 %v10006_v25  ;;  %v10554_v25 = vor.u32 %v11889_v44, %v10553_v9  ;;  %v10601_v13 = vld [vmem:[#allocation8 + $0x120] sm:$0xf]  ;;  %v11901_v23 = vld [vmem:[#allocation8 + $0x12c] sm:$0xf0]  ;;  %v10571_v20 = vld [vmem:[#allocation8 + $0xf0] sm:$0xf0] }
 0x315   :  { %5993 = vmatpush.bf16.msrb.mxu1 %v10134_v51  ;;  %v10682_v51 = vor.u32 %v11921_v59, %v10681_v15  ;;  %v10602_v31 = vor.u32 %v11901_v23, %v10601_v13  ;;  %v11865_v32 = vld [vmem:[#allocation8 + $0xc] sm:$0xf0]  ;;  %v10585_v49 = vld [vmem:[#allocation8 + $0x100] sm:$0xf]  ;;  %v11887_v9 = vld [vmem:[#allocation8 + $0xc4] sm:$0xf] }
 0x316   :  { %6006 = vmatpush.bf16.msrb.mxu2 %v10262_v60  ;;  %v10537_v60 = vld [vmem:[#allocation8 + $0xa0] sm:$0xf]  ;;  %v11897_v36 = vld [vmem:[#allocation8 + $0x10c] sm:$0xf0]  ;;  %v10555_v44 = vld [vmem:[#allocation8 + $0xd0] sm:$0xf0] }
 0x317   :  { %6019 = vmatpush.bf16.msrb.mxu3 %v10390_v53  ;;  %v10538_v3 = vor.u32 %v11885_v62, %v10537_v60  ;;  %v10666_v53 = vor.u32 %v11917_v63, %v10665_v0  ;;  %v11919_v15 = vld [vmem:[#allocation8 + $0x1c4] sm:$0xf]  ;;  %v10683_v59 = vld [vmem:[#allocation8 + $0x1d0] sm:$0xf0] }
 0x318   :  { %5981 = vmatpush.bf16.msrb.mxu0 %v9990_v28  ;;  %v10686_v62 = vor.u32 %v11919_v15, %v10683_v59  ;;  %v11883_v0 = vld [vmem:[#allocation8 + $0xa4] sm:$0xf]  ;;  %v10539_v63 = vld [vmem:[#allocation8 + $0xb0] sm:$0xf0]  ;;  %v11890_v15 = vld [vmem:[#allocation8 + $0xd4] sm:$0xf0] }
 0x319   :  { %5994 = vmatpush.bf16.msrb.mxu1 %v10118_v29  ;;  %v10523_v11 = vld [vmem:[#allocation8 + $0x90] sm:$0xf0]  ;;  %v11911_v14 = vld [vmem:[#allocation8 + $0x184] sm:$0xf] }
 0x31a   :  { %6007 = vmatpush.bf16.msrb.mxu2 %v10246_v37  ;;  %v11871_v40 = vld [vmem:[#allocation8 + $0x44] sm:$0xf] }
 0x31b   :  { %6020 = vmatpush.bf16.msrb.mxu3 %v10374_v39  ;;  %v10617_v39 = vld [vmem:[#allocation8 + $0x140] sm:$0xf]  ;;  %v11899_v23 = vld [vmem:[#allocation8 + $0x124] sm:$0xf] }
 0x31c   :  { %5982 = vmatpush.bf16.msrb.mxu0 %v9974_v47 }
 0x31d   :  { %5995 = vmatpush.bf16.msrb.mxu1 %v10102_v24  ;;  %v11869_v24 = vld [vmem:[#allocation8 + $0x2c] sm:$0xf0] }
 0x31e   :  { %6008 = vmatpush.bf16.msrb.mxu2 %v10230_v12  ;;  %v10474_v48 = vor.u32 %v11869_v24, %v10473_v22  ;;  %v11867_v22 = vld [vmem:[#allocation8 + $0x24] sm:$0xf]  ;;  %v10475_v24 = vld [vmem:[#allocation8 + $0x30] sm:$0xf0] }
 0x31f   :  { %6021 = vmatpush.bf16.msrb.mxu3 %v10358_v27  ;;  %v10457_v27 = vld [vmem:[#allocation8] sm:$0xf] }
 0x320   :  { %5983 = vmatpush.bf16.msrb.mxu0 %v9958_v26  ;;  %v5777_v16 = vpop.f32.mrf.mxu0  ;;  %v11923_v26 = vld [vmem:[#allocation8 + $0x1e4] sm:$0xf]  ;;  %v10458_v52 = vor.u32 %v11865_v32, %v10457_v27 }
 0x321   :  { %5996 = vmatpush.bf16.msrb.mxu1 %v10086_v56  ;;  %v5790_v28 = vpop.f32.mrf.mxu1  ;;  %v6178_v56 = vunpack.c.l.b16 %v12474_v55  ;;  %v11863_v32 = vld [vmem:[#allocation8 + $0x4] sm:$0xf] }
 0x322   :  { %6009 = vmatpush.bf16.msrb.mxu2 %v10214_v8  ;;  %v10586_v8 = vor.u32 %v11897_v36, %v10585_v49  ;;  %v10459_v49 = vld [vmem:[#allocation8 + $0x10] sm:$0xf0] }
 0x323   :  { %6022 = vmatpush.bf16.msrb.mxu3 %v10342_v17  ;;  %5984 = vmatmul.bf16.vlgmr.msrb.gmra.mxu0 %v12391_v61  ;;  %v10522_v61 = vor.u32 %v11881_v7, %v10521_v6  ;;  %v10574_v17 = vor.u32 %v11891_v50, %v10571_v20  ;;  %v11879_v7 = vld [vmem:[#allocation8 + $0x84] sm:$0xf]  ;;  %v10587_v36 = vld [vmem:[#allocation8 + $0x110] sm:$0xf0]  ;;  %v10577_v50 = vld [vmem:[#allocation8 + $0xe8] sm:$0xf] }
 0x324   :  { %6830 = vmatpush.bf16.msra.mxu0 %v10570_v57  ;;  %5997 = vmatmul.bf16.vlgmr.msrb.gmra.mxu1 %v12395_v2  ;;  %v10505_v2 = vld [vmem:[#allocation8 + $0x60] sm:$0xf]  ;;  %v6179_v57 = vunpack.c.h.b16 %v12474_v55  ;;  %v11915_v55 = vld [vmem:[#allocation8 + $0x1a4] sm:$0xf]  ;;  %v11894_v20 = vld [vmem:[#allocation8 + $0xf4] sm:$0xf0] }
 0x325   :  { %6843 = vmatpush.bf16.msra.mxu1 %v10698_v43  ;;  %6010 = vmatmul.bf16.vlgmr.msrb.gmra.mxu2 %v12393_v1  ;;  %v5778_v1 = vadd.f32 %v5777_v16, %v12521_v42  ;;  %v10506_v37 = vor.u32 %v11877_v34, %v10505_v2  ;;  %v10618_v42 = vor.u32 %v11905_v41, %v10617_v39  ;;  %v11903_v39 = vld [vmem:[#allocation8 + $0x144] sm:$0xf]  ;;  %v10619_v41 = vld [vmem:[#allocation8 + $0x150] sm:$0xf0] }
 0x326   :  { %6023 = vmatmul.bf16.vlgmr.msrb.gmra.mxu3 %v12397_v5  ;;  %v11909_v5 = vld [vmem:[#allocation8 + $0x16c] sm:$0xf0]  ;;  %v10702_v43 = vor.u32 %v11923_v26, %v10699_v54  ;;  %v12532_v60 = vpack.c.b16 %v6179_v57, %v6179_v57  ;;  %v11926_v26 = vld [vmem:[#allocation8 + $0x1f4] sm:$0xf0]  ;;  %v10561_v57 = vld [vmem:[#allocation8 + $0xc8] sm:$0xf] }
 0x327   :  { %v5791_v29 = vadd.f32 %v5790_v28, %v5778_v1  ;;  %v10634_v30 = vor.u32 %v11909_v5, %v10633_v58  ;;  %v11875_v28 = vld [vmem:[#allocation8 + $0x64] sm:$0xf]  ;;  %v10507_v58 = vld [vmem:[#allocation8 + $0x70] sm:$0xf0] }
 0x328   :  { %6831 = vmatpush.bf16.msra.mxu0 %v10554_v25  ;;  %v5803_v35 = vpop.f32.mrf.mxu2  ;;  %v5779_v47 = vpop.f32.mrf.mxu0  ;;  %v12530_v25 = vpack.c.b16 %v6178_v56, %v6178_v56  ;;  %v11907_v5 = vld [vmem:[#allocation8 + $0x164] sm:$0xf] }
 0x329   :  { %6844 = vmatpush.bf16.msra.mxu1 %v10682_v51  ;;  %v5804_v18 = vadd.f32 %v5803_v35, %v5791_v29  ;;  %v5816_v4 = vpop.f32.mrf.mxu3  ;;  %v5792_v12 = vpop.f32.mrf.mxu1  ;;  %v10558_v51 = vor.u32 %v11887_v9, %v10555_v44  ;;  %v10635_v29 = vld [vmem:[#allocation8 + $0x170] sm:$0xf0]  ;;  %v11957_v9 = vld [vmem:[#allocation8 + $0x2ec] sm:$0xf0] }
 0x32a   :  { %v10638_v33 = vor.u32 %v11907_v5, %v10635_v29  ;;  %v10491_v35 = vld [vmem:[#allocation8 + $0x50] sm:$0xf0]  ;;  %v11949_v5 = vld [vmem:[#allocation8 + $0x2ac] sm:$0xf0]  ;;  %v10921_v29 = vld [vmem:[#allocation8 + $0x3a0] sm:$0xf] }
 0x32b   :  { %v5817_v46 = vadd.f32 %v5816_v4, %v5804_v18 }
 0x32c   :  { %6832 = vmatpush.bf16.msra.mxu0 %v10538_v3  ;;  %v10667_v3 = vld [vmem:[#allocation8 + $0x1b0] sm:$0xf0] }
 0x32d   :  { %6845 = vmatpush.bf16.msra.mxu1 %v10666_v53  ;;  %v10542_v53 = vor.u32 %v11883_v0, %v10539_v63  ;;  %v10670_v6 = vor.u32 %v11915_v55, %v10667_v3  ;;  %v10689_v0 = vld [vmem:[#allocation8 + $0x1c8] sm:$0xf]  ;;  %v11922_v63 = vld [vmem:[#allocation8 + $0x1d4] sm:$0xf0]  ;;  %v10562_v3 = vor.u32 %v11890_v15, %v10561_v57  ;;  %v10745_v15 = vld [vmem:[#allocation8 + $0x240] sm:$0xf] }
 0x330   :  { %6833 = vmatpush.bf16.msra.mxu0 %v10522_v61  ;;  %v5805_v19 = vpop.f32.mrf.mxu2  ;;  %v10651_v61 = vld [vmem:[#allocation8 + $0x190] sm:$0xf0] }
 0x331   :  { %6846 = vmatpush.bf16.msra.mxu1 %v10650_v21  ;;  %v5818_v10 = vpop.f32.mrf.mxu3  ;;  %v10526_v21 = vor.u32 %v11879_v7, %v10523_v11  ;;  %v10654_v34 = vor.u32 %v11911_v14, %v10651_v61  ;;  %v11895_v19 = vld [vmem:[#allocation8 + $0x104] sm:$0xf]  ;;  %v11953_v7 = vld [vmem:[#allocation8 + $0x2cc] sm:$0xf0]  ;;  %v10690_v11 = vor.u32 %v11922_v63, %v10689_v0  ;;  %v11886_v14 = vld [vmem:[#allocation8 + $0xb4] sm:$0xf0] }
 0x332   :  { %v10705_v10 = vld [vmem:[#allocation8 + $0x1e8] sm:$0xf]  ;;  %v11870_v0 = vld [vmem:[#allocation8 + $0x34] sm:$0xf0] }
 0x333   :  { %v10706_v44 = vor.u32 %v11926_v26, %v10705_v10  ;;  %v10497_v26 = vld [vmem:[#allocation8 + $0x48] sm:$0xf] }
 0x334   :  { %6834 = vmatpush.bf16.msra.mxu0 %v10506_v37 }
 0x335   :  { %6847 = vmatpush.bf16.msra.mxu1 %v10634_v30  ;;  %v10510_v30 = vor.u32 %v11875_v28, %v10507_v58  ;;  %v10793_v58 = vld [vmem:[#allocation8 + $0x2a0] sm:$0xf] }
 0x338   :  { %6835 = vmatpush.bf16.msra.mxu0 %v10490_v45 }
 0x339   :  { %6848 = vmatpush.bf16.msra.mxu1 %v10618_v42  ;;  %v10622_v42 = vor.u32 %v11903_v39, %v10619_v41  ;;  %v10657_v39 = vld [vmem:[#allocation8 + $0x188] sm:$0xf]  ;;  %v11914_v41 = vld [vmem:[#allocation8 + $0x194] sm:$0xf0] }
 0x33c   :  { %6836 = vmatpush.bf16.msra.mxu0 %v10474_v48  ;;  %v10603_v48 = vld [vmem:[#allocation8 + $0x130] sm:$0xf0] }
 0x33d   :  { %6849 = vmatpush.bf16.msra.mxu1 %v10602_v31  ;;  %v10478_v31 = vor.u32 %v11867_v22, %v10475_v24  ;;  %v10606_v27 = vor.u32 %v11899_v23, %v10603_v48  ;;  %v10658_v22 = vor.u32 %v11914_v41, %v10657_v39  ;;  %v11878_v24 = vld [vmem:[#allocation8 + $0x74] sm:$0xf0]  ;;  %v10905_v23 = vld [vmem:[#allocation8 + $0x380] sm:$0xf]  ;;  %v11977_v48 = vld [vmem:[#allocation8 + $0x38c] sm:$0xf0] }
 0x33e   :  { %v10707_v39 = vld [vmem:[#allocation8 + $0x1f8] sm:$0xf0] }
 0x340   :  { %6837 = vmatpush.bf16.msra.mxu0 %v10458_v52  ;;  %v5829_v16 = vpop.f32.mrf.mxu0  ;;  %v10462_v52 = vor.u32 %v11863_v32, %v10459_v49  ;;  %v11910_v32 = vld [vmem:[#allocation8 + $0x174] sm:$0xf0]  ;;  %v10906_v49 = vor.u32 %v11977_v48, %v10905_v23  ;;  %v11961_v48 = vld [vmem:[#allocation8 + $0x30c] sm:$0xf0] }
 0x341   :  { %6850 = vmatpush.bf16.msra.mxu1 %v10586_v8  ;;  %v5830_v2 = vadd.f32 %v5829_v16, %v5817_v46  ;;  %v5842_v1 = vpop.f32.mrf.mxu1  ;;  %v10494_v46 = vor.u32 %v11871_v40, %v10491_v35  ;;  %v10590_v8 = vor.u32 %v11895_v19, %v10587_v36  ;;  %v10937_v16 = vld [vmem:[#allocation8 + $0x3c0] sm:$0xf]  ;;  %v10794_v40 = vor.u32 %v11949_v5, %v10793_v58  ;;  %v11981_v35 = vld [vmem:[#allocation8 + $0x3ac] sm:$0xf0]  ;;  %v10593_v58 = vld [vmem:[#allocation8 + $0x108] sm:$0xf] }
 0x342   :  { %v10761_v36 = vld [vmem:[#allocation8 + $0x260] sm:$0xf] }
 0x343   :  { %6838 = vmatmul.bf16.vlgmr.msra.gmra.mxu0 %v12530_v25  ;;  %v5843_v37 = vadd.f32 %v5842_v1, %v5830_v2  ;;  %v10673_v2 = vld [vmem:[#allocation8 + $0x1a8] sm:$0xf] }
 0x344   :  { %6882 = vmatpush.bf16.msrb.mxu0 %v10574_v17  ;;  %6851 = vmatmul.bf16.vlgmr.msra.gmra.mxu1 %v12532_v60  ;;  %v10578_v17 = vor.u32 %v11894_v20, %v10577_v50  ;;  %v11941_v50 = vld [vmem:[#allocation8 + $0x26c] sm:$0xf0]  ;;  %v10889_v20 = vld [vmem:[#allocation8 + $0x360] sm:$0xf] }
 0x345   :  { %6895 = vmatpush.bf16.msrb.mxu1 %v10702_v43  ;;  %v10825_v43 = vld [vmem:[#allocation8 + $0x2e0] sm:$0xf] }
 0x346   :  { %v10826_v59 = vor.u32 %v11957_v9, %v10825_v43 }
 0x348   :  { %6883 = vmatpush.bf16.msrb.mxu0 %v10558_v51  ;;  %v5855_v18 = vpop.f32.mrf.mxu2  ;;  %v5831_v47 = vpop.f32.mrf.mxu0  ;;  %v10953_v51 = vld [vmem:[#allocation8 + $0x3e0] sm:$0xf]  ;;  %6856 = vmatpush.bf16.msra.mxu2 %v10826_v59  ;;  %v11937_v59 = vld [vmem:[#allocation8 + $0x24c] sm:$0xf0] }
 0x349   :  { %6896 = vmatpush.bf16.msrb.mxu1 %v10686_v62  ;;  %v5856_v4 = vadd.f32 %v5855_v18, %v5843_v37  ;;  %v5868_v45 = vpop.f32.mrf.mxu3  ;;  %v5844_v12 = vpop.f32.mrf.mxu1  ;;  %v11989_v62 = vld [vmem:[#allocation8 + $0x3ec] sm:$0xf0]  ;;  %v10922_v18 = vor.u32 %v11981_v35, %v10921_v29  ;;  %v11924_v35 = vld [vmem:[#allocation8 + $0x1ec] sm:$0xf] }
 0x34a   :  { %v10954_v55 = vor.u32 %v11989_v62, %v10953_v51  ;;  %v11945_v47 = vld [vmem:[#allocation8 + $0x28c] sm:$0xf0] }
 0x34b   :  { %v12536_v13 = vadd.f32 %v5868_v45, %v5856_v4  ;;  %v10513_v45 = vld [vmem:[#allocation8 + $0x68] sm:$0xf]  ;;  %v11965_v29 = vld [vmem:[#allocation8 + $0x32c] sm:$0xf0] }
 0x34c   :  { %6884 = vmatpush.bf16.msrb.mxu0 %v10542_v53  ;;  %v10545_v53 = vld [vmem:[#allocation8 + $0xa8] sm:$0xf]  ;;  %6869 = vmatpush.bf16.msra.mxu3 %v10954_v55  ;;  %v10514_v19 = vor.u32 %v11878_v24, %v10513_v45  ;;  %v10746_v55 = vor.u32 %v11937_v59, %v10745_v15  ;;  %v10713_v45 = vld [vmem:[#allocation8 + $0x200] sm:$0xf] }
 0x34d   :  { %6897 = vmatpush.bf16.msrb.mxu1 %v10670_v6  ;;  %v10809_v6 = vld [vmem:[#allocation8 + $0x2c0] sm:$0xf]  ;;  %v10546_v28 = vor.u32 %v11886_v14, %v10545_v53  ;;  %v11969_v53 = vld [vmem:[#allocation8 + $0x34c] sm:$0xf0] }
 0x34e   :  { %v10810_v61 = vor.u32 %v11953_v7, %v10809_v6  ;;  %v10609_v6 = vld [vmem:[#allocation8 + $0x128] sm:$0xf]  ;;  %v11902_v7 = vld [vmem:[#allocation8 + $0x134] sm:$0xf0] }
 0x350   :  { %6885 = vmatpush.bf16.msrb.mxu0 %v10526_v21  ;;  %v5857_v54 = vpop.f32.mrf.mxu2  ;;  %v11985_v21 = vld [vmem:[#allocation8 + $0x3cc] sm:$0xf0]  ;;  %6857 = vmatpush.bf16.msra.mxu2 %v10810_v61  ;;  %v10465_v61 = vld [vmem:[#allocation8 + $0x8] sm:$0xf] }
 0x351   :  { %6898 = vmatpush.bf16.msrb.mxu1 %v10654_v34  ;;  %v5870_v56 = vpop.f32.mrf.mxu3  ;;  %v11918_v34 = vld [vmem:[#allocation8 + $0x1b4] sm:$0xf0]  ;;  %v10938_v1 = vor.u32 %v11985_v21, %v10937_v16  ;;  %v10729_v21 = vld [vmem:[#allocation8 + $0x220] sm:$0xf] }
 0x352   :  { %v10674_v37 = vor.u32 %v11918_v34, %v10673_v2  ;;  %v11874_v54 = vld [vmem:[#allocation8 + $0x54] sm:$0xf0]  ;;  %v11973_v56 = vld [vmem:[#allocation8 + $0x36c] sm:$0xf0]  ;;  %v10857_v34 = vld [vmem:[#allocation8 + $0x320] sm:$0xf] }
 0x353   :  { %6870 = vmatpush.bf16.msra.mxu3 %v10938_v1  ;;  %v10890_v57 = vor.u32 %v11973_v56, %v10889_v20  ;;  %v10498_v9 = vor.u32 %v11874_v54, %v10497_v26  ;;  %v11933_v2 = vld [vmem:[#allocation8 + $0x22c] sm:$0xf0]  ;;  %v10610_v1 = vor.u32 %v11902_v7, %v10609_v6  ;;  %v11987_v20 = vld [vmem:[#allocation8 + $0x3e4] sm:$0xf]  ;;  %v11920_v26 = vld [vmem:[#allocation8 + $0x1cc] sm:$0xf] }
 0x354   :  { %6886 = vmatpush.bf16.msrb.mxu0 %v10510_v30  ;;  %v10529_v30 = vld [vmem:[#allocation8 + $0x88] sm:$0xf]  ;;  %6858 = vmatpush.bf16.msra.mxu2 %v10794_v40  ;;  %v10730_v5 = vor.u32 %v11933_v2, %v10729_v21  ;;  %v10858_v40 = vor.u32 %v11965_v29, %v10857_v34  ;;  %v10691_v54 = vld [vmem:[#allocation8 + $0x1d8] sm:$0xf0]  ;;  %v11884_v56 = vld [vmem:[#allocation8 + $0xac] sm:$0xf] }
 0x355   :  { %6899 = vmatpush.bf16.msrb.mxu1 %v10638_v33  ;;  %v11882_v33 = vld [vmem:[#allocation8 + $0x94] sm:$0xf0]  ;;  %v10694_v15 = vor.u32 %v11920_v26, %v10691_v54  ;;  %v11979_v7 = vld [vmem:[#allocation8 + $0x3a4] sm:$0xf]  ;;  %v10531_v21 = vld [vmem:[#allocation8 + $0x98] sm:$0xf0] }
 0x356   :  { %v10530_v4 = vor.u32 %v11882_v33, %v10529_v30  ;;  %v11892_v30 = vld [vmem:[#allocation8 + $0xec] sm:$0xf]  ;;  %v10579_v33 = vld [vmem:[#allocation8 + $0xf8] sm:$0xf0]  ;;  %v11975_v29 = vld [vmem:[#allocation8 + $0x384] sm:$0xf] }
 0x357   :  { %6871 = vmatpush.bf16.msra.mxu3 %v10922_v18  ;;  %v11888_v18 = vld [vmem:[#allocation8 + $0xcc] sm:$0xf]  ;;  %v10582_v24 = vor.u32 %v11892_v30, %v10579_v33  ;;  %v10659_v34 = vld [vmem:[#allocation8 + $0x198] sm:$0xf0]  ;;  %v11967_v26 = vld [vmem:[#allocation8 + $0x344] sm:$0xf] }
 0x358   :  { %6887 = vmatpush.bf16.msrb.mxu0 %v10494_v46  ;;  %v10777_v46 = vld [vmem:[#allocation8 + $0x280] sm:$0xf]  ;;  %v11912_v2 = vld [vmem:[#allocation8 + $0x18c] sm:$0xf]  ;;  %v10515_v33 = vld [vmem:[#allocation8 + $0x78] sm:$0xf0] }
 0x359   :  { %6900 = vmatpush.bf16.msrb.mxu1 %v10622_v42  ;;  %v10778_v12 = vor.u32 %v11945_v47, %v10777_v46  ;;  %v11929_v46 = vld [vmem:[#allocation8 + $0x20c] sm:$0xf0]  ;;  %v10841_v47 = vld [vmem:[#allocation8 + $0x300] sm:$0xf]  ;;  %v11876_v30 = vld [vmem:[#allocation8 + $0x6c] sm:$0xf] }
 0x35a   :  { %v10714_v23 = vor.u32 %v11929_v46, %v10713_v45  ;;  %v10518_v46 = vor.u32 %v11876_v30, %v10515_v33  ;;  %v10843_v30 = vld [vmem:[#allocation8 + $0x310] sm:$0xf0] }
 0x35b   :  { %6859 = vmatpush.bf16.msra.mxu2 %v10778_v12  ;;  %6872 = vmatpush.bf16.msra.mxu3 %v10906_v49  ;;  %v10710_v49 = vor.u32 %v11924_v35, %v10707_v39  ;;  %v10907_v35 = vld [vmem:[#allocation8 + $0x390] sm:$0xf0] }
 0x35c   :  { %6888 = vmatpush.bf16.msrb.mxu0 %v10478_v31 }
 0x35d   :  { %6901 = vmatpush.bf16.msrb.mxu1 %v10606_v27  ;;  %v10641_v27 = vld [vmem:[#allocation8 + $0x168] sm:$0xf] }
 0x35e   :  { %v10642_v10 = vor.u32 %v11910_v32, %v10641_v27  ;;  %v11955_v27 = vld [vmem:[#allocation8 + $0x2e4] sm:$0xf]  ;;  %v10827_v32 = vld [vmem:[#allocation8 + $0x2f0] sm:$0xf0] }
 0x35f   :  { %6873 = vmatpush.bf16.msra.mxu3 %v10890_v57  ;;  %v11951_v57 = vld [vmem:[#allocation8 + $0x2c4] sm:$0xf] }
 0x360   :  { %6889 = vmatpush.bf16.msrb.mxu0 %v10462_v52  ;;  %v12540_v42 = vpop.f32.mrf.mxu0  ;;  %v10762_v52 = vor.u32 %v11941_v50, %v10761_v36  ;;  %v10842_v36 = vor.u32 %v11961_v48, %v10841_v47  ;;  %v10830_v50 = vor.u32 %v11955_v27, %v10827_v32  ;;  %v11939_v47 = vld [vmem:[#allocation8 + $0x264] sm:$0xf]  ;;  %v10499_v48 = vld [vmem:[#allocation8 + $0x58] sm:$0xf0]  ;;  %v10891_v32 = vld [vmem:[#allocation8 + $0x370] sm:$0xf0] }
 0x361   :  { %6902 = vmatpush.bf16.msrb.mxu1 %v10590_v8  ;;  %v12542_v31 = vpop.f32.mrf.mxu1  ;;  %v10625_v8 = vld [vmem:[#allocation8 + $0x148] sm:$0xf]  ;;  %v5882_v54 = vadd.f32 %v12540_v42, %v12536_v13  ;;  %v11963_v13 = vld [vmem:[#allocation8 + $0x324] sm:$0xf] }
 0x362   :  { %6860 = vmatpush.bf16.msra.mxu2 %v10762_v52 }
 0x363   :  { %6890 = vmatmul.bf16.vlgmr.msrb.gmra.mxu0 %v12530_v25  ;;  %v5895_v42 = vadd.f32 %v12542_v31, %v5882_v54 }
 0x364   :  { %6934 = vmatpush.bf16.msra.mxu0 %v10578_v17  ;;  %6903 = vmatmul.bf16.vlgmr.msrb.gmra.mxu1 %v12532_v60  ;;  %v11906_v17 = vld [vmem:[#allocation8 + $0x154] sm:$0xf0] }
 0x365   :  { %6947 = vmatpush.bf16.msra.mxu1 %v10706_v44  ;;  %v10481_v44 = vld [vmem:[#allocation8 + $0x28] sm:$0xf]  ;;  %v10626_v62 = vor.u32 %v11906_v17, %v10625_v8  ;;  %v10547_v8 = vld [vmem:[#allocation8 + $0xb8] sm:$0xf0] }
 0x366   :  { %6861 = vmatpush.bf16.msra.mxu2 %v10746_v55  ;;  %v10482_v16 = vor.u32 %v11870_v0, %v10481_v44  ;;  %v11983_v44 = vld [vmem:[#allocation8 + $0x3c4] sm:$0xf]  ;;  %v11916_v55 = vld [vmem:[#allocation8 + $0x1ac] sm:$0xf] }
 0x367   :  { %v11947_v0 = vld [vmem:[#allocation8 + $0x2a4] sm:$0xf] }
 0x368   :  { %6935 = vmatpush.bf16.msra.mxu0 %v10562_v3  ;;  %v12544_v43 = vpop.f32.mrf.mxu2  ;;  %v5883_v63 = vpop.f32.mrf.mxu0  ;;  %v10873_v3 = vld [vmem:[#allocation8 + $0x340] sm:$0xf] }
 0x369   :  { %6948 = vmatpush.bf16.msra.mxu1 %v10690_v11  ;;  %v12546_v51 = vpop.f32.mrf.mxu3  ;;  %v5896_v11 = vpop.f32.mrf.mxu1  ;;  %v10874_v14 = vor.u32 %v11969_v53, %v10873_v3  ;;  %v10795_v63 = vld [vmem:[#allocation8 + $0x2b0] sm:$0xf0]  ;;  %v10675_v3 = vld [vmem:[#allocation8 + $0x1b8] sm:$0xf0] }
 0x36a   :  { %6862 = vmatpush.bf16.msra.mxu2 %v10730_v5  ;;  %v10798_v6 = vor.u32 %v11947_v0, %v10795_v63  ;;  %v10923_v11 = vld [vmem:[#allocation8 + $0x3b0] sm:$0xf0] }
 0x36b   :  { %6874 = vmatpush.bf16.msra.mxu3 %v10874_v14  ;;  %v10550_v14 = vor.u32 %v11884_v56, %v10547_v8  ;;  %v10779_v5 = vld [vmem:[#allocation8 + $0x290] sm:$0xf0]  ;;  %v11868_v8 = vld [vmem:[#allocation8 + $0x2c] sm:$0xf] }
 0x36c   :  { %6936 = vmatpush.bf16.msra.mxu0 %v10546_v28  ;;  %v11866_v28 = vld [vmem:[#allocation8 + $0x14] sm:$0xf0] }
 0x36d   :  { %6949 = vmatpush.bf16.msra.mxu1 %v10674_v37  ;;  %v11898_v37 = vld [vmem:[#allocation8 + $0x114] sm:$0xf0]  ;;  %v10466_v41 = vor.u32 %v11866_v28, %v10465_v61  ;;  %v10678_v61 = vor.u32 %v11916_v55, %v10675_v3  ;;  %v11931_v3 = vld [vmem:[#allocation8 + $0x224] sm:$0xf] }
 0x36e   :  { %6863 = vmatpush.bf16.msra.mxu2 %v10714_v23  ;;  %v11872_v23 = vld [vmem:[#allocation8 + $0x4c] sm:$0xf] }
 0x36f   :  { %6875 = vmatpush.bf16.msra.mxu3 %v10858_v40 }
 0x370   :  { %6937 = vmatpush.bf16.msra.mxu0 %v10530_v4  ;;  %v5909_v4 = vpop.f32.mrf.mxu2 }
 0x371   :  { %6950 = vmatpush.bf16.msra.mxu1 %v10658_v22  ;;  %v10594_v22 = vor.u32 %v11898_v37, %v10593_v58  ;;  %v5922_v12 = vpop.f32.mrf.mxu3  ;;  %v11943_v58 = vld [vmem:[#allocation8 + $0x284] sm:$0xf]  ;;  %v10662_v37 = vor.u32 %v11912_v2, %v10659_v34  ;;  %v10910_v4 = vor.u32 %v11975_v29, %v10907_v35  ;;  %v5908_v34 = vadd.f32 %v12544_v43, %v5895_v42  ;;  %v11946_v42 = vld [vmem:[#allocation8 + $0x294] sm:$0xf0] }
 0x372   :  { %6908 = vmatpush.bf16.msrb.mxu2 %v10830_v50  ;;  %v10782_v40 = vor.u32 %v11943_v58, %v10779_v5  ;;  %v10502_v50 = vor.u32 %v11872_v23, %v10499_v48  ;;  %v10715_v58 = vld [vmem:[#allocation8 + $0x210] sm:$0xf0]  ;;  %v11959_v5 = vld [vmem:[#allocation8 + $0x304] sm:$0xf] }
 0x373   :  { %6876 = vmatpush.bf16.msra.mxu3 %v10842_v36  ;;  %v5921_v35 = vadd.f32 %v12546_v51, %v5908_v34  ;;  %v10897_v34 = vld [vmem:[#allocation8 + $0x368] sm:$0xf] }
 0x374   :  { %6938 = vmatpush.bf16.msra.mxu0 %v10514_v19  ;;  %v10563_v19 = vld [vmem:[#allocation8 + $0xd8] sm:$0xf0] }
 0x375   :  { %6951 = vmatpush.bf16.msra.mxu1 %v10642_v10  ;;  %v10955_v10 = vld [vmem:[#allocation8 + $0x3f0] sm:$0xf0]  ;;  %v10566_v17 = vor.u32 %v11888_v18, %v10563_v19  ;;  %v10643_v18 = vld [vmem:[#allocation8 + $0x178] sm:$0xf0] }
 0x376   :  { %v10958_v52 = vor.u32 %v11987_v20, %v10955_v10  ;;  %v10627_v19 = vld [vmem:[#allocation8 + $0x158] sm:$0xf0]  ;;  %v11935_v20 = vld [vmem:[#allocation8 + $0x244] sm:$0xf]  ;;  %v10747_v10 = vld [vmem:[#allocation8 + $0x250] sm:$0xf0] }
 0x378   :  { %6939 = vmatpush.bf16.msra.mxu0 %v10498_v9  ;;  %v10811_v9 = vld [vmem:[#allocation8 + $0x2d0] sm:$0xf0]  ;;  %6921 = vmatpush.bf16.msrb.mxu3 %v10958_v52 }
 0x379   :  { %6952 = vmatpush.bf16.msra.mxu1 %v10626_v62  ;;  %v10814_v59 = vor.u32 %v11951_v57, %v10811_v9  ;;  %v10939_v62 = vld [vmem:[#allocation8 + $0x3d0] sm:$0xf0]  ;;  %v10750_v57 = vor.u32 %v11935_v20, %v10747_v10 }
 0x37a   :  { %v10942_v53 = vor.u32 %v11983_v44, %v10939_v62  ;;  %v10875_v9 = vld [vmem:[#allocation8 + $0x350] sm:$0xf0] }
 0x37b   :  { %6909 = vmatpush.bf16.msrb.mxu2 %v10814_v59  ;;  %v10611_v59 = vld [vmem:[#allocation8 + $0x138] sm:$0xf0]  ;;  %v10878_v0 = vor.u32 %v11967_v26, %v10875_v9  ;;  %v10945_v9 = vld [vmem:[#allocation8 + $0x3c8] sm:$0xf] }
 0x37c   :  { %6940 = vmatpush.bf16.msra.mxu0 %v10482_v16  ;;  %v11880_v16 = vld [vmem:[#allocation8 + $0x8c] sm:$0xf]  ;;  %6922 = vmatpush.bf16.msrb.mxu3 %v10942_v53  ;;  %v10731_v53 = vld [vmem:[#allocation8 + $0x230] sm:$0xf0] }
 0x37d   :  { %6953 = vmatpush.bf16.msra.mxu1 %v10610_v1  ;;  %v10926_v1 = vor.u32 %v11979_v7, %v10923_v11  ;;  %v10534_v28 = vor.u32 %v11880_v16, %v10531_v21  ;;  %v11864_v7 = vld [vmem:[#allocation8 + $0xc] sm:$0xf]  ;;  %v10467_v11 = vld [vmem:[#allocation8 + $0x18] sm:$0xf0] }
 0x37e   :  { %v11896_v16 = vld [vmem:[#allocation8 + $0x10c] sm:$0xf]  ;;  %v10595_v21 = vld [vmem:[#allocation8 + $0x118] sm:$0xf0] }
 0x37f   :  { %6910 = vmatpush.bf16.msrb.mxu2 %v10798_v6  ;;  %v10598_v31 = vor.u32 %v11896_v16, %v10595_v21  ;;  %v10769_v16 = vld [vmem:[#allocation8 + $0x268] sm:$0xf] }
 0x380   :  { %6941 = vmatpush.bf16.msra.mxu0 %v10466_v41  ;;  %v12550_v39 = vpop.f32.mrf.mxu0  ;;  %v11908_v41 = vld [vmem:[#allocation8 + $0x16c] sm:$0xf]  ;;  %6923 = vmatpush.bf16.msrb.mxu3 %v10926_v1  ;;  %v10470_v1 = vor.u32 %v11864_v7, %v10467_v11  ;;  %v11978_v7 = vld [vmem:[#allocation8 + $0x394] sm:$0xf0] }
 0x381   :  { %6954 = vmatpush.bf16.msra.mxu1 %v10594_v22  ;;  %v12552_v45 = vpop.f32.mrf.mxu1  ;;  %v10763_v22 = vld [vmem:[#allocation8 + $0x270] sm:$0xf0]  ;;  %v10646_v12 = vor.u32 %v11908_v41, %v10643_v18  ;;  %v5934_v43 = vadd.f32 %v12550_v39, %v5921_v35 }
 0x382   :  { %v10766_v27 = vor.u32 %v11939_v47, %v10763_v22 }
 0x383   :  { %6942 = vmatmul.bf16.vlgmr.msra.gmra.mxu0 %v12530_v25  ;;  %6911 = vmatpush.bf16.msrb.mxu2 %v10782_v40  ;;  %v10846_v40 = vor.u32 %v11959_v5, %v10843_v30  ;;  %v5947_v41 = vadd.f32 %v12552_v45, %v5934_v43  ;;  %v11990_v45 = vld [vmem:[#allocation8 + $0x3f4] sm:$0xf0] }
 0x384   :  { %6986 = vmatpush.bf16.msrb.mxu0 %v10582_v24  ;;  %6955 = vmatmul.bf16.vlgmr.msra.gmra.mxu1 %v12532_v60  ;;  %v11971_v24 = vld [vmem:[#allocation8 + $0x364] sm:$0xf]  ;;  %v11938_v30 = vld [vmem:[#allocation8 + $0x254] sm:$0xf0] }
 0x385   :  { %6999 = vmatpush.bf16.msrb.mxu1 %v10710_v49  ;;  %v11904_v49 = vld [vmem:[#allocation8 + $0x14c] sm:$0xf]  ;;  %6924 = vmatpush.bf16.msrb.mxu3 %v10910_v4  ;;  %v10894_v36 = vor.u32 %v11971_v24, %v10891_v32  ;;  %v6030_v32 = vmax.f32 %v12515_v38, 0.0  ;;  %v11986_v38 = vld [vmem:[#allocation8 + $0x3d4] sm:$0xf0] }
 0x386   :  { %v10630_v56 = vor.u32 %v11904_v49, %v10627_v19 }
 0x387   :  { %6912 = vmatpush.bf16.msrb.mxu2 %v10766_v27 }
 0x388   :  { %6987 = vmatpush.bf16.msrb.mxu0 %v10566_v17  ;;  %v5959_v52 = vpop.f32.mrf.mxu2  ;;  %v10483_v17 = vld [vmem:[#allocation8 + $0x38] sm:$0xf0]  ;;  %v5935_v62 = vpop.f32.mrf.mxu0 }
 0x389   :  { %7000 = vmatpush.bf16.msrb.mxu1 %v10694_v15  ;;  %v5972_v44 = vpop.f32.mrf.mxu3  ;;  %v11900_v15 = vld [vmem:[#allocation8 + $0x12c] sm:$0xf]  ;;  %6925 = vmatpush.bf16.msrb.mxu3 %v10894_v36  ;;  %v5948_v63 = vpop.f32.mrf.mxu1  ;;  %v10486_v55 = vor.u32 %v11868_v8, %v10483_v17  ;;  %v5960_v18 = vadd.f32 %v5959_v52, %v5947_v41  ;;  %v10961_v36 = vld [vmem:[#allocation8 + $0x3e8] sm:$0xf]  ;;  %v11950_v62 = vld [vmem:[#allocation8 + $0x2b4] sm:$0xf0] }
 0x38a   :  { %v10614_v6 = vor.u32 %v11900_v15, %v10611_v59  ;;  %v10962_v52 = vor.u32 %v11990_v45, %v10961_v36  ;;  %v10946_v15 = vor.u32 %v11986_v38, %v10945_v9  ;;  %v10801_v59 = vld [vmem:[#allocation8 + $0x2a8] sm:$0xf]  ;;  %v11982_v63 = vld [vmem:[#allocation8 + $0x3b4] sm:$0xf0]  ;;  %v11980_v9 = vld [vmem:[#allocation8 + $0x3ac] sm:$0xf] }
 0x38b   :  { %6913 = vmatpush.bf16.msrb.mxu2 %v10750_v57  ;;  %v5973_v4 = vadd.f32 %v5972_v44, %v5960_v18  ;;  %v11954_v57 = vld [vmem:[#allocation8 + $0x2d4] sm:$0xf0]  ;;  %v10737_v41 = vld [vmem:[#allocation8 + $0x228] sm:$0xf]  ;;  %v10931_v38 = vld [vmem:[#allocation8 + $0x3b8] sm:$0xf0] }
 0x38c   :  { %6988 = vmatpush.bf16.msrb.mxu0 %v10550_v14  ;;  %v10734_v14 = vor.u32 %v11931_v3, %v10731_v53  ;;  %v10802_v3 = vor.u32 %v11950_v62, %v10801_v59  ;;  %v11944_v59 = vld [vmem:[#allocation8 + $0x28c] sm:$0xf]  ;;  %v10787_v62 = vld [vmem:[#allocation8 + $0x298] sm:$0xf0] }
 0x38d   :  { %7001 = vmatpush.bf16.msrb.mxu1 %v10678_v61  ;;  %v10859_v61 = vld [vmem:[#allocation8 + $0x330] sm:$0xf0]  ;;  %6926 = vmatpush.bf16.msrb.mxu3 %v10878_v0  ;;  %v10929_v0 = vld [vmem:[#allocation8 + $0x3a8] sm:$0xf] }
 0x38e   :  { %v10862_v2 = vor.u32 %v11963_v13, %v10859_v61  ;;  %v10930_v53 = vor.u32 %v11982_v63, %v10929_v0  ;;  %v10785_v13 = vld [vmem:[#allocation8 + $0x288] sm:$0xf]  ;;  %v11976_v0 = vld [vmem:[#allocation8 + $0x38c] sm:$0xf]  ;;  %v10915_v63 = vld [vmem:[#allocation8 + $0x398] sm:$0xf0] }
 0x38f   :  { %6914 = vmatpush.bf16.msrb.mxu2 %v10734_v14  ;;  %v10786_v14 = vor.u32 %v11946_v42, %v10785_v13  ;;  %v10918_v13 = vor.u32 %v11976_v0, %v10915_v63  ;;  %v11940_v42 = vld [vmem:[#allocation8 + $0x26c] sm:$0xf]  ;;  %v11991_v0 = vld [vmem:[#allocation11] sm:$0xff] }
 0x390   :  { %6989 = vmatpush.bf16.msrb.mxu0 %v10534_v28  ;;  %v11927_v28 = vld [vmem:[#allocation8 + $0x204] sm:$0xf]  ;;  %v5961_v29 = vpop.f32.mrf.mxu2 }
 0x391   :  { %7002 = vmatpush.bf16.msrb.mxu1 %v10662_v37  ;;  %v10718_v37 = vor.u32 %v11927_v28, %v10715_v58  ;;  %v5974_v33 = vpop.f32.mrf.mxu3  ;;  %6927 = vmatpush.bf16.msrb.mxu3 %v10862_v2  ;;  %v11942_v2 = vld [vmem:[#allocation8 + $0x274] sm:$0xf0]  ;;  %v11999_v63 = vld [vmem:[#allocation11 + $0x40] sm:$0xff] }
 0x392   :  { %v10881_v33 = vld [vmem:[#allocation8 + $0x348] sm:$0xf] }
 0x393   :  { %6915 = vmatpush.bf16.msrb.mxu2 %v10718_v37  ;;  %v10753_v37 = vld [vmem:[#allocation8 + $0x248] sm:$0xf] }
 0x394   :  { %6990 = vmatpush.bf16.msrb.mxu0 %v10518_v46  ;;  %v10754_v35 = vor.u32 %v11938_v30, %v10753_v37  ;;  %v11932_v30 = vld [vmem:[#allocation8 + $0x22c] sm:$0xf] }
 0x395   :  { %7003 = vmatpush.bf16.msrb.mxu1 %v10646_v12  ;;  %6928 = vmatpush.bf16.msrb.mxu3 %v10846_v40  ;;  %v11970_v40 = vld [vmem:[#allocation8 + $0x354] sm:$0xf0] }
 0x396   :  { %v10882_v43 = vor.u32 %v11970_v40, %v10881_v33  ;;  %v10739_v40 = vld [vmem:[#allocation8 + $0x238] sm:$0xf0] }
 0x398   :  { %6991 = vmatpush.bf16.msrb.mxu0 %v10502_v50 }
 0x399   :  { %7004 = vmatpush.bf16.msrb.mxu1 %v10630_v56  ;;  %v10817_v56 = vld [vmem:[#allocation8 + $0x2c8] sm:$0xf] }
 0x39a   :  { %v10818_v44 = vor.u32 %v11954_v57, %v10817_v56  ;;  %v11948_v56 = vld [vmem:[#allocation8 + $0x2ac] sm:$0xf]  ;;  %v10803_v57 = vld [vmem:[#allocation8 + $0x2b8] sm:$0xf0] }
 0x39c   :  { %6992 = vmatpush.bf16.msrb.mxu0 %v10486_v55  ;;  %v12570_v55 = vld [vmem:[#allocation9] sm:$0xf] }
 0x39d   :  { %7005 = vmatpush.bf16.msrb.mxu1 %v10614_v6  ;;  %v10913_v6 = vld [vmem:[#allocation8 + $0x388] sm:$0xf]  ;;  %v6168_v11 = vperm.slane %v12570_v55, 0 }
 0x39e   :  { %v10914_v61 = vor.u32 %v11978_v7, %v10913_v6  ;;  %v10771_v7 = vld [vmem:[#allocation8 + $0x278] sm:$0xf0] }
 0x3a0   :  { %6993 = vmatpush.bf16.msrb.mxu0 %v10470_v1  ;;  %v5985_v46 = vpop.f32.mrf.mxu0  ;;  %v11974_v1 = vld [vmem:[#allocation8 + $0x374] sm:$0xf0] }
 0x3a1   :  { %7006 = vmatpush.bf16.msrb.mxu1 %v10598_v31  ;;  %v5998_v47 = vpop.f32.mrf.mxu1  ;;  %v5986_v22 = vadd.f32 %v5985_v46, %v5973_v4  ;;  %v10770_v31 = vor.u32 %v11942_v2, %v10769_v16  ;;  %v10898_v29 = vor.u32 %v11974_v1, %v10897_v34  ;;  %v11934_v4 = vld [vmem:[#allocation8 + $0x234] sm:$0xf0]  ;;  %v10865_v46 = vld [vmem:[#allocation8 + $0x328] sm:$0xf]  ;;  %v10774_v2 = vor.u32 %v11940_v42, %v10771_v7  ;;  %v11936_v1 = vld [vmem:[#allocation8 + $0x24c] sm:$0xf] }
 0x3a2   :  { %v12022_v7 = vld [vmem:[#allocation11 + $0xf8] sm:$0xff] }
 0x3a3   :  { %6994 = vmatmul.bf16.vlgmr.msrb.gmra.mxu0 %v12530_v25  ;;  %v5999_v24 = vadd.f32 %v5998_v47, %v5986_v22  ;;  %v10833_v25 = vld [vmem:[#allocation8 + $0x2e8] sm:$0xf]  ;;  %v11966_v47 = vld [vmem:[#allocation8 + $0x334] sm:$0xf0] }
 0x3a4   :  { %7007 = vmatmul.bf16.vlgmr.msrb.gmra.mxu1 %v12532_v60  ;;  %v11958_v60 = vld [vmem:[#allocation8 + $0x2f4] sm:$0xf0] }
 0x3a5   :  { %v10834_v54 = vor.u32 %v11958_v60, %v10833_v25  ;;  %v10963_v25 = vld [vmem:[#allocation8 + $0x3f8] sm:$0xf0] }
 0x3a8   :  { %v6011_v12 = vpop.f32.mrf.mxu2  ;;  %v5987_v48 = vpop.f32.mrf.mxu0 }
 0x3a9   :  { %v6012_v51 = vadd.f32 %v6011_v12, %v5999_v24  ;;  %v6024_v23 = vpop.f32.mrf.mxu3  ;;  %v6000_v27 = vpop.f32.mrf.mxu1  ;;  %v10738_v24 = vor.u32 %v11934_v4, %v10737_v41  ;;  %v10866_v12 = vor.u32 %v11966_v47, %v10865_v46  ;;  %v10849_v48 = vld [vmem:[#allocation8 + $0x308] sm:$0xf]  ;;  %v11928_v46 = vld [vmem:[#allocation8 + $0x20c] sm:$0xf]  ;;  %v10723_v47 = vld [vmem:[#allocation8 + $0x218] sm:$0xf0] }
 0x3aa   :  { %v11962_v27 = vld [vmem:[#allocation8 + $0x314] sm:$0xf0] }
 0x3ab   :  { %v6025_v39 = vadd.f32 %v6024_v23, %v6012_v51  ;;  %v10721_v51 = vld [vmem:[#allocation8 + $0x208] sm:$0xf]  ;;  %v11930_v23 = vld [vmem:[#allocation8 + $0x214] sm:$0xf0]  ;;  %v10850_v60 = vor.u32 %v11962_v27, %v10849_v48 }
 0x3ad   :  { %v6031_v49 = vmax.f32 %v6025_v39, 0.0  ;;  %v11956_v39 = vld [vmem:[#allocation8 + $0x2ec] sm:$0xf] }
 0x3af   :  { %v6033_v19 = vpack.c.bf16 %v6031_v49, %v6030_v32  ;;  %v10835_v32 = vld [vmem:[#allocation8 + $0x2f8] sm:$0xf0]  ;;  %v11988_v49 = vld [vmem:[#allocation8 + $0x3ec] sm:$0xf] }
 0x3b0   :  { %v6013_v50 = vpop.f32.mrf.mxu2  ;;  %v10838_v36 = vor.u32 %v11956_v39, %v10835_v32  ;;  %v10966_v45 = vor.u32 %v11988_v49, %v10963_v25  ;;  %v11998_v49 = vld [vmem:[#allocation11 + $0x38] sm:$0xff] }
 0x3b1   :  { %v6180_v20 = vunpack.c.l.b16 %v6033_v19  ;;  %v6181_v10 = vunpack.c.h.b16 %v6033_v19  ;;  %v6026_v26 = vpop.f32.mrf.mxu3  ;;  %v10722_v19 = vor.u32 %v11930_v23, %v10721_v51  ;;  %v11952_v50 = vld [vmem:[#allocation8 + $0x2cc] sm:$0xf]  ;;  %v6170_v23 = vperm.slane %v12570_v55, 2  ;;  %v12006_v25 = vld [vmem:[#allocation11 + $0x78] sm:$0xff]  ;;  %7322 = vmatpush.bf16.msra.mxu0 %v11998_v49 }
 0x3b2   :  { %v10947_v26 = vld [vmem:[#allocation8 + $0x3d8] sm:$0xf0]  ;;  %7335 = vmatpush.bf16.msra.mxu1 %v12006_v25 }
 0x3b3   :  { %v12564_v8 = vpack.c.b16 %v6180_v20, %v6180_v20  ;;  %v12566_v17 = vpack.c.b16 %v6181_v10, %v6181_v10  ;;  %v10819_v20 = vld [vmem:[#allocation8 + $0x2d8] sm:$0xf0]  ;;  %v11984_v10 = vld [vmem:[#allocation8 + $0x3cc] sm:$0xf] }
 0x3b5   :  { %6864 = vmatmul.bf16.vlgmr.msra.gmra.mxu2 %v12564_v8  ;;  %6877 = vmatmul.bf16.vlgmr.msra.gmra.mxu3 %v12566_v17 }
 0x3b6   :  { %6960 = vmatpush.bf16.msra.mxu2 %v10834_v54  ;;  %6973 = vmatpush.bf16.msra.mxu3 %v10962_v52  ;;  %v10822_v54 = vor.u32 %v11952_v50, %v10819_v20  ;;  %v10950_v52 = vor.u32 %v11984_v10, %v10947_v26  ;;  %v12005_v10 = vld [vmem:[#allocation11 + $0x70] sm:$0xff]  ;;  %v11996_v26 = vld [vmem:[#allocation11 + $0x28] sm:$0xff] }
 0x3b7   :  { %7336 = vmatpush.bf16.msra.mxu1 %v12005_v10 }
 0x3ba   :  { %6961 = vmatpush.bf16.msra.mxu2 %v10818_v44  ;;  %6974 = vmatpush.bf16.msra.mxu3 %v10946_v15  ;;  %v10806_v44 = vor.u32 %v11948_v56, %v10803_v57  ;;  %v10934_v15 = vor.u32 %v11980_v9, %v10931_v38  ;;  %v11995_v57 = vld [vmem:[#allocation11 + $0x20] sm:$0xff]  ;;  %v12002_v38 = vld [vmem:[#allocation11 + $0x58] sm:$0xff] }
 0x3bb   :  { %v12003_v9 = vld [vmem:[#allocation11 + $0x60] sm:$0xff] }
 0x3be   :  { %6962 = vmatpush.bf16.msra.mxu2 %v10802_v3  ;;  %6975 = vmatpush.bf16.msra.mxu3 %v10930_v53  ;;  %v6169_v3 = vperm.slane %v12570_v55, 1  ;;  %v10790_v53 = vor.u32 %v11944_v59, %v10787_v62  ;;  %v11992_v59 = vld [vmem:[#allocation11 + $0x8] sm:$0xff] }
 0x3bf   :  { %v12000_v62 = vld [vmem:[#allocation11 + $0x48] sm:$0xff] }
 0x3c0   :  { %v6839_v21 = vpop.f32.mrf.mxu0 }
 0x3c1   :  { %v6840_v28 = vadd.f32 %v6839_v21, %v6168_v11  ;;  %v6852_v58 = vpop.f32.mrf.mxu1  ;;  %v11972_v11 = vld [vmem:[#allocation8 + $0x36c] sm:$0xf] }
 0x3c2   :  { %6963 = vmatpush.bf16.msra.mxu2 %v10786_v14  ;;  %6976 = vmatpush.bf16.msra.mxu3 %v10914_v61  ;;  %v10899_v14 = vld [vmem:[#allocation8 + $0x378] sm:$0xf0] }
 0x3c3   :  { %v12573_v5 = vadd.f32 %v6852_v58, %v6840_v28  ;;  %v10902_v34 = vor.u32 %v11972_v11, %v10899_v14  ;;  %v10755_v28 = vld [vmem:[#allocation8 + $0x258] sm:$0xf0]  ;;  %v11968_v58 = vld [vmem:[#allocation8 + $0x34c] sm:$0xf]  ;;  %v12013_v11 = vld [vmem:[#allocation11 + $0xb0] sm:$0xff] }
 0x3c4   :  { %v12021_v14 = vld [vmem:[#allocation11 + $0xf0] sm:$0xff] }
 0x3c5   :  { %6916 = vmatmul.bf16.vlgmr.msrb.gmra.mxu2 %v12564_v8  ;;  %6929 = vmatmul.bf16.vlgmr.msrb.gmra.mxu3 %v12566_v17 }
 0x3c6   :  { %6964 = vmatpush.bf16.msra.mxu2 %v10770_v31  ;;  %6977 = vmatpush.bf16.msra.mxu3 %v10898_v29  ;;  %v10883_v31 = vld [vmem:[#allocation8 + $0x358] sm:$0xf0]  ;;  %v10758_v29 = vor.u32 %v11936_v1, %v10755_v28 }
 0x3c7   :  { %v10886_v37 = vor.u32 %v11968_v58, %v10883_v31  ;;  %v12011_v31 = vld [vmem:[#allocation11 + $0xa0] sm:$0xff] }
 0x3c8   :  { %v6841_v18 = vpop.f32.mrf.mxu0 }
 0x3c9   :  { %v6854_v22 = vpop.f32.mrf.mxu1  ;;  %v10742_v18 = vor.u32 %v11932_v30, %v10739_v40  ;;  %v12010_v40 = vld [vmem:[#allocation11 + $0x98] sm:$0xff] }
 0x3ca   :  { %6965 = vmatpush.bf16.msra.mxu2 %v10754_v35  ;;  %6978 = vmatpush.bf16.msra.mxu3 %v10882_v43  ;;  %v11964_v35 = vld [vmem:[#allocation8 + $0x32c] sm:$0xf]  ;;  %v10867_v43 = vld [vmem:[#allocation8 + $0x338] sm:$0xf0] }
 0x3cb   :  { %v10870_v4 = vor.u32 %v11964_v35, %v10867_v43  ;;  %v11960_v22 = vld [vmem:[#allocation8 + $0x30c] sm:$0xf] }
 0x3ce   :  { %6966 = vmatpush.bf16.msra.mxu2 %v10738_v24  ;;  %6979 = vmatpush.bf16.msra.mxu3 %v10866_v12  ;;  %v10851_v24 = vld [vmem:[#allocation8 + $0x318] sm:$0xf0]  ;;  %v10726_v12 = vor.u32 %v11928_v46, %v10723_v47  ;;  %v12009_v47 = vld [vmem:[#allocation11 + $0x90] sm:$0xff] }
 0x3cf   :  { %v10854_v51 = vor.u32 %v11960_v22, %v10851_v24  ;;  %v12017_v22 = vld [vmem:[#allocation11 + $0xd0] sm:$0xff] }
 0x3d2   :  { %6967 = vmatpush.bf16.msra.mxu2 %v10722_v19  ;;  %6980 = vmatpush.bf16.msra.mxu3 %v10850_v60 }
 0x3d5   :  { %6968 = vmatmul.bf16.vlgmr.msra.gmra.mxu2 %v12564_v8  ;;  %6981 = vmatmul.bf16.vlgmr.msra.gmra.mxu3 %v12566_v17 }
 0x3d6   :  { %7012 = vmatpush.bf16.msrb.mxu2 %v10838_v36  ;;  %7025 = vmatpush.bf16.msrb.mxu3 %v10966_v45  ;;  %v6171_v36 = vperm.slane %v12570_v55, 3  ;;  %v11994_v55 = vld [vmem:[#allocation11 + $0x18] sm:$0xff] }
 0x3da   :  { %7013 = vmatpush.bf16.msrb.mxu2 %v10822_v54  ;;  %7026 = vmatpush.bf16.msrb.mxu3 %v10950_v52  ;;  %v12004_v54 = vld [vmem:[#allocation11 + $0x68] sm:$0xff] }
 0x3db   :  { %7337 = vmatpush.bf16.msra.mxu1 %v12004_v54 }
 0x3de   :  { %7014 = vmatpush.bf16.msrb.mxu2 %v10806_v44  ;;  %7027 = vmatpush.bf16.msrb.mxu3 %v10934_v15  ;;  %v11993_v44 = vld [vmem:[#allocation11 + $0x10] sm:$0xff] }
 0x3df   :  { %7338 = vmatpush.bf16.msra.mxu1 %v12003_v9  ;;  %v12001_v15 = vld [vmem:[#allocation11 + $0x50] sm:$0xff] }
 0x3e0   :  { %v6891_v6 = vpop.f32.mrf.mxu0 }
 0x3e1   :  { %v6892_v61 = vadd.f32 %v6891_v6, %v6169_v3  ;;  %v6904_v16 = vpop.f32.mrf.mxu1  ;;  %v12014_v6 = vld [vmem:[#allocation11 + $0xb8] sm:$0xff] }
 0x3e2   :  { %7015 = vmatpush.bf16.msrb.mxu2 %v10790_v53  ;;  %7028 = vmatpush.bf16.msrb.mxu3 %v10918_v13 }
 0x3e3   :  { %v12580_v21 = vadd.f32 %v6904_v16, %v6892_v61  ;;  %7339 = vmatpush.bf16.msra.mxu1 %v12002_v38  ;;  %v12012_v16 = vld [vmem:[#allocation11 + $0xa8] sm:$0xff] }
 0x3e6   :  { %7016 = vmatpush.bf16.msrb.mxu2 %v10774_v2  ;;  %7029 = vmatpush.bf16.msrb.mxu3 %v10902_v34  ;;  %v12020_v2 = vld [vmem:[#allocation11 + $0xe8] sm:$0xff] }
 0x3e7   :  { %7340 = vmatpush.bf16.msra.mxu1 %v12001_v15  ;;  %v12033_v15 = vld [vmem:[#allocation12] ss:$0 sm:$0xff] }
 0x3e8   :  { %v6893_v33 = vpop.f32.mrf.mxu0 }
 0x3e9   :  { %v6906_v41 = vpop.f32.mrf.mxu1 }
 0x3ea   :  { %7017 = vmatpush.bf16.msrb.mxu2 %v10758_v29  ;;  %7030 = vmatpush.bf16.msrb.mxu3 %v10886_v37  ;;  %v12019_v29 = vld [vmem:[#allocation11 + $0xe0] sm:$0xff] }
 0x3eb   :  { %7341 = vmatpush.bf16.msra.mxu1 %v12000_v62 }
 0x3ee   :  { %7018 = vmatpush.bf16.msrb.mxu2 %v10742_v18  ;;  %7031 = vmatpush.bf16.msrb.mxu3 %v10870_v4 }
 0x3ef   :  { %7342 = vmatpush.bf16.msra.mxu1 %v11999_v63 }
 0x3f2   :  { %7019 = vmatpush.bf16.msrb.mxu2 %v10726_v12  ;;  %7032 = vmatpush.bf16.msrb.mxu3 %v10854_v51  ;;  %v12008_v51 = vld [vmem:[#allocation11 + $0x88] sm:$0xff] }
 0x3f5   :  { %7020 = vmatmul.bf16.vlgmr.msrb.gmra.mxu2 %v12564_v8  ;;  %7033 = vmatmul.bf16.vlgmr.msrb.gmra.mxu3 %v12566_v17  ;;  %v11997_v17 = vld [vmem:[#allocation11 + $0x30] sm:$0xff] }
 0x3f6   :  { %7323 = vmatpush.bf16.msra.mxu0 %v11997_v17  ;;  %7348 = vmatpush.bf16.msra.mxu2 %v12014_v6 }
 0x3f7   :  { %7361 = vmatpush.bf16.msra.mxu3 %v12022_v7 }
 0x3fa   :  { %7324 = vmatpush.bf16.msra.mxu0 %v11996_v26  ;;  %7349 = vmatpush.bf16.msra.mxu2 %v12013_v11 }
 0x3fb   :  { %7362 = vmatpush.bf16.msra.mxu3 %v12021_v14 }
 0x3fe   :  { %7325 = vmatpush.bf16.msra.mxu0 %v11995_v57  ;;  %7350 = vmatpush.bf16.msra.mxu2 %v12012_v16 }
 0x3ff   :  { %7363 = vmatpush.bf16.msra.mxu3 %v12020_v2 }
 0x400   :  { %v6943_v48 = vpop.f32.mrf.mxu0 }
 0x401   :  { %v6944_v27 = vadd.f32 %v6943_v48, %v6170_v23  ;;  %v6956_v39 = vpop.f32.mrf.mxu1  ;;  %v12016_v23 = vld [vmem:[#allocation11 + $0xc8] sm:$0xff]  ;;  %v12007_v48 = vld [vmem:[#allocation11 + $0x80] sm:$0xff] }
 0x402   :  { %7326 = vmatpush.bf16.msra.mxu0 %v11994_v55  ;;  %7351 = vmatpush.bf16.msra.mxu2 %v12011_v31 }
 0x403   :  { %v12585_v32 = vadd.f32 %v6956_v39, %v6944_v27  ;;  %7364 = vmatpush.bf16.msra.mxu3 %v12019_v29  ;;  %v12015_v27 = vld [vmem:[#allocation11 + $0xc0] sm:$0xff] }
 0x406   :  { %7327 = vmatpush.bf16.msra.mxu0 %v11993_v44  ;;  %7352 = vmatpush.bf16.msra.mxu2 %v12010_v40 }
 0x408   :  { %v6945_v19 = vpop.f32.mrf.mxu0 }
 0x409   :  { %v6958_v60 = vpop.f32.mrf.mxu1 }
 0x40a   :  { %7328 = vmatpush.bf16.msra.mxu0 %v11992_v59  ;;  %7353 = vmatpush.bf16.msra.mxu2 %v12009_v47 }
 0x40e   :  { %7329 = vmatpush.bf16.msra.mxu0 %v11991_v0  ;;  %7354 = vmatpush.bf16.msra.mxu2 %v12008_v51 }
 0x412   :  { %7355 = vmatpush.bf16.msra.mxu2 %v12007_v48 }
 0x420   :  { %v6995_v45 = vpop.f32.mrf.mxu0 }
 0x421   :  { %v6996_v50 = vadd.f32 %v6995_v45, %v6171_v36  ;;  %v7008_v8 = vpop.f32.mrf.mxu1 }
 0x423   :  { %v12588_v20 = vadd.f32 %v7008_v8, %v6996_v50 }
 0x428   :  { %v6997_v52 = vpop.f32.mrf.mxu0 }
 0x429   :  { %v7010_v56 = vpop.f32.mrf.mxu1 }
 0x438   :  { %v6865_v3 = vpop.f32.mrf.mxu2  ;;  %v6878_v53 = vpop.f32.mrf.mxu3 }
 0x439   :  { %v6866_v61 = vadd.f32 %v6865_v3, %v12573_v5  ;;  %v12018_v5 = vld [vmem:[#allocation11 + $0xd8] sm:$0xff] }
 0x43a   :  { %7365 = vmatpush.bf16.msra.mxu3 %v12018_v5 }
 0x43b   :  { %v6879_v28 = vadd.f32 %v6878_v53, %v6866_v61 }
 0x43d   :  { %v7038_v30 = vmax.f32 %v6879_v28, 0.0 }
 0x43e   :  { %7366 = vmatpush.bf16.msra.mxu3 %v12017_v22 }
 0x440   :  { %v6867_v13 = vpop.f32.mrf.mxu2  ;;  %v6880_v42 = vpop.f32.mrf.mxu3 }
 0x442   :  { %7367 = vmatpush.bf16.msra.mxu3 %v12016_v23 }
 0x446   :  { %7368 = vmatpush.bf16.msra.mxu3 %v12015_v27 }
 0x448   :  { %v6917_v34 = vpop.f32.mrf.mxu2  ;;  %v6930_v1 = vpop.f32.mrf.mxu3 }
 0x449   :  { %v6918_v58 = vadd.f32 %v6917_v34, %v12580_v21 }
 0x44b   :  { %v6931_v37 = vadd.f32 %v6930_v1, %v6918_v58 }
 0x44d   :  { %v7039_v33 = vmax.f32 %v6931_v37, 0.0 }
 0x44f   :  { %v7042_v35 = vpack.c.bf16 %v7039_v33, %v7038_v30 }
 0x450   :  { %v6919_v43 = vpop.f32.mrf.mxu2  ;;  %v6932_v41 = vpop.f32.mrf.mxu3 }
 0x451   :  { %v7118_v18 = vunpack.c.l.b16 %v7042_v35  ;;  %v7119_v4 = vunpack.c.h.b16 %v7042_v35 }
 0x453   :  { %v7122_v46 = vpack.c.b16 %v7118_v18, %v7118_v18  ;;  %v7123_v21 = vpack.c.b16 %v7119_v4, %v7119_v4 }
 0x455   :  { %7330 = vmatmul.bf16.vlgmr.msra.gmra.mxu0 %v7122_v46  ;;  %7343 = vmatmul.bf16.vlgmr.msra.gmra.mxu1 %v7123_v21 }
 0x458   :  { %v6969_v24 = vpop.f32.mrf.mxu2  ;;  %v6982_v12 = vpop.f32.mrf.mxu3 }
 0x459   :  { %v6970_v25 = vadd.f32 %v6969_v24, %v12585_v32 }
 0x45b   :  { %v6983_v36 = vadd.f32 %v6982_v12, %v6970_v25 }
 0x45d   :  { %v7040_v8 = vmax.f32 %v6983_v36, 0.0 }
 0x460   :  { %v6971_v39 = vpop.f32.mrf.mxu2  ;;  %v6984_v49 = vpop.f32.mrf.mxu3 }
 0x478   :  { %v7021_v19 = vpop.f32.mrf.mxu2  ;;  %v7034_v60 = vpop.f32.mrf.mxu3 }
 0x479   :  { %v7022_v45 = vadd.f32 %v7021_v19, %v12588_v20 }
 0x47b   :  { %v7035_v50 = vadd.f32 %v7034_v60, %v7022_v45 }
 0x47d   :  { %v7041_v17 = vmax.f32 %v7035_v50, 0.0 }
 0x47f   :  { %v7043_v10 = vpack.c.bf16 %v7041_v17, %v7040_v8 }
 0x480   :  { %v7023_v26 = vpop.f32.mrf.mxu2  ;;  %v7036_v54 = vpop.f32.mrf.mxu3 }
 0x481   :  { %v7120_v52 = vunpack.c.l.b16 %v7043_v10  ;;  %v7121_v56 = vunpack.c.h.b16 %v7043_v10 }
 0x483   :  { %v7124_v57 = vpack.c.b16 %v7120_v52, %v7120_v52  ;;  %v7125_v9 = vpack.c.b16 %v7121_v56, %v7121_v56 }
 0x485   :  { %7356 = vmatmul.bf16.vlgmr.msra.gmra.mxu2 %v7124_v57  ;;  %7369 = vmatmul.bf16.vlgmr.msra.gmra.mxu3 %v7125_v9 }
 0x4d2   :  { %v7331_v55 = vpop.f32.mrf.mxu0  ;;  %v7344_v38 = vpop.f32.mrf.mxu1 }
 0x4d3   :  { %v7332_v59 = vadd.f32 %v12033_v15, %v7331_v55 }
 0x4d5   :  { %v7345_v62 = vadd.f32 %v7344_v38, %v7332_v59 }
 0x4da   :  { %v7333_v32 = vpop.f32.mrf.mxu0  ;;  %v7346_v44 = vpop.f32.mrf.mxu1 }
 0x508   :  { %v7357_v20 = vpop.f32.mrf.mxu2  ;;  %v7370_v0 = vpop.f32.mrf.mxu3 }
 0x509   :  { %v7358_v63 = vadd.f32 %v7357_v20, %v7345_v62 }
 0x50b   :  { %v7371_v3 = vadd.f32 %v7370_v0, %v7358_v63 }
 0x50d   :  { %7374 = vst [vmem:[%s12604_s7] sm:$0xff] %v7371_v3 }
 0x510   :  { %v7359_v53 = vpop.f32.mrf.mxu2  ;;  %v7372_v13 = vpop.f32.mrf.mxu3 }
 0x511   :  { %7379 = vsyncpa [#allocation5], 1 }
 0x512   :  { %7380 = vsyncpa [#allocation7], 1 }
 0x513   :  { %7381 = vsyncpa [#allocation10], 1 }
 0x514   :  { %7382 = vsyncpa [#allocation13], 1 }

</bundles_post_ra>
